<compile_context>
chip_gen: v6e
topology: v6e:2x2x1
jax: 0.10.0
libtpu: 0.0.40
codegen_flags: <defaults>
</compile_context>

<pallas_src>
import jax
import jax.numpy as jnp
from jax.experimental import pallas as pl
from jax.experimental.pallas import tpu as pltpu


LANE = 128


def _round_up(n, m):
    return ((n + m - 1) // m) * m


# ----------------------------------------------------------------------------
# Fused kernel: one grid step == one batch tile of B_tile images.
#   conv1 GEMM + ReLU -> conv2 (im2col staged) GEMM + residual + ReLU
#   -> global-avg-pool -> decoder GEMM
# ----------------------------------------------------------------------------
def _dual_resnet_fused_kernel(xcol_ref, w1_ref, b1_ref, w2_ref, b2_ref,
                              dw_ref, db_ref, feat_ref, rec_ref,
                              h1h_ref, h1f_ref, pat_ref):
    """
    xcol_ref: (BT, P, K1)        bf16  host-side conv1 im2col, K padded to 128
    w1_ref:   (K1, Cpad)         bf16  conv1 weights, one matrix
    b1_ref:   (1, Cpad)          f32
    w2_ref:   (9*Cpad, Cpad)     bf16  conv2 weights, (ky,kx,cin) stacked on K
    b2_ref:   (1, Cpad)          f32
    dw_ref:   (Cpad, Dout)       bf16  decoder weight
    db_ref:   (1, Dout)          f32
    feat_ref: (BT, 1, Cpad)      f32   GAP features (channel-padded)
    rec_ref:  (BT, 1, Dout)      f32   flat reconstruction
    h1h_ref:  (BT, H+2, W+2, Cpad) bf16  scratch: halo-padded conv1 output
    h1f_ref:  (BT*P, Cpad)       f32   scratch: f32 h1 for the residual add
    pat_ref:  (BT*P, 9*Cpad)     bf16  scratch: conv2 im2col staging
    """
    BT, P, K1 = xcol_ref.shape
    Cpad = b1_ref.shape[1]
    Hp, Wp = h1h_ref.shape[1], h1h_ref.shape[2]
    H, W = Hp - 2, Wp - 2
    M = BT * P

    # ---- conv1: single lane-dense GEMM, f32 accumulation ----
    lhs1 = xcol_ref[...].reshape(M, K1)                       # bf16
    h1 = jnp.maximum(
        jnp.dot(lhs1, w1_ref[...], preferred_element_type=jnp.float32)
        + b1_ref[...], 0.0)                                   # (M, Cpad) f32
    h1f_ref[...] = h1                                         # keep f32 copy for residual

    # ---- zero only the 1-pixel halo ring (interior fully overwritten below) ----
    zrow = jnp.zeros((BT, 1, Wp, Cpad), jnp.bfloat16)
    zcol = jnp.zeros((BT, H, 1, Cpad), jnp.bfloat16)
    h1h_ref[:, 0:1, :, :] = zrow
    h1h_ref[:, H + 1:H + 2, :, :] = zrow
    h1h_ref[:, 1:H + 1, 0:1, :] = zcol
    h1h_ref[:, 1:H + 1, W + 1:W + 2, :] = zcol

    # ---- stage h1 once as bf16 (single cast) with a zero halo for conv2 ----
    h1h_ref[:, 1:H + 1, 1:W + 1, :] = h1.astype(jnp.bfloat16).reshape(BT, H, W, Cpad)

    # ---- conv2 im2col staging: 9 shifted windows -> (M, 9*Cpad) bf16,
    #      lane-aligned 128-wide column blocks ----
    for t in range(9):
        dy, dx = t // 3, t % 3
        pat_ref[:, t * Cpad:(t + 1) * Cpad] = (
            h1h_ref[:, dy:dy + H, dx:dx + W, :].reshape(M, Cpad))

    # ---- conv2 as ONE long-K GEMM (K = 9*Cpad) + residual + ReLU ----
    h2 = jnp.maximum(
        jnp.dot(pat_ref[...], w2_ref[...], preferred_element_type=jnp.float32)
        + b2_ref[...] + h1f_ref[...], 0.0)                    # (M, Cpad) f32

    # ---- global average pool per image ----
    feat = jnp.sum(h2.reshape(BT, P, Cpad), axis=1) * (1.0 / P)   # (BT, Cpad) f32
    feat_ref[...] = feat.reshape(BT, 1, Cpad)

    # ---- decoder GEMM (BT, Cpad) x (Cpad, Dout), fused epilogue ----
    rec = jnp.dot(feat.astype(jnp.bfloat16), dw_ref[...],
                  preferred_element_type=jnp.float32) + db_ref[...]
    rec_ref[...] = rec.reshape(BT, 1, -1)


# ----------------------------------------------------------------------------
# Parameter init (PyTorch layouts) and one-time packing (hoisted out of forward)
# ----------------------------------------------------------------------------
def init_params(key, cin, ch, h, w):
    ks = jax.random.split(key, 6)
    scale = 0.1
    return {
        "conv1_w": scale * jax.random.normal(ks[0], (ch, cin, 3, 3), jnp.float32),
        "conv1_b": scale * jax.random.normal(ks[1], (ch,), jnp.float32),
        "conv2_w": scale * jax.random.normal(ks[2], (ch, ch, 3, 3), jnp.float32),
        "conv2_b": scale * jax.random.normal(ks[3], (ch,), jnp.float32),
        "dec_w":   scale * jax.random.normal(ks[4], (ch, cin * h * w), jnp.float32),
        "dec_b":   scale * jax.random.normal(ks[5], (cin * h * w,), jnp.float32),
        # present in the PyTorch module but unused by forward():
        "adaptive_weights": jnp.zeros((3,), jnp.float32),
    }


def pack_params(params, cpad, k1pad):
    """One-time repack: fused-GEMM conv weights, channel/K zero-padding, bf16."""
    cout1, cin1, _, _ = params["conv1_w"].shape
    # conv1: (cout, cin, 3, 3) -> (ky, kx, cin, cout) -> (9*cin, cout) -> pad K & N
    w1 = jnp.transpose(params["conv1_w"], (2, 3, 1, 0)).reshape(9 * cin1, cout1)
    w1 = jnp.pad(w1, ((0, k1pad - 9 * cin1), (0, cpad - cout1))).astype(jnp.bfloat16)

    cout2, cin2, _, _ = params["conv2_w"].shape
    # conv2: (cout, cin, 3, 3) -> (ky, kx, cin, cout) -> pad cin/cout to Cpad
    #        -> (9*Cpad, Cpad)  (matches the im2col staging layout in-kernel)
    w2 = jnp.transpose(params["conv2_w"], (2, 3, 1, 0))
    w2 = jnp.pad(w2, ((0, 0), (0, 0), (0, cpad - cin2), (0, cpad - cout2)))
    w2 = w2.reshape(9 * cpad, cpad).astype(jnp.bfloat16)

    b1 = jnp.pad(params["conv1_b"], (0, cpad - cout1))[None, :].astype(jnp.float32)
    b2 = jnp.pad(params["conv2_b"], (0, cpad - cout2))[None, :].astype(jnp.float32)

    ch, _ = params["dec_w"].shape
    dw = jnp.pad(params["dec_w"], ((0, cpad - ch), (0, 0))).astype(jnp.bfloat16)
    db = params["dec_b"][None, :].astype(jnp.float32)
    return {"w1": w1, "b1": b1, "w2": w2, "b2": b2, "dw": dw, "db": db}


# ----------------------------------------------------------------------------
# Forward
# ----------------------------------------------------------------------------
def dual_resnet_forward(packed, x_nchw, ch, b_tile=None):
    B, Cin, H, W = x_nchw.shape
    P = H * W
    cpad = packed["b1"].shape[1]
    dout = packed["db"].shape[1]
    k1pad = packed["w1"].shape[0]
    if b_tile is None:
        b_tile = min(B, 8)
    assert B % b_tile == 0, "batch must be divisible by the batch tile"

    # Host-side prep: conv1 im2col (tiny: P*9*Cin elems/image), bf16, K padded
    # to a lane-dense 128 so the conv1 GEMM is (B_tile*P, 128) x (128, Cpad).
    x_nhwc = jnp.transpose(x_nchw, (0, 2, 3, 1)).astype(jnp.float32)
    xp = jnp.pad(x_nhwc, ((0, 0), (1, 1), (1, 1), (0, 0)))
    cols = [xp[:, dy:dy + H, dx:dx + W, :] for dy in range(3) for dx in range(3)]
    xcol = jnp.concatenate(cols, axis=-1).reshape(B, P, 9 * Cin)
    xcol = jnp.pad(xcol, ((0, 0), (0, 0), (0, k1pad - 9 * Cin))).astype(jnp.bfloat16)

    feat_pad, rec_flat = pl.pallas_call(
        _dual_resnet_fused_kernel,
        out_shape=[jax.ShapeDtypeStruct((B, 1, cpad), jnp.float32),
                   jax.ShapeDtypeStruct((B, 1, dout), jnp.float32)],
        grid=(B // b_tile,),
        in_specs=[
            pl.BlockSpec((b_tile, P, k1pad), lambda b: (b, 0, 0)),   # conv1 im2col
            pl.BlockSpec((k1pad, cpad),      lambda b: (0, 0)),      # w1
            pl.BlockSpec((1, cpad),          lambda b: (0, 0)),      # b1
            pl.BlockSpec((9 * cpad, cpad),   lambda b: (0, 0)),      # w2 (fused K)
            pl.BlockSpec((1, cpad),          lambda b: (0, 0)),      # b2
            pl.BlockSpec((cpad, dout),       lambda b: (0, 0)),      # dec_w
            pl.BlockSpec((1, dout),          lambda b: (0, 0)),      # dec_b
        ],
        out_specs=[
            pl.BlockSpec((b_tile, 1, cpad), lambda b: (b, 0, 0)),    # features
            pl.BlockSpec((b_tile, 1, dout), lambda b: (b, 0, 0)),    # recon flat
        ],
        scratch_shapes=[
            pltpu.VMEM((b_tile, H + 2, W + 2, cpad), jnp.bfloat16),  # h1 + halo (bf16)
            pltpu.VMEM((b_tile * P, cpad), jnp.float32),             # h1 f32 (residual)
            pltpu.VMEM((b_tile * P, 9 * cpad), jnp.bfloat16),        # conv2 im2col
        ],
        compiler_params=pltpu.CompilerParams(
            dimension_semantics=("parallel",)),
    )(xcol, packed["w1"], packed["b1"], packed["w2"], packed["b2"],
      packed["dw"], packed["db"])

    features = feat_pad[:, 0, :ch]                                    # (B, Ch)
    reconstructed = rec_flat[:, 0, :].reshape(B, Cin, H, W)           # NCHW
    # DualResNet.forward returns (features, features, reconstructed)
    return features, features, reconstructed


# ----------------------------------------------------------------------------
# Pure-JAX f32 reference for the numerical check
# ----------------------------------------------------------------------------
def _reference_forward(params, x_nchw):
    B, Cin, H, W = x_nchw.shape
    x = jnp.transpose(x_nchw, (0, 2, 3, 1))

    def conv3x3(xin, w_oikk, b):
        cout, cin, k, _ = w_oikk.shape
        xp = jnp.pad(xin, ((0, 0), (1, 1), (1, 1), (0, 0)))
        cols = [xp[:, dy:dy + H, dx:dx + W, :]
                for dy in range(3) for dx in range(3)]
        p = jnp.concatenate(cols, axis=-1)                      # (B,H,W,9*cin)
        wm = jnp.transpose(w_oikk, (2, 3, 1, 0)).reshape(k * k * cin, cout)
        return jnp.einsum("bhwk,kc->bhwc", p, wm) + b

    h1 = jax.nn.relu(conv3x3(x, params["conv1_w"], params["conv1_b"]))
    h2 = jax.nn.relu(conv3x3(h1, params["conv2_w"], params["conv2_b"]) + h1)
    feats = jnp.mean(h2, axis=(1, 2))
    rec = feats @ params["dec_w"] + params["dec_b"]
    return feats, rec.reshape(B, Cin, H, W)


if __name__ == "__main__":
    key = jax.random.PRNGKey(0)
    k_x, k_p = jax.random.split(key)

    B, Cin, H, W = 2, 4, 16, 16
    Ch = 32
    cpad = _round_up(Ch, LANE)           # 128: lane-dense MXU N, no extra padding
    k1pad = _round_up(9 * Cin, LANE)     # 128: lane-dense conv1 GEMM K

    x = jax.random.normal(k_x, (B, Cin, H, W), jnp.float32)
    params = init_params(k_p, Cin, Ch, H, W)
    packed = pack_params(params, cpad, k1pad)   # one-time weight repack (hoisted)

    fwd = jax.jit(lambda p, xx: dual_resnet_forward(p, xx, Ch))
    feats, feats2, recon = fwd(packed, x)
    jax.block_until_ready((feats, feats2, recon))

    assert feats.shape == (B, Ch)
    assert feats2.shape == (B, Ch)
    assert recon.shape == (B, Cin, H, W)

    # Check vs f32 reference (kernel uses bf16 MXU operands, f32 accumulation).
    ref_feats, ref_recon = _reference_forward(params, x)
    assert bool(jnp.allclose(feats, ref_feats, atol=5e-2, rtol=5e-2))
    assert bool(jnp.allclose(recon, ref_recon, atol=5e-2, rtol=5e-2))

    print("KERNEL_OK")
</pallas_src>

<mosaic_0001>
module attributes {stable_mosaic.version = 11 : i64} {
  func.func @_dual_resnet_fused_kernel(%arg0: i32, %arg1: memref<2x256x128xbf16, #tpu.memory_space<vmem>>, %arg2: memref<128x128xbf16, #tpu.memory_space<vmem>>, %arg3: memref<1x128xf32, #tpu.memory_space<vmem>>, %arg4: memref<1152x128xbf16, #tpu.memory_space<vmem>>, %arg5: memref<1x128xf32, #tpu.memory_space<vmem>>, %arg6: memref<128x1024xbf16, #tpu.memory_space<vmem>>, %arg7: memref<1x1024xf32, #tpu.memory_space<vmem>>, %arg8: memref<2x1x128xf32, #tpu.memory_space<vmem>>, %arg9: memref<2x1x1024xf32, #tpu.memory_space<vmem>>, %arg10: memref<2x18x18x128xbf16, #tpu.memory_space<vmem>>, %arg11: memref<512x128xf32, #tpu.memory_space<vmem>>, %arg12: memref<512x1152xbf16, #tpu.memory_space<vmem>>) attributes {dimension_semantics = [#tpu.dimension_semantics<parallel>], iteration_bounds = array<i64: 1>, scalar_prefetch = 0 : i64, scratch_operands = 3 : i64, tpu.core_type = #tpu.core_type<tc>, window_params = [{transform_indices = @transform_0, window_bounds = array<i64: 2, 256, 128>}, {pipeline_mode = #tpu.pipeline_mode<synchronous>, transform_indices = @transform_1, window_bounds = array<i64: 128, 128>}, {pipeline_mode = #tpu.pipeline_mode<synchronous>, transform_indices = @transform_2, window_bounds = array<i64: 1, 128>}, {pipeline_mode = #tpu.pipeline_mode<synchronous>, transform_indices = @transform_3, window_bounds = array<i64: 1152, 128>}, {pipeline_mode = #tpu.pipeline_mode<synchronous>, transform_indices = @transform_4, window_bounds = array<i64: 1, 128>}, {pipeline_mode = #tpu.pipeline_mode<synchronous>, transform_indices = @transform_5, window_bounds = array<i64: 128, 1024>}, {pipeline_mode = #tpu.pipeline_mode<synchronous>, transform_indices = @transform_6, window_bounds = array<i64: 1, 1024>}, {transform_indices = @transform_7, window_bounds = array<i64: 2, 1, 128>}, {transform_indices = @transform_8, window_bounds = array<i64: 2, 1, 1024>}]} {
    %c0 = arith.constant 0 : index
    %c0_0 = arith.constant 0 : index
    %c0_1 = arith.constant 0 : index
    %0 = vector.load %arg1[%c0, %c0_0, %c0_1] : memref<2x256x128xbf16, #tpu.memory_space<vmem>>, vector<2x256x128xbf16>
    %1 = vector.shape_cast %0 : vector<2x256x128xbf16> to vector<512x128xbf16>
    %c0_2 = arith.constant 0 : index
    %c0_3 = arith.constant 0 : index
    %2 = vector.load %arg2[%c0_2, %c0_3] : memref<128x128xbf16, #tpu.memory_space<vmem>>, vector<128x128xbf16>
    %cst = arith.constant dense<0.000000e+00> : vector<512x128xf32>
    %3 = tpu.matmul %1, %2, %cst {dimension_numbers = #tpu.dot_dimension_numbers<[1], [0], [0], [1], [0, 0, 1, 1], [], []>} : vector<512x128xbf16>, vector<128x128xbf16>, vector<512x128xf32> -> vector<512x128xf32>
    %c0_4 = arith.constant 0 : index
    %c0_5 = arith.constant 0 : index
    %4 = vector.load %arg3[%c0_4, %c0_5] : memref<1x128xf32, #tpu.memory_space<vmem>>, vector<1x128xf32>
    %5 = vector.broadcast %4 : vector<1x128xf32> to vector<512x128xf32>
    %6 = arith.addf %3, %5 : vector<512x128xf32>
    %cst_6 = arith.constant 0.000000e+00 : f32
    %7 = vector.broadcast %cst_6 : f32 to vector<512x128xf32>
    %8 = arith.maximumf %6, %7 : vector<512x128xf32>
    %c0_7 = arith.constant 0 : index
    %c0_8 = arith.constant 0 : index
    %9 = vector.load %arg11[%c0_7, %c0_8] : memref<512x128xf32, #tpu.memory_space<vmem>>, vector<512x128xf32>
    tpu.vector_store %arg11[%c0_7, %c0_8], %8 {strides = array<i32>} : memref<512x128xf32, #tpu.memory_space<vmem>>, vector<512x128xf32>,
    %cst_9 = arith.constant 0.000000e+00 : bf16
    %10 = vector.broadcast %cst_9 : bf16 to vector<2x1x18x128xbf16>
    %cst_10 = arith.constant 0.000000e+00 : bf16
    %11 = vector.broadcast %cst_10 : bf16 to vector<2x16x1x128xbf16>
    %c0_11 = arith.constant 0 : index
    %c0_12 = arith.constant 0 : index
    %c0_13 = arith.constant 0 : index
    %c0_14 = arith.constant 0 : index
    %12 = vector.load %arg10[%c0_11, %c0_12, %c0_13, %c0_14] : memref<2x18x18x128xbf16, #tpu.memory_space<vmem>>, vector<2x1x18x128xbf16>
    tpu.vector_store %arg10[%c0_11, %c0_12, %c0_13, %c0_14], %10 {strides = array<i32>} : memref<2x18x18x128xbf16, #tpu.memory_space<vmem>>, vector<2x1x18x128xbf16>,
    %c0_15 = arith.constant 0 : index
    %c17 = arith.constant 17 : index
    %c0_16 = arith.constant 0 : index
    %c0_17 = arith.constant 0 : index
    %13 = vector.load %arg10[%c0_15, %c17, %c0_16, %c0_17] : memref<2x18x18x128xbf16, #tpu.memory_space<vmem>>, vector<2x1x18x128xbf16>
    tpu.vector_store %arg10[%c0_15, %c17, %c0_16, %c0_17], %10 {strides = array<i32>} : memref<2x18x18x128xbf16, #tpu.memory_space<vmem>>, vector<2x1x18x128xbf16>,
    %c0_18 = arith.constant 0 : index
    %c1 = arith.constant 1 : index
    %c0_19 = arith.constant 0 : index
    %c0_20 = arith.constant 0 : index
    %14 = vector.load %arg10[%c0_18, %c1, %c0_19, %c0_20] : memref<2x18x18x128xbf16, #tpu.memory_space<vmem>>, vector<2x16x1x128xbf16>
    tpu.vector_store %arg10[%c0_18, %c1, %c0_19, %c0_20], %11 {strides = array<i32>} : memref<2x18x18x128xbf16, #tpu.memory_space<vmem>>, vector<2x16x1x128xbf16>,
    %c0_21 = arith.constant 0 : index
    %c1_22 = arith.constant 1 : index
    %c17_23 = arith.constant 17 : index
    %c0_24 = arith.constant 0 : index
    %15 = vector.load %arg10[%c0_21, %c1_22, %c17_23, %c0_24] : memref<2x18x18x128xbf16, #tpu.memory_space<vmem>>, vector<2x16x1x128xbf16>
    tpu.vector_store %arg10[%c0_21, %c1_22, %c17_23, %c0_24], %11 {strides = array<i32>} : memref<2x18x18x128xbf16, #tpu.memory_space<vmem>>, vector<2x16x1x128xbf16>,
    %16 = arith.truncf %8 : vector<512x128xf32> to vector<512x128xbf16>
    %17 = vector.shape_cast %16 : vector<512x128xbf16> to vector<2x16x16x128xbf16>
    %c0_25 = arith.constant 0 : index
    %c1_26 = arith.constant 1 : index
    %c1_27 = arith.constant 1 : index
    %c0_28 = arith.constant 0 : index
    %18 = vector.load %arg10[%c0_25, %c1_26, %c1_27, %c0_28] : memref<2x18x18x128xbf16, #tpu.memory_space<vmem>>, vector<2x16x16x128xbf16>
    tpu.vector_store %arg10[%c0_25, %c1_26, %c1_27, %c0_28], %17 {strides = array<i32>} : memref<2x18x18x128xbf16, #tpu.memory_space<vmem>>, vector<2x16x16x128xbf16>,
    %c0_29 = arith.constant 0 : index
    %c0_30 = arith.constant 0 : index
    %c0_31 = arith.constant 0 : index
    %c0_32 = arith.constant 0 : index
    %19 = vector.load %arg10[%c0_29, %c0_30, %c0_31, %c0_32] : memref<2x18x18x128xbf16, #tpu.memory_space<vmem>>, vector<2x16x16x128xbf16>
    %20 = vector.shape_cast %19 : vector<2x16x16x128xbf16> to vector<512x128xbf16>
    %c0_33 = arith.constant 0 : index
    %c0_34 = arith.constant 0 : index
    %21 = vector.load %arg12[%c0_33, %c0_34] : memref<512x1152xbf16, #tpu.memory_space<vmem>>, vector<512x128xbf16>
    tpu.vector_store %arg12[%c0_33, %c0_34], %20 {strides = array<i32>} : memref<512x1152xbf16, #tpu.memory_space<vmem>>, vector<512x128xbf16>,
    %c0_35 = arith.constant 0 : index
    %c0_36 = arith.constant 0 : index
    %c1_37 = arith.constant 1 : index
    %c0_38 = arith.constant 0 : index
    %22 = vector.load %arg10[%c0_35, %c0_36, %c1_37, %c0_38] : memref<2x18x18x128xbf16, #tpu.memory_space<vmem>>, vector<2x16x16x128xbf16>
    %23 = vector.shape_cast %22 : vector<2x16x16x128xbf16> to vector<512x128xbf16>
    %c0_39 = arith.constant 0 : index
    %c128 = arith.constant 128 : index
    %24 = vector.load %arg12[%c0_39, %c128] : memref<512x1152xbf16, #tpu.memory_space<vmem>>, vector<512x128xbf16>
    tpu.vector_store %arg12[%c0_39, %c128], %23 {strides = array<i32>} : memref<512x1152xbf16, #tpu.memory_space<vmem>>, vector<512x128xbf16>,
    %c0_40 = arith.constant 0 : index
    %c0_41 = arith.constant 0 : index
    %c2 = arith.constant 2 : index
    %c0_42 = arith.constant 0 : index
    %25 = vector.load %arg10[%c0_40, %c0_41, %c2, %c0_42] : memref<2x18x18x128xbf16, #tpu.memory_space<vmem>>, vector<2x16x16x128xbf16>
    %26 = vector.shape_cast %25 : vector<2x16x16x128xbf16> to vector<512x128xbf16>
    %c0_43 = arith.constant 0 : index
    %c256 = arith.constant 256 : index
    %27 = vector.load %arg12[%c0_43, %c256] : memref<512x1152xbf16, #tpu.memory_space<vmem>>, vector<512x128xbf16>
    tpu.vector_store %arg12[%c0_43, %c256], %26 {strides = array<i32>} : memref<512x1152xbf16, #tpu.memory_space<vmem>>, vector<512x128xbf16>,
    %c0_44 = arith.constant 0 : index
    %c1_45 = arith.constant 1 : index
    %c0_46 = arith.constant 0 : index
    %c0_47 = arith.constant 0 : index
    %28 = vector.load %arg10[%c0_44, %c1_45, %c0_46, %c0_47] : memref<2x18x18x128xbf16, #tpu.memory_space<vmem>>, vector<2x16x16x128xbf16>
    %29 = vector.shape_cast %28 : vector<2x16x16x128xbf16> to vector<512x128xbf16>
    %c0_48 = arith.constant 0 : index
    %c384 = arith.constant 384 : index
    %30 = vector.load %arg12[%c0_48, %c384] : memref<512x1152xbf16, #tpu.memory_space<vmem>>, vector<512x128xbf16>
    tpu.vector_store %arg12[%c0_48, %c384], %29 {strides = array<i32>} : memref<512x1152xbf16, #tpu.memory_space<vmem>>, vector<512x128xbf16>,
    %c0_49 = arith.constant 0 : index
    %c1_50 = arith.constant 1 : index
    %c1_51 = arith.constant 1 : index
    %c0_52 = arith.constant 0 : index
    %31 = vector.load %arg10[%c0_49, %c1_50, %c1_51, %c0_52] : memref<2x18x18x128xbf16, #tpu.memory_space<vmem>>, vector<2x16x16x128xbf16>
    %32 = vector.shape_cast %31 : vector<2x16x16x128xbf16> to vector<512x128xbf16>
    %c0_53 = arith.constant 0 : index
    %c512 = arith.constant 512 : index
    %33 = vector.load %arg12[%c0_53, %c512] : memref<512x1152xbf16, #tpu.memory_space<vmem>>, vector<512x128xbf16>
    tpu.vector_store %arg12[%c0_53, %c512], %32 {strides = array<i32>} : memref<512x1152xbf16, #tpu.memory_space<vmem>>, vector<512x128xbf16>,
    %c0_54 = arith.constant 0 : index
    %c1_55 = arith.constant 1 : index
    %c2_56 = arith.constant 2 : index
    %c0_57 = arith.constant 0 : index
    %34 = vector.load %arg10[%c0_54, %c1_55, %c2_56, %c0_57] : memref<2x18x18x128xbf16, #tpu.memory_space<vmem>>, vector<2x16x16x128xbf16>
    %35 = vector.shape_cast %34 : vector<2x16x16x128xbf16> to vector<512x128xbf16>
    %c0_58 = arith.constant 0 : index
    %c640 = arith.constant 640 : index
    %36 = vector.load %arg12[%c0_58, %c640] : memref<512x1152xbf16, #tpu.memory_space<vmem>>, vector<512x128xbf16>
    tpu.vector_store %arg12[%c0_58, %c640], %35 {strides = array<i32>} : memref<512x1152xbf16, #tpu.memory_space<vmem>>, vector<512x128xbf16>,
    %c0_59 = arith.constant 0 : index
    %c2_60 = arith.constant 2 : index
    %c0_61 = arith.constant 0 : index
    %c0_62 = arith.constant 0 : index
    %37 = vector.load %arg10[%c0_59, %c2_60, %c0_61, %c0_62] : memref<2x18x18x128xbf16, #tpu.memory_space<vmem>>, vector<2x16x16x128xbf16>
    %38 = vector.shape_cast %37 : vector<2x16x16x128xbf16> to vector<512x128xbf16>
    %c0_63 = arith.constant 0 : index
    %c768 = arith.constant 768 : index
    %39 = vector.load %arg12[%c0_63, %c768] : memref<512x1152xbf16, #tpu.memory_space<vmem>>, vector<512x128xbf16>
    tpu.vector_store %arg12[%c0_63, %c768], %38 {strides = array<i32>} : memref<512x1152xbf16, #tpu.memory_space<vmem>>, vector<512x128xbf16>,
    %c0_64 = arith.constant 0 : index
    %c2_65 = arith.constant 2 : index
    %c1_66 = arith.constant 1 : index
    %c0_67 = arith.constant 0 : index
    %40 = vector.load %arg10[%c0_64, %c2_65, %c1_66, %c0_67] : memref<2x18x18x128xbf16, #tpu.memory_space<vmem>>, vector<2x16x16x128xbf16>
    %41 = vector.shape_cast %40 : vector<2x16x16x128xbf16> to vector<512x128xbf16>
    %c0_68 = arith.constant 0 : index
    %c896 = arith.constant 896 : index
    %42 = vector.load %arg12[%c0_68, %c896] : memref<512x1152xbf16, #tpu.memory_space<vmem>>, vector<512x128xbf16>
    tpu.vector_store %arg12[%c0_68, %c896], %41 {strides = array<i32>} : memref<512x1152xbf16, #tpu.memory_space<vmem>>, vector<512x128xbf16>,
    %c0_69 = arith.constant 0 : index
    %c2_70 = arith.constant 2 : index
    %c2_71 = arith.constant 2 : index
    %c0_72 = arith.constant 0 : index
    %43 = vector.load %arg10[%c0_69, %c2_70, %c2_71, %c0_72] : memref<2x18x18x128xbf16, #tpu.memory_space<vmem>>, vector<2x16x16x128xbf16>
    %44 = vector.shape_cast %43 : vector<2x16x16x128xbf16> to vector<512x128xbf16>
    %c0_73 = arith.constant 0 : index
    %c1024 = arith.constant 1024 : index
    %45 = vector.load %arg12[%c0_73, %c1024] : memref<512x1152xbf16, #tpu.memory_space<vmem>>, vector<512x128xbf16>
    tpu.vector_store %arg12[%c0_73, %c1024], %44 {strides = array<i32>} : memref<512x1152xbf16, #tpu.memory_space<vmem>>, vector<512x128xbf16>,
    %c0_74 = arith.constant 0 : index
    %c0_75 = arith.constant 0 : index
    %46 = vector.load %arg12[%c0_74, %c0_75] : memref<512x1152xbf16, #tpu.memory_space<vmem>>, vector<512x1152xbf16>
    %c0_76 = arith.constant 0 : index
    %c0_77 = arith.constant 0 : index
    %47 = vector.load %arg4[%c0_76, %c0_77] : memref<1152x128xbf16, #tpu.memory_space<vmem>>, vector<1152x128xbf16>
    %cst_78 = arith.constant dense<0.000000e+00> : vector<512x128xf32>
    %48 = tpu.matmul %46, %47, %cst_78 {dimension_numbers = #tpu.dot_dimension_numbers<[1], [0], [0], [1], [0, 0, 1, 1], [], []>} : vector<512x1152xbf16>, vector<1152x128xbf16>, vector<512x128xf32> -> vector<512x128xf32>
    %c0_79 = arith.constant 0 : index
    %c0_80 = arith.constant 0 : index
    %49 = vector.load %arg5[%c0_79, %c0_80] : memref<1x128xf32, #tpu.memory_space<vmem>>, vector<1x128xf32>
    %50 = vector.broadcast %49 : vector<1x128xf32> to vector<512x128xf32>
    %51 = arith.addf %48, %50 : vector<512x128xf32>
    %c0_81 = arith.constant 0 : index
    %c0_82 = arith.constant 0 : index
    %52 = vector.load %arg11[%c0_81, %c0_82] : memref<512x128xf32, #tpu.memory_space<vmem>>, vector<512x128xf32>
    %53 = arith.addf %51, %52 : vector<512x128xf32>
    %cst_83 = arith.constant 0.000000e+00 : f32
    %54 = vector.broadcast %cst_83 : f32 to vector<512x128xf32>
    %55 = arith.maximumf %53, %54 : vector<512x128xf32>
    %56 = vector.shape_cast %55 : vector<512x128xf32> to vector<2x256x128xf32>
    %cst_84 = arith.constant dense<0.000000e+00> : vector<2x128xf32>
    %57 = vector.multi_reduction <add>, %56, %cst_84 [1] : vector<2x256x128xf32> to vector<2x128xf32>
    %cst_85 = arith.constant 3.906250e-03 : f32
    %58 = vector.broadcast %cst_85 : f32 to vector<2x128xf32>
    %59 = arith.mulf %57, %58 : vector<2x128xf32>
    %60 = vector.shape_cast %59 : vector<2x128xf32> to vector<2x1x128xf32>
    %c0_86 = arith.constant 0 : index
    %c0_87 = arith.constant 0 : index
    %c0_88 = arith.constant 0 : index
    %61 = vector.load %arg8[%c0_86, %c0_87, %c0_88] : memref<2x1x128xf32, #tpu.memory_space<vmem>>, vector<2x1x128xf32>
    tpu.vector_store %arg8[%c0_86, %c0_87, %c0_88], %60 {strides = array<i32>} : memref<2x1x128xf32, #tpu.memory_space<vmem>>, vector<2x1x128xf32>,
    %62 = arith.truncf %59 : vector<2x128xf32> to vector<2x128xbf16>
    %c0_89 = arith.constant 0 : index
    %c0_90 = arith.constant 0 : index
    %63 = vector.load %arg6[%c0_89, %c0_90] : memref<128x1024xbf16, #tpu.memory_space<vmem>>, vector<128x1024xbf16>
    %cst_91 = arith.constant dense<0.000000e+00> : vector<2x1024xf32>
    %64 = tpu.matmul %62, %63, %cst_91 {dimension_numbers = #tpu.dot_dimension_numbers<[1], [0], [0], [1], [0, 0, 1, 1], [], []>} : vector<2x128xbf16>, vector<128x1024xbf16>, vector<2x1024xf32> -> vector<2x1024xf32>
    %c0_92 = arith.constant 0 : index
    %c0_93 = arith.constant 0 : index
    %65 = vector.load %arg7[%c0_92, %c0_93] : memref<1x1024xf32, #tpu.memory_space<vmem>>, vector<1x1024xf32>
    %66 = vector.broadcast %65 : vector<1x1024xf32> to vector<2x1024xf32>
    %67 = arith.addf %64, %66 : vector<2x1024xf32>
    %68 = vector.shape_cast %67 : vector<2x1024xf32> to vector<2x1x1024xf32>
    %c0_94 = arith.constant 0 : index
    %c0_95 = arith.constant 0 : index
    %c0_96 = arith.constant 0 : index
    %69 = vector.load %arg9[%c0_94, %c0_95, %c0_96] : memref<2x1x1024xf32, #tpu.memory_space<vmem>>, vector<2x1x1024xf32>
    tpu.vector_store %arg9[%c0_94, %c0_95, %c0_96], %68 {strides = array<i32>} : memref<2x1x1024xf32, #tpu.memory_space<vmem>>, vector<2x1x1024xf32>,
    return
  }
  func.func @transform_0(%arg0: i32) -> (i32, i32, i32) {
    %c0_i32 = arith.constant 0 : i32
    %c0_i32_0 = arith.constant 0 : i32
    %c0_i32_1 = arith.constant 0 : i32
    return %arg0, %c0_i32, %c0_i32_0 : i32, i32, i32
  }
  func.func @transform_1(%arg0: i32) -> (i32, i32) {
    %c0_i32 = arith.constant 0 : i32
    %c0_i32_0 = arith.constant 0 : i32
    %c0_i32_1 = arith.constant 0 : i32
    return %c0_i32, %c0_i32_0 : i32, i32
  }
  func.func @transform_2(%arg0: i32) -> (i32, i32) {
    %c0_i32 = arith.constant 0 : i32
    %c0_i32_0 = arith.constant 0 : i32
    %c0_i32_1 = arith.constant 0 : i32
    return %c0_i32, %c0_i32_0 : i32, i32
  }
  func.func @transform_3(%arg0: i32) -> (i32, i32) {
    %c0_i32 = arith.constant 0 : i32
    %c0_i32_0 = arith.constant 0 : i32
    %c0_i32_1 = arith.constant 0 : i32
    return %c0_i32, %c0_i32_0 : i32, i32
  }
  func.func @transform_4(%arg0: i32) -> (i32, i32) {
    %c0_i32 = arith.constant 0 : i32
    %c0_i32_0 = arith.constant 0 : i32
    %c0_i32_1 = arith.constant 0 : i32
    return %c0_i32, %c0_i32_0 : i32, i32
  }
  func.func @transform_5(%arg0: i32) -> (i32, i32) {
    %c0_i32 = arith.constant 0 : i32
    %c0_i32_0 = arith.constant 0 : i32
    %c0_i32_1 = arith.constant 0 : i32
    return %c0_i32, %c0_i32_0 : i32, i32
  }
  func.func @transform_6(%arg0: i32) -> (i32, i32) {
    %c0_i32 = arith.constant 0 : i32
    %c0_i32_0 = arith.constant 0 : i32
    %c0_i32_1 = arith.constant 0 : i32
    return %c0_i32, %c0_i32_0 : i32, i32
  }
  func.func @transform_7(%arg0: i32) -> (i32, i32, i32) {
    %c0_i32 = arith.constant 0 : i32
    %c0_i32_0 = arith.constant 0 : i32
    %c0_i32_1 = arith.constant 0 : i32
    return %arg0, %c0_i32, %c0_i32_0 : i32, i32, i32
  }
  func.func @transform_8(%arg0: i32) -> (i32, i32, i32) {
    %c0_i32 = arith.constant 0 : i32
    %c0_i32_0 = arith.constant 0 : i32
    %c0_i32_1 = arith.constant 0 : i32
    return %arg0, %c0_i32, %c0_i32_0 : i32, i32, i32
  }
}

</mosaic_0001>

<bundles_post_ra>
// kernel: squeeze.3
= control target key start
LH: loop header
LB: loop body
LE: loop exit
PB: predicated region body
PF: predicated region fallthrough
CT: control target
= control target key end

     0   :  { %s427_s0 = inlined_call_operand.vmem [shape: f32[2,1024], index: 0, kind: input, shape index: {}]   ;;  %s428_s1 = inlined_call_operand.hbm [shape: f32[2,4,16,16], index: 1, kind: output, shape index: {}]  }
   0x1   :  { %v291_v0 = vld [vmem:[%s427_s0 + $0x6] sm:$0x3]  ;;  %v292_v1 = vld [vmem:[%s427_s0 + $0x4] sm:$0x3]  ;;  %v293_v2 = vld [vmem:[%s427_s0 + $0x2] sm:$0x3] }
   0x2   :  { %30 = vst [vmem:[#allocation2 + $0x18] sm:$0x3] %v291_v0  ;;  %35 = vst [vmem:[#allocation2 + $0x10] sm:$0x3] %v292_v1  ;;  %v40_v3 = vld [vmem:[%s427_s0] sm:$0x3] }
   0x3   :  { %39 = vst [vmem:[#allocation2 + $0x8] sm:$0x3] %v293_v2  ;;  %41 = vst [vmem:[#allocation2] sm:$0x3] %v40_v3  ;;  %v287_v4 = vld [vmem:[%s427_s0 + $0xe] sm:$0x3] }
   0x4   :  { %v288_v5 = vld [vmem:[%s427_s0 + $0xc] sm:$0x3]  ;;  %v289_v6 = vld [vmem:[%s427_s0 + $0xa] sm:$0x3]  ;;  %10 = vst [vmem:[#allocation2 + $0x38] sm:$0x3] %v287_v4 }
   0x5   :  { %15 = vst [vmem:[#allocation2 + $0x30] sm:$0x3] %v288_v5  ;;  %20 = vst [vmem:[#allocation2 + $0x28] sm:$0x3] %v289_v6  ;;  %v290_v7 = vld [vmem:[%s427_s0 + $0x8] sm:$0x3] }
   0x6   :  { %2 = vsyncpa [#allocation1], 0  ;;  %25 = vst [vmem:[#allocation2 + $0x20] sm:$0x3] %v290_v7  ;;  %vm99_vm0 = vcmask 1047556   ;;  %s324_s0 = smov 96  }
   0x7   :  { %s325_s22 = smov 112   ;;  %s326_s23 = smov 80   ;;  %vm43_vm1 = vcmask 130048  }
   0x8   :  { %s327_s24 = smov 64   ;;  %s328_s25 = smov 48  }
   0x9   :  { %v55_v40 = vld [vmem:[#allocation2 + $0x10] sm:$0x3]   ;;  %v62_v42 = vld [vmem:[#allocation2 + $0x18] sm:$0x3]   ;;  %s329_s26 = smov 32   ;;  %s330_s27 = smov 16  }
   0xa   :  { %v121_v8 = vld [vmem:[#allocation2] ss:$8 sm:$0xf]   ;;  %v123_v9 = vld [vmem:[#allocation2 - $0x1f] ss:$8 sm:$0xf0]  }
   0xb   :  { %v125_v10 = vsel %vm99_vm0, %v123_v9, %v121_v8  ;;  %v96_v11 = vld [vmem:[#allocation2] ss:$8 sm:$0xf]   ;;  %v98_v12 = vld [vmem:[#allocation2 - $0x1f] ss:$8 sm:$0xf0]  }
   0xc   :  { %126 = vrot.lane.b32.xlu1 %v125_v10, %s324_s0  ;;  %v100_v13 = vsel %vm99_vm0, %v98_v12, %v96_v11  ;;  %v146_v22 = vld [vmem:[#allocation2] ss:$8 sm:$0xf]   ;;  %v148_v23 = vld [vmem:[#allocation2 - $0x1f] ss:$8 sm:$0xf0]  }
   0xd   :  { %v134_v14 = vld [vmem:[#allocation2 + $0x20] ss:$8 sm:$0xf]   ;;  %v136_v15 = vld [vmem:[#allocation2 + $0x1] ss:$8 sm:$0xf0]   ;;  %101 = vrot.lane.b32.xlu0 %v100_v13, %s325_s22  ;;  %v150_v25 = vsel %vm99_vm0, %v148_v23, %v146_v22 }
   0xe   :  { %v138_v16 = vsel %vm99_vm0, %v136_v15, %v134_v14  ;;  %v109_v17 = vld [vmem:[#allocation2 + $0x20] ss:$8 sm:$0xf]   ;;  %v111_v18 = vld [vmem:[#allocation2 + $0x1] ss:$8 sm:$0xf0]  }
   0xf   :  { %v113_v19 = vsel %vm99_vm0, %v111_v18, %v109_v17  ;;  %v159_v20 = vld [vmem:[#allocation2 + $0x20] ss:$8 sm:$0xf]   ;;  %v161_v21 = vld [vmem:[#allocation2 + $0x1] ss:$8 sm:$0xf0]  }
  0x10   :  { %139 = vrot.lane.b32.xlu1 %v138_v16, %s324_s0  ;;  %v163_v24 = vsel %vm99_vm0, %v161_v21, %v159_v20  ;;  %v184_v26 = vld [vmem:[#allocation2 + $0x20] ss:$8 sm:$0xf]   ;;  %v186_v27 = vld [vmem:[#allocation2 + $0x1] ss:$8 sm:$0xf0]  }
  0x11   :  { %114 = vrot.lane.b32.xlu0 %v113_v19, %s325_s22  ;;  %v171_v28 = vld [vmem:[#allocation2] ss:$8 sm:$0xf]   ;;  %v173_v29 = vld [vmem:[#allocation2 - $0x1f] ss:$8 sm:$0xf0]   ;;  %v188_v30 = vsel %vm99_vm0, %v186_v27, %v184_v26 }
  0x12   :  { %v175_v31 = vsel %vm99_vm0, %v173_v29, %v171_v28  ;;  %v209_v32 = vld [vmem:[#allocation2 + $0x20] ss:$8 sm:$0xf]   ;;  %v211_v33 = vld [vmem:[#allocation2 + $0x1] ss:$8 sm:$0xf0]  }
  0x13   :  { %v196_v34 = vld [vmem:[#allocation2] ss:$8 sm:$0xf]   ;;  %v198_v35 = vld [vmem:[#allocation2 - $0x1f] ss:$8 sm:$0xf0]   ;;  %v213_v41 = vsel %vm99_vm0, %v211_v33, %v209_v32 }
  0x14   :  { %164 = vrot.lane.b32.xlu1 %v163_v24, %s326_s23  ;;  %v234_v36 = vld [vmem:[#allocation2 + $0x20] ss:$8 sm:$0xf]   ;;  %v236_v37 = vld [vmem:[#allocation2 + $0x1] ss:$8 sm:$0xf0]   ;;  %v200_v45 = vsel %vm99_vm0, %v198_v35, %v196_v34 }
  0x15   :  { %151 = vrot.lane.b32.xlu0 %v150_v25, %s326_s23  ;;  %v42_v38 = vld [vmem:[#allocation2] sm:$0x3]   ;;  %v48_v39 = vld [vmem:[#allocation2 + $0x8] sm:$0x3]   ;;  %58 = vst.msk [vmem:[#allocation0 + $0x10] sm:$0x1] %vm43_vm1, %v55_v40   ;;  %v238_v50 = vsel %vm99_vm0, %v236_v37, %v234_v36 }
  0x16   :  { %44 = vst.msk [vmem:[#allocation0] sm:$0x1] %vm43_vm1, %v42_v38   ;;  %46 = vst.msk [vmem:[#allocation0 + $0x3f] sm:$0x2] %vm43_vm1, %v42_v38   ;;  %v69_v43 = vld [vmem:[#allocation2 + $0x20] sm:$0x3]  }
  0x17   :  { %51 = vst.msk [vmem:[#allocation0 + $0x8] sm:$0x1] %vm43_vm1, %v48_v39   ;;  %53 = vst.msk [vmem:[#allocation0 + $0x47] sm:$0x2] %vm43_vm1, %v48_v39   ;;  %v76_v44 = vld [vmem:[#allocation2 + $0x28] sm:$0x3]  }
  0x18   :  { %189 = vrot.lane.b32.xlu1 %v188_v30, %s327_s24  ;;  %60 = vst.msk [vmem:[#allocation0 + $0x4f] sm:$0x2] %vm43_vm1, %v55_v40   ;;  %65 = vst.msk [vmem:[#allocation0 + $0x18] sm:$0x1] %vm43_vm1, %v62_v42   ;;  %v83_v46 = vld [vmem:[#allocation2 + $0x30] sm:$0x3]  }
  0x19   :  { %176 = vrot.lane.b32.xlu0 %v175_v31, %s327_s24  ;;  %67 = vst.msk [vmem:[#allocation0 + $0x57] sm:$0x2] %vm43_vm1, %v62_v42   ;;  %72 = vst.msk [vmem:[#allocation0 + $0x20] sm:$0x1] %vm43_vm1, %v69_v43   ;;  %v90_v47 = vld [vmem:[#allocation2 + $0x38] sm:$0x3]  }
  0x1a   :  { %74 = vst.msk [vmem:[#allocation0 + $0x5f] sm:$0x2] %vm43_vm1, %v69_v43   ;;  %79 = vst.msk [vmem:[#allocation0 + $0x28] sm:$0x1] %vm43_vm1, %v76_v44   ;;  %s331_s28 = smov [#allocation0]  }
  0x1b   :  { %81 = vst.msk [vmem:[#allocation0 + $0x67] sm:$0x2] %vm43_vm1, %v76_v44   ;;  %v221_v48 = vld [vmem:[#allocation2] ss:$8 sm:$0xf]   ;;  %s275_s29 = sshll.u32 %s331_s28, 4  ;;  %s276_s29 = int_to_ptr.vmem [resolvable:$true] %s275_s29 }
  0x1c   :  { %v223_v49 = vld [vmem:[#allocation2 - $0x1f] ss:$8 sm:$0xf0]   ;;  %86 = vst.msk [vmem:[#allocation0 + $0x30] sm:$0x1] %vm43_vm1, %v83_v46   ;;  %214 = vrot.lane.b32.xlu1 %v213_v41, %s328_s25  ;;  %s302_s30 = scalar_lea.vmem %s276_s29, 2048  ;;  %p307_p1 = scmp.lt.s32.totalorder %s276_s29, %s276_s29 }
  0x1d   :  { %88 = vst.msk [vmem:[#allocation0 + $0x6f] sm:$0x2] %vm43_vm1, %v83_v46   ;;  %93 = vst.msk [vmem:[#allocation0 + $0x38] sm:$0x1] %vm43_vm1, %v90_v47   ;;  %201 = vrot.lane.b32.xlu0 %v200_v45, %s328_s25  ;;  %v225_v51 = vsel %vm99_vm0, %v223_v49, %v221_v48  ;;  %p303_p0 = scmp.ne.s32.totalorder %s276_s29, %s302_s30  ;;  %p308_p2 = scmp.lt.s32.totalorder %s302_s30, %s302_s30 }
  0x1e   :  { %95 = vst.msk [vmem:[#allocation0 + $0x77] sm:$0x2] %vm43_vm1, %v90_v47   ;;  %v259_v52 = vld [vmem:[#allocation2 + $0x20] ss:$8 sm:$0xf]  }
  0x1f   :  { %v261_v53 = vld [vmem:[#allocation2 + $0x1] ss:$8 sm:$0xf0]   ;;  %v246_v54 = vld [vmem:[#allocation2] ss:$8 sm:$0xf]   ;;  %p309_p3 = por %p308_p2, %p307_p1 }
  0x20   :  { %v248_v55 = vld [vmem:[#allocation2 - $0x1f] ss:$8 sm:$0xf0]   ;;  %239 = vrot.lane.b32.xlu1 %v238_v50, %s329_s26  ;;  %v263_v56 = vsel %vm99_vm0, %v261_v53, %v259_v52 }
  0x21   :  { %226 = vrot.lane.b32.xlu0 %v225_v51, %s329_s26  ;;  %v250_v57 = vsel %vm99_vm0, %v248_v55, %v246_v54  ;;  %p310_p4 = pnand %p309_p3, %p303_p0 }
  0x24   :  { %264 = vrot.lane.b32.xlu1 %v263_v56, %s330_s27 }
  0x25   :  { %251 = vrot.lane.b32.xlu0 %v250_v57, %s330_s27 }
  0x7e   :  { %v127_v58 = vpop.permute.xlu1 %126  }
  0x7f   :  { %130 = vst.msk [vmem:[#allocation0 + $0x2] ss:$8 sm:$0xf] %vm43_vm1, %v127_v58   ;;  %132 = vst.msk [vmem:[#allocation0 + $0x22] ss:$8 sm:$0xf0] %vm43_vm1, %v127_v58   ;;  %v102_v59 = vpop.permute.xlu0 %101  }
  0x80   :  { %105 = vst.msk [vmem:[#allocation0 + $0x1] ss:$8 sm:$0xf] %vm43_vm1, %v102_v59   ;;  %107 = vst.msk [vmem:[#allocation0 + $0x21] ss:$8 sm:$0xf0] %vm43_vm1, %v102_v59  }
  0x82   :  { %v140_v60 = vpop.permute.xlu1 %139  }
  0x83   :  { %143 = vst.msk [vmem:[#allocation0 + $0x22] ss:$8 sm:$0xf] %vm43_vm1, %v140_v60   ;;  %145 = vst.msk [vmem:[#allocation0 + $0x42] ss:$8 sm:$0xf0] %vm43_vm1, %v140_v60   ;;  %v115_v61 = vpop.permute.xlu0 %114  }
  0x84   :  { %118 = vst.msk [vmem:[#allocation0 + $0x21] ss:$8 sm:$0xf] %vm43_vm1, %v115_v61   ;;  %120 = vst.msk [vmem:[#allocation0 + $0x41] ss:$8 sm:$0xf0] %vm43_vm1, %v115_v61  }
  0x86   :  { %v165_v62 = vpop.permute.xlu1 %164  }
  0x87   :  { %168 = vst.msk [vmem:[#allocation0 + $0x23] ss:$8 sm:$0xf] %vm43_vm1, %v165_v62   ;;  %170 = vst.msk [vmem:[#allocation0 + $0x43] ss:$8 sm:$0xf0] %vm43_vm1, %v165_v62   ;;  %v152_v63 = vpop.permute.xlu0 %151  }
  0x88   :  { %155 = vst.msk [vmem:[#allocation0 + $0x3] ss:$8 sm:$0xf] %vm43_vm1, %v152_v63   ;;  %157 = vst.msk [vmem:[#allocation0 + $0x23] ss:$8 sm:$0xf0] %vm43_vm1, %v152_v63  }
  0x8a   :  { %v190_v0 = vpop.permute.xlu1 %189  }
  0x8b   :  { %193 = vst.msk [vmem:[#allocation0 + $0x24] ss:$8 sm:$0xf] %vm43_vm1, %v190_v0   ;;  %195 = vst.msk [vmem:[#allocation0 + $0x44] ss:$8 sm:$0xf0] %vm43_vm1, %v190_v0   ;;  %v177_v1 = vpop.permute.xlu0 %176  }
  0x8c   :  { %180 = vst.msk [vmem:[#allocation0 + $0x4] ss:$8 sm:$0xf] %vm43_vm1, %v177_v1   ;;  %182 = vst.msk [vmem:[#allocation0 + $0x24] ss:$8 sm:$0xf0] %vm43_vm1, %v177_v1  }
  0x8e   :  { %v215_v2 = vpop.permute.xlu1 %214  }
  0x8f   :  { %218 = vst.msk [vmem:[#allocation0 + $0x25] ss:$8 sm:$0xf] %vm43_vm1, %v215_v2   ;;  %220 = vst.msk [vmem:[#allocation0 + $0x45] ss:$8 sm:$0xf0] %vm43_vm1, %v215_v2   ;;  %v202_v3 = vpop.permute.xlu0 %201  }
  0x90   :  { %205 = vst.msk [vmem:[#allocation0 + $0x5] ss:$8 sm:$0xf] %vm43_vm1, %v202_v3   ;;  %207 = vst.msk [vmem:[#allocation0 + $0x25] ss:$8 sm:$0xf0] %vm43_vm1, %v202_v3  }
  0x92   :  { %v240_v4 = vpop.permute.xlu1 %239  }
  0x93   :  { %243 = vst.msk [vmem:[#allocation0 + $0x26] ss:$8 sm:$0xf] %vm43_vm1, %v240_v4   ;;  %245 = vst.msk [vmem:[#allocation0 + $0x46] ss:$8 sm:$0xf0] %vm43_vm1, %v240_v4   ;;  %v227_v5 = vpop.permute.xlu0 %226  }
  0x94   :  { %230 = vst.msk [vmem:[#allocation0 + $0x6] ss:$8 sm:$0xf] %vm43_vm1, %v227_v5   ;;  %232 = vst.msk [vmem:[#allocation0 + $0x26] ss:$8 sm:$0xf0] %vm43_vm1, %v227_v5  }
  0x96   :  { %v265_v6 = vpop.permute.xlu1 %264  }
  0x97   :  { %268 = vst.msk [vmem:[#allocation0 + $0x27] ss:$8 sm:$0xf] %vm43_vm1, %v265_v6   ;;  %270 = vst.msk [vmem:[#allocation0 + $0x47] ss:$8 sm:$0xf0] %vm43_vm1, %v265_v6   ;;  %v252_v7 = vpop.permute.xlu0 %251  }
  0x98   :  { %255 = vst.msk [vmem:[#allocation0 + $0x7] ss:$8 sm:$0xf] %vm43_vm1, %v252_v7   ;;  %257 = vst.msk [vmem:[#allocation0 + $0x27] ss:$8 sm:$0xf0] %vm43_vm1, %v252_v7  }
  0x99   :  { %313 = shalt.err (!%p310_p4)
}
  0x9a   :  { %278 = dma.vmem_to_hbm [thread:$0]  %s276_s29, 2048, %s428_s1, [#allocation1]  }
  0x9b   :  { %322 = dma.done.wait [#allocation1], 2048  }
  0x9c   :  { %323 = vsyncadd [#allocation1], 4294965248 }
  0x9d   :  { %280 = vsyncpa [#allocation1], 1 }

// kernel: _lambda_.1
= control target key start
LH: loop header
LB: loop body
LE: loop exit
PB: predicated region body
PF: predicated region fallthrough
CT: control target
= control target key end

     0   :  { %v16850_v1 = vmov 0   ;;  %vm787_vm0 = vcmask 1040384   ;;  %vm788_vm1 = vsmask.f32 256  ;;  %v793_v46 = vld [vmem:[#allocation2 + $0x18] sm:$0x1]  ;;  %s16840_s1 = inlined_call_operand.vmem [shape: bf16[128,128], index: 1, kind: input, shape index: {}]   ;;  %s16841_s0 = inlined_call_operand.vmem [shape: bf16[2,256,128], index: 0, kind: input, shape index: {}]   ;;  %s16842_s3 = inlined_call_operand.vmem [shape: bf16[1152,128], index: 3, kind: input, shape index: {}]   ;;  %s16843_s2 = inlined_call_operand.vmem [shape: f32[1,128], index: 2, kind: input, shape index: {}]   ;;  %s16844_s4 = inlined_call_operand.vmem [shape: f32[1,128], index: 4, kind: input, shape index: {}]   ;;  %s16845_s5 = inlined_call_operand.vmem [shape: bf16[128,1024], index: 5, kind: input, shape index: {}]   ;;  %s16846_s7 = inlined_call_operand.vmem [shape: f32[2,1,128], index: 7, kind: output, shape index: {0}]   ;;  %s16847_s6 = inlined_call_operand.vmem [shape: f32[1,1024], index: 6, kind: input, shape index: {}]   ;;  %s16848_s8 = inlined_call_operand.vmem [shape: f32[2,1,1024], index: 8, kind: output, shape index: {1}]  }
   0x1   :  { %v12751_v0 = vld [vmem:[%s16840_s1 + $0x38] sm:$0xff]   ;;  %9418 = vmatprep.subr.bf16.mxu1 %v16850_v1  ;;  %773 = vst [vmem:[#allocation2] sm:$0xf] %v16850_v1  ;;  %774 = vst [vmem:[#allocation2 + $0x4] sm:$0xf] %v16850_v1  ;;  %v12752_v2 = vld [vmem:[%s16840_s1 + $0x30] sm:$0xff]  }
   0x2   :  { %775 = vst [vmem:[#allocation2 + $0x8] sm:$0x1] %v16850_v1  ;;  %776 = vst [vmem:[#allocation2 + $0xd8] sm:$0xf] %v16850_v1  ;;  %12589 = vmatprep.subr.bf16.mxu0 %v12751_v0  ;;  %v12753_v3 = vld [vmem:[%s16840_s1 + $0x28] sm:$0xff]   ;;  %v12754_v4 = vld [vmem:[%s16840_s1 + $0x20] sm:$0xff]  }
   0x3   :  { %777 = vst [vmem:[#allocation2 + $0xdc] sm:$0xf] %v16850_v1  ;;  %778 = vst [vmem:[#allocation2 + $0xe0] sm:$0x1] %v16850_v1  ;;  %12590 = vmatpush3.bf16.msra.mxu0 %v12751_v0  ;;  %v12759_v5 = vld [vmem:[%s16841_s0] sm:$0xff]   ;;  %v12755_v6 = vld [vmem:[%s16840_s1 + $0x18] sm:$0xff]  }
   0x4   :  { %780 = vst [vmem:[#allocation2 + $0xcc] sm:$0xf] %v16850_v1  ;;  %781 = vst [vmem:[#allocation2 + $0xd0] sm:$0xf] %v16850_v1  ;;  %12591 = vmatprep.subr.bf16.mxu0 %v12752_v2  ;;  %12605 = vmatprep.mubr.bf16.mxu0 %v12759_v5  ;;  %v12756_v7 = vld [vmem:[%s16840_s1 + $0x10] sm:$0xff]   ;;  %v12757_v8 = vld [vmem:[%s16840_s1 + $0x8] sm:$0xff]  }
   0x5   :  { %782 = vst [vmem:[#allocation2 + $0xd4] sm:$0x1] %v16850_v1  ;;  %783 = vst [vmem:[#allocation2 + $0x1a4] sm:$0xf] %v16850_v1  ;;  %v12758_v9 = vld [vmem:[%s16840_s1] sm:$0xff]   ;;  %v12760_v10 = vld [vmem:[%s16841_s0 + $0x8] sm:$0xff]  }
   0x6   :  { %784 = vst [vmem:[#allocation2 + $0x1a8] sm:$0xf] %v16850_v1  ;;  %785 = vst [vmem:[#allocation2 + $0x1ac] sm:$0x1] %v16850_v1  ;;  %v12761_v11 = vld [vmem:[%s16841_s0 + $0x10] sm:$0xff]   ;;  %v12783_v12 = vld [vmem:[%s16842_s3 + $0x38] sm:$0xff]  }
   0x7   :  { %12592 = vmatpush3.bf16.msra.mxu0 %v12752_v2  ;;  %v12784_v13 = vld [vmem:[%s16842_s3 + $0x30] sm:$0xff]   ;;  %9419 = vmatpush1.bf16.msra.mxu1 %v12783_v12  ;;  %v12785_v14 = vld [vmem:[%s16842_s3 + $0xb8] sm:$0xff]   ;;  %v12788_v16 = vld [vmem:[%s16842_s3 + $0x28] sm:$0xff]   ;;  %vm886_vm3 = vsmask.f32 7938  ;;  %vm3359_vm5 = vcmask 1042432  }
   0x8   :  { %12593 = vmatprep.subr.bf16.mxu0 %v12753_v3  ;;  %9420 = vmatprep.subr.bf16.mxu1 %v16850_v1  ;;  %v12762_v15 = vld [vmem:[%s16841_s0 + $0x18] sm:$0xff]   ;;  %v12789_v17 = vld [vmem:[%s16842_s3 + $0xb0] sm:$0xff]   ;;  %v12763_v18 = vld [vmem:[%s16841_s0 + $0x20] sm:$0xff]   ;;  %vm2268_vm6 = vsmask.f32 3328  ;;  %vm3360_vm8 = vcmask 1046532  }
   0x9   :  { %v12791_v19 = vld [vmem:[%s16842_s3 + $0xa8] sm:$0xff]   ;;  %v12790_v20 = vld [vmem:[%s16842_s3 + $0x20] sm:$0xff]   ;;  %v12792_v23 = vld [vmem:[%s16842_s3 + $0x18] sm:$0xff]   ;;  %vm2269_vm7 = vsmask.f32 7440  ;;  %vm1818_vm11 = vcmask 1043456  }
   0xa   :  { %v12793_v21 = vld [vmem:[%s16842_s3 + $0xa0] sm:$0xff]   ;;  %v12764_v22 = vld [vmem:[%s16841_s0 + $0x28] sm:$0xff]   ;;  %v12765_v24 = vld [vmem:[%s16841_s0 + $0x30] sm:$0xff]   ;;  %vm1176_vm13 = vsmask.f32 4368  ;;  %vm11245_vm15 = vcmask 1041409  }
   0xb   :  { %12594 = vmatpush3.bf16.msra.mxu0 %v12753_v3  ;;  %9421 = vmatpush1.bf16.msra.mxu1 %v12784_v13  ;;  %v12795_v25 = vld [vmem:[%s16842_s3 + $0x98] sm:$0xff]   ;;  %v12794_v26 = vld [vmem:[%s16842_s3 + $0x10] sm:$0xff]   ;;  %v12798_v29 = vld [vmem:[%s16842_s3 + $0x8] sm:$0xff]  }
   0xc   :  { %12595 = vmatprep.subr.bf16.mxu0 %v12754_v4  ;;  %9422 = vmatprep.subr.bf16.mxu1 %v16850_v1  ;;  %v12799_v27 = vld [vmem:[%s16842_s3 + $0x90] sm:$0xff]   ;;  %v12766_v28 = vld [vmem:[%s16841_s0 + $0x38] sm:$0xff]   ;;  %v12767_v30 = vld [vmem:[%s16841_s0 + $0x40] sm:$0xff]  }
   0xd   :  { %v12800_v31 = vld [vmem:[%s16842_s3] sm:$0xff]   ;;  %v12768_v32 = vld [vmem:[%s16841_s0 + $0x48] sm:$0xff]   ;;  %v12769_v33 = vld [vmem:[%s16841_s0 + $0x50] sm:$0xff]  }
   0xe   :  { %v12770_v34 = vld [vmem:[%s16841_s0 + $0x58] sm:$0xff]   ;;  %v12771_v35 = vld [vmem:[%s16841_s0 + $0x60] sm:$0xff]   ;;  %v12772_v36 = vld [vmem:[%s16841_s0 + $0x68] sm:$0xff]  }
   0xf   :  { %12596 = vmatpush3.bf16.msra.mxu0 %v12754_v4  ;;  %9423 = vmatpush1.bf16.msra.mxu1 %v12788_v16  ;;  %v12773_v37 = vld [vmem:[%s16841_s0 + $0x70] sm:$0xff]   ;;  %v12774_v38 = vld [vmem:[%s16841_s0 + $0x78] sm:$0xff]   ;;  %v12775_v39 = vld [vmem:[%s16841_s0 + $0x80] sm:$0xff]  }
  0x10   :  { %12597 = vmatprep.subr.bf16.mxu0 %v12755_v6  ;;  %9424 = vmatprep.subr.bf16.mxu1 %v16850_v1  ;;  %v12776_v40 = vld [vmem:[%s16841_s0 + $0x88] sm:$0xff]   ;;  %v12777_v41 = vld [vmem:[%s16841_s0 + $0x90] sm:$0xff]   ;;  %v12802_v43 = vld [vmem:[%s16842_s3 + $0x78] sm:$0xff]  }
  0x11   :  { %v12801_v42 = vld [vmem:[%s16842_s3 + $0x88] sm:$0xff]   ;;  %v12803_v44 = vld [vmem:[%s16842_s3 + $0x80] sm:$0xff]   ;;  %vm13485_vm2 = vmand %vm787_vm0, %vm788_vm1 }
  0x12   :  { %v12778_v47 = vld [vmem:[%s16841_s0 + $0x98] sm:$0xff]   ;;  %v794_v48 = vsel %vm13485_vm2, 0, %v793_v46  ;;  %v12779_v49 = vld [vmem:[%s16841_s0 + $0xa0] sm:$0xff]   ;;  %v790_v50 = vld [vmem:[#allocation2 + $0xc] sm:$0x1] }
  0x13   :  { %12598 = vmatpush3.bf16.msra.mxu0 %v12755_v6  ;;  %9425 = vmatpush1.bf16.msra.mxu1 %v12790_v20  ;;  %795 = vst [vmem:[#allocation2 + $0x18] sm:$0x1] %v794_v48  ;;  %v12804_v51 = vld [vmem:[%s16842_s3 + $0x70] sm:$0xff]   ;;  %v791_v52 = vsel %vm13485_vm2, 0, %v790_v50  ;;  %v12805_v53 = vld [vmem:[%s16842_s3 + $0xf8] sm:$0xff]   ;;  %vm13509_vm4 = vmand %vm787_vm0, %vm886_vm3 }
  0x14   :  { %12599 = vmatprep.subr.bf16.mxu0 %v12756_v7  ;;  %9426 = vmatprep.subr.bf16.mxu1 %v16850_v1  ;;  %792 = vst [vmem:[#allocation2 + $0xc] sm:$0x1] %v791_v52  ;;  %v891_v55 = vld [vmem:[#allocation2 + $0x20] sm:$0x1]  ;;  %v888_v57 = vld [vmem:[#allocation2 + $0x14] sm:$0x1]  ;;  %vm13579_vm9 = vmor %vm2268_vm6, %vm2269_vm7 }
  0x15   :  { %v892_v56 = vsel %vm13509_vm4, 0, %v891_v55  ;;  %v12808_v58 = vld [vmem:[%s16842_s3 + $0x68] sm:$0xff]   ;;  %v889_v59 = vsel %vm13509_vm4, 0, %v888_v57  ;;  %v12809_v60 = vld [vmem:[%s16842_s3 + $0xf0] sm:$0xff]   ;;  %v796_v2 = vld [vmem:[#allocation2 + $0x24] sm:$0x1] }
  0x16   :  { %893 = vst [vmem:[#allocation2 + $0x20] sm:$0x1] %v892_v56  ;;  %v12780_v61 = vld [vmem:[%s16841_s0 + $0xa8] sm:$0xff]   ;;  %890 = vst [vmem:[#allocation2 + $0x14] sm:$0x1] %v889_v59  ;;  %v12781_v63 = vld [vmem:[%s16841_s0 + $0xb0] sm:$0xff]  }
  0x17   :  { %12600 = vmatpush3.bf16.msra.mxu0 %v12756_v7  ;;  %9427 = vmatpush1.bf16.msra.mxu1 %v12792_v23  ;;  %v799_v62 = vld [vmem:[#allocation2 + $0x30] sm:$0x1]  ;;  %v12810_v3 = vld [vmem:[%s16842_s3 + $0x60] sm:$0xff]   ;;  %v797_v4 = vsel %vm13485_vm2, 0, %v796_v2  ;;  %v12811_v5 = vld [vmem:[%s16842_s3 + $0xe8] sm:$0xff]  }
  0x18   :  { %12601 = vmatprep.subr.bf16.mxu0 %v12757_v8  ;;  %9428 = vmatprep.subr.bf16.mxu1 %v16850_v1  ;;  %v800_v0 = vsel %vm13485_vm2, 0, %v799_v62  ;;  %798 = vst [vmem:[#allocation2 + $0x24] sm:$0x1] %v797_v4  ;;  %v12782_v6 = vld [vmem:[%s16841_s0 + $0xb8] sm:$0xff]   ;;  %v2173_v12 = vld [vmem:[#allocation2 + $0x4] sm:$0xf]  ;;  %vm13597_vm10 = vmor %vm3359_vm5, %vm3360_vm8 }
  0x19   :  { %801 = vst [vmem:[#allocation2 + $0x30] sm:$0x1] %v800_v0  ;;  %v897_v7 = vld [vmem:[#allocation2 + $0x38] sm:$0x1]  ;;  %v12786_v13 = vld [vmem:[%s16841_s0 + $0xc0] sm:$0xff]   ;;  %v12819_v48 = vld [vmem:[%s16842_s3 + $0xd0] sm:$0xff]  }
  0x1a   :  { %v2174_v23 = vld [vmem:[#allocation2 + $0x8] sm:$0x1]  ;;  %v3168_v52 = vld [vmem:[#allocation2 + $0x4] sm:$0xf]  ;;  %v12797_v62 = vld [vmem:[%s16841_s0 + $0xd8] sm:$0xff]  }
  0x1b   :  { %12602 = vmatpush3.bf16.msra.mxu0 %v12757_v8  ;;  %9429 = vmatpush1.bf16.msra.mxu1 %v12794_v26  ;;  %v12812_v8 = vld [vmem:[%s16842_s3 + $0x58] sm:$0xff]   ;;  %v3364_v55 = vrot.slane %v3168_v52, 5  ;;  %v12820_v57 = vld [vmem:[%s16842_s3 + $0x40] sm:$0xff]   ;;  %v12821_v59 = vld [vmem:[%s16842_s3 + $0xc8] sm:$0xff]  }
  0x1c   :  { %12603 = vmatprep.subr.bf16.mxu0 %v12758_v9  ;;  %9430 = vmatprep.subr.bf16.mxu1 %v16850_v1  ;;  %v12806_v0 = vld [vmem:[%s16841_s0 + $0xe0] sm:$0xff]   ;;  %vm13716_vm12 = vmand %vm1818_vm11, %vm886_vm3 }
  0x1d   :  { %v835_v52 = vld [vmem:[#allocation2 + $0xc0] sm:$0x1]  ;;  %vm13732_vm14 = vmor %vm788_vm1, %vm1176_vm13 }
  0x1e   :  { %v11171_v50 = vld [vmem:[%s16845_s5 + $0x120] sm:$0xff] }
  0x1f   :  { %12604 = vmatpush3.bf16.msra.mxu0 %v12758_v9  ;;  %9431 = vmatpush1.bf16.msra.mxu1 %v12798_v29  ;;  %v898_v9 = vsel %vm13509_vm4, 0, %v897_v7  ;;  %v805_v29 = vld [vmem:[#allocation2 + $0x48] sm:$0x1] }
  0x20   :  { %9707 = vmatprep.subr.bf16.mxu0 %v16850_v1  ;;  %9432 = vmatprep.subr.bf16.mxu1 %v16850_v1  ;;  %899 = vst [vmem:[#allocation2 + $0x38] sm:$0x1] %v898_v9  ;;  %v12816_v9 = vld [vmem:[%s16841_s0 + $0xf0] sm:$0xff]  }
  0x22   :  { %12606 = vmatmul.mubr.bf16.vlgmr.msra.gmra.mxu0 %v12760_v10  ;;  %v12813_v10 = vld [vmem:[%s16842_s3 + $0xe0] sm:$0xff]  }
  0x23   :  { %12609 = vmatprep.mubr.bf16.mxu0 %v12761_v11  ;;  %9708 = vmatpush1.bf16.msra.mxu0 %v12785_v14  ;;  %v2172_v11 = vld [vmem:[#allocation2] sm:$0xf]  ;;  %v894_v14 = vld [vmem:[#allocation2 + $0x2c] sm:$0x1] }
  0x24   :  { %9709 = vmatprep.subr.bf16.mxu0 %v16850_v1  ;;  %9433 = vmatpush1.bf16.msra.mxu1 %v12800_v31  ;;  %v2275_v16 = vshll.u32 %v2172_v11, 16 }
  0x25   :  { %9434 = vmatprep.subr.bf16.mxu1 %v16850_v1 }
  0x27   :  { %9710 = vmatpush1.bf16.msra.mxu0 %v12789_v17  ;;  %v895_v17 = vsel %vm13509_vm4, 0, %v894_v14 }
  0x28   :  { %9711 = vmatprep.subr.bf16.mxu0 %v16850_v1  ;;  %9435 = vmatpush2.bf16.msra.mxu1 %v12802_v43  ;;  %896 = vst [vmem:[#allocation2 + $0x2c] sm:$0x1] %v895_v17  ;;  %v12818_v43 = vld [vmem:[%s16842_s3 + $0x48] sm:$0xff]   ;;  %v12829_v17 = vld [vmem:[%s16842_s3 + $0x138] sm:$0xff]  }
  0x29   :  { %9436 = vmatprep.subr.bf16.mxu1 %v16850_v1 }
  0x2a   :  { %12610 = vmatmul.mubr.bf16.gmra.mxu0 %v12762_v15  ;;  %v2272_v15 = vshrl.u32 %v2172_v11, 16 }
  0x2b   :  { %12613 = vmatprep.mubr.bf16.mxu0 %v12763_v18  ;;  %9712 = vmatpush1.bf16.msra.mxu0 %v12791_v19  ;;  %v2281_v18 = vshll.u32 %v2173_v12, 16  ;;  %v2285_v19 = vshrl.u32 %v2173_v12, 16  ;;  %v909_v12 = vld [vmem:[#allocation2 + $0x68] sm:$0x1] }
  0x2c   :  { %9713 = vmatprep.subr.bf16.mxu0 %v16850_v1  ;;  %9437 = vmatpush2.bf16.msra.mxu1 %v12804_v51  ;;  %v2274_v20 = vrot.slane %v2272_v15, 4  ;;  %v910_v14 = vsel %vm13509_vm4, 0, %v909_v12 }
  0x2d   :  { %9438 = vmatprep.subr.bf16.mxu1 %v16850_v1  ;;  %911 = vst [vmem:[#allocation2 + $0x68] sm:$0x1] %v910_v14 }
  0x2f   :  { %9714 = vmatpush1.bf16.msra.mxu0 %v12793_v21  ;;  %v2277_v21 = vrot.slane %v2275_v16, 5  ;;  %v12817_v16 = vld [vmem:[%s16841_s0 + $0xf8] sm:$0xff]  }
  0x30   :  { %9715 = vmatprep.subr.bf16.mxu0 %v16850_v1  ;;  %9439 = vmatpush2.bf16.msra.mxu1 %v12808_v58  ;;  %v900_v58 = vld [vmem:[#allocation2 + $0x44] sm:$0x1] }
  0x31   :  { %9440 = vmatprep.subr.bf16.mxu1 %v16850_v1 }
  0x32   :  { %12614 = vmatmul.mubr.bf16.gmra.mxu0 %v12764_v22  ;;  %v802_v22 = vld [vmem:[#allocation2 + $0x3c] sm:$0x1] }
  0x33   :  { %12617 = vmatprep.mubr.bf16.mxu0 %v12765_v24  ;;  %9716 = vmatpush1.bf16.msra.mxu0 %v12795_v25  ;;  %v2283_v24 = vrot.slane %v2281_v18, 5  ;;  %v2287_v25 = vrot.slane %v2285_v19, 4  ;;  %v803_v26 = vsel %vm13485_vm2, 0, %v802_v22  ;;  %v817_v18 = vld [vmem:[#allocation2 + $0x78] sm:$0x1] }
  0x34   :  { %9717 = vmatprep.subr.bf16.mxu0 %v16850_v1  ;;  %9441 = vmatpush2.bf16.msra.mxu1 %v12810_v3  ;;  %804 = vst [vmem:[#allocation2 + $0x3c] sm:$0x1] %v803_v26  ;;  %v814_v19 = vld [vmem:[#allocation2 + $0x6c] sm:$0x1]  ;;  %v915_v22 = vld [vmem:[#allocation2 + $0x80] sm:$0x1] }
  0x35   :  { %9442 = vmatprep.subr.bf16.mxu1 %v16850_v1  ;;  %v2288_v31 = vor.u32 %v2287_v25, %v2283_v24  ;;  %v12842_v26 = vld [vmem:[%s16842_s3 + $0x130] sm:$0xff]  }
  0x37   :  { %9718 = vmatpush1.bf16.msra.mxu0 %v12799_v27  ;;  %v2278_v27 = vor.u32 %v2277_v21, %v2274_v20  ;;  %v818_v20 = vsel %vm13485_vm2, 0, %v817_v18  ;;  %v815_v21 = vsel %vm13485_vm2, 0, %v814_v19 }
  0x38   :  { %9719 = vmatprep.subr.bf16.mxu0 %v16850_v1  ;;  %9443 = vmatpush2.bf16.msra.mxu1 %v12812_v8  ;;  %v12807_v8 = vld [vmem:[%s16841_s0 + $0xe8] sm:$0xff]   ;;  %819 = vst [vmem:[#allocation2 + $0x78] sm:$0x1] %v818_v20  ;;  %816 = vst [vmem:[#allocation2 + $0x6c] sm:$0x1] %v815_v21 }
  0x39   :  { %9444 = vmatprep.subr.bf16.mxu1 %v16850_v1 }
  0x3a   :  { %12618 = vmatmul.mubr.bf16.gmra.mxu0 %v12766_v28  ;;  %v2291_v28 = vshll.u32 %v2174_v23, 16  ;;  %v916_v23 = vsel %vm13509_vm4, 0, %v915_v22 }
  0x3b   :  { %12621 = vmatprep.mubr.bf16.mxu0 %v12767_v30  ;;  %9720 = vmatpush1.bf16.msra.mxu0 %v12801_v42  ;;  %v12814_v30 = vld [vmem:[%s16842_s3 + $0x50] sm:$0xff]   ;;  %v3167_v42 = vld [vmem:[#allocation2] sm:$0xe]  ;;  %917 = vst [vmem:[#allocation2 + $0x80] sm:$0x1] %v916_v23 }
  0x3c   :  { %9721 = vmatprep.subr.bf16.mxu0 %v16850_v1  ;;  %9445 = vmatpush2.bf16.msra.mxu1 %v12814_v30 }
  0x3d   :  { %9446 = vmatprep.subr.bf16.mxu1 %v16850_v1 }
  0x3f   :  { %9722 = vmatpush1.bf16.msra.mxu0 %v12803_v44 }
  0x40   :  { %9723 = vmatprep.subr.bf16.mxu0 %v16850_v1  ;;  %9447 = vmatpush2.bf16.msra.mxu1 %v12818_v43  ;;  %v924_v43 = vld [vmem:[#allocation2 + $0xa4] sm:$0x1] }
  0x41   :  { %9448 = vmatprep.subr.bf16.mxu1 %v16850_v1 }
  0x42   :  { %12622 = vmatmul.mubr.bf16.gmra.mxu0 %v12768_v32  ;;  %v806_v32 = vsel %vm13485_vm2, 0, %v805_v29  ;;  %v921_v29 = vld [vmem:[#allocation2 + $0x98] sm:$0x1] }
  0x43   :  { %12625 = vmatprep.mubr.bf16.mxu0 %v12769_v33  ;;  %9724 = vmatpush2.bf16.msra.mxu0 %v12805_v53  ;;  %v12815_v33 = vld [vmem:[%s16842_s3 + $0xd8] sm:$0xff]   ;;  %807 = vst [vmem:[#allocation2 + $0x48] sm:$0x1] %v806_v32  ;;  %v3169_v53 = vld [vmem:[#allocation2 + $0x8] sm:$0x1]  ;;  %v922_v32 = vsel %vm13509_vm4, 0, %v921_v29 }
  0x44   :  { %9725 = vmatprep.subr.bf16.mxu0 %v16850_v1  ;;  %v3367_v56 = vrot.slane %v3169_v53, 5  ;;  %9449 = vmatpush2.bf16.msra.mxu1 %v12820_v57  ;;  %923 = vst [vmem:[#allocation2 + $0x98] sm:$0x1] %v922_v32  ;;  %v832_v53 = vld [vmem:[#allocation2 + $0xb4] sm:$0x1] }
  0x45   :  { %9996 = vmatprep.subr.bf16.mxu1 %v16850_v1 }
  0x47   :  { %9726 = vmatpush2.bf16.msra.mxu0 %v12809_v60 }
  0x48   :  { %9727 = vmatprep.subr.bf16.mxu0 %v16850_v1 }
  0x4a   :  { %12626 = vmatmul.mubr.bf16.gmra.mxu0 %v12770_v34  ;;  %v12787_v34 = vld [vmem:[%s16841_s0 + $0xc8] sm:$0xff]  }
  0x4b   :  { %12629 = vmatprep.mubr.bf16.mxu0 %v12771_v35  ;;  %9728 = vmatpush2.bf16.msra.mxu0 %v12811_v5  ;;  %v12796_v35 = vld [vmem:[%s16841_s0 + $0xd0] sm:$0xff]   ;;  %v12825_v5 = vld [vmem:[%s16842_s3 + $0xc0] sm:$0xff]  }
  0x4c   :  { %9729 = vmatprep.subr.bf16.mxu0 %v16850_v1 }
  0x4f   :  { %9730 = vmatpush2.bf16.msra.mxu0 %v12813_v10  ;;  %v811_v10 = vld [vmem:[#allocation2 + $0x60] sm:$0x1] }
  0x50   :  { %9731 = vmatprep.subr.bf16.mxu0 %v16850_v1  ;;  %v812_v11 = vsel %vm13485_vm2, 0, %v811_v10 }
  0x51   :  { %813 = vst [vmem:[#allocation2 + $0x60] sm:$0x1] %v812_v11 }
  0x52   :  { %12630 = vmatmul.mubr.bf16.gmra.mxu0 %v12772_v36 }
  0x53   :  { %12633 = vmatprep.mubr.bf16.mxu0 %v12773_v37  ;;  %v2279_v37 = vrot.slane %v2278_v27, 4  ;;  %9732 = vmatpush2.bf16.msra.mxu0 %v12815_v33  ;;  %v823_v27 = vld [vmem:[#allocation2 + $0x90] sm:$0x1]  ;;  %v918_v33 = vld [vmem:[#allocation2 + $0x8c] sm:$0x1] }
  0x54   :  { %9733 = vmatprep.subr.bf16.mxu0 %v16850_v1  ;;  %v824_v30 = vsel %vm13485_vm2, 0, %v823_v27 }
  0x55   :  { %v2284_v44 = vsel %vm13579_vm9, %v2279_v37, %v2283_v24  ;;  %v912_v24 = vld [vmem:[#allocation2 + $0x74] sm:$0x1]  ;;  %825 = vst [vmem:[#allocation2 + $0x90] sm:$0x1] %v824_v30  ;;  %v829_v37 = vld [vmem:[#allocation2 + $0xa8] sm:$0x1] }
  0x56   :  { %3103 = vst [vmem:[#allocation4 + $0x4] sm:$0xf] %v2284_v44  ;;  %v913_v25 = vsel %vm13509_vm4, 0, %v912_v24  ;;  %v925_v44 = vsel %vm13509_vm4, 0, %v924_v43  ;;  %v1820_v24 = vld [vmem:[#allocation2 + $0xc] sm:$0xf] }
  0x57   :  { %9734 = vmatpush2.bf16.msra.mxu0 %v12819_v48  ;;  %914 = vst [vmem:[#allocation2 + $0x74] sm:$0x1] %v913_v25  ;;  %926 = vst [vmem:[#allocation2 + $0xa4] sm:$0x1] %v925_v44 }
  0x58   :  { %9735 = vmatprep.subr.bf16.mxu0 %v16850_v1 }
  0x5a   :  { %12634 = vmatmul.mubr.bf16.gmra.mxu0 %v12774_v38  ;;  %v2289_v38 = vrot.slane %v2288_v31, 4 }
  0x5b   :  { %12637 = vmatprep.mubr.bf16.mxu0 %v12775_v39  ;;  %v2293_v39 = vrot.slane %v2291_v28, 5  ;;  %9736 = vmatpush2.bf16.msra.mxu0 %v12821_v59  ;;  %v820_v28 = vld [vmem:[#allocation2 + $0x84] sm:$0x1]  ;;  %v833_v59 = vsel %vm13485_vm2, 0, %v832_v53 }
  0x5c   :  { %9737 = vmatprep.subr.bf16.mxu0 %v16850_v1  ;;  %v821_v31 = vsel %vm13485_vm2, 0, %v820_v28  ;;  %834 = vst [vmem:[#allocation2 + $0xb4] sm:$0x1] %v833_v59 }
  0x5d   :  { %v2294_v46 = vsel %vm13579_vm9, %v2289_v38, %v2293_v39  ;;  %822 = vst [vmem:[#allocation2 + $0x84] sm:$0x1] %v821_v31  ;;  %v826_v38 = vld [vmem:[#allocation2 + $0x9c] sm:$0x1]  ;;  %v927_v39 = vld [vmem:[#allocation2 + $0xb0] sm:$0x1] }
  0x5e   :  { %3104 = vst [vmem:[#allocation4 + $0x28] sm:$0xf] %v2294_v46  ;;  %v12864_v46 = vld [vmem:[%s16842_s3 + $0x120] sm:$0xff]  }
  0x5f   :  { %9738 = vmatpush2.bf16.msra.mxu0 %v12825_v5 }
  0x60   :  { %10285 = vmatprep.subr.bf16.mxu0 %v16850_v1 }
  0x62   :  { %12638 = vmatmul.mubr.bf16.gmra.mxu0 %v12776_v40  ;;  %v2044_v40 = vld [vmem:[#allocation2] sm:$0xf] }
  0x63   :  { %12641 = vmatprep.mubr.bf16.mxu0 %v12777_v41  ;;  %v2045_v41 = vld [vmem:[#allocation2 + $0x4] sm:$0xf]  ;;  %2108 = vst [vmem:[#allocation4] sm:$0xf] %v2044_v40  ;;  %v830_v40 = vsel %vm13485_vm2, 0, %v829_v37 }
  0x64   :  { %2109 = vst [vmem:[#allocation4 + $0x24] sm:$0xf] %v2045_v41  ;;  %v827_v41 = vsel %vm13485_vm2, 0, %v826_v38  ;;  %831 = vst [vmem:[#allocation2 + $0xa8] sm:$0x1] %v830_v40 }
  0x65   :  { %v12824_v4 = vld [vmem:[#allocation4 + $0x4] ss:$36 sps:$4 sm:$0xff]   ;;  %828 = vst [vmem:[#allocation2 + $0x9c] sm:$0x1] %v827_v41 }
  0x66   :  { %9450 = vmatprep.mubr.bf16.mxu1 %v12824_v4 }
  0x6a   :  { %12642 = vmatmul.mubr.bf16.gmra.mxu0 %v12778_v47  ;;  %v903_v47 = vld [vmem:[#allocation2 + $0x50] sm:$0x1] }
  0x6b   :  { %12645 = vmatprep.mubr.bf16.mxu0 %v12779_v49  ;;  %v11924_v49 = vrot.slane %v3167_v42, 9  ;;  %v904_v51 = vsel %vm13509_vm4, 0, %v903_v47  ;;  %v12822_v3 = vld [vmem:[#allocation4] ss:$36 sps:$4 sm:$0xff]   ;;  %v928_v42 = vsel %vm13509_vm4, 0, %v927_v39 }
  0x6c   :  { %905 = vst [vmem:[#allocation2 + $0x50] sm:$0x1] %v904_v51  ;;  %9451 = vmatmul.mubr.bf16.vlgmr.msra.gmra.mxu1 %v12822_v3  ;;  %929 = vst [vmem:[#allocation2 + $0xb0] sm:$0x1] %v928_v42  ;;  %v13688_v47 = vld [vmem:[%s16843_s2] ss:$0 sm:$0xff] }
  0x6d   :  { %v3365_v60 = vsel %vm13597_vm10, %v11924_v49, %v3364_v55  ;;  %9997 = vmatpush1.bf16.msra.mxu1 %v12829_v17 }
  0x6e   :  { %3650 = vst [vmem:[#allocation4 + $0x8] sm:$0xf] %v3365_v60  ;;  %9998 = vmatprep.subr.bf16.mxu1 %v16850_v1 }
  0x71   :  { %9999 = vmatpush1.bf16.msra.mxu1 %v12842_v26 }
  0x72   :  { %12646 = vmatmul.mubr.bf16.gmra.mxu0 %v12780_v61  ;;  %v3366_v61 = vrot.slane %v3364_v55, 4  ;;  %10000 = vmatprep.subr.bf16.mxu1 %v16850_v1  ;;  %v933_v55 = vld [vmem:[#allocation2 + $0xc8] sm:$0x1] }
  0x73   :  { %12649 = vmatprep.mubr.bf16.mxu0 %v12781_v63  ;;  %v901_v63 = vsel %vm13509_vm4, 0, %v900_v58  ;;  %v836_v58 = vsel %vm13485_vm2, 0, %v835_v52 }
  0x74   :  { %902 = vst [vmem:[#allocation2 + $0x44] sm:$0x1] %v901_v63  ;;  %v3368_v2 = vsel %vm13597_vm10, %v3366_v61, %v3367_v56  ;;  %837 = vst [vmem:[#allocation2 + $0xc0] sm:$0x1] %v836_v58  ;;  %v934_v61 = vsel %vm13509_vm4, 0, %v933_v55 }
  0x75   :  { %3651 = vst [vmem:[#allocation4 + $0x2c] sm:$0xf] %v3368_v2  ;;  %935 = vst [vmem:[#allocation2 + $0xc8] sm:$0x1] %v934_v61  ;;  %v930_v2 = vld [vmem:[#allocation2 + $0xbc] sm:$0x1] }
  0x76   :  { %v931_v4 = vsel %vm13509_vm4, 0, %v930_v2  ;;  %v1824_v58 = vld [vmem:[#allocation2 + $0x14] sm:$0x1]  ;;  %v12875_v61 = vld [vmem:[%s16842_s3 + $0x118] sm:$0xff]  }
  0x77   :  { %932 = vst [vmem:[#allocation2 + $0xbc] sm:$0x1] %v931_v4 }
  0x7a   :  { %12650 = vmatmul.mubr.bf16.gmra.mxu0 %v12782_v6  ;;  %v808_v6 = vld [vmem:[#allocation2 + $0x54] sm:$0x1] }
  0x7b   :  { %12653 = vmatprep.mubr.bf16.mxu0 %v12786_v13  ;;  %v809_v7 = vsel %vm13485_vm2, 0, %v808_v6  ;;  %v906_v13 = vld [vmem:[#allocation2 + $0x5c] sm:$0x1] }
  0x7c   :  { %810 = vst [vmem:[#allocation2 + $0x54] sm:$0x1] %v809_v7  ;;  %v907_v15 = vsel %vm13509_vm4, 0, %v906_v13 }
  0x7d   :  { %908 = vst [vmem:[#allocation2 + $0x5c] sm:$0x1] %v907_v15  ;;  %v1827_v15 = vld [vmem:[#allocation2 + $0x18] sm:$0xf] }
  0x82   :  { %12654 = vmatmul.mubr.bf16.gmra.mxu0 %v12787_v34  ;;  %v919_v34 = vsel %vm13509_vm4, 0, %v918_v33 }
  0x83   :  { %12657 = vmatprep.mubr.bf16.mxu0 %v12796_v35  ;;  %920 = vst [vmem:[#allocation2 + $0x8c] sm:$0x1] %v919_v34  ;;  %v12853_v35 = vld [vmem:[%s16842_s3 + $0x128] sm:$0xff]  }
  0x84   :  { %10001 = vmatpush1.bf16.msra.mxu1 %v12853_v35  ;;  %v1831_v35 = vld [vmem:[#allocation2 + $0x20] sm:$0x1] }
  0x85   :  { %10002 = vmatprep.subr.bf16.mxu1 %v16850_v1 }
  0x88   :  { %10003 = vmatpush1.bf16.msra.mxu1 %v12864_v46 }
  0x89   :  { %10004 = vmatprep.subr.bf16.mxu1 %v16850_v1 }
  0x8a   :  { %12658 = vmatmul.mubr.bf16.gmra.mxu0 %v12797_v62 }
  0x8b   :  { %12661 = vmatprep.mubr.bf16.mxu0 %v12806_v0 }
  0x8c   :  { %10005 = vmatpush1.bf16.msra.mxu1 %v12875_v61 }
  0x8d   :  { %10006 = vmatprep.subr.bf16.mxu1 %v16850_v1 }
  0x92   :  { %12662 = vmatmul.mubr.bf16.gmra.mxu0 %v12807_v8 }
  0x93   :  { %12665 = vmatprep.mubr.bf16.mxu0 %v12816_v9 }
  0x9a   :  { %12666 = vmatmul.mubr.bf16.gmra.mxu0 %v12817_v16 }
  0xe2   :  { %v12607_v48 = vpop.f32.mrf.mxu0 }
  0xe3   :  { %v399_v49 = vadd.f32 %v12607_v48, %v13688_v47 }
  0xe4   :  { %v390_v51 = vpop.f32.mrf.mxu0 }
  0xe5   :  { %v13692_v56 = vmax.f32 %v399_v49, 0.0  ;;  %v391_v57 = vadd.f32 %v13688_v47, %v390_v51 }
  0xe6   :  { %v12608_v60 = vpop.f32.mrf.mxu0 }
  0xe7   :  { %16926 = vst [vmem:[#allocation5_spill] sm:$0xff] %v13692_v56  ;;  %v12447_v62 = vpack.c.bf16 %v13692_v56, %v13692_v56  ;;  %v13703_v63 = vmax.f32 %v391_v57, 0.0  ;;  %v402_v0 = vadd.f32 %v12608_v60, %v13688_v47 }
  0xe8   :  { %v393_v3 = vpop.f32.mrf.mxu0 }
  0xe9   :  { %16927 = vst [vmem:[#allocation6_spill] sm:$0xff] %v13703_v63  ;;  %v1196_v5 = vshrl.u32 %v12447_v62, 16  ;;  %v12445_v6 = vpack.c.bf16 %v13703_v63, %v13703_v63  ;;  %v13710_v7 = vmax.f32 %v402_v0, 0.0  ;;  %v394_v8 = vadd.f32 %v13688_v47, %v393_v3 }
  0xea   :  { %v12611_v9 = vpop.f32.mrf.mxu0  ;;  %v1199_v11 = vshll.u32 %v12447_v62, 16 }
  0xeb   :  { %16928 = vst [vmem:[#allocation7_spill] sm:$0xff] %v13710_v7  ;;  %v1198_v10 = vrot.slane %v1196_v5, 7  ;;  %v1179_v12 = vshrl.u32 %v12445_v6, 16  ;;  %v12448_v13 = vpack.c.bf16 %v13710_v7, %v13710_v7  ;;  %v1182_v16 = vshll.u32 %v12445_v6, 16  ;;  %v1841_v5 = vld [vmem:[#allocation2 + $0x30] sm:$0xf] }
  0xec   :  { %v13720_v17 = vmax.f32 %v394_v8, 0.0  ;;  %v415_v18 = vadd.f32 %v12611_v9, %v13688_v47  ;;  %v406_v19 = vpop.f32.mrf.mxu0 }
  0xed   :  { %v1201_v20 = vor.u32 %v1199_v11, %v1198_v10  ;;  %v1202_v21 = vrot.slane %v1198_v10, 4  ;;  %v1181_v22 = vrot.slane %v1179_v12, 7  ;;  %v1204_v23 = vshrl.u32 %v12448_v13, 16 }
  0xee   :  { %16931 = vst [vmem:[#allocation8_spill] sm:$0xff] %v13720_v17  ;;  %v1207_v25 = vshll.u32 %v12448_v13, 16  ;;  %v12446_v26 = vpack.c.bf16 %v13720_v17, %v13720_v17  ;;  %v13725_v27 = vmax.f32 %v415_v18, 0.0  ;;  %v407_v28 = vadd.f32 %v13688_v47, %v406_v19  ;;  %v12612_v29 = vpop.f32.mrf.mxu0 }
  0xef   :  { %v1828_v30 = vsel %vm13716_vm12, %v1201_v20, %v1827_v15  ;;  %v1184_v31 = vor.u32 %v1182_v16, %v1181_v22  ;;  %v1185_v32 = vrot.slane %v1181_v22, 4  ;;  %v1206_v33 = vrot.slane %v1204_v23, 7 }
  0xf0   :  { %16932 = vst [vmem:[#allocation9_spill] sm:$0xff] %v13725_v27  ;;  %1829 = vst [vmem:[#allocation2 + $0x18] sm:$0xf] %v1828_v30  ;;  %v1187_v37 = vshrl.u32 %v12446_v26, 16  ;;  %v1190_v38 = vshll.u32 %v12446_v26, 16  ;;  %v12451_v39 = vpack.c.bf16 %v13725_v27, %v13725_v27  ;;  %v13738_v40 = vmax.f32 %v407_v28, 0.0  ;;  %v409_v41 = vpop.f32.mrf.mxu0 }
  0xf1   :  { %v1821_v42 = vsel %vm13716_vm12, %v1184_v31, %v1820_v24  ;;  %v1209_v43 = vor.u32 %v1207_v25, %v1206_v33  ;;  %v1211_v44 = vrot.slane %v1206_v33, 4  ;;  %v418_v46 = vadd.f32 %v12612_v29, %v13688_v47  ;;  %v1834_v24 = vld [vmem:[#allocation2 + $0x24] sm:$0xf] }
  0xf2   :  { %16935 = vst [vmem:[#allocation10_spill] sm:$0xff] %v13738_v40  ;;  %1822 = vst [vmem:[#allocation2 + $0xc] sm:$0xf] %v1821_v42  ;;  %v1189_v48 = vrot.slane %v1187_v37, 7  ;;  %v1230_v49 = vshrl.u32 %v12451_v39, 16  ;;  %v1233_v51 = vshll.u32 %v12451_v39, 16  ;;  %v12449_v52 = vpack.c.bf16 %v13738_v40, %v13738_v40  ;;  %v12615_v53 = vpop.f32.mrf.mxu0 }
  0xf3   :  { %v1210_v55 = vsel %vm13732_vm14, %v1202_v21, %v1209_v43  ;;  %v1832_v57 = vsel %vm13485_vm2, %v1211_v44, %v1831_v35  ;;  %v13749_v59 = vmax.f32 %v418_v46, 0.0  ;;  %v410_v60 = vadd.f32 %v13688_v47, %v409_v41 }
  0xf4   :  { %1830 = vst [vmem:[#allocation2 + $0x1c] sm:$0xf] %v1210_v55  ;;  %1833 = vst [vmem:[#allocation2 + $0x20] sm:$0x1] %v1832_v57  ;;  %v1192_v62 = vor.u32 %v1190_v38, %v1189_v48  ;;  %v1194_v0 = vrot.slane %v1189_v48, 4  ;;  %v1232_v2 = vrot.slane %v1230_v49, 7  ;;  %v422_v4 = vpop.f32.mrf.mxu0  ;;  %v431_v10 = vadd.f32 %v12615_v53, %v13688_v47 }
  0xf5   :  { %16936 = vst [vmem:[#allocation11_spill] sm:$0xff] %v13749_v59  ;;  %v1213_v3 = vshrl.u32 %v12449_v52, 16  ;;  %v1216_v6 = vshll.u32 %v12449_v52, 16  ;;  %v12452_v8 = vpack.c.bf16 %v13749_v59, %v13749_v59  ;;  %v13757_v9 = vmax.f32 %v410_v60, 0.0  ;;  %v1845_v38 = vld [vmem:[#allocation2 + $0x38] sm:$0x1] }
  0xf6   :  { %v1193_v11 = vsel %vm13732_vm14, %v1185_v32, %v1192_v62  ;;  %v1825_v12 = vsel %vm13485_vm2, %v1194_v0, %v1824_v58  ;;  %v1235_v13 = vor.u32 %v1233_v51, %v1232_v2  ;;  %v1236_v15 = vrot.slane %v1232_v2, 4  ;;  %v12616_v16 = vpop.f32.mrf.mxu0  ;;  %v1838_v55 = vld [vmem:[#allocation2 + $0x2c] sm:$0x1] }
  0xf7   :  { %16937 = vst [vmem:[#allocation12_spill] sm:$0xff] %v13757_v9  ;;  %1823 = vst [vmem:[#allocation2 + $0x10] sm:$0xf] %v1193_v11  ;;  %v1215_v18 = vrot.slane %v1213_v3, 7  ;;  %v1238_v19 = vshrl.u32 %v12452_v8, 16  ;;  %v1241_v20 = vshll.u32 %v12452_v8, 16  ;;  %v12450_v21 = vpack.c.bf16 %v13757_v9, %v13757_v9 }
  0xf8   :  { %1826 = vst [vmem:[#allocation2 + $0x14] sm:$0x1] %v1825_v12  ;;  %v3716_v22 = vld [vmem:[#allocation2 + $0x18] sm:$0xf]  ;;  %v1842_v23 = vsel %vm13716_vm12, %v1235_v13, %v1841_v5  ;;  %v13769_v25 = vmax.f32 %v431_v10, 0.0  ;;  %v423_v26 = vadd.f32 %v13688_v47, %v422_v4  ;;  %v434_v28 = vadd.f32 %v12616_v16, %v13688_v47  ;;  %v425_v29 = vpop.f32.mrf.mxu0 }
  0xf9   :  { %3780 = vst [vmem:[#allocation4 + $0x54] sm:$0xf] %v3716_v22  ;;  %v2048_v30 = vld [vmem:[#allocation2 + $0x18] sm:$0xf]  ;;  %1843 = vst [vmem:[#allocation2 + $0x30] sm:$0xf] %v1842_v23  ;;  %v1218_v31 = vor.u32 %v1216_v6, %v1215_v18 }
  0xfa   :  { %16938 = vst [vmem:[#allocation13_spill] sm:$0xff] %v13769_v25  ;;  %v1219_v32 = vrot.slane %v1215_v18, 4  ;;  %v1240_v33 = vrot.slane %v1238_v19, 7  ;;  %v1221_v35 = vshrl.u32 %v12450_v21, 16  ;;  %v3714_v37 = vld [vmem:[#allocation2 + $0xc] sm:$0xf]  ;;  %v12455_v41 = vpack.c.bf16 %v13769_v25, %v13769_v25  ;;  %v12619_v44 = vpop.f32.mrf.mxu0 }
  0xfb   :  { %2112 = vst [vmem:[#allocation4 + $0x90] sm:$0xf] %v2048_v30  ;;  %v1224_v39 = vshll.u32 %v12450_v21, 16  ;;  %v13775_v42 = vmax.f32 %v423_v26, 0.0  ;;  %v13777_v43 = vmax.f32 %v434_v28, 0.0  ;;  %v1835_v46 = vsel %vm13716_vm12, %v1218_v31, %v1834_v24 }
  0xfc   :  { %3778 = vst [vmem:[#allocation4 + $0xc] sm:$0xf] %v3714_v37  ;;  %v1243_v48 = vor.u32 %v1241_v20, %v1240_v33  ;;  %v1245_v49 = vrot.slane %v1240_v33, 4  ;;  %v1223_v51 = vrot.slane %v1221_v35, 7  ;;  %v3717_v52 = vld [vmem:[#allocation2 + $0x1c] sm:$0xf]  ;;  %v438_v62 = vpop.f32.mrf.mxu0  ;;  %v426_v20 = vadd.f32 %v13688_v47, %v425_v29 }
  0xfd   :  { %16939 = vst [vmem:[#allocation14_spill] sm:$0xff] %v13775_v42  ;;  %16940 = vst [vmem:[#allocation15_spill] sm:$0xff] %v13777_v43  ;;  %v2046_v53 = vld [vmem:[#allocation2 + $0xc] sm:$0xf]  ;;  %v1264_v57 = vshrl.u32 %v12455_v41, 16  ;;  %v1267_v58 = vshll.u32 %v12455_v41, 16  ;;  %v12453_v60 = vpack.c.bf16 %v13775_v42, %v13775_v42  ;;  %v12456_v61 = vpack.c.bf16 %v13777_v43, %v13777_v43 }
  0xfe   :  { %1836 = vst [vmem:[#allocation2 + $0x24] sm:$0xf] %v1835_v46  ;;  %3781 = vst [vmem:[#allocation4 + $0x78] sm:$0xf] %v3717_v52  ;;  %v1244_v0 = vsel %vm13732_vm14, %v1236_v15, %v1243_v48  ;;  %v1846_v2 = vsel %vm13485_vm2, %v1245_v49, %v1845_v38  ;;  %v1226_v3 = vor.u32 %v1224_v39, %v1223_v51  ;;  %v1228_v4 = vrot.slane %v1223_v51, 4  ;;  %v12620_v12 = vpop.f32.mrf.mxu0 }
  0xff   :  { %2110 = vst [vmem:[#allocation4 + $0x48] sm:$0xf] %v2046_v53  ;;  %v2049_v5 = vld [vmem:[#allocation2 + $0x1c] sm:$0xf]  ;;  %1844 = vst [vmem:[#allocation2 + $0x34] sm:$0xf] %v1244_v0  ;;  %v439_v33 = vadd.f32 %v13688_v47, %v438_v62  ;;  %v450_v35 = vadd.f32 %v12620_v12, %v13688_v47 }
 0x100   :  { %1847 = vst [vmem:[#allocation2 + $0x38] sm:$0x1] %v1846_v2  ;;  %v1266_v6 = vrot.slane %v1264_v57, 7  ;;  %v1247_v8 = vshrl.u32 %v12453_v60, 16  ;;  %v1250_v10 = vshll.u32 %v12453_v60, 16  ;;  %v1272_v11 = vshrl.u32 %v12456_v61, 16  ;;  %v441_v26 = vpop.f32.mrf.mxu0 }
 0x101   :  { %v3715_v13 = vld [vmem:[#allocation2 + $0x10] sm:$0xf]  ;;  %2113 = vst [vmem:[#allocation4 + $0xb4] sm:$0xf] %v2049_v5  ;;  %v1227_v16 = vsel %vm13732_vm14, %v1219_v32, %v1226_v3  ;;  %v1839_v15 = vsel %vm13485_vm2, %v1228_v4, %v1838_v55  ;;  %v1855_v18 = vld [vmem:[#allocation2 + $0x48] sm:$0xf]  ;;  %v447_v32 = vadd.f32 %v12619_v44, %v13688_v47 }
 0x102   :  { %v1275_v19 = vshll.u32 %v12456_v61, 16  ;;  %3779 = vst [vmem:[#allocation4 + $0x30] sm:$0xf] %v3715_v13  ;;  %1837 = vst [vmem:[#allocation2 + $0x28] sm:$0xf] %v1227_v16  ;;  %v1269_v21 = vor.u32 %v1267_v58, %v1266_v6  ;;  %v1270_v22 = vrot.slane %v1266_v6, 4  ;;  %v12623_v41 = vpop.f32.mrf.mxu0 }
 0x103   :  { %1840 = vst [vmem:[#allocation2 + $0x2c] sm:$0x1] %v1839_v15  ;;  %v13794_v23 = vrot.slane %v1247_v8, 7  ;;  %v1274_v24 = vrot.slane %v1272_v11, 7  ;;  %v2047_v28 = vld [vmem:[#allocation2 + $0x10] sm:$0xf]  ;;  %v442_v15 = vadd.f32 %v13688_v47, %v441_v26 }
 0x104   :  { %v1848_v30 = vld [vmem:[#allocation2 + $0x3c] sm:$0xf]  ;;  %v13796_v31 = vmax.f32 %v426_v20, 0.0  ;;  %2111 = vst [vmem:[#allocation4 + $0x6c] sm:$0xf] %v2047_v28  ;;  %v1856_v29 = vsel %vm13716_vm12, %v1269_v21, %v1855_v18  ;;  %v13806_v44 = vmax.f32 %v447_v32, 0.0  ;;  %v454_v2 = vpop.f32.mrf.mxu0  ;;  %v463_v18 = vadd.f32 %v12623_v41, %v13688_v47 }
 0x105   :  { %v1252_v37 = vor.u32 %v1250_v10, %v13794_v23  ;;  %v1277_v38 = vor.u32 %v1275_v19, %v1274_v24  ;;  %v1859_v39 = vld [vmem:[#allocation2 + $0x50] sm:$0x1]  ;;  %v6502_v46 = vld [vmem:[#allocation2 + $0x24] sm:$0xe]  ;;  %1857 = vst [vmem:[#allocation2 + $0x48] sm:$0xf] %v1856_v29 }
 0x106   :  { %16941 = vst [vmem:[#allocation16_spill] sm:$0xff] %v13796_v31  ;;  %v1279_v48 = vrot.slane %v1274_v24, 4  ;;  %v12454_v49 = vpack.c.bf16 %v13796_v31, %v13796_v31  ;;  %16942 = vst [vmem:[#allocation17_spill] sm:$0xff] %v13806_v44  ;;  %v13808_v51 = vmax.f32 %v439_v33, 0.0  ;;  %v1253_v52 = vrot.slane %v13794_v23, 4  ;;  %v12886_v26 = vld [vmem:[%s16842_s3 + $0x110] sm:$0xff]  }
 0x107   :  { %v1849_v53 = vsel %vm13716_vm12, %v1252_v37, %v1848_v30  ;;  %v1278_v55 = vsel %vm13732_vm14, %v1270_v22, %v1277_v38  ;;  %v13815_v57 = vmax.f32 %v450_v35, 0.0  ;;  %v3718_v58 = vld [vmem:[#allocation2 + $0x24] sm:$0xf]  ;;  %v12459_v0 = vpack.c.bf16 %v13806_v44, %v13806_v44  ;;  %v3720_v3 = vld [vmem:[#allocation2 + $0x30] sm:$0xf]  ;;  %v12624_v37 = vpop.f32.mrf.mxu0  ;;  %10007 = vmatpush1.bf16.msra.mxu1 %v12886_v26 }
 0x108   :  { %16943 = vst [vmem:[#allocation18_spill] sm:$0xff] %v13808_v51  ;;  %1850 = vst [vmem:[#allocation2 + $0x3c] sm:$0xf] %v1849_v53  ;;  %v1860_v60 = vsel %vm13485_vm2, %v1279_v48, %v1859_v39  ;;  %v1255_v61 = vshrl.u32 %v12454_v49, 16  ;;  %v1258_v62 = vshll.u32 %v12454_v49, 16  ;;  %v11989_v4 = vrot.slane %v6502_v46, 9  ;;  %10008 = vmatprep.subr.bf16.mxu1 %v16850_v1 }
 0x109   :  { %16944 = vst [vmem:[#allocation19_spill] sm:$0xff] %v13815_v57  ;;  %1858 = vst [vmem:[#allocation2 + $0x4c] sm:$0xf] %v1278_v55  ;;  %v12457_v5 = vpack.c.bf16 %v13808_v51, %v13808_v51  ;;  %v12460_v6 = vpack.c.bf16 %v13815_v57, %v13815_v57  ;;  %v12826_v8 = vld [vmem:[#allocation4 + $0x8] ss:$36 sps:$4 sm:$0xff]   ;;  %v1298_v16 = vshrl.u32 %v12459_v0, 16  ;;  %v455_v23 = vadd.f32 %v13688_v47, %v454_v2 }
 0x10a   :  { %3782 = vst [vmem:[#allocation4 + $0x9c] sm:$0xf] %v3718_v58  ;;  %1861 = vst [vmem:[#allocation2 + $0x50] sm:$0x1] %v1860_v60  ;;  %v12828_v10 = vld [vmem:[#allocation4 + $0xc] ss:$36 sps:$4 sm:$0xff]   ;;  %v466_v49 = vadd.f32 %v12624_v37, %v13688_v47 }
 0x10b   :  { %3784 = vst [vmem:[#allocation4 + $0xe4] sm:$0xf] %v3720_v3  ;;  %v13825_v11 = vld [vmem:[#allocation2 + $0x28] sm:$0xf]  ;;  %v1257_v12 = vrot.slane %v1255_v61, 7  ;;  %v1301_v20 = vshll.u32 %v12459_v0, 16  ;;  %9739 = vmatprep.mubr.bf16.mxu0 %v12828_v10 }
 0x10c   :  { %v1852_v13 = vld [vmem:[#allocation2 + $0x44] sm:$0x1]  ;;  %v16849_v19 = vrot.slane %v13825_v11, 5  ;;  %v1869_v21 = vld [vmem:[#allocation2 + $0x60] sm:$0xf]  ;;  %v1281_v22 = vshrl.u32 %v12457_v5, 16  ;;  %9740 = vmatmul.mubr.bf16.vlgmr.msra.gmra.mxu0 %v12826_v8 }
 0x10d   :  { %v3719_v24 = vld [vmem:[#allocation2 + $0x28] sm:$0xf]  ;;  %v1260_v28 = vor.u32 %v1258_v62, %v1257_v12  ;;  %v1262_v30 = vrot.slane %v1257_v12, 4  ;;  %v1300_v32 = vrot.slane %v1298_v16, 7  ;;  %v1284_v33 = vshll.u32 %v12457_v5, 16 }
 0x10e   :  { %v1862_v35 = vld [vmem:[#allocation2 + $0x54] sm:$0xf]  ;;  %v3170_v29 = vld [vmem:[#allocation2 + $0xc] sm:$0xe]  ;;  %3783 = vst [vmem:[#allocation4 + $0xc0] sm:$0xf] %v3719_v24  ;;  %v6701_v38 = vsel %vm13597_vm10, %v11989_v4, %v16849_v19 }
 0x10f   :  { %v13838_v39 = vrot.slane %v1281_v22, 7  ;;  %v1306_v41 = vshrl.u32 %v12460_v6, 16  ;;  %v3171_v46 = vld [vmem:[#allocation2 + $0x10] sm:$0xf]  ;;  %v3172_v48 = vld [vmem:[#allocation2 + $0x14] sm:$0x1]  ;;  %v1261_v53 = vsel %vm13732_vm14, %v1253_v52, %v1260_v28  ;;  %v1853_v55 = vsel %vm13485_vm2, %v1262_v30, %v1852_v13 }
 0x110   :  { %6981 = vst [vmem:[#allocation4 + $0x68] sm:$0xf] %v6701_v38  ;;  %v1303_v58 = vor.u32 %v1301_v20, %v1300_v32  ;;  %v1304_v60 = vrot.slane %v1300_v32, 4  ;;  %v3721_v61 = vld [vmem:[#allocation2 + $0x34] sm:$0xf]  ;;  %v1309_v4 = vshll.u32 %v12460_v6, 16 }
 0x111   :  { %v2050_v62 = vld [vmem:[#allocation2 + $0x24] sm:$0xf]  ;;  %1851 = vst [vmem:[#allocation2 + $0x40] sm:$0xf] %v1261_v53  ;;  %1854 = vst [vmem:[#allocation2 + $0x44] sm:$0x1] %v1853_v55  ;;  %v1286_v0 = vor.u32 %v1284_v33, %v13838_v39 }
 0x112   :  { %v1287_v2 = vrot.slane %v13838_v39, 4  ;;  %v1308_v3 = vrot.slane %v1306_v41, 7  ;;  %3785 = vst [vmem:[#allocation4 + $0x108] sm:$0xf] %v3721_v61  ;;  %v2051_v5 = vld [vmem:[#allocation2 + $0x28] sm:$0xf]  ;;  %v1870_v52 = vsel %vm13716_vm12, %v1303_v58, %v1869_v21 }
 0x113   :  { %2114 = vst [vmem:[#allocation4 + $0xd8] sm:$0xf] %v2050_v62  ;;  %v1873_v8 = vld [vmem:[#allocation2 + $0x68] sm:$0x1]  ;;  %v13850_v10 = vmax.f32 %v442_v15, 0.0  ;;  %v13852_v12 = vmax.f32 %v463_v18, 0.0  ;;  %v1863_v16 = vsel %vm13716_vm12, %v1286_v0, %v1862_v35 }
 0x114   :  { %v11925_v13 = vrot.slane %v3170_v29, 9  ;;  %2115 = vst [vmem:[#allocation4 + $0xfc] sm:$0xf] %v2051_v5  ;;  %1871 = vst [vmem:[#allocation2 + $0x60] sm:$0xf] %v1870_v52  ;;  %v1311_v6 = vor.u32 %v1309_v4, %v1308_v3  ;;  %v1313_v20 = vrot.slane %v1308_v3, 4 }
 0x115   :  { %16945 = vst [vmem:[#allocation20_spill] sm:$0xff] %v13850_v10  ;;  %16946 = vst [vmem:[#allocation21_spill] sm:$0xff] %v13852_v12  ;;  %v3371_v22 = vrot.slane %v3171_v46, 5  ;;  %v12458_v24 = vpack.c.bf16 %v13850_v10, %v13850_v10  ;;  %v12463_v21 = vpack.c.bf16 %v13852_v12, %v13852_v12  ;;  %v3374_v15 = vrot.slane %v3172_v48, 5  ;;  %v2175_v18 = vld [vmem:[#allocation2 + $0xc] sm:$0xf] }
 0x116   :  { %1864 = vst [vmem:[#allocation2 + $0x54] sm:$0xf] %v1863_v16  ;;  %v13860_v28 = vmax.f32 %v455_v23, 0.0  ;;  %v1312_v30 = vsel %vm13732_vm14, %v1304_v60, %v1311_v6  ;;  %v1874_v32 = vsel %vm13485_vm2, %v1313_v20, %v1873_v8  ;;  %v13868_v29 = vld [vmem:[#allocation2 + $0x10] sm:$0xf]  ;;  %v13874_v58 = vmax.f32 %v466_v49, 0.0 }
 0x117   :  { %v3372_v33 = vsel %vm13597_vm10, %v11925_v13, %v3371_v22  ;;  %v3373_v35 = vrot.slane %v3371_v22, 4  ;;  %v3722_v37 = vld [vmem:[#allocation2 + $0x3c] sm:$0xf]  ;;  %1872 = vst [vmem:[#allocation2 + $0x64] sm:$0xf] %v1312_v30  ;;  %v1289_v26 = vshrl.u32 %v12458_v24, 16 }
 0x118   :  { %16947 = vst [vmem:[#allocation22_spill] sm:$0xff] %v13860_v28  ;;  %1875 = vst [vmem:[#allocation2 + $0x68] sm:$0x1] %v1874_v32  ;;  %v1292_v38 = vshll.u32 %v12458_v24, 16  ;;  %v1332_v23 = vshrl.u32 %v12463_v21, 16  ;;  %v1335_v41 = vshll.u32 %v12463_v21, 16  ;;  %v12461_v55 = vpack.c.bf16 %v13860_v28, %v13860_v28 }
 0x119   :  { %3652 = vst [vmem:[#allocation4 + $0x50] sm:$0xf] %v3372_v33  ;;  %3786 = vst [vmem:[#allocation4 + $0x12c] sm:$0xf] %v3722_v37  ;;  %v2052_v46 = vld [vmem:[#allocation2 + $0x30] sm:$0xf]  ;;  %v3375_v53 = vsel %vm13597_vm10, %v3373_v35, %v3374_v15  ;;  %v12464_v13 = vpack.c.bf16 %v13874_v58, %v13874_v58 }
 0x11a   :  { %v1866_v48 = vld [vmem:[#allocation2 + $0x5c] sm:$0x1]  ;;  %16948 = vst [vmem:[#allocation23_spill] sm:$0xff] %v13874_v58  ;;  %v2296_v60 = vshrl.u32 %v2175_v18, 16  ;;  %v2053_v61 = vld [vmem:[#allocation2 + $0x34] sm:$0xf] }
 0x11b   :  { %2116 = vst [vmem:[#allocation4 + $0x120] sm:$0xf] %v2052_v46  ;;  %v1291_v62 = vrot.slane %v1289_v26, 7  ;;  %v13876_v0 = vrot.slane %v1332_v23, 7  ;;  %v1883_v3 = vld [vmem:[#allocation2 + $0x78] sm:$0xf] }
 0x11c   :  { %3653 = vst [vmem:[#allocation4 + $0x74] sm:$0xf] %v3375_v53  ;;  %v2299_v4 = vshll.u32 %v2175_v18, 16  ;;  %v2305_v5 = vshll.u32 %v13868_v29, 16  ;;  %2117 = vst [vmem:[#allocation4 + $0x144] sm:$0xf] %v2053_v61 }
 0x11d   :  { %v1315_v52 = vshrl.u32 %v12461_v55, 16  ;;  %v1318_v8 = vshll.u32 %v12461_v55, 16  ;;  %v2298_v16 = vrot.slane %v2296_v60, 4  ;;  %v3723_v49 = vld [vmem:[#allocation2 + $0x40] sm:$0xf]  ;;  %v1294_v6 = vor.u32 %v1292_v38, %v1291_v62 }
 0x11e   :  { %v1296_v20 = vrot.slane %v1291_v62, 4  ;;  %v1337_v22 = vor.u32 %v1335_v41, %v13876_v0  ;;  %v1338_v24 = vrot.slane %v13876_v0, 4  ;;  %v3173_v21 = vld [vmem:[#allocation2 + $0x18] sm:$0xe]  ;;  %v3174_v15 = vld [vmem:[#allocation2 + $0x1c] sm:$0xf] }
 0x11f   :  { %3787 = vst [vmem:[#allocation4 + $0x150] sm:$0xf] %v3723_v49  ;;  %v13883_v18 = vrot.slane %v1315_v52, 7  ;;  %v1340_v30 = vshrl.u32 %v12464_v13, 16  ;;  %v1343_v32 = vshll.u32 %v12464_v13, 16  ;;  %v2301_v35 = vrot.slane %v2299_v4, 5 }
 0x120   :  { %v2177_v33 = vld [vmem:[#allocation2 + $0x14] sm:$0x1]  ;;  %v1295_v37 = vsel %vm13732_vm14, %v1287_v2, %v1294_v6  ;;  %v1867_v26 = vsel %vm13485_vm2, %v1296_v20, %v1866_v48  ;;  %v1884_v38 = vsel %vm13716_vm12, %v1337_v22, %v1883_v3  ;;  %v1876_v23 = vld [vmem:[#allocation2 + $0x6c] sm:$0xf]  ;;  %v1887_v41 = vld [vmem:[#allocation2 + $0x80] sm:$0x1] }
 0x121   :  { %v2307_v46 = vrot.slane %v2305_v5, 5  ;;  %1865 = vst [vmem:[#allocation2 + $0x58] sm:$0xf] %v1295_v37  ;;  %1868 = vst [vmem:[#allocation2 + $0x5c] sm:$0x1] %v1867_v26  ;;  %v1320_v53 = vor.u32 %v1318_v8, %v13883_v18  ;;  %v1321_v55 = vrot.slane %v13883_v18, 4  ;;  %v2302_v60 = vor.u32 %v2301_v35, %v2298_v16  ;;  %v457_v35 = vpop.f32.mrf.mxu0 }
 0x122   :  { %1885 = vst [vmem:[#allocation2 + $0x78] sm:$0xf] %v1884_v38  ;;  %v1342_v39 = vrot.slane %v1340_v30, 7  ;;  %v3175_v61 = vld [vmem:[#allocation2 + $0x20] sm:$0x1]  ;;  %v2309_v48 = vshrl.u32 %v13868_v29, 16 }
 0x123   :  { %v2178_v2 = vld [vmem:[#allocation2 + $0x18] sm:$0xf]  ;;  %v3724_v62 = vld [vmem:[#allocation2 + $0x48] sm:$0xf]  ;;  %v2315_v0 = vshll.u32 %v2177_v33, 16  ;;  %v11926_v4 = vrot.slane %v3173_v21, 9  ;;  %v1877_v8 = vsel %vm13716_vm12, %v1320_v53, %v1876_v23 }
 0x124   :  { %v3378_v3 = vrot.slane %v3174_v15, 5  ;;  %v2179_v52 = vld [vmem:[#allocation2 + $0x1c] sm:$0xf]  ;;  %v2180_v13 = vld [vmem:[#allocation2 + $0x20] sm:$0x1]  ;;  %v7059_v6 = vld [vmem:[#allocation4 + $0x74] sm:$0xff]  ;;  %v1345_v22 = vor.u32 %v1343_v32, %v1342_v39 }
 0x125   :  { %v3725_v5 = vld [vmem:[#allocation2 + $0x4c] sm:$0xf]  ;;  %3788 = vst [vmem:[#allocation4 + $0x174] sm:$0xf] %v3724_v62  ;;  %v7054_v49 = vld [vmem:[#allocation4 + $0x50] sm:$0xff]  ;;  %v1347_v16 = vrot.slane %v1342_v39, 4  ;;  %v458_v62 = vadd.f32 %v13688_v47, %v457_v35 }
 0x126   :  { %v12830_v20 = vld [vmem:[#allocation4 + $0x54] ss:$36 sps:$4 sm:$0xff]   ;;  %v2303_v30 = vrot.slane %v2302_v60, 4  ;;  %3789 = vst [vmem:[#allocation4 + $0x198] sm:$0xf] %v3725_v5  ;;  %v2311_v29 = vrot.slane %v2309_v48, 4  ;;  %v12032_v21 = vcombine.low %v7054_v49, %v7059_v6  ;;  %v3379_v15 = vsel %vm13597_vm10, %v11926_v4, %v3378_v3  ;;  %v13907_v4 = vpop.f32.mrf.mxu0 }
 0x127   :  { %1878 = vst [vmem:[#allocation2 + $0x6c] sm:$0xf] %v1877_v8  ;;  %v2317_v33 = vrot.slane %v2315_v0, 5  ;;  %v2054_v37 = vld [vmem:[#allocation2 + $0x3c] sm:$0xf]  ;;  %9747 = vmatprep.mubr.bf16.mxu0 %v12830_v20  ;;  %v1346_v38 = vsel %vm13732_vm14, %v1338_v24, %v1345_v22  ;;  %v1888_v32 = vsel %vm13485_vm2, %v1347_v16, %v1887_v41  ;;  %v3380_v53 = vrot.slane %v3378_v3, 4 }
 0x128   :  { %v2055_v26 = vld [vmem:[#allocation2 + $0x40] sm:$0xf]  ;;  %v2308_v23 = vsel %vm13579_vm9, %v2303_v30, %v2307_v46  ;;  %3654 = vst [vmem:[#allocation4 + $0x98] sm:$0xf] %v3379_v15  ;;  %2118 = vst [vmem:[#allocation4 + $0x168] sm:$0xf] %v2054_v37  ;;  %v2312_v39 = vor.u32 %v2311_v29, %v2307_v46  ;;  %9748 = vmatmul.mubr.bf16.gmra.mxu0 %v12032_v21 }
 0x129   :  { %2119 = vst [vmem:[#allocation4 + $0x18c] sm:$0xf] %v2055_v26  ;;  %1886 = vst [vmem:[#allocation2 + $0x7c] sm:$0xf] %v1346_v38  ;;  %v3381_v60 = vrot.slane %v3175_v61, 5  ;;  %v2320_v48 = vshrl.u32 %v2178_v2, 16  ;;  %v470_v26 = vpop.f32.mrf.mxu0 }
 0x12a   :  { %1889 = vst [vmem:[#allocation2 + $0x80] sm:$0x1] %v1888_v32  ;;  %3105 = vst [vmem:[#allocation4 + $0x4c] sm:$0xf] %v2308_v23  ;;  %v3176_v24 = vld [vmem:[#allocation2 + $0x24] sm:$0xe] }
 0x12b   :  { %v3177_v0 = vld [vmem:[#allocation2 + $0x28] sm:$0xf]  ;;  %v2323_v41 = vshll.u32 %v2178_v2, 16  ;;  %v2329_v5 = vshll.u32 %v2179_v52, 16  ;;  %v2333_v49 = vshrl.u32 %v2179_v52, 16  ;;  %v2339_v3 = vshll.u32 %v2180_v13, 16 }
 0x12c   :  { %v3178_v6 = vld [vmem:[#allocation2 + $0x2c] sm:$0x1]  ;;  %v2313_v20 = vrot.slane %v2312_v39, 4  ;;  %v3382_v8 = vsel %vm13597_vm10, %v3380_v53, %v3381_v60  ;;  %v13911_v46 = vmax.f32 %v458_v62, 0.0  ;;  %v2322_v22 = vrot.slane %v2320_v48, 4 }
 0x12d   :  { %v2181_v61 = vld [vmem:[#allocation2 + $0x24] sm:$0xf]  ;;  %v12899_v16 = vld [vmem:[%s16842_s3 + $0x108] sm:$0xff]   ;;  %3655 = vst [vmem:[#allocation4 + $0xbc] sm:$0xf] %v3382_v8  ;;  %v2325_v30 = vrot.slane %v2323_v41, 5 }
 0x12e   :  { %16949 = vst [vmem:[#allocation24_spill] sm:$0xff] %v13911_v46  ;;  %v2331_v35 = vrot.slane %v2329_v5, 5  ;;  %v2335_v2 = vrot.slane %v2333_v49, 4  ;;  %v2341_v29 = vrot.slane %v2339_v3, 5  ;;  %v2182_v52 = vld [vmem:[#allocation2 + $0x28] sm:$0xf]  ;;  %v2318_v13 = vsel %vm13579_vm9, %v2313_v20, %v2317_v33  ;;  %10009 = vmatpush1.bf16.msra.mxu1 %v12899_v16 }
 0x12f   :  { %v12462_v21 = vpack.c.bf16 %v13911_v46, %v13911_v46  ;;  %v11927_v15 = vrot.slane %v3176_v24, 9  ;;  %v3385_v37 = vrot.slane %v3177_v0, 5  ;;  %v3726_v38 = vld [vmem:[#allocation2 + $0x54] sm:$0xf]  ;;  %v3727_v32 = vld [vmem:[#allocation2 + $0x58] sm:$0xf]  ;;  %v2326_v23 = vor.u32 %v2325_v30, %v2322_v22  ;;  %10010 = vmatprep.subr.bf16.mxu1 %v16850_v1 }
 0x130   :  { %3106 = vst [vmem:[#allocation4 + $0x70] sm:$0xf] %v2318_v13  ;;  %v2336_v53 = vor.u32 %v2335_v2, %v2331_v35  ;;  %v3388_v39 = vrot.slane %v3178_v6, 5  ;;  %v2344_v60 = vshrl.u32 %v2181_v61, 16  ;;  %3790 = vst [vmem:[#allocation4 + $0x1bc] sm:$0xf] %v3726_v38  ;;  %v12628_v13 = vpop.f32.mrf.mxu0 }
 0x131   :  { %3791 = vst [vmem:[#allocation4 + $0x1e0] sm:$0xf] %v3727_v32  ;;  %v2056_v62 = vld [vmem:[#allocation2 + $0x48] sm:$0xf]  ;;  %v2057_v48 = vld [vmem:[#allocation2 + $0x4c] sm:$0xf]  ;;  %v3386_v24 = vsel %vm13597_vm10, %v11927_v15, %v3385_v37 }
 0x132   :  { %v1323_v33 = vshrl.u32 %v12462_v21, 16  ;;  %v1326_v41 = vshll.u32 %v12462_v21, 16  ;;  %v3387_v0 = vrot.slane %v3385_v37, 4  ;;  %v2183_v5 = vld [vmem:[#allocation2 + $0x2c] sm:$0x1]  ;;  %v2327_v49 = vrot.slane %v2326_v23, 4 }
 0x133   :  { %2120 = vst [vmem:[#allocation4 + $0x1b0] sm:$0xf] %v2056_v62  ;;  %2121 = vst [vmem:[#allocation4 + $0x1d4] sm:$0xf] %v2057_v48  ;;  %v2337_v3 = vrot.slane %v2336_v53, 4  ;;  %v2346_v6 = vrot.slane %v2344_v60, 4 }
 0x134   :  { %3656 = vst [vmem:[#allocation4 + $0xe0] sm:$0xf] %v3386_v24  ;;  %v2347_v20 = vshll.u32 %v2181_v61, 16  ;;  %v1325_v8 = vrot.slane %v1323_v33, 7  ;;  %v1880_v22 = vld [vmem:[#allocation2 + $0x74] sm:$0x1]  ;;  %v3389_v16 = vsel %vm13597_vm10, %v3387_v0, %v3388_v39  ;;  %v2332_v15 = vsel %vm13579_vm9, %v2327_v49, %v2331_v35 }
 0x135   :  { %v2353_v30 = vshll.u32 %v2182_v52, 16  ;;  %v2357_v2 = vshrl.u32 %v2182_v52, 16  ;;  %v7064_v21 = vld [vmem:[#allocation4 + $0x98] sm:$0xff]  ;;  %v2342_v37 = vsel %vm13579_vm9, %v2337_v3, %v2341_v29  ;;  %3657 = vst [vmem:[#allocation4 + $0x104] sm:$0xf] %v3389_v16  ;;  %v2363_v32 = vshll.u32 %v2183_v5, 16 }
 0x136   :  { %v2349_v38 = vrot.slane %v2347_v20, 5  ;;  %v3179_v23 = vld [vmem:[#allocation2 + $0x30] sm:$0xe]  ;;  %v1328_v60 = vor.u32 %v1326_v41, %v1325_v8  ;;  %v1330_v62 = vrot.slane %v1325_v8, 4  ;;  %3107 = vst [vmem:[#allocation4 + $0x94] sm:$0xf] %v2332_v15  ;;  %v479_v35 = vadd.f32 %v13907_v4, %v13688_v47  ;;  %v473_v8 = vpop.f32.mrf.mxu0 }
 0x137   :  { %v7069_v61 = vld [vmem:[#allocation4 + $0xbc] sm:$0xff]  ;;  %3108 = vst [vmem:[#allocation4 + $0xb8] sm:$0xf] %v2342_v37  ;;  %v2355_v39 = vrot.slane %v2353_v30, 5  ;;  %v2359_v52 = vrot.slane %v2357_v2, 4  ;;  %v2365_v24 = vrot.slane %v2363_v32, 5  ;;  %v482_v30 = vadd.f32 %v12628_v13, %v13688_v47 }
 0x138   :  { %v12835_v53 = vld [vmem:[#allocation4 + $0x9c] ss:$36 sps:$4 sm:$0xff]   ;;  %v12041_v48 = vcombine.low %v7064_v21, %v7069_v61  ;;  %v2350_v33 = vor.u32 %v2349_v38, %v2346_v6  ;;  %v3180_v0 = vld [vmem:[#allocation2 + $0x34] sm:$0xf]  ;;  %v3181_v29 = vld [vmem:[#allocation2 + $0x38] sm:$0x1]  ;;  %v1329_v41 = vsel %vm13732_vm14, %v1321_v55, %v1328_v60  ;;  %v1881_v5 = vsel %vm13485_vm2, %v1330_v62, %v1880_v22 }
 0x139   :  { %v12832_v49 = vld [vmem:[#allocation4 + $0x4c] ss:$36 sps:$4 sm:$0xff]   ;;  %9755 = vmatprep.mubr.bf16.mxu0 %v12835_v53  ;;  %v2360_v20 = vor.u32 %v2359_v52, %v2355_v39  ;;  %v471_v6 = vadd.f32 %v13688_v47, %v470_v26  ;;  %1879 = vst [vmem:[#allocation2 + $0x70] sm:$0xf] %v1329_v41  ;;  %1882 = vst [vmem:[#allocation2 + $0x74] sm:$0x1] %v1881_v5 }
 0x13a   :  { %v12834_v3 = vld [vmem:[#allocation4 + $0x48] ss:$36 sps:$4 sm:$0xff]   ;;  %9756 = vmatmul.mubr.bf16.gmra.mxu0 %v12041_v48  ;;  %v2351_v4 = vrot.slane %v2350_v33, 4  ;;  %v13938_v16 = vmax.f32 %v479_v35, 0.0  ;;  %v11928_v2 = vrot.slane %v3179_v23, 9  ;;  %9458 = vmatprep.mubr.bf16.mxu1 %v12832_v49  ;;  %v3392_v15 = vrot.slane %v3180_v0, 5 }
 0x13b   :  { %v3728_v18 = vld [vmem:[#allocation2 + $0x60] sm:$0xf]  ;;  %v2361_v21 = vrot.slane %v2360_v20, 4  ;;  %v13941_v55 = vmax.f32 %v471_v6, 0.0  ;;  %v3395_v22 = vrot.slane %v3181_v29, 5  ;;  %9459 = vmatmul.mubr.bf16.gmra.mxu1 %v12834_v3  ;;  %v7074_v26 = vld [vmem:[#allocation4 + $0xe0] sm:$0xff]  ;;  %v474_v23 = vadd.f32 %v13688_v47, %v473_v8 }
 0x13c   :  { %16950 = vst [vmem:[#allocation25_spill] sm:$0xff] %v13938_v16  ;;  %v13943_v37 = vld [vmem:[#allocation2 + $0x30] sm:$0xf]  ;;  %3792 = vst [vmem:[#allocation4 + $0x204] sm:$0xf] %v3728_v18  ;;  %v2356_v38 = vsel %vm13579_vm9, %v2351_v4, %v2355_v39  ;;  %v12467_v32 = vpack.c.bf16 %v13938_v16, %v13938_v16  ;;  %v13949_v13 = vmax.f32 %v482_v30, 0.0  ;;  %v3393_v33 = vsel %vm13597_vm10, %v11928_v2, %v3392_v15 }
 0x13d   :  { %16951 = vst [vmem:[#allocation26_spill] sm:$0xff] %v13941_v55  ;;  %v13952_v61 = vld [vmem:[#allocation2 + $0x34] sm:$0xf]  ;;  %v3729_v53 = vld [vmem:[#allocation2 + $0x64] sm:$0xf]  ;;  %v2366_v48 = vsel %vm13579_vm9, %v2361_v21, %v2365_v24  ;;  %v12465_v39 = vpack.c.bf16 %v13941_v55, %v13941_v55  ;;  %v3394_v35 = vrot.slane %v3392_v15, 4  ;;  %v12631_v15 = vpop.f32.mrf.mxu0 }
 0x13e   :  { %16952 = vst [vmem:[#allocation27_spill] sm:$0xff] %v13949_v13  ;;  %v2058_v60 = vld [vmem:[#allocation2 + $0x54] sm:$0xf]  ;;  %3109 = vst [vmem:[#allocation4 + $0xdc] sm:$0xf] %v2356_v38  ;;  %v1366_v29 = vshrl.u32 %v12467_v32, 16  ;;  %v12468_v3 = vpack.c.bf16 %v13949_v13, %v13949_v13 }
 0x13f   :  { %v7079_v62 = vld [vmem:[#allocation4 + $0x104] sm:$0xff]  ;;  %3793 = vst [vmem:[#allocation4 + $0x228] sm:$0xf] %v3729_v53  ;;  %2122 = vst [vmem:[#allocation4 + $0x1f8] sm:$0xf] %v2058_v60  ;;  %v1369_v49 = vshll.u32 %v12467_v32, 16  ;;  %v3396_v6 = vsel %vm13597_vm10, %v3394_v35, %v3395_v22 }
 0x140   :  { %v12840_v52 = vld [vmem:[#allocation4 + $0xe4] ss:$36 sps:$4 sm:$0xff]   ;;  %v12837_v47 = vld [vmem:[#allocation4 + $0x94] ss:$36 sps:$4 sm:$0xff]   ;;  %3110 = vst [vmem:[#allocation4 + $0x100] sm:$0xf] %v2366_v48  ;;  %v12050_v41 = vcombine.low %v7074_v26, %v7079_v62 }
 0x141   :  { %v2059_v0 = vld [vmem:[#allocation2 + $0x58] sm:$0xf]  ;;  %3658 = vst [vmem:[#allocation4 + $0x128] sm:$0xf] %v3393_v33  ;;  %9763 = vmatprep.mubr.bf16.mxu0 %v12840_v52  ;;  %v1897_v24 = vld [vmem:[#allocation2 + $0x90] sm:$0xf]  ;;  %9466 = vmatprep.mubr.bf16.mxu1 %v12837_v47 }
 0x142   :  { %2123 = vst [vmem:[#allocation4 + $0x21c] sm:$0xf] %v2059_v0  ;;  %v1349_v5 = vshrl.u32 %v12465_v39, 16  ;;  %v1352_v20 = vshll.u32 %v12465_v39, 16  ;;  %v13964_v8 = vmax.f32 %v474_v23, 0.0  ;;  %v1368_v4 = vrot.slane %v1366_v29, 7  ;;  %9764 = vmatmul.mubr.bf16.gmra.mxu0 %v12050_v41 }
 0x143   :  { %v1890_v30 = vld [vmem:[#allocation2 + $0x84] sm:$0xf]  ;;  %v1374_v2 = vshrl.u32 %v12468_v3, 16  ;;  %v1377_v18 = vshll.u32 %v12468_v3, 16  ;;  %3659 = vst [vmem:[#allocation4 + $0x14c] sm:$0xf] %v3396_v6 }
 0x144   :  { %16953 = vst [vmem:[#allocation28_spill] sm:$0xff] %v13964_v8  ;;  %v2368_v21 = vshrl.u32 %v13943_v37, 16  ;;  %v1351_v26 = vrot.slane %v1349_v5, 7  ;;  %v1901_v38 = vld [vmem:[#allocation2 + $0x98] sm:$0x1]  ;;  %v12466_v32 = vpack.c.bf16 %v13964_v8, %v13964_v8  ;;  %v2371_v53 = vshll.u32 %v13943_v37, 16 }
 0x145   :  { %v2377_v22 = vshll.u32 %v13952_v61, 16  ;;  %v12839_v23 = vld [vmem:[#allocation4 + $0x90] ss:$36 sps:$4 sm:$0xff]   ;;  %v1371_v60 = vor.u32 %v1369_v49, %v1368_v4  ;;  %v1372_v62 = vrot.slane %v1368_v4, 4  ;;  %v1376_v52 = vrot.slane %v1374_v2, 7  ;;  %v486_v49 = vpop.f32.mrf.mxu0 }
 0x146   :  { %v2186_v48 = vld [vmem:[#allocation2 + $0x38] sm:$0x1]  ;;  %v2370_v39 = vrot.slane %v2368_v21, 4  ;;  %v1354_v33 = vor.u32 %v1352_v20, %v1351_v26  ;;  %v1355_v35 = vrot.slane %v1351_v26, 4  ;;  %v1357_v0 = vshrl.u32 %v12466_v32, 16  ;;  %9467 = vmatmul.mubr.bf16.gmra.mxu1 %v12839_v23 }
 0x147   :  { %v1360_v47 = vshll.u32 %v12466_v32, 16  ;;  %v3182_v29 = vld [vmem:[#allocation2 + $0x3c] sm:$0xe]  ;;  %v1898_v3 = vsel %vm13716_vm12, %v1371_v60, %v1897_v24  ;;  %v1379_v5 = vor.u32 %v1377_v18, %v1376_v52  ;;  %v1381_v37 = vrot.slane %v1376_v52, 4  ;;  %v1894_v6 = vld [vmem:[#allocation2 + $0x8c] sm:$0x1] }
 0x148   :  { %v2373_v19 = vrot.slane %v2371_v53, 5  ;;  %v3183_v1 = vld [vmem:[#allocation2 + $0x40] sm:$0xf]  ;;  %v12843_v4 = vld [vmem:[#allocation4 + $0xdc] ss:$36 sps:$4 sm:$0xff]   ;;  %v1891_v41 = vsel %vm13716_vm12, %v1354_v33, %v1890_v30  ;;  %v1359_v20 = vrot.slane %v1357_v0, 7 }
 0x149   :  { %1899 = vst [vmem:[#allocation2 + $0x90] sm:$0xf] %v1898_v3  ;;  %v3184_v2 = vld [vmem:[#allocation2 + $0x44] sm:$0x1]  ;;  %v13978_v21 = vld [vmem:[%s16843_s2] ss:$0 sm:$0xff]  ;;  %v1380_v26 = vsel %vm13732_vm14, %v1372_v62, %v1379_v5  ;;  %v1902_v32 = vsel %vm13485_vm2, %v1381_v37, %v1901_v38  ;;  %9474 = vmatprep.mubr.bf16.mxu1 %v12843_v4 }
 0x14a   :  { %v495_v24 = vadd.f32 %v13978_v21, %v12631_v15  ;;  %v13982_v18 = vadd.f32 %v13978_v21, %v486_v49  ;;  %1892 = vst [vmem:[#allocation2 + $0x84] sm:$0xf] %v1891_v41  ;;  %v7084_v30 = vld [vmem:[#allocation4 + $0x128] sm:$0xff]  ;;  %v2374_v53 = vor.u32 %v2373_v19, %v2370_v39  ;;  %v2379_v23 = vrot.slane %v2377_v22, 5  ;;  %v2188_v52 = vld [vmem:[#allocation2 + $0x40] sm:$0xf] }
 0x14b   :  { %v2187_v60 = vld [vmem:[#allocation2 + $0x3c] sm:$0xf]  ;;  %1900 = vst [vmem:[#allocation2 + $0x94] sm:$0xf] %v1380_v26  ;;  %1903 = vst [vmem:[#allocation2 + $0x98] sm:$0x1] %v1902_v32  ;;  %v1362_v0 = vor.u32 %v1360_v47, %v1359_v20 }
 0x14c   :  { %v7089_v33 = vld [vmem:[#allocation4 + $0x14c] sm:$0xff]  ;;  %v1364_v3 = vrot.slane %v1359_v20, 4  ;;  %v2381_v49 = vshrl.u32 %v13952_v61, 16  ;;  %v2387_v41 = vshll.u32 %v2186_v48, 16  ;;  %v2189_v13 = vld [vmem:[#allocation2 + $0x44] sm:$0x1] }
 0x14d   :  { %v12846_v15 = vld [vmem:[#allocation4 + $0x12c] ss:$36 sps:$4 sm:$0xff]   ;;  %v2375_v62 = vrot.slane %v2374_v53, 4  ;;  %v12059_v5 = vcombine.low %v7084_v30, %v7089_v33  ;;  %v11929_v8 = vrot.slane %v3182_v29, 9  ;;  %v3399_v38 = vrot.slane %v3183_v1, 5 }
 0x14e   :  { %v3730_v37 = vld [vmem:[#allocation2 + $0x6c] sm:$0xf]  ;;  %v12912_v19 = vld [vmem:[%s16842_s3 + $0x100] sm:$0xff]   ;;  %9771 = vmatprep.mubr.bf16.mxu0 %v12846_v15  ;;  %v1363_v22 = vsel %vm13732_vm14, %v1355_v35, %v1362_v0  ;;  %v1895_v39 = vsel %vm13485_vm2, %v1364_v3, %v1894_v6  ;;  %v2383_v47 = vrot.slane %v2381_v49, 4  ;;  %v2389_v61 = vrot.slane %v2387_v41, 5 }
 0x14f   :  { %v3731_v48 = vld [vmem:[#allocation2 + $0x70] sm:$0xf]  ;;  %3794 = vst [vmem:[#allocation4 + $0x24c] sm:$0xf] %v3730_v37  ;;  %v2060_v4 = vld [vmem:[#allocation2 + $0x60] sm:$0xf]  ;;  %v2380_v1 = vsel %vm13579_vm9, %v2375_v62, %v2379_v23  ;;  %9772 = vmatmul.mubr.bf16.gmra.mxu0 %v12059_v5  ;;  %v3400_v29 = vsel %vm13597_vm10, %v11929_v8, %v3399_v38  ;;  %10011 = vmatpush1.bf16.msra.mxu1 %v12912_v19 }
 0x150   :  { %v12845_v20 = vld [vmem:[#allocation4 + $0xd8] ss:$36 sps:$4 sm:$0xff]   ;;  %1893 = vst [vmem:[#allocation2 + $0x88] sm:$0xf] %v1363_v22  ;;  %1896 = vst [vmem:[#allocation2 + $0x8c] sm:$0x1] %v1895_v39  ;;  %v2384_v6 = vor.u32 %v2383_v47, %v2379_v23 }
 0x151   :  { %v3401_v26 = vrot.slane %v3399_v38, 4  ;;  %v3402_v35 = vrot.slane %v3184_v2, 5  ;;  %3795 = vst [vmem:[#allocation4 + $0x270] sm:$0xf] %v3731_v48  ;;  %v2061_v32 = vld [vmem:[#allocation2 + $0x64] sm:$0xf]  ;;  %9475 = vmatmul.mubr.bf16.gmra.mxu1 %v12845_v20  ;;  %v12632_v38 = vpop.f32.mrf.mxu0 }
 0x152   :  { %2124 = vst [vmem:[#allocation4 + $0x240] sm:$0xf] %v2060_v4  ;;  %3111 = vst [vmem:[#allocation4 + $0x124] sm:$0xf] %v2380_v1  ;;  %v2392_v30 = vshrl.u32 %v2187_v60, 16  ;;  %v2395_v53 = vshll.u32 %v2187_v60, 16  ;;  %v498_v47 = vadd.f32 %v13978_v21, %v12632_v38 }
 0x153   :  { %3660 = vst [vmem:[#allocation4 + $0x170] sm:$0xf] %v3400_v29  ;;  %v2401_v33 = vshll.u32 %v2188_v52, 16  ;;  %2125 = vst [vmem:[#allocation4 + $0x264] sm:$0xf] %v2061_v32  ;;  %v16954_v15 = vmov 0   ;;  %v3403_v0 = vsel %vm13597_vm10, %v3401_v26, %v3402_v35 }
 0x154   :  { %10012 = vmatprep.subr.bf16.mxu1 %v16954_v15  ;;  %v2405_v8 = vshrl.u32 %v2188_v52, 16  ;;  %v2411_v3 = vshll.u32 %v2189_v13, 16  ;;  %v14003_v2 = vmax.f32 %v495_v24, 0.0  ;;  %v3185_v49 = vld [vmem:[#allocation2 + $0x48] sm:$0xe]  ;;  %v2385_v41 = vrot.slane %v2384_v6, 4 }
 0x155   :  { %3661 = vst [vmem:[#allocation4 + $0x194] sm:$0xf] %v3403_v0  ;;  %v2394_v23 = vrot.slane %v2392_v30, 4  ;;  %v2397_v62 = vrot.slane %v2395_v53, 5  ;;  %v2403_v5 = vrot.slane %v2401_v33, 5  ;;  %v14008_v39 = vmax.f32 %v13982_v18, 0.0  ;;  %v489_v53 = vpop.f32.mrf.mxu0 }
 0x156   :  { %16955 = vst [vmem:[#allocation29_spill] sm:$0xff] %v14003_v2  ;;  %v3186_v60 = vld [vmem:[#allocation2 + $0x4c] sm:$0xf]  ;;  %v2407_v37 = vrot.slane %v2405_v8, 4  ;;  %v2413_v19 = vrot.slane %v2411_v3, 5  ;;  %v12471_v22 = vpack.c.bf16 %v14003_v2, %v14003_v2  ;;  %v2390_v13 = vsel %vm13579_vm9, %v2385_v41, %v2389_v61 }
 0x157   :  { %16956 = vst [vmem:[#allocation30_spill] sm:$0xff] %v14008_v39  ;;  %v3187_v52 = vld [vmem:[#allocation2 + $0x50] sm:$0x1]  ;;  %v2398_v24 = vor.u32 %v2397_v62, %v2394_v23  ;;  %v11930_v48 = vrot.slane %v3185_v49, 9  ;;  %v3732_v4 = vld [vmem:[#allocation2 + $0x78] sm:$0xf]  ;;  %v12469_v26 = vpack.c.bf16 %v14008_v39, %v14008_v39 }
 0x158   :  { %3112 = vst [vmem:[#allocation4 + $0x148] sm:$0xf] %v2390_v13  ;;  %v2408_v20 = vor.u32 %v2407_v37, %v2403_v5  ;;  %v1400_v1 = vshrl.u32 %v12471_v22, 16  ;;  %v1403_v29 = vshll.u32 %v12471_v22, 16  ;;  %v3733_v35 = vld [vmem:[#allocation2 + $0x7c] sm:$0xf]  ;;  %v12635_v37 = vpop.f32.mrf.mxu0 }
 0x159   :  { %3796 = vst [vmem:[#allocation4 + $0x294] sm:$0xf] %v3732_v4  ;;  %v2062_v18 = vld [vmem:[#allocation2 + $0x6c] sm:$0xf]  ;;  %v2399_v32 = vrot.slane %v2398_v24, 4  ;;  %v14015_v6 = vmax.f32 %v498_v47, 0.0 }
 0x15a   :  { %v3406_v30 = vrot.slane %v3186_v60, 5  ;;  %v3409_v61 = vrot.slane %v3187_v52, 5  ;;  %3797 = vst [vmem:[#allocation4 + $0x2b8] sm:$0xf] %v3733_v35  ;;  %2126 = vst [vmem:[#allocation4 + $0x288] sm:$0xf] %v2062_v18 }
 0x15b   :  { %16957 = vst [vmem:[#allocation31_spill] sm:$0xff] %v14015_v6  ;;  %v7094_v33 = vld [vmem:[#allocation4 + $0x170] sm:$0xff]  ;;  %v2409_v0 = vrot.slane %v2408_v20, 4  ;;  %v14017_v8 = vrot.slane %v1400_v1, 7  ;;  %v1383_v3 = vshrl.u32 %v12469_v26, 16  ;;  %v1386_v49 = vshll.u32 %v12469_v26, 16 }
 0x15c   :  { %v2404_v41 = vsel %vm13579_vm9, %v2399_v32, %v2403_v5  ;;  %v1911_v23 = vld [vmem:[#allocation2 + $0xa8] sm:$0xf]  ;;  %v12472_v62 = vpack.c.bf16 %v14015_v6, %v14015_v6  ;;  %v3407_v38 = vsel %vm13597_vm10, %v11930_v48, %v3406_v30  ;;  %v3408_v60 = vrot.slane %v3406_v30, 4  ;;  %v2063_v22 = vld [vmem:[#allocation2 + $0x70] sm:$0xf] }
 0x15d   :  { %v7099_v52 = vld [vmem:[#allocation4 + $0x194] sm:$0xff]  ;;  %v2414_v24 = vsel %vm13579_vm9, %v2409_v0, %v2413_v19  ;;  %3113 = vst [vmem:[#allocation4 + $0x16c] sm:$0xf] %v2404_v41  ;;  %v1405_v47 = vor.u32 %v1403_v29, %v14017_v8  ;;  %v14028_v4 = vrot.slane %v1383_v3, 7  ;;  %3662 = vst [vmem:[#allocation4 + $0x1b8] sm:$0xf] %v3407_v38  ;;  %v490_v32 = vadd.f32 %v13978_v21, %v489_v53 }
 0x15e   :  { %v12851_v13 = vld [vmem:[#allocation4 + $0x174] ss:$36 sps:$4 sm:$0xff]   ;;  %2127 = vst [vmem:[#allocation4 + $0x2ac] sm:$0xf] %v2063_v22  ;;  %3114 = vst [vmem:[#allocation4 + $0x190] sm:$0xf] %v2414_v24  ;;  %v12068_v48 = vcombine.low %v7094_v33, %v7099_v52  ;;  %v3410_v26 = vsel %vm13597_vm10, %v3408_v60, %v3409_v61 }
 0x15f   :  { %v1904_v5 = vld [vmem:[#allocation2 + $0x9c] sm:$0xf]  ;;  %v1408_v20 = vshrl.u32 %v12472_v62, 16  ;;  %v1411_v1 = vshll.u32 %v12472_v62, 16  ;;  %v2190_v35 = vld [vmem:[#allocation2 + $0x48] sm:$0xf]  ;;  %9779 = vmatprep.mubr.bf16.mxu0 %v12851_v13  ;;  %v1912_v19 = vsel %vm13716_vm12, %v1405_v47, %v1911_v23  ;;  %v1388_v18 = vor.u32 %v1386_v49, %v14028_v4  ;;  %v502_v23 = vpop.f32.mrf.mxu0 }
 0x160   :  { %v1915_v29 = vld [vmem:[#allocation2 + $0xb0] sm:$0x1]  ;;  %3663 = vst [vmem:[#allocation4 + $0x1dc] sm:$0xf] %v3410_v26  ;;  %v2191_v30 = vld [vmem:[#allocation2 + $0x4c] sm:$0xf]  ;;  %9780 = vmatmul.mubr.bf16.gmra.mxu0 %v12068_v48  ;;  %v14039_v62 = vadd.f32 %v13978_v21, %v12635_v37  ;;  %v503_v33 = vadd.f32 %v13978_v21, %v502_v23 }
 0x161   :  { %v2192_v0 = vld [vmem:[#allocation2 + $0x50] sm:$0x1]  ;;  %v12848_v3 = vld [vmem:[#allocation4 + $0x124] ss:$36 sps:$4 sm:$0xff]   ;;  %v1406_v41 = vrot.slane %v14017_v8, 4  ;;  %v1410_v61 = vrot.slane %v1408_v20, 7  ;;  %v1905_v49 = vsel %vm13716_vm12, %v1388_v18, %v1904_v5 }
 0x162   :  { %1913 = vst [vmem:[#allocation2 + $0xa8] sm:$0xf] %v1912_v19  ;;  %v12850_v38 = vld [vmem:[#allocation4 + $0x120] ss:$36 sps:$4 sm:$0xff]   ;;  %v14043_v60 = vmax.f32 %v490_v32, 0.0  ;;  %v2416_v53 = vshrl.u32 %v2190_v35, 16  ;;  %9482 = vmatprep.mubr.bf16.mxu1 %v12848_v3 }
 0x163   :  { %v2419_v22 = vshll.u32 %v2190_v35, 16  ;;  %v3188_v52 = vld [vmem:[#allocation2 + $0x54] sm:$0xe]  ;;  %1906 = vst [vmem:[#allocation2 + $0x9c] sm:$0xf] %v1905_v49  ;;  %v1413_v8 = vor.u32 %v1411_v1, %v1410_v61  ;;  %v1415_v13 = vrot.slane %v1410_v61, 4  ;;  %9483 = vmatmul.mubr.bf16.gmra.mxu1 %v12850_v38  ;;  %v12636_v61 = vpop.f32.mrf.mxu0 }
 0x164   :  { %16958 = vst [vmem:[#allocation32_spill] sm:$0xff] %v14043_v60  ;;  %v2425_v24 = vshll.u32 %v2191_v30, 16  ;;  %v2429_v47 = vshrl.u32 %v2191_v30, 16  ;;  %v3189_v20 = vld [vmem:[#allocation2 + $0x58] sm:$0xf]  ;;  %v12470_v37 = vpack.c.bf16 %v14043_v60, %v14043_v60  ;;  %v2418_v48 = vrot.slane %v2416_v53, 4 }
 0x165   :  { %v2421_v26 = vrot.slane %v2419_v22, 5  ;;  %v2435_v19 = vshll.u32 %v2192_v0, 16  ;;  %v14047_v5 = vld [vmem:[#allocation2 + $0x5c] sm:$0x1]  ;;  %v3734_v18 = vld [vmem:[#allocation2 + $0x84] sm:$0xf]  ;;  %v1414_v35 = vsel %vm13732_vm14, %v1406_v41, %v1413_v8  ;;  %v1916_v1 = vsel %vm13485_vm2, %v1415_v13, %v1915_v29 }
 0x166   :  { %v7104_v32 = vld [vmem:[#allocation4 + $0x1b8] sm:$0xff]  ;;  %v2427_v3 = vrot.slane %v2425_v24, 5  ;;  %v2431_v30 = vrot.slane %v2429_v47, 4  ;;  %3798 = vst [vmem:[#allocation4 + $0x2dc] sm:$0xf] %v3734_v18  ;;  %v1391_v53 = vshrl.u32 %v12470_v37, 16  ;;  %v514_v6 = vadd.f32 %v13978_v21, %v12636_v61 }
 0x167   :  { %v3735_v38 = vld [vmem:[#allocation2 + $0x88] sm:$0xf]  ;;  %v12854_v49 = vld [vmem:[#allocation4 + $0x16c] ss:$36 sps:$4 sm:$0xff]   ;;  %1914 = vst [vmem:[#allocation2 + $0xac] sm:$0xf] %v1414_v35  ;;  %v2422_v0 = vor.u32 %v2421_v26, %v2418_v48 }
 0x168   :  { %1917 = vst [vmem:[#allocation2 + $0xb0] sm:$0x1] %v1916_v1  ;;  %v2193_v22 = vld [vmem:[#allocation2 + $0x54] sm:$0xf]  ;;  %3799 = vst [vmem:[#allocation4 + $0x300] sm:$0xf] %v3735_v38  ;;  %v2432_v24 = vor.u32 %v2431_v30, %v2427_v3  ;;  %9490 = vmatprep.mubr.bf16.mxu1 %v12854_v49 }
 0x169   :  { %v7109_v41 = vld [vmem:[#allocation4 + $0x1dc] sm:$0xff]  ;;  %v1394_v29 = vshll.u32 %v12470_v37, 16  ;;  %v1908_v13 = vld [vmem:[#allocation2 + $0xa4] sm:$0x1]  ;;  %v2437_v47 = vrot.slane %v2435_v19, 5  ;;  %v11931_v60 = vrot.slane %v3188_v52, 9 }
 0x16a   :  { %v12857_v8 = vld [vmem:[#allocation4 + $0x1bc] ss:$36 sps:$4 sm:$0xff]   ;;  %v2194_v2 = vld [vmem:[#allocation2 + $0x58] sm:$0xf]  ;;  %v1393_v18 = vrot.slane %v1391_v53, 7  ;;  %v2423_v35 = vrot.slane %v2422_v0, 4  ;;  %v12077_v1 = vcombine.low %v7104_v32, %v7109_v41 }
 0x16b   :  { %v3413_v39 = vrot.slane %v3189_v20, 5  ;;  %v2195_v48 = vld [vmem:[#allocation2 + $0x5c] sm:$0x1]  ;;  %9787 = vmatprep.mubr.bf16.mxu0 %v12857_v8  ;;  %v2433_v26 = vrot.slane %v2432_v24, 4  ;;  %v3416_v61 = vrot.slane %v14047_v5, 5  ;;  %v2440_v37 = vshrl.u32 %v2193_v22, 16 }
 0x16c   :  { %v12925_v23 = vld [vmem:[%s16842_s3 + $0x178] sm:$0xff]   ;;  %v2443_v38 = vshll.u32 %v2193_v22, 16  ;;  %v1396_v52 = vor.u32 %v1394_v29, %v1393_v18  ;;  %v1398_v16 = vrot.slane %v1393_v18, 4  ;;  %v2428_v49 = vsel %vm13579_vm9, %v2423_v35, %v2427_v3  ;;  %9788 = vmatmul.mubr.bf16.gmra.mxu0 %v12077_v1  ;;  %v3191_v24 = vld [vmem:[#allocation2 + $0x60] sm:$0xe] }
 0x16d   :  { %v2064_v30 = vld [vmem:[#allocation2 + $0x78] sm:$0xf]  ;;  %v3414_v20 = vsel %vm13597_vm10, %v11931_v60, %v3413_v39  ;;  %v2065_v32 = vld [vmem:[#allocation2 + $0x7c] sm:$0xf]  ;;  %10013 = vmatpush2.bf16.msra.mxu1 %v12925_v23  ;;  %v2438_v53 = vsel %vm13579_vm9, %v2433_v26, %v2437_v47  ;;  %3115 = vst [vmem:[#allocation4 + $0x1b4] sm:$0xf] %v2428_v49 }
 0x16e   :  { %v12856_v19 = vld [vmem:[#allocation4 + $0x168] ss:$36 sps:$4 sm:$0xff]   ;;  %2128 = vst [vmem:[#allocation4 + $0x2d0] sm:$0xf] %v2064_v30  ;;  %v3415_v5 = vrot.slane %v3413_v39, 4  ;;  %v2442_v0 = vrot.slane %v2440_v37, 4  ;;  %10014 = vmatprep.subr.bf16.mxu1 %v16954_v15  ;;  %v1909_v41 = vsel %vm13485_vm2, %v1398_v16, %v1908_v13  ;;  %v505_v39 = vpop.f32.mrf.mxu0 }
 0x16f   :  { %3664 = vst [vmem:[#allocation4 + $0x200] sm:$0xf] %v3414_v20  ;;  %v2445_v22 = vrot.slane %v2443_v38, 5  ;;  %2129 = vst [vmem:[#allocation4 + $0x2f4] sm:$0xf] %v2065_v32  ;;  %9491 = vmatmul.mubr.bf16.gmra.mxu1 %v12856_v19  ;;  %v16959_v3 = vrot.slane %v14028_v4, 4 }
 0x170   :  { %3116 = vst [vmem:[#allocation4 + $0x1d8] sm:$0xf] %v2438_v53  ;;  %v2449_v8 = vshll.u32 %v2194_v2, 16  ;;  %v2453_v29 = vshrl.u32 %v2194_v2, 16  ;;  %1910 = vst [vmem:[#allocation2 + $0xa4] sm:$0x1] %v1909_v41  ;;  %v3417_v47 = vsel %vm13597_vm10, %v3415_v5, %v3416_v61  ;;  %v506_v61 = vadd.f32 %v13978_v21, %v505_v39 }
 0x171   :  { %v1397_v60 = vsel %vm13732_vm14, %v16959_v3, %v1396_v52  ;;  %v2446_v18 = vor.u32 %v2445_v22, %v2442_v0  ;;  %v2459_v35 = vshll.u32 %v2195_v48, 16  ;;  %v14075_v4 = vmax.f32 %v14039_v62, 0.0  ;;  %3665 = vst [vmem:[#allocation4 + $0x224] sm:$0xf] %v3417_v47  ;;  %v3192_v2 = vld [vmem:[#allocation2 + $0x64] sm:$0xf] }
 0x172   :  { %1907 = vst [vmem:[#allocation2 + $0xa0] sm:$0xf] %v1397_v60  ;;  %v2451_v1 = vrot.slane %v2449_v8, 5  ;;  %v2455_v23 = vrot.slane %v2453_v29, 4  ;;  %v14077_v26 = vmax.f32 %v503_v33, 0.0  ;;  %v14079_v16 = vmax.f32 %v514_v6, 0.0 }
 0x173   :  { %16960 = vst [vmem:[#allocation33_spill] sm:$0xff] %v14075_v4  ;;  %v2447_v13 = vrot.slane %v2446_v18, 4  ;;  %v12475_v37 = vpack.c.bf16 %v14075_v4, %v14075_v4  ;;  %v3193_v38 = vld [vmem:[#allocation2 + $0x68] sm:$0x1]  ;;  %v11932_v30 = vrot.slane %v3191_v24, 9  ;;  %v12928_v62 = vld [vmem:[%s16842_s3 + $0x1b8] sm:$0xff]  }
 0x174   :  { %16961 = vst [vmem:[#allocation34_spill] sm:$0xff] %v14077_v26  ;;  %16962 = vst [vmem:[#allocation35_spill] sm:$0xff] %v14079_v16  ;;  %v2456_v48 = vor.u32 %v2455_v23, %v2451_v1  ;;  %v2461_v19 = vrot.slane %v2459_v35, 5  ;;  %v12473_v33 = vpack.c.bf16 %v14077_v26, %v14077_v26  ;;  %v12476_v6 = vpack.c.bf16 %v14079_v16, %v14079_v16  ;;  %v3736_v52 = vld [vmem:[#allocation2 + $0x90] sm:$0xf]  ;;  %v14096_v23 = vpop.f32.mrf.mxu0 }
 0x175   :  { %v3737_v49 = vld [vmem:[#allocation2 + $0x94] sm:$0xf]  ;;  %v2452_v20 = vsel %vm13579_vm9, %v2447_v13, %v2451_v1  ;;  %v1434_v32 = vshrl.u32 %v12475_v37, 16  ;;  %v1437_v53 = vshll.u32 %v12475_v37, 16  ;;  %v3420_v5 = vrot.slane %v3192_v2, 5  ;;  %10286 = vmatpush1.bf16.msra.mxu0 %v12928_v62 }
 0x176   :  { %3800 = vst [vmem:[#allocation4 + $0x324] sm:$0xf] %v3736_v52  ;;  %3801 = vst [vmem:[#allocation4 + $0x348] sm:$0xf] %v3737_v49  ;;  %v2066_v0 = vld [vmem:[#allocation2 + $0x84] sm:$0xf]  ;;  %10287 = vmatprep.subr.bf16.mxu0 %v16954_v15 }
 0x177   :  { %v2457_v22 = vrot.slane %v2456_v48, 4  ;;  %3117 = vst [vmem:[#allocation4 + $0x1fc] sm:$0xf] %v2452_v20  ;;  %v1925_v3 = vld [vmem:[#allocation2 + $0xc0] sm:$0xf]  ;;  %v1417_v60 = vshrl.u32 %v12473_v33, 16  ;;  %v3421_v18 = vsel %vm13597_vm10, %v11932_v30, %v3420_v5 }
 0x178   :  { %v1420_v41 = vshll.u32 %v12473_v33, 16  ;;  %v1442_v8 = vshrl.u32 %v12476_v6, 16  ;;  %2130 = vst [vmem:[#allocation4 + $0x318] sm:$0xf] %v2066_v0  ;;  %v12859_v29 = vld [vmem:[#allocation4 + $0x1b4] ss:$36 sps:$4 sm:$0xff]  }
 0x179   :  { %v1436_v24 = vrot.slane %v1434_v32, 7  ;;  %v1918_v39 = vld [vmem:[#allocation2 + $0xb4] sm:$0xf]  ;;  %v1929_v47 = vld [vmem:[#allocation2 + $0xc8] sm:$0x1]  ;;  %v3423_v35 = vrot.slane %v3193_v38, 5  ;;  %v2462_v37 = vsel %vm13579_vm9, %v2457_v22, %v2461_v19  ;;  %9498 = vmatprep.mubr.bf16.mxu1 %v12859_v29 }
 0x17a   :  { %v2196_v1 = vld [vmem:[#allocation2 + $0x60] sm:$0xf]  ;;  %v7114_v13 = vld [vmem:[#allocation4 + $0x200] sm:$0xff]  ;;  %v14100_v62 = vrot.slane %v1417_v60, 7  ;;  %v1444_v48 = vrot.slane %v1442_v8, 7  ;;  %v1445_v33 = vshll.u32 %v12476_v6, 16 }
 0x17b   :  { %v12861_v2 = vld [vmem:[#allocation4 + $0x1b0] ss:$36 sps:$4 sm:$0xff]   ;;  %3666 = vst [vmem:[#allocation4 + $0x248] sm:$0xf] %v3421_v18  ;;  %v7119_v52 = vld [vmem:[#allocation4 + $0x224] sm:$0xff]  ;;  %v1439_v20 = vor.u32 %v1437_v53, %v1436_v24  ;;  %v1440_v30 = vrot.slane %v1436_v24, 4 }
 0x17c   :  { %v12862_v49 = vld [vmem:[#allocation4 + $0x204] ss:$36 sps:$4 sm:$0xff]   ;;  %3118 = vst [vmem:[#allocation4 + $0x220] sm:$0xf] %v2462_v37  ;;  %v3422_v38 = vrot.slane %v3420_v5, 4  ;;  %v14102_v32 = vmax.f32 %v506_v61, 0.0  ;;  %9499 = vmatmul.mubr.bf16.gmra.mxu1 %v12861_v2  ;;  %v1422_v0 = vor.u32 %v1420_v41, %v14100_v62  ;;  %v1447_v19 = vor.u32 %v1445_v33, %v1444_v48  ;;  %v518_v41 = vpop.f32.mrf.mxu0 }
 0x17d   :  { %v1449_v22 = vrot.slane %v1444_v48, 4  ;;  %v2197_v60 = vld [vmem:[#allocation2 + $0x64] sm:$0xf]  ;;  %v2067_v8 = vld [vmem:[#allocation2 + $0x88] sm:$0xf]  ;;  %9795 = vmatprep.mubr.bf16.mxu0 %v12862_v49  ;;  %v1926_v6 = vsel %vm13716_vm12, %v1439_v20, %v1925_v3  ;;  %v12086_v29 = vcombine.low %v7114_v13, %v7119_v52  ;;  %v2464_v13 = vshrl.u32 %v2196_v1, 16 }
 0x17e   :  { %16963 = vst [vmem:[#allocation36_spill] sm:$0xff] %v14102_v32  ;;  %v3424_v53 = vsel %vm13597_vm10, %v3422_v38, %v3423_v35  ;;  %v12474_v61 = vpack.c.bf16 %v14102_v32, %v14102_v32  ;;  %v2198_v5 = vld [vmem:[#allocation2 + $0x68] sm:$0x1]  ;;  %v3194_v24 = vld [vmem:[#allocation2 + $0x6c] sm:$0xe]  ;;  %v1919_v18 = vsel %vm13716_vm12, %v1422_v0, %v1918_v39  ;;  %v1448_v2 = vsel %vm13732_vm14, %v1440_v30, %v1447_v19 }
 0x17f   :  { %2131 = vst [vmem:[#allocation4 + $0x33c] sm:$0xf] %v2067_v8  ;;  %1927 = vst [vmem:[#allocation2 + $0xc0] sm:$0xf] %v1926_v6  ;;  %v1930_v3 = vsel %vm13485_vm2, %v1449_v22, %v1929_v47  ;;  %v3195_v35 = vld [vmem:[#allocation2 + $0x70] sm:$0xf]  ;;  %9796 = vmatmul.mubr.bf16.gmra.mxu0 %v12086_v29 }
 0x180   :  { %3667 = vst [vmem:[#allocation4 + $0x26c] sm:$0xf] %v3424_v53  ;;  %1920 = vst [vmem:[#allocation2 + $0xb4] sm:$0xf] %v1919_v18  ;;  %v1425_v37 = vshrl.u32 %v12474_v61, 16  ;;  %v1428_v48 = vshll.u32 %v12474_v61, 16  ;;  %v12640_v53 = vpop.f32.mrf.mxu0 }
 0x181   :  { %1928 = vst [vmem:[#allocation2 + $0xc4] sm:$0xf] %v1448_v2  ;;  %1931 = vst [vmem:[#allocation2 + $0xc8] sm:$0x1] %v1930_v3  ;;  %v2467_v33 = vshll.u32 %v2196_v1, 16  ;;  %v2473_v52 = vshll.u32 %v2197_v60, 16  ;;  %v527_v2 = vadd.f32 %v13978_v21, %v14096_v23 }
 0x182   :  { %v3196_v49 = vld [vmem:[#allocation2 + $0x74] sm:$0x1]  ;;  %v1922_v20 = vld [vmem:[#allocation2 + $0xbc] sm:$0x1]  ;;  %v2466_v39 = vrot.slane %v2464_v13, 4  ;;  %v2477_v38 = vshrl.u32 %v2197_v60, 16  ;;  %v14126_v60 = vadd.f32 %v13978_v21, %v518_v41 }
 0x183   :  { %v2483_v0 = vshll.u32 %v2198_v5, 16  ;;  %v11933_v30 = vrot.slane %v3194_v24, 9  ;;  %v14118_v19 = vld [vmem:[#allocation2 + $0x6c] sm:$0xf]  ;;  %v1427_v47 = vrot.slane %v1425_v37, 7  ;;  %v2469_v22 = vrot.slane %v2467_v33, 5 }
 0x184   :  { %v2475_v8 = vrot.slane %v2473_v52, 5  ;;  %v3427_v6 = vrot.slane %v3195_v35, 5  ;;  %v12939_v29 = vld [vmem:[%s16842_s3 + $0x170] sm:$0xff]   ;;  %v2479_v1 = vrot.slane %v2477_v38, 4  ;;  %v14129_v5 = vadd.f32 %v13978_v21, %v12640_v53  ;;  %v12867_v24 = vld [vmem:[#allocation4 + $0x1f8] ss:$36 sps:$4 sm:$0xff]  }
 0x185   :  { %v12865_v61 = vld [vmem:[#allocation4 + $0x1fc] ss:$36 sps:$4 sm:$0xff]   ;;  %v7124_v3 = vld [vmem:[#allocation4 + $0x248] sm:$0xff]  ;;  %v1430_v13 = vor.u32 %v1428_v48, %v1427_v47  ;;  %v1432_v35 = vrot.slane %v1427_v47, 4  ;;  %v2470_v37 = vor.u32 %v2469_v22, %v2466_v39  ;;  %v2485_v33 = vrot.slane %v2483_v0, 5  ;;  %10015 = vmatpush2.bf16.msra.mxu1 %v12939_v29  ;;  %v14143_v29 = vpop.f32.mrf.mxu0 }
 0x186   :  { %v2200_v18 = vld [vmem:[#allocation2 + $0x70] sm:$0xf]  ;;  %v2201_v52 = vld [vmem:[#allocation2 + $0x74] sm:$0x1]  ;;  %9506 = vmatprep.mubr.bf16.mxu1 %v12865_v61  ;;  %v2480_v38 = vor.u32 %v2479_v1, %v2475_v8  ;;  %v3428_v16 = vsel %vm13597_vm10, %v11933_v30, %v3427_v6  ;;  %v3429_v23 = vrot.slane %v3427_v6, 4  ;;  %v3430_v32 = vrot.slane %v3196_v49, 5  ;;  %10016 = vmatprep.subr.bf16.mxu1 %v16954_v15 }
 0x187   :  { %v841_v41 = vld [vmem:[#allocation2 + $0xf0] sm:$0x1]  ;;  %v14133_v4 = vld [vmem:[#allocation2 + $0x78] sm:$0xe]  ;;  %v3738_v53 = vld [vmem:[#allocation2 + $0x9c] sm:$0xf]  ;;  %9507 = vmatmul.mubr.bf16.gmra.mxu1 %v12867_v24  ;;  %v1923_v30 = vsel %vm13485_vm2, %v1432_v35, %v1922_v20 }
 0x188   :  { %v3739_v26 = vld [vmem:[#allocation2 + $0xa0] sm:$0xf]  ;;  %v16964_v0 = vrot.slane %v14100_v62, 4  ;;  %v2471_v22 = vrot.slane %v2470_v37, 4  ;;  %3668 = vst [vmem:[#allocation4 + $0x290] sm:$0xf] %v3428_v16  ;;  %v3431_v62 = vsel %vm13597_vm10, %v3429_v23, %v3430_v32 }
 0x189   :  { %v7129_v48 = vld [vmem:[#allocation4 + $0x26c] sm:$0xff]  ;;  %v2488_v49 = vshrl.u32 %v14118_v19, 16  ;;  %3802 = vst [vmem:[#allocation4 + $0x36c] sm:$0xf] %v3738_v53  ;;  %3803 = vst [vmem:[#allocation4 + $0x390] sm:$0xf] %v3739_v26  ;;  %v14150_v26 = vpop.f32.mrf.mxu0 }
 0x18a   :  { %v12868_v39 = vld [vmem:[#allocation4 + $0x24c] ss:$36 sps:$4 sm:$0xff]   ;;  %v1431_v47 = vsel %vm13732_vm14, %v16964_v0, %v1430_v13  ;;  %1924 = vst [vmem:[#allocation2 + $0xbc] sm:$0x1] %v1923_v30  ;;  %v2481_v61 = vrot.slane %v2480_v38, 4  ;;  %v12095_v1 = vcombine.low %v7124_v3, %v7129_v48  ;;  %v2491_v24 = vshll.u32 %v14118_v19, 16 }
 0x18b   :  { %v3198_v6 = vld [vmem:[#allocation2 + $0x7c] sm:$0xf]  ;;  %1921 = vst [vmem:[#allocation2 + $0xb8] sm:$0xf] %v1431_v47  ;;  %v3199_v13 = vld [vmem:[#allocation2 + $0x80] sm:$0x1]  ;;  %9803 = vmatprep.mubr.bf16.mxu0 %v12868_v39  ;;  %v2476_v16 = vsel %vm13579_vm9, %v2471_v22, %v2475_v8 }
 0x18c   :  { %v2068_v20 = vld [vmem:[#allocation2 + $0x90] sm:$0xf]  ;;  %3669 = vst [vmem:[#allocation4 + $0x2b4] sm:$0xf] %v3431_v62  ;;  %v2490_v35 = vrot.slane %v2488_v49, 4  ;;  %v2497_v37 = vshll.u32 %v2200_v18, 16  ;;  %v2486_v3 = vsel %vm13579_vm9, %v2481_v61, %v2485_v33  ;;  %9804 = vmatmul.mubr.bf16.gmra.mxu0 %v12095_v1 }
 0x18d   :  { %v2501_v53 = vshrl.u32 %v2200_v18, 16  ;;  %v2069_v0 = vld [vmem:[#allocation2 + $0x94] sm:$0xf]  ;;  %2132 = vst [vmem:[#allocation4 + $0x360] sm:$0xf] %v2068_v20  ;;  %v2493_v32 = vrot.slane %v2491_v24, 5 }
 0x18e   :  { %3119 = vst [vmem:[#allocation4 + $0x244] sm:$0xf] %v2476_v16  ;;  %v2507_v19 = vshll.u32 %v2201_v52, 16  ;;  %v14154_v38 = vmax.f32 %v527_v2, 0.0  ;;  %v838_v23 = vld [vmem:[#allocation2 + $0xe4] sm:$0x1] }
 0x18f   :  { %2133 = vst [vmem:[#allocation4 + $0x384] sm:$0xf] %v2069_v0  ;;  %3120 = vst [vmem:[#allocation4 + $0x268] sm:$0xf] %v2486_v3  ;;  %v2499_v8 = vrot.slane %v2497_v37, 5  ;;  %v2503_v48 = vrot.slane %v2501_v53, 4  ;;  %v2494_v47 = vor.u32 %v2493_v32, %v2490_v35 }
 0x190   :  { %16965 = vst [vmem:[#allocation37_spill] sm:$0xff] %v14154_v38  ;;  %v842_v18 = vsel %vm13485_vm2, 0, %v841_v41  ;;  %v11934_v39 = vrot.slane %v14133_v4, 9  ;;  %v2509_v30 = vrot.slane %v2507_v19, 5  ;;  %v12479_v33 = vpack.c.bf16 %v14154_v38, %v14154_v38  ;;  %v2202_v52 = vld [vmem:[#allocation2 + $0x78] sm:$0xf]  ;;  %v534_v41 = vpop.f32.mrf.mxu0 }
 0x191   :  { %843 = vst [vmem:[#allocation2 + $0xf0] sm:$0x1] %v842_v18  ;;  %v3434_v22 = vrot.slane %v3198_v6, 5  ;;  %v2504_v2 = vor.u32 %v2503_v48, %v2499_v8  ;;  %v3437_v49 = vrot.slane %v3199_v13, 5  ;;  %v14162_v61 = vmax.f32 %v14126_v60, 0.0  ;;  %v12942_v4 = vld [vmem:[%s16842_s3 + $0x1b0] sm:$0xff]  }
 0x192   :  { %v839_v1 = vsel %vm13485_vm2, 0, %v838_v23  ;;  %v14166_v62 = vld [vmem:[#allocation2 + $0x7c] sm:$0xf]  ;;  %v7134_v24 = vld [vmem:[#allocation4 + $0x290] sm:$0xff]  ;;  %v2495_v20 = vrot.slane %v2494_v47, 4  ;;  %v1468_v16 = vshrl.u32 %v12479_v33, 16  ;;  %10288 = vmatpush1.bf16.msra.mxu0 %v12942_v4 }
 0x193   :  { %16966 = vst [vmem:[#allocation38_spill] sm:$0xff] %v14162_v61  ;;  %v1471_v6 = vshll.u32 %v12479_v33, 16  ;;  %v3435_v13 = vsel %vm13597_vm10, %v11934_v39, %v3434_v22  ;;  %840 = vst [vmem:[#allocation2 + $0xe4] sm:$0x1] %v839_v1  ;;  %v2505_v60 = vrot.slane %v2504_v2, 4  ;;  %v3436_v35 = vrot.slane %v3434_v22, 4  ;;  %10289 = vmatprep.subr.bf16.mxu0 %v16954_v15  ;;  %v14185_v1 = vpop.f32.mrf.mxu0 }
 0x194   :  { %3670 = vst [vmem:[#allocation4 + $0x2d8] sm:$0xf] %v3435_v13  ;;  %v12477_v37 = vpack.c.bf16 %v14162_v61, %v14162_v61  ;;  %v2204_v53 = vld [vmem:[#allocation2 + $0x80] sm:$0x1]  ;;  %v2512_v0 = vshrl.u32 %v2202_v52, 16  ;;  %v7139_v3 = vld [vmem:[#allocation4 + $0x2b4] sm:$0xff]  ;;  %v2500_v19 = vsel %vm13579_vm9, %v2495_v20, %v2499_v8  ;;  %v14195_v13 = vadd.f32 %v13978_v21, %v534_v41 }
 0x195   :  { %v12873_v32 = vld [vmem:[#allocation4 + $0x294] ss:$36 sps:$4 sm:$0xff]   ;;  %v14177_v23 = vrot.slane %v1468_v16, 7  ;;  %v2515_v48 = vshll.u32 %v2202_v52, 16  ;;  %v2521_v18 = vshll.u32 %v14166_v62, 16  ;;  %v2510_v39 = vsel %vm13579_vm9, %v2505_v60, %v2509_v30 }
 0x196   :  { %3121 = vst [vmem:[#allocation4 + $0x28c] sm:$0xf] %v2500_v19  ;;  %v12104_v47 = vcombine.low %v7134_v24, %v7139_v3  ;;  %v3438_v33 = vsel %vm13597_vm10, %v3436_v35, %v3437_v49  ;;  %v1451_v22 = vshrl.u32 %v12477_v37, 16  ;;  %v939_v2 = vld [vmem:[#allocation2 + $0xf8] sm:$0x1]  ;;  %9811 = vmatprep.mubr.bf16.mxu0 %v12873_v32  ;;  %v522_v30 = vadd.f32 %v13978_v21, %v14143_v29 }
 0x197   :  { %v3740_v8 = vld [vmem:[#allocation2 + $0xa8] sm:$0xf]  ;;  %v3741_v4 = vld [vmem:[#allocation2 + $0xac] sm:$0xf]  ;;  %v12870_v20 = vld [vmem:[#allocation4 + $0x244] ss:$36 sps:$4 sm:$0xff]   ;;  %v1473_v16 = vor.u32 %v1471_v6, %v14177_v23  ;;  %v14192_v49 = vadd.f32 %v13978_v21, %v14150_v26 }
 0x198   :  { %v12872_v52 = vld [vmem:[#allocation4 + $0x240] ss:$36 sps:$4 sm:$0xff]   ;;  %3122 = vst [vmem:[#allocation4 + $0x2b0] sm:$0xf] %v2510_v39  ;;  %3671 = vst [vmem:[#allocation4 + $0x2fc] sm:$0xf] %v3438_v33  ;;  %9812 = vmatmul.mubr.bf16.gmra.mxu0 %v12104_v47  ;;  %9514 = vmatprep.mubr.bf16.mxu1 %v12870_v20 }
 0x199   :  { %v936_v24 = vld [vmem:[#allocation2 + $0xec] sm:$0x1]  ;;  %3804 = vst [vmem:[#allocation4 + $0x3b4] sm:$0xf] %v3740_v8  ;;  %3805 = vst [vmem:[#allocation4 + $0x3d8] sm:$0xf] %v3741_v4  ;;  %9515 = vmatmul.mubr.bf16.gmra.mxu1 %v12872_v52 }
 0x19a   :  { %v1939_v60 = vld [vmem:[#allocation2 + $0xf0] sm:$0xf]  ;;  %v14197_v35 = vrot.slane %v1451_v22, 7  ;;  %v1454_v3 = vshll.u32 %v12477_v37, 16  ;;  %v2514_v6 = vrot.slane %v2512_v0, 4  ;;  %v2517_v32 = vrot.slane %v2515_v48, 5  ;;  %v14207_v22 = vpop.f32.mrf.mxu0 }
 0x19b   :  { %v3200_v19 = vld [vmem:[#allocation2 + $0x84] sm:$0xe]  ;;  %v3201_v39 = vld [vmem:[#allocation2 + $0x88] sm:$0xf]  ;;  %v1940_v29 = vsel %vm13716_vm12, %v1473_v16, %v1939_v60  ;;  %v2523_v26 = vrot.slane %v2521_v18, 5  ;;  %v2525_v33 = vshrl.u32 %v14166_v62, 16 }
 0x19c   :  { %v2531_v41 = vshll.u32 %v2204_v53, 16  ;;  %v2070_v38 = vld [vmem:[#allocation2 + $0x9c] sm:$0xf]  ;;  %1941 = vst [vmem:[#allocation2 + $0xf0] sm:$0xf] %v1940_v29  ;;  %v1456_v47 = vor.u32 %v1454_v3, %v14197_v35  ;;  %v2518_v0 = vor.u32 %v2517_v32, %v2514_v6  ;;  %v14205_v48 = vmax.f32 %v14129_v5, 0.0  ;;  %v14219_v6 = vpop.f32.mrf.mxu0 }
 0x19d   :  { %v1932_v37 = vld [vmem:[#allocation2 + $0xe4] sm:$0xf]  ;;  %v2071_v4 = vld [vmem:[#allocation2 + $0xa0] sm:$0xf]  ;;  %2134 = vst [vmem:[#allocation4 + $0x3a8] sm:$0xf] %v2070_v38 }
 0x19e   :  { %16967 = vst [vmem:[#allocation39_spill] sm:$0xff] %v14205_v48  ;;  %v2527_v18 = vrot.slane %v2525_v33, 4  ;;  %v2533_v20 = vrot.slane %v2531_v41, 5  ;;  %v940_v62 = vsel %vm13509_vm4, 0, %v939_v2  ;;  %v14211_v53 = vmax.f32 %v522_v30, 0.0  ;;  %v7144_v32 = vld [vmem:[#allocation4 + $0x2d8] sm:$0xff] }
 0x19f   :  { %2135 = vst [vmem:[#allocation4 + $0x3cc] sm:$0xf] %v2071_v4  ;;  %v1933_v52 = vsel %vm13716_vm12, %v1456_v47, %v1932_v37  ;;  %v2519_v16 = vrot.slane %v2518_v0, 4  ;;  %941 = vst [vmem:[#allocation2 + $0xf8] sm:$0x1] %v940_v62  ;;  %v12480_v5 = vpack.c.bf16 %v14205_v48, %v14205_v48  ;;  %v937_v60 = vsel %vm13509_vm4, 0, %v936_v24 }
 0x1a0   :  { %16968 = vst [vmem:[#allocation40_spill] sm:$0xff] %v14211_v53  ;;  %v3202_v38 = vld [vmem:[#allocation2 + $0x8c] sm:$0x1]  ;;  %v2205_v3 = vld [vmem:[#allocation2 + $0x84] sm:$0xf]  ;;  %v2528_v2 = vor.u32 %v2527_v18, %v2523_v26  ;;  %v12478_v30 = vpack.c.bf16 %v14211_v53, %v14211_v53  ;;  %v11935_v29 = vrot.slane %v3200_v19, 9  ;;  %v14230_v4 = vadd.f32 %v13978_v21, %v14185_v1 }
 0x1a1   :  { %1934 = vst [vmem:[#allocation2 + $0xe4] sm:$0xf] %v1933_v52  ;;  %938 = vst [vmem:[#allocation2 + $0xec] sm:$0x1] %v937_v60  ;;  %v3441_v33 = vrot.slane %v3201_v39, 5  ;;  %v1457_v37 = vrot.slane %v14197_v35, 4  ;;  %v2524_v24 = vsel %vm13579_vm9, %v2519_v16, %v2523_v26  ;;  %v14234_v16 = vpop.f32.mrf.mxu0 }
 0x1a2   :  { %v14223_v41 = vld [vmem:[#allocation2 + $0x88] sm:$0xf]  ;;  %v12876_v47 = vld [vmem:[#allocation4 + $0x28c] ss:$36 sps:$4 sm:$0xff]   ;;  %v1476_v0 = vshrl.u32 %v12480_v5, 16  ;;  %v7149_v18 = vld [vmem:[#allocation4 + $0x2fc] sm:$0xff] }
 0x1a3   :  { %v12879_v62 = vld [vmem:[#allocation4 + $0x2dc] ss:$36 sps:$4 sm:$0xff]   ;;  %v2529_v52 = vrot.slane %v2528_v2, 4  ;;  %3123 = vst [vmem:[#allocation4 + $0x2d4] sm:$0xf] %v2524_v24  ;;  %v1479_v60 = vshll.u32 %v12480_v5, 16  ;;  %v3442_v39 = vsel %vm13597_vm10, %v11935_v29, %v3441_v33  ;;  %9522 = vmatprep.mubr.bf16.mxu1 %v12876_v47  ;;  %v12113_v53 = vcombine.low %v7144_v32, %v7149_v18 }
 0x1a4   :  { %v1459_v19 = vshrl.u32 %v12478_v30, 16  ;;  %v12878_v8 = vld [vmem:[#allocation4 + $0x288] ss:$36 sps:$4 sm:$0xff]   ;;  %v1478_v35 = vrot.slane %v1476_v0, 7  ;;  %v1462_v48 = vshll.u32 %v12478_v30, 16  ;;  %v3443_v26 = vrot.slane %v3441_v33, 4  ;;  %9819 = vmatprep.mubr.bf16.mxu0 %v12879_v62 }
 0x1a5   :  { %3672 = vst [vmem:[#allocation4 + $0x320] sm:$0xf] %v3442_v39  ;;  %v12953_v21 = vld [vmem:[%s16842_s3 + $0x168] sm:$0xff]   ;;  %v2534_v1 = vsel %vm13579_vm9, %v2529_v52, %v2533_v20  ;;  %v3444_v2 = vrot.slane %v3202_v38, 5  ;;  %v2536_v47 = vshrl.u32 %v2205_v3, 16  ;;  %9523 = vmatmul.mubr.bf16.gmra.mxu1 %v12878_v8  ;;  %9820 = vmatmul.mubr.bf16.gmra.mxu0 %v12113_v53  ;;  %v2539_v33 = vshll.u32 %v2205_v3, 16 }
 0x1a6   :  { %v1461_v5 = vrot.slane %v1459_v19, 7  ;;  %v2207_v29 = vld [vmem:[#allocation2 + $0x8c] sm:$0x1]  ;;  %3124 = vst [vmem:[#allocation4 + $0x2f8] sm:$0xf] %v2534_v1  ;;  %v1481_v30 = vor.u32 %v1479_v60, %v1478_v35  ;;  %v1483_v32 = vrot.slane %v1478_v35, 4  ;;  %10017 = vmatpush2.bf16.msra.mxu1 %v12953_v21  ;;  %v14250_v35 = vpop.f32.mrf.mxu0 }
 0x1a7   :  { %v2545_v24 = vshll.u32 %v14223_v41, 16  ;;  %v847_v0 = vld [vmem:[#allocation2 + $0x108] sm:$0x1]  ;;  %v1943_v18 = vld [vmem:[#allocation2 + $0xf8] sm:$0x1]  ;;  %v3445_v62 = vsel %vm13597_vm10, %v3443_v26, %v3444_v2  ;;  %v2538_v20 = vrot.slane %v2536_v47, 4  ;;  %10018 = vmatprep.subr.bf16.mxu1 %v16954_v15 }
 0x1a8   :  { %v1464_v39 = vor.u32 %v1462_v48, %v1461_v5  ;;  %v1466_v61 = vrot.slane %v1461_v5, 4  ;;  %v844_v52 = vld [vmem:[#allocation2 + $0xfc] sm:$0x1]  ;;  %v16969_v38 = vrot.slane %v14177_v23, 4  ;;  %v1944_v53 = vsel %vm13485_vm2, %v1483_v32, %v1943_v18  ;;  %v1936_v3 = vld [vmem:[#allocation2 + $0xec] sm:$0x1] }
 0x1a9   :  { %3673 = vst [vmem:[#allocation4 + $0x344] sm:$0xf] %v3445_v62  ;;  %v2541_v60 = vrot.slane %v2539_v33, 5  ;;  %v2547_v19 = vrot.slane %v2545_v24, 5  ;;  %v945_v48 = vld [vmem:[#allocation2 + $0x110] sm:$0x1] }
 0x1aa   :  { %v1482_v8 = vsel %vm13732_vm14, %v16969_v38, %v1481_v30  ;;  %1945 = vst [vmem:[#allocation2 + $0xf8] sm:$0x1] %v1944_v53  ;;  %v1465_v23 = vsel %vm13732_vm14, %v1457_v37, %v1464_v39  ;;  %v1937_v26 = vsel %vm13485_vm2, %v1466_v61, %v1936_v3  ;;  %v2549_v21 = vshrl.u32 %v14223_v41, 16  ;;  %v14258_v5 = vld [vmem:[#allocation2 + $0x90] sm:$0xe] }
 0x1ab   :  { %1942 = vst [vmem:[#allocation2 + $0xf4] sm:$0xf] %v1482_v8  ;;  %v2555_v1 = vshll.u32 %v2207_v29, 16  ;;  %v3742_v2 = vld [vmem:[#allocation2 + $0xb4] sm:$0xf]  ;;  %v2542_v47 = vor.u32 %v2541_v60, %v2538_v20  ;;  %v14261_v30 = vmax.f32 %v14192_v49, 0.0 }
 0x1ac   :  { %1935 = vst [vmem:[#allocation2 + $0xe8] sm:$0xf] %v1465_v23  ;;  %1938 = vst [vmem:[#allocation2 + $0xec] sm:$0x1] %v1937_v26  ;;  %v848_v32 = vsel %vm13485_vm2, 0, %v847_v0  ;;  %v14266_v37 = vmax.f32 %v14195_v13, 0.0 }
 0x1ad   :  { %16970 = vst [vmem:[#allocation41_spill] sm:$0xff] %v14261_v30  ;;  %v3743_v33 = vld [vmem:[#allocation2 + $0xb8] sm:$0xf]  ;;  %3806 = vst [vmem:[#allocation4 + $0x3fc] sm:$0xf] %v3742_v2  ;;  %v2551_v61 = vrot.slane %v2549_v21, 4  ;;  %v12483_v13 = vpack.c.bf16 %v14261_v30, %v14261_v30 }
 0x1ae   :  { %16971 = vst [vmem:[#allocation42_spill] sm:$0xff] %v14266_v37  ;;  %v2557_v41 = vrot.slane %v2555_v1, 5  ;;  %849 = vst [vmem:[#allocation2 + $0x108] sm:$0x1] %v848_v32  ;;  %v845_v29 = vsel %vm13485_vm2, 0, %v844_v52  ;;  %v14271_v24 = vmax.f32 %v14230_v4, 0.0  ;;  %v12481_v39 = vpack.c.bf16 %v14266_v37, %v14266_v37  ;;  %v14284_v52 = vpop.f32.mrf.mxu0 }
 0x1af   :  { %3807 = vst [vmem:[#allocation4 + $0x420] sm:$0xf] %v3743_v33  ;;  %v12956_v49 = vld [vmem:[%s16842_s3 + $0x1a8] sm:$0xff]   ;;  %v7154_v0 = vld [vmem:[#allocation4 + $0x320] sm:$0xff]  ;;  %v2543_v18 = vrot.slane %v2542_v47, 4  ;;  %v946_v62 = vsel %vm13509_vm4, 0, %v945_v48  ;;  %v2552_v3 = vor.u32 %v2551_v61, %v2547_v19 }
 0x1b0   :  { %16972 = vst [vmem:[#allocation43_spill] sm:$0xff] %v14271_v24  ;;  %846 = vst [vmem:[#allocation2 + $0xfc] sm:$0x1] %v845_v29  ;;  %v3204_v20 = vld [vmem:[#allocation2 + $0x94] sm:$0xf]  ;;  %v12484_v60 = vpack.c.bf16 %v14271_v24, %v14271_v24  ;;  %v11936_v23 = vrot.slane %v14258_v5, 9  ;;  %10290 = vmatpush1.bf16.msra.mxu0 %v12956_v49  ;;  %v14291_v47 = vpop.f32.mrf.mxu0 }
 0x1b1   :  { %v14282_v4 = vld [vmem:[#allocation2 + $0x98] sm:$0x1]  ;;  %v2072_v38 = vld [vmem:[#allocation2 + $0xa8] sm:$0xf]  ;;  %v12883_v53 = vld [vmem:[#allocation4 + $0x2d0] ss:$36 sps:$4 sm:$0xff]   ;;  %v2548_v48 = vsel %vm13579_vm9, %v2543_v18, %v2547_v19  ;;  %10291 = vmatprep.subr.bf16.mxu0 %v16954_v15 }
 0x1b2   :  { %v12881_v8 = vld [vmem:[#allocation4 + $0x2d4] ss:$36 sps:$4 sm:$0xff]   ;;  %947 = vst [vmem:[#allocation2 + $0x110] sm:$0x1] %v946_v62  ;;  %2136 = vst [vmem:[#allocation4 + $0x3f0] sm:$0xf] %v2072_v38 }
 0x1b3   :  { %v1502_v26 = vshrl.u32 %v12483_v13, 16  ;;  %v1505_v21 = vshll.u32 %v12483_v13, 16  ;;  %v1485_v1 = vshrl.u32 %v12481_v39, 16  ;;  %v2073_v2 = vld [vmem:[#allocation2 + $0xac] sm:$0xf]  ;;  %9530 = vmatprep.mubr.bf16.mxu1 %v12881_v8  ;;  %v7159_v32 = vld [vmem:[#allocation4 + $0x344] sm:$0xff] }
 0x1b4   :  { %v12884_v33 = vld [vmem:[#allocation4 + $0x324] ss:$36 sps:$4 sm:$0xff]   ;;  %v2553_v61 = vrot.slane %v2552_v3, 4  ;;  %3125 = vst [vmem:[#allocation4 + $0x31c] sm:$0xf] %v2548_v48  ;;  %v1488_v29 = vshll.u32 %v12481_v39, 16  ;;  %9531 = vmatmul.mubr.bf16.gmra.mxu1 %v12883_v53  ;;  %v12122_v8 = vcombine.low %v7154_v0, %v7159_v32 }
 0x1b5   :  { %v1510_v5 = vshrl.u32 %v12484_v60, 16  ;;  %v14297_v49 = vld [vmem:[%s16843_s2] ss:$0 sm:$0xff]  ;;  %v942_v18 = vld [vmem:[#allocation2 + $0x104] sm:$0x1]  ;;  %v1504_v13 = vrot.slane %v1502_v26, 7  ;;  %9827 = vmatprep.mubr.bf16.mxu0 %v12884_v33 }
 0x1b6   :  { %v538_v19 = vadd.f32 %v14297_v49, %v14207_v22  ;;  %2137 = vst [vmem:[#allocation4 + $0x414] sm:$0xf] %v2073_v2  ;;  %v14301_v62 = vrot.slane %v1485_v1, 7  ;;  %v1513_v38 = vshll.u32 %v12484_v60, 16  ;;  %v2208_v3 = vld [vmem:[#allocation2 + $0x90] sm:$0xf]  ;;  %v2558_v39 = vsel %vm13579_vm9, %v2553_v61, %v2557_v41  ;;  %9828 = vmatmul.mubr.bf16.gmra.mxu0 %v12122_v8  ;;  %v14311_v60 = vpop.f32.mrf.mxu0 }
 0x1b7   :  { %v1512_v48 = vrot.slane %v1510_v5, 7  ;;  %v3448_v24 = vrot.slane %v3204_v20, 5  ;;  %v3451_v30 = vrot.slane %v14282_v4, 5  ;;  %v2209_v37 = vld [vmem:[#allocation2 + $0x94] sm:$0xf]  ;;  %v1507_v22 = vor.u32 %v1505_v21, %v1504_v13 }
 0x1b8   :  { %3126 = vst [vmem:[#allocation4 + $0x340] sm:$0xf] %v2558_v39  ;;  %v1508_v55 = vrot.slane %v1504_v13, 4  ;;  %v1953_v2 = vld [vmem:[#allocation2 + $0x108] sm:$0xf]  ;;  %v1490_v53 = vor.u32 %v1488_v29, %v14301_v62  ;;  %v14309_v0 = vadd.f32 %v14297_v49, %v14219_v6  ;;  %v14319_v6 = vmax.f32 %v538_v19, 0.0 }
 0x1b9   :  { %v2210_v26 = vld [vmem:[#allocation2 + $0x98] sm:$0x1]  ;;  %v1946_v41 = vld [vmem:[#allocation2 + $0xfc] sm:$0xf]  ;;  %v1515_v1 = vor.u32 %v1513_v38, %v1512_v48  ;;  %v1517_v20 = vrot.slane %v1512_v48, 4  ;;  %v3449_v4 = vsel %vm13597_vm10, %v11936_v23, %v3448_v24  ;;  %v3450_v32 = vrot.slane %v3448_v24, 4 }
 0x1ba   :  { %v3206_v21 = vld [vmem:[#allocation2 + $0x9c] sm:$0xe]  ;;  %v1954_v33 = vsel %vm13716_vm12, %v1507_v22, %v1953_v2  ;;  %v1947_v61 = vsel %vm13716_vm12, %v1490_v53, %v1946_v41  ;;  %v1957_v29 = vld [vmem:[#allocation2 + $0x110] sm:$0x1]  ;;  %3674 = vst [vmem:[#allocation4 + $0x368] sm:$0xf] %v3449_v4  ;;  %v12482_v19 = vpack.c.bf16 %v14319_v6, %v14319_v6  ;;  %v14331_v41 = vpop.f32.mrf.mxu0 }
 0x1bb   :  { %16973 = vst [vmem:[#allocation44_spill] sm:$0xff] %v14319_v6  ;;  %v943_v5 = vsel %vm13509_vm4, 0, %v942_v18  ;;  %v3207_v13 = vld [vmem:[#allocation2 + $0xa0] sm:$0xf]  ;;  %1955 = vst [vmem:[#allocation2 + $0x108] sm:$0xf] %v1954_v33  ;;  %v1516_v24 = vsel %vm13732_vm14, %v1508_v55, %v1515_v1  ;;  %v1958_v23 = vsel %vm13485_vm2, %v1517_v20, %v1957_v29  ;;  %v3452_v38 = vsel %vm13597_vm10, %v3450_v32, %v3451_v30 }
 0x1bc   :  { %1948 = vst [vmem:[#allocation2 + $0xfc] sm:$0xf] %v1947_v61  ;;  %944 = vst [vmem:[#allocation2 + $0x104] sm:$0x1] %v943_v5  ;;  %v2560_v8 = vshrl.u32 %v2208_v3, 16  ;;  %v2563_v18 = vshll.u32 %v2208_v3, 16 }
 0x1bd   :  { %v3744_v39 = vld [vmem:[#allocation2 + $0xc0] sm:$0xf]  ;;  %1956 = vst [vmem:[#allocation2 + $0x10c] sm:$0xf] %v1516_v24  ;;  %1959 = vst [vmem:[#allocation2 + $0x110] sm:$0x1] %v1958_v23 }
 0x1be   :  { %3675 = vst [vmem:[#allocation4 + $0x38c] sm:$0xf] %v3452_v38  ;;  %v2569_v48 = vshll.u32 %v2209_v37, 16  ;;  %v2573_v22 = vshrl.u32 %v2209_v37, 16  ;;  %v3208_v2 = vld [vmem:[#allocation2 + $0xa4] sm:$0x1] }
 0x1bf   :  { %v2211_v55 = vld [vmem:[#allocation2 + $0x9c] sm:$0xf]  ;;  %v3745_v53 = vld [vmem:[#allocation2 + $0xc4] sm:$0xf]  ;;  %3808 = vst [vmem:[#allocation4 + $0x444] sm:$0xf] %v3744_v39 }
 0x1c0   :  { %v2562_v1 = vrot.slane %v2560_v8, 4  ;;  %v2579_v30 = vshll.u32 %v2210_v26, 16  ;;  %v11937_v20 = vrot.slane %v3206_v21, 9  ;;  %v3455_v4 = vrot.slane %v3207_v13, 5  ;;  %v14333_v32 = vld [vmem:[#allocation2 + $0xa0] sm:$0xf] }
 0x1c1   :  { %3809 = vst [vmem:[#allocation4 + $0x468] sm:$0xf] %v3745_v53  ;;  %v2074_v33 = vld [vmem:[#allocation2 + $0xb4] sm:$0xf]  ;;  %v1493_v61 = vshrl.u32 %v12482_v19, 16  ;;  %v1496_v29 = vshll.u32 %v12482_v19, 16  ;;  %v551_v26 = vadd.f32 %v14297_v49, %v14234_v16 }
 0x1c2   :  { %v2565_v5 = vrot.slane %v2563_v18, 5  ;;  %v2571_v3 = vrot.slane %v2569_v48, 5  ;;  %v2075_v24 = vld [vmem:[#allocation2 + $0xb8] sm:$0xf]  ;;  %2138 = vst [vmem:[#allocation4 + $0x438] sm:$0xf] %v2074_v33  ;;  %v3456_v8 = vsel %vm13597_vm10, %v11937_v20, %v3455_v4  ;;  %v14340_v18 = vpop.f32.mrf.mxu0 }
 0x1c3   :  { %v12887_v37 = vld [vmem:[#allocation4 + $0x31c] ss:$36 sps:$4 sm:$0xff]   ;;  %v1491_v23 = vrot.slane %v14301_v62, 4  ;;  %v2575_v38 = vrot.slane %v2573_v22, 4  ;;  %2139 = vst [vmem:[#allocation4 + $0x45c] sm:$0xf] %v2075_v24 }
 0x1c4   :  { %v12889_v21 = vld [vmem:[#allocation4 + $0x318] ss:$36 sps:$4 sm:$0xff]   ;;  %v1495_v13 = vrot.slane %v1493_v61, 7  ;;  %v2566_v39 = vor.u32 %v2565_v5, %v2562_v1  ;;  %v2581_v53 = vrot.slane %v2579_v30, 5  ;;  %v3457_v19 = vrot.slane %v3455_v4, 4  ;;  %9538 = vmatprep.mubr.bf16.mxu1 %v12887_v37  ;;  %v14343_v61 = vpop.f32.mrf.mxu0  ;;  %v12967_v1 = vld [vmem:[%s16842_s3 + $0x160] sm:$0xff]  }
 0x1c5   :  { %3676 = vst [vmem:[#allocation4 + $0x3b0] sm:$0xf] %v3456_v8  ;;  %v2576_v48 = vor.u32 %v2575_v38, %v2571_v3  ;;  %v3458_v33 = vrot.slane %v3208_v2, 5  ;;  %v2213_v62 = vld [vmem:[#allocation2 + $0xa4] sm:$0x1]  ;;  %v2584_v22 = vshrl.u32 %v2211_v55, 16  ;;  %9539 = vmatmul.mubr.bf16.gmra.mxu1 %v12889_v21 }
 0x1c6   :  { %v2587_v6 = vshll.u32 %v2211_v55, 16  ;;  %v1498_v20 = vor.u32 %v1496_v29, %v1495_v13  ;;  %v1500_v58 = vrot.slane %v1495_v13, 4  ;;  %v1950_v46 = vld [vmem:[#allocation2 + $0x104] sm:$0x1]  ;;  %v2567_v16 = vrot.slane %v2566_v39, 4  ;;  %10019 = vmatpush2.bf16.msra.mxu1 %v12967_v1 }
 0x1c7   :  { %v2593_v24 = vshll.u32 %v14333_v32, 16  ;;  %v12892_v30 = vld [vmem:[#allocation4 + $0x36c] ss:$36 sps:$4 sm:$0xff]   ;;  %v2577_v4 = vrot.slane %v2576_v48, 4  ;;  %v3459_v2 = vsel %vm13597_vm10, %v3457_v19, %v3458_v33  ;;  %v562_v55 = vadd.f32 %v14297_v49, %v14250_v35  ;;  %v850_v13 = vld [vmem:[#allocation2 + $0x114] sm:$0x1]  ;;  %10020 = vmatprep.subr.bf16.mxu1 %v16954_v15 }
 0x1c8   :  { %v853_v5 = vld [vmem:[#allocation2 + $0x120] sm:$0x1]  ;;  %v12890_v29 = vld [vmem:[#allocation4 + $0x368] ss:$36 sps:$4 sm:$0xff]   ;;  %v1499_v37 = vsel %vm13732_vm14, %v1491_v23, %v1498_v20  ;;  %v1951_v38 = vsel %vm13485_vm2, %v1500_v58, %v1950_v46  ;;  %v2572_v8 = vsel %vm13579_vm9, %v2567_v16, %v2571_v3  ;;  %3677 = vst [vmem:[#allocation4 + $0x3d4] sm:$0xf] %v3459_v2  ;;  %9835 = vmatprep.mubr.bf16.mxu0 %v12892_v30 }
 0x1c9   :  { %v2586_v21 = vrot.slane %v2584_v22, 4  ;;  %1949 = vst [vmem:[#allocation2 + $0x100] sm:$0xf] %v1499_v37  ;;  %1952 = vst [vmem:[#allocation2 + $0x104] sm:$0x1] %v1951_v38  ;;  %v2582_v35 = vsel %vm13579_vm9, %v2577_v4, %v2581_v53  ;;  %v2589_v39 = vrot.slane %v2587_v6, 5  ;;  %9836 = vmatmul.mubr.bf16.gmra.mxu0 %v12890_v29  ;;  %v14369_v53 = vpop.f32.mrf.mxu0 }
 0x1ca   :  { %3127 = vst [vmem:[#allocation4 + $0x364] sm:$0xf] %v2572_v8  ;;  %v2595_v19 = vrot.slane %v2593_v24, 5  ;;  %v2597_v23 = vshrl.u32 %v14333_v32, 16  ;;  %v951_v48 = vld [vmem:[#allocation2 + $0x128] sm:$0x1] }
 0x1cb   :  { %3128 = vst [vmem:[#allocation4 + $0x388] sm:$0xf] %v2582_v35  ;;  %v2603_v58 = vshll.u32 %v2213_v62, 16  ;;  %v14363_v46 = vmax.f32 %v14309_v0, 0.0  ;;  %v854_v3 = vsel %vm13485_vm2, 0, %v853_v5  ;;  %v14367_v33 = vmax.f32 %v551_v26, 0.0 }
 0x1cc   :  { %v2590_v6 = vor.u32 %v2589_v39, %v2586_v21  ;;  %v2599_v22 = vrot.slane %v2597_v23, 4  ;;  %855 = vst [vmem:[#allocation2 + $0x120] sm:$0x1] %v854_v3  ;;  %v851_v32 = vsel %vm13485_vm2, 0, %v850_v13  ;;  %v14373_v20 = vmax.f32 %v562_v55, 0.0  ;;  %v14387_v13 = vpop.f32.mrf.mxu0 }
 0x1cd   :  { %16974 = vst [vmem:[#allocation45_spill] sm:$0xff] %v14363_v46  ;;  %16975 = vst [vmem:[#allocation46_spill] sm:$0xff] %v14367_v33  ;;  %v12487_v62 = vpack.c.bf16 %v14363_v46, %v14363_v46  ;;  %v12485_v0 = vpack.c.bf16 %v14367_v33, %v14367_v33  ;;  %v952_v26 = vsel %vm13509_vm4, 0, %v951_v48  ;;  %v14381_v16 = vld [vmem:[#allocation2 + $0xa8] sm:$0xe]  ;;  %v2605_v30 = vrot.slane %v2603_v58, 5 }
 0x1ce   :  { %16976 = vst [vmem:[#allocation47_spill] sm:$0xff] %v14373_v20  ;;  %852 = vst [vmem:[#allocation2 + $0x114] sm:$0x1] %v851_v32  ;;  %v2591_v24 = vrot.slane %v2590_v6, 4  ;;  %v2600_v1 = vor.u32 %v2599_v22, %v2595_v19  ;;  %v12488_v4 = vpack.c.bf16 %v14373_v20, %v14373_v20  ;;  %v3746_v2 = vld [vmem:[#allocation2 + $0xe4] sm:$0xf]  ;;  %v554_v58 = vadd.f32 %v14297_v49, %v14284_v52 }
 0x1cf   :  { %953 = vst [vmem:[#allocation2 + $0x128] sm:$0x1] %v952_v26  ;;  %v3747_v5 = vld [vmem:[#allocation2 + $0xe8] sm:$0xf]  ;;  %v1536_v55 = vshrl.u32 %v12487_v62, 16  ;;  %v1539_v29 = vshll.u32 %v12487_v62, 16  ;;  %v14562_v44 = vadd.f32 %v14297_v49, %v14387_v13 }
 0x1d0   :  { %v1519_v37 = vshrl.u32 %v12485_v0, 16  ;;  %v1522_v38 = vshll.u32 %v12485_v0, 16  ;;  %v3210_v8 = vld [vmem:[#allocation2 + $0xac] sm:$0xf]  ;;  %v14385_v21 = vld [vmem:[#allocation2 + $0xb0] sm:$0x1]  ;;  %v2596_v39 = vsel %vm13579_vm9, %v2591_v24, %v2595_v19 }
 0x1d1   :  { %3810 = vst [vmem:[#allocation4 + $0x48c] sm:$0xf] %v3746_v2  ;;  %3811 = vst [vmem:[#allocation4 + $0x4b0] sm:$0xf] %v3747_v5  ;;  %v12898_v35 = vld [vmem:[#allocation4 + $0x3b4] ss:$36 sps:$4 sm:$0xff]  }
 0x1d2   :  { %v2601_v23 = vrot.slane %v2600_v1, 4  ;;  %v11938_v48 = vrot.slane %v14381_v16, 9  ;;  %v948_v3 = vld [vmem:[#allocation2 + $0x11c] sm:$0x1]  ;;  %v14394_v6 = vld [vmem:[#allocation2 + $0xa8] sm:$0xf]  ;;  %9843 = vmatprep.mubr.bf16.mxu0 %v12898_v35 }
 0x1d3   :  { %v12896_v22 = vld [vmem:[#allocation4 + $0x3b0] ss:$36 sps:$4 sm:$0xff]   ;;  %3129 = vst [vmem:[#allocation4 + $0x3ac] sm:$0xf] %v2596_v39  ;;  %v1538_v32 = vrot.slane %v1536_v55, 7  ;;  %v14396_v62 = vrot.slane %v1519_v37, 7  ;;  %v14402_v37 = vpop.f32.mrf.mxu0 }
 0x1d4   :  { %v1544_v0 = vshrl.u32 %v12488_v4, 16  ;;  %v12893_v26 = vld [vmem:[#allocation4 + $0x364] ss:$36 sps:$4 sm:$0xff]   ;;  %v2606_v19 = vsel %vm13579_vm9, %v2601_v23, %v2605_v30  ;;  %v1547_v24 = vshll.u32 %v12488_v4, 16  ;;  %v2215_v16 = vld [vmem:[#allocation2 + $0xac] sm:$0xf]  ;;  %9844 = vmatmul.mubr.bf16.gmra.mxu0 %v12896_v22 }
 0x1d5   :  { %v12895_v2 = vld [vmem:[#allocation4 + $0x360] ss:$36 sps:$4 sm:$0xff]   ;;  %3130 = vst [vmem:[#allocation4 + $0x3d0] sm:$0xf] %v2606_v19  ;;  %v1541_v1 = vor.u32 %v1539_v29, %v1538_v32  ;;  %v1542_v52 = vrot.slane %v1538_v32, 4  ;;  %v1524_v20 = vor.u32 %v1522_v38, %v14396_v62  ;;  %9546 = vmatprep.mubr.bf16.mxu1 %v12893_v26  ;;  %v3462_v33 = vrot.slane %v3210_v8, 5  ;;  %v14414_v8 = vpop.f32.mrf.mxu0 }
 0x1d6   :  { %v1967_v5 = vld [vmem:[#allocation2 + $0x120] sm:$0xf]  ;;  %v2076_v55 = vld [vmem:[#allocation2 + $0xd8] sm:$0xf]  ;;  %v1960_v46 = vld [vmem:[#allocation2 + $0x114] sm:$0xf]  ;;  %9547 = vmatmul.mubr.bf16.gmra.mxu1 %v12895_v2 }
 0x1d7   :  { %v1546_v35 = vrot.slane %v1544_v0, 7  ;;  %v3465_v30 = vrot.slane %v14385_v21, 5  ;;  %v14405_v4 = vmax.f32 %v554_v58, 0.0  ;;  %2140 = vst [vmem:[#allocation4 + $0x480] sm:$0xf] %v2076_v55  ;;  %v1968_v29 = vsel %vm13716_vm12, %v1541_v1, %v1967_v5 }
 0x1d8   :  { %v1961_v38 = vsel %vm13716_vm12, %v1524_v20, %v1960_v46  ;;  %v1971_v23 = vld [vmem:[#allocation2 + $0x128] sm:$0x1]  ;;  %v949_v22 = vsel %vm13509_vm4, 0, %v948_v3  ;;  %v2608_v32 = vshrl.u32 %v14394_v6, 16  ;;  %v2077_v0 = vld [vmem:[#allocation2 + $0xdc] sm:$0xf]  ;;  %v3463_v26 = vsel %vm13597_vm10, %v11938_v48, %v3462_v33 }
 0x1d9   :  { %16977 = vst [vmem:[#allocation48_spill] sm:$0xff] %v14405_v4  ;;  %1969 = vst [vmem:[#allocation2 + $0x120] sm:$0xf] %v1968_v29  ;;  %v1549_v21 = vor.u32 %v1547_v24, %v1546_v35  ;;  %v1551_v58 = vrot.slane %v1546_v35, 4  ;;  %v3464_v2 = vrot.slane %v3462_v33, 4  ;;  %v12486_v46 = vpack.c.bf16 %v14405_v4, %v14405_v4  ;;  %v12970_v24 = vld [vmem:[%s16842_s3 + $0x1a0] sm:$0xff]  }
 0x1da   :  { %1962 = vst [vmem:[#allocation2 + $0x114] sm:$0xf] %v1961_v38  ;;  %950 = vst [vmem:[#allocation2 + $0x11c] sm:$0x1] %v949_v22  ;;  %v2216_v19 = vld [vmem:[#allocation2 + $0xb0] sm:$0x1]  ;;  %10292 = vmatpush1.bf16.msra.mxu0 %v12970_v24 }
 0x1db   :  { %2141 = vst [vmem:[#allocation4 + $0x4a4] sm:$0xf] %v2077_v0  ;;  %3678 = vst [vmem:[#allocation4 + $0x3f8] sm:$0xf] %v3463_v26  ;;  %v2610_v20 = vrot.slane %v2608_v32, 4  ;;  %v2611_v3 = vshll.u32 %v14394_v6, 16  ;;  %v1550_v48 = vsel %vm13732_vm14, %v1542_v52, %v1549_v21  ;;  %v1972_v33 = vsel %vm13485_vm2, %v1551_v58, %v1971_v23  ;;  %v14434_v52 = vpop.f32.mrf.mxu0  ;;  %10293 = vmatprep.subr.bf16.mxu0 %v16954_v15 }
 0x1dc   :  { %v2617_v1 = vshll.u32 %v2215_v16, 16  ;;  %v3212_v5 = vld [vmem:[#allocation2 + $0xb4] sm:$0xe]  ;;  %v3466_v55 = vsel %vm13597_vm10, %v3464_v2, %v3465_v30  ;;  %v2621_v35 = vshrl.u32 %v2215_v16, 16  ;;  %v3213_v29 = vld [vmem:[#allocation2 + $0xb8] sm:$0xf]  ;;  %v575_v16 = vadd.f32 %v14297_v49, %v14291_v47 }
 0x1dd   :  { %v14430_v38 = vld [vmem:[#allocation2 + $0xbc] sm:$0x1]  ;;  %1970 = vst [vmem:[#allocation2 + $0x124] sm:$0xf] %v1550_v48  ;;  %1973 = vst [vmem:[#allocation2 + $0x128] sm:$0x1] %v1972_v33  ;;  %v14440_v30 = vadd.f32 %v14297_v49, %v14311_v60  ;;  %v14444_v2 = vadd.f32 %v14297_v49, %v14331_v41  ;;  %v14451_v28 = vpop.f32.mrf.mxu0 }
 0x1de   :  { %3679 = vst [vmem:[#allocation4 + $0x41c] sm:$0xf] %v3466_v55  ;;  %v1527_v6 = vshrl.u32 %v12486_v46, 16  ;;  %v1530_v22 = vshll.u32 %v12486_v46, 16  ;;  %v2613_v32 = vrot.slane %v2611_v3, 5  ;;  %v2619_v0 = vrot.slane %v2617_v1, 5 }
 0x1df   :  { %v14432_v26 = vld [vmem:[#allocation2 + $0xb4] sm:$0xf]  ;;  %v12900_v23 = vld [vmem:[#allocation4 + $0x3ac] ss:$36 sps:$4 sm:$0xff]   ;;  %v2623_v58 = vrot.slane %v2621_v35, 4  ;;  %v2627_v1 = vshll.u32 %v2216_v19, 16 }
 0x1e0   :  { %v12902_v21 = vld [vmem:[#allocation4 + $0x3a8] ss:$36 sps:$4 sm:$0xff]   ;;  %v1529_v46 = vrot.slane %v1527_v6, 7  ;;  %v2614_v3 = vor.u32 %v2613_v32, %v2610_v20  ;;  %v11939_v24 = vrot.slane %v3212_v5, 9  ;;  %v3748_v33 = vld [vmem:[#allocation2 + $0xf0] sm:$0xf]  ;;  %9554 = vmatprep.mubr.bf16.mxu1 %v12900_v23  ;;  %v14453_v23 = vpop.f32.mrf.mxu1 }
 0x1e1   :  { %v14447_v48 = vld [vmem:[#allocation2 + $0xb8] sm:$0xf]  ;;  %v2624_v55 = vor.u32 %v2623_v58, %v2619_v0  ;;  %v3469_v47 = vrot.slane %v3213_v29, 5  ;;  %v3472_v35 = vrot.slane %v14430_v38, 5  ;;  %v2219_v60 = vld [vmem:[#allocation2 + $0xbc] sm:$0x1]  ;;  %9555 = vmatmul.mubr.bf16.gmra.mxu1 %v12902_v21 }
 0x1e2   :  { %v2632_v39 = vshrl.u32 %v14432_v26, 16  ;;  %v3749_v4 = vld [vmem:[#allocation2 + $0xf4] sm:$0xf]  ;;  %3812 = vst [vmem:[#allocation4 + $0x4d4] sm:$0xf] %v3748_v33  ;;  %v1532_v41 = vor.u32 %v1530_v22, %v1529_v46  ;;  %v1534_v12 = vrot.slane %v1529_v46, 4 }
 0x1e3   :  { %v1964_v6 = vld [vmem:[#allocation2 + $0x11c] sm:$0x1]  ;;  %v2615_v20 = vrot.slane %v2614_v3, 4  ;;  %v2629_v19 = vrot.slane %v2627_v1, 5  ;;  %v859_v5 = vld [vmem:[#allocation2 + $0x138] sm:$0x1]  ;;  %v3470_v38 = vsel %vm13597_vm10, %v11939_v24, %v3469_v47  ;;  %v9454_v24 = vpop.f32.mrf.mxu1 }
 0x1e4   :  { %v856_v32 = vld [vmem:[#allocation2 + $0x12c] sm:$0x1]  ;;  %3813 = vst [vmem:[#allocation4 + $0x4f8] sm:$0xf] %v3749_v4  ;;  %16978 = vst [vmem:[#allocation49_spill] sm:$0xff] %v14453_v23  ;;  %v2625_v29 = vrot.slane %v2624_v55, 4  ;;  %v1965_v46 = vsel %vm13485_vm2, %v1534_v12, %v1964_v6 }
 0x1e5   :  { %v3471_v58 = vrot.slane %v3469_v47, 4  ;;  %v2634_v57 = vrot.slane %v2632_v39, 4  ;;  %v2078_v33 = vld [vmem:[#allocation2 + $0xe4] sm:$0xf]  ;;  %v16979_v22 = vrot.slane %v14396_v62, 4  ;;  %v2620_v4 = vsel %vm13579_vm9, %v2615_v20, %v2619_v0  ;;  %v12981_v62 = vld [vmem:[%s16842_s3 + $0x158] sm:$0xff]  }
 0x1e6   :  { %3680 = vst [vmem:[#allocation4 + $0x440] sm:$0xf] %v3470_v38  ;;  %v2635_v3 = vshll.u32 %v14432_v26, 16  ;;  %v957_v1 = vld [vmem:[#allocation2 + $0x140] sm:$0x1]  ;;  %v2630_v12 = vsel %vm13579_vm9, %v2625_v29, %v2629_v19  ;;  %v2641_v26 = vshll.u32 %v14447_v48, 16  ;;  %v14481_v29 = vpop.f32.mrf.mxu0  ;;  %10021 = vmatpush2.bf16.msra.mxu1 %v12981_v62 }
 0x1e7   :  { %v1533_v21 = vsel %vm13732_vm14, %v16979_v22, %v1532_v41  ;;  %v2079_v55 = vld [vmem:[#allocation2 + $0xe8] sm:$0xf]  ;;  %2142 = vst [vmem:[#allocation4 + $0x4c8] sm:$0xf] %v2078_v33  ;;  %v12905_v39 = vld [vmem:[#allocation4 + $0x3fc] ss:$36 sps:$4 sm:$0xff]   ;;  %v3473_v0 = vsel %vm13597_vm10, %v3471_v58, %v3472_v35  ;;  %v14476_v41 = vadd.f32 %v14297_v49, %v14340_v18  ;;  %v14483_v35 = vpop.f32.mrf.mxu1  ;;  %10022 = vmatprep.subr.bf16.mxu1 %v16954_v15 }
 0x1e8   :  { %1963 = vst [vmem:[#allocation2 + $0x118] sm:$0xf] %v1533_v21  ;;  %1966 = vst [vmem:[#allocation2 + $0x11c] sm:$0x1] %v1965_v46  ;;  %v3215_v47 = vld [vmem:[#allocation2 + $0xd8] sm:$0xe]  ;;  %9851 = vmatprep.mubr.bf16.mxu0 %v12905_v39 }
 0x1e9   :  { %3131 = vst [vmem:[#allocation4 + $0x3f4] sm:$0xf] %v2620_v4  ;;  %2143 = vst [vmem:[#allocation4 + $0x4ec] sm:$0xf] %v2079_v55  ;;  %v12903_v6 = vld [vmem:[#allocation4 + $0x3f8] ss:$36 sps:$4 sm:$0xff]  }
 0x1ea   :  { %3132 = vst [vmem:[#allocation4 + $0x418] sm:$0xf] %v2630_v12  ;;  %3681 = vst [vmem:[#allocation4 + $0x464] sm:$0xf] %v3473_v0  ;;  %v2637_v20 = vrot.slane %v2635_v3, 5  ;;  %v2645_v38 = vshrl.u32 %v14447_v48, 16  ;;  %9852 = vmatmul.mubr.bf16.gmra.mxu0 %v12903_v6  ;;  %v14495_v3 = vpop.f32.mrf.mxu0 }
 0x1eb   :  { %v2651_v33 = vshll.u32 %v2219_v60, 16  ;;  %v14479_v19 = vmax.f32 %v575_v16, 0.0  ;;  %16981 = vst [vmem:[#allocation51_spill] sm:$0xff] %v14483_v35  ;;  %v2643_v58 = vrot.slane %v2641_v26, 5  ;;  %v860_v18 = vsel %vm13485_vm2, 0, %v859_v5  ;;  %v9457_v5 = vpop.f32.mrf.mxu1 }
 0x1ec   :  { %v14488_v22 = vmax.f32 %v14440_v30, 0.0  ;;  %v857_v21 = vsel %vm13485_vm2, 0, %v856_v32  ;;  %v2638_v16 = vor.u32 %v2637_v20, %v2634_v57  ;;  %v2647_v48 = vrot.slane %v2645_v38, 4  ;;  %861 = vst [vmem:[#allocation2 + $0x138] sm:$0x1] %v860_v18 }
 0x1ed   :  { %16980 = vst [vmem:[#allocation50_spill] sm:$0xff] %v14479_v19  ;;  %v2653_v60 = vrot.slane %v2651_v33, 5  ;;  %v12491_v46 = vpack.c.bf16 %v14479_v19, %v14479_v19  ;;  %858 = vst [vmem:[#allocation2 + $0x12c] sm:$0x1] %v857_v21  ;;  %v3216_v4 = vld [vmem:[#allocation2 + $0xdc] sm:$0xf] }
 0x1ee   :  { %16982 = vst [vmem:[#allocation52_spill] sm:$0xff] %v14488_v22  ;;  %v12489_v30 = vpack.c.bf16 %v14488_v22, %v14488_v22  ;;  %v14500_v32 = vmax.f32 %v14444_v2, 0.0  ;;  %v958_v57 = vsel %vm13509_vm4, 0, %v957_v1  ;;  %v3217_v55 = vld [vmem:[#allocation2 + $0xe0] sm:$0x1]  ;;  %v11940_v24 = vrot.slane %v3215_v47, 9 }
 0x1ef   :  { %v2639_v62 = vrot.slane %v2638_v16, 4  ;;  %v2648_v39 = vor.u32 %v2647_v48, %v2643_v58  ;;  %v1570_v12 = vshrl.u32 %v12491_v46, 16  ;;  %v1573_v0 = vshll.u32 %v12491_v46, 16  ;;  %959 = vst [vmem:[#allocation2 + $0x140] sm:$0x1] %v958_v57  ;;  %v14510_v16 = vpop.f32.mrf.mxu0 }
 0x1f0   :  { %16983 = vst [vmem:[#allocation53_spill] sm:$0xff] %v14500_v32  ;;  %v1553_v26 = vshrl.u32 %v12489_v30, 16  ;;  %v1556_v6 = vshll.u32 %v12489_v30, 16  ;;  %v12492_v20 = vpack.c.bf16 %v14500_v32, %v14500_v32  ;;  %v3476_v38 = vrot.slane %v3216_v4, 5  ;;  %v954_v21 = vld [vmem:[#allocation2 + $0x134] sm:$0x1] }
 0x1f1   :  { %v2644_v2 = vsel %vm13579_vm9, %v2639_v62, %v2643_v58  ;;  %v2649_v33 = vrot.slane %v2648_v39, 4  ;;  %v14508_v18 = vrot.slane %v1570_v12, 7  ;;  %v3479_v1 = vrot.slane %v3217_v55, 5  ;;  %v2220_v47 = vld [vmem:[#allocation2 + $0xd8] sm:$0xf] }
 0x1f2   :  { %v12906_v48 = vld [vmem:[#allocation4 + $0x3f4] ss:$36 sps:$4 sm:$0xff]   ;;  %3133 = vst [vmem:[#allocation4 + $0x43c] sm:$0xf] %v2644_v2  ;;  %v14512_v5 = vrot.slane %v1553_v26, 7  ;;  %v3477_v30 = vsel %vm13597_vm10, %v11940_v24, %v3476_v38  ;;  %v14522_v39 = vadd.f32 %v14297_v49, %v14343_v61  ;;  %v1578_v19 = vshrl.u32 %v12492_v20, 16 }
 0x1f3   :  { %v12908_v46 = vld [vmem:[#allocation4 + $0x3f0] ss:$36 sps:$4 sm:$0xff]   ;;  %v2221_v4 = vld [vmem:[#allocation2 + $0xdc] sm:$0xf]  ;;  %v12909_v57 = vld [vmem:[#allocation4 + $0x440] ss:$36 sps:$4 sm:$0xff]   ;;  %v2654_v58 = vsel %vm13579_vm9, %v2649_v33, %v2653_v60  ;;  %v1575_v55 = vor.u32 %v1573_v0, %v14508_v18  ;;  %9562 = vmatprep.mubr.bf16.mxu1 %v12906_v48  ;;  %v14528_v60 = vadd.f32 %v14297_v49, %v14369_v53 }
 0x1f4   :  { %v12911_v32 = vld [vmem:[#allocation4 + $0x444] ss:$36 sps:$4 sm:$0xff]   ;;  %v1576_v62 = vrot.slane %v14508_v18, 4  ;;  %3682 = vst [vmem:[#allocation4 + $0x488] sm:$0xf] %v3477_v30  ;;  %v1558_v24 = vor.u32 %v1556_v6, %v14512_v5  ;;  %9563 = vmatmul.mubr.bf16.gmra.mxu1 %v12908_v46  ;;  %v1581_v61 = vshll.u32 %v12492_v20, 16  ;;  %v14535_v6 = vpop.f32.mrf.mxu0 }
 0x1f5   :  { %3134 = vst [vmem:[#allocation4 + $0x460] sm:$0xf] %v2654_v58  ;;  %v1981_v12 = vld [vmem:[#allocation2 + $0x138] sm:$0xf]  ;;  %v1974_v2 = vld [vmem:[#allocation2 + $0x12c] sm:$0xf]  ;;  %9859 = vmatprep.mubr.bf16.mxu0 %v12911_v32 }
 0x1f6   :  { %v1982_v0 = vsel %vm13716_vm12, %v1575_v55, %v1981_v12  ;;  %v3478_v33 = vrot.slane %v3476_v38, 4  ;;  %v14533_v18 = vmax.f32 %v14476_v41, 0.0  ;;  %v2222_v48 = vld [vmem:[#allocation2 + $0xe0] sm:$0x1]  ;;  %v12984_v30 = vld [vmem:[%s16842_s3 + $0x198] sm:$0xff]   ;;  %v1975_v53 = vsel %vm13716_vm12, %v1558_v24, %v1974_v2  ;;  %9860 = vmatmul.mubr.bf16.gmra.mxu0 %v12909_v57  ;;  %v14551_v10 = vpop.f32.mrf.mxu0 }
 0x1f7   :  { %1983 = vst [vmem:[#allocation2 + $0x138] sm:$0xf] %v1982_v0  ;;  %v1580_v32 = vrot.slane %v1578_v19, 7  ;;  %v1985_v46 = vld [vmem:[#allocation2 + $0x140] sm:$0x1]  ;;  %v955_v20 = vsel %vm13509_vm4, 0, %v954_v21  ;;  %10294 = vmatpush1.bf16.msra.mxu0 %v12984_v30 }
 0x1f8   :  { %16984 = vst [vmem:[#allocation54_spill] sm:$0xff] %v14533_v18  ;;  %v2656_v38 = vshrl.u32 %v2220_v47, 16  ;;  %1976 = vst [vmem:[#allocation2 + $0x12c] sm:$0xf] %v1975_v53  ;;  %v3480_v41 = vsel %vm13597_vm10, %v3478_v33, %v3479_v1  ;;  %v12490_v58 = vpack.c.bf16 %v14533_v18, %v14533_v18  ;;  %v2659_v55 = vshll.u32 %v2220_v47, 16  ;;  %10295 = vmatprep.subr.bf16.mxu0 %v16954_v15 }
 0x1f9   :  { %956 = vst [vmem:[#allocation2 + $0x134] sm:$0x1] %v955_v20  ;;  %v2665_v12 = vshll.u32 %v2221_v4, 16  ;;  %v3218_v0 = vld [vmem:[#allocation2 + $0xe4] sm:$0xe]  ;;  %v1583_v57 = vor.u32 %v1581_v61, %v1580_v32  ;;  %v1585_v2 = vrot.slane %v1580_v32, 4 }
 0x1fa   :  { %v3219_v26 = vld [vmem:[#allocation2 + $0xe8] sm:$0xf]  ;;  %v3750_v24 = vld [vmem:[#allocation2 + $0xfc] sm:$0xf]  ;;  %v3751_v19 = vld [vmem:[#allocation2 + $0x100] sm:$0xf] }
 0x1fb   :  { %3683 = vst [vmem:[#allocation4 + $0x4ac] sm:$0xf] %v3480_v41  ;;  %v2658_v21 = vrot.slane %v2656_v38, 4  ;;  %v2669_v22 = vshrl.u32 %v2221_v4, 16  ;;  %v14548_v53 = vld [vmem:[#allocation2 + $0xec] sm:$0x1]  ;;  %v1584_v4 = vsel %vm13732_vm14, %v1576_v62, %v1583_v57  ;;  %v1986_v30 = vsel %vm13485_vm2, %v1585_v2, %v1985_v46  ;;  %v14568_v46 = vpop.f32.mrf.mxu0 }
 0x1fc   :  { %3814 = vst [vmem:[#allocation4 + $0x51c] sm:$0xf] %v3750_v24  ;;  %3815 = vst [vmem:[#allocation4 + $0x540] sm:$0xf] %v3751_v19  ;;  %v1561_v1 = vshrl.u32 %v12490_v58, 16  ;;  %v1564_v33 = vshll.u32 %v12490_v58, 16  ;;  %v14566_v62 = vadd.f32 %v14297_v49, %v14402_v37 }
 0x1fd   :  { %v2661_v47 = vrot.slane %v2659_v55, 5  ;;  %v2667_v20 = vrot.slane %v2665_v12, 5  ;;  %v2223_v18 = vld [vmem:[#allocation2 + $0xe4] sm:$0xf]  ;;  %v12995_v61 = vld [vmem:[%s16842_s3 + $0x150] sm:$0xff]   ;;  %v2671_v32 = vrot.slane %v2669_v22, 4 }
 0x1fe   :  { %v2675_v38 = vshll.u32 %v2222_v48, 16  ;;  %v2080_v41 = vld [vmem:[#allocation2 + $0xf0] sm:$0xf]  ;;  %1984 = vst [vmem:[#allocation2 + $0x13c] sm:$0xf] %v1584_v4  ;;  %v1563_v55 = vrot.slane %v1561_v1, 7  ;;  %10023 = vmatpush2.bf16.msra.mxu1 %v12995_v61 }
 0x1ff   :  { %v12913_v24 = vld [vmem:[#allocation4 + $0x43c] ss:$36 sps:$4 sm:$0xff]   ;;  %1987 = vst [vmem:[#allocation2 + $0x140] sm:$0x1] %v1986_v30  ;;  %v2662_v12 = vor.u32 %v2661_v47, %v2658_v21  ;;  %v2224_v19 = vld [vmem:[#allocation2 + $0xe8] sm:$0xf]  ;;  %v2672_v22 = vor.u32 %v2671_v32, %v2667_v20  ;;  %10024 = vmatprep.subr.bf16.mxu1 %v16954_v15 }
 0x200   :  { %v12915_v58 = vld [vmem:[#allocation4 + $0x438] ss:$36 sps:$4 sm:$0xff]   ;;  %2144 = vst [vmem:[#allocation4 + $0x510] sm:$0xf] %v2080_v41  ;;  %v2677_v48 = vrot.slane %v2675_v38, 5  ;;  %v11941_v57 = vrot.slane %v3218_v0, 9  ;;  %9570 = vmatprep.mubr.bf16.mxu1 %v12913_v24  ;;  %v1566_v21 = vor.u32 %v1564_v33, %v1563_v55 }
 0x201   :  { %v3483_v2 = vrot.slane %v3219_v26, 5  ;;  %v2225_v4 = vld [vmem:[#allocation2 + $0xec] sm:$0x1]  ;;  %v2081_v1 = vld [vmem:[#allocation2 + $0xf4] sm:$0xf]  ;;  %v1568_v13 = vrot.slane %v1563_v55, 4  ;;  %9571 = vmatmul.mubr.bf16.gmra.mxu1 %v12915_v58 }
 0x202   :  { %v2663_v47 = vrot.slane %v2662_v12, 4  ;;  %v3486_v30 = vrot.slane %v14548_v53, 5  ;;  %v865_v49 = vld [vmem:[#allocation2 + $0x150] sm:$0x1]  ;;  %2145 = vst [vmem:[#allocation4 + $0x534] sm:$0xf] %v2081_v1  ;;  %v14582_v12 = vpop.f32.mrf.mxu0 }
 0x203   :  { %v1978_v37 = vld [vmem:[#allocation2 + $0x134] sm:$0x1]  ;;  %v2673_v41 = vrot.slane %v2672_v22, 4  ;;  %v3484_v61 = vsel %vm13597_vm10, %v11941_v57, %v3483_v2  ;;  %v3485_v0 = vrot.slane %v3483_v2, 4  ;;  %v2680_v26 = vshrl.u32 %v2223_v18, 16 }
 0x204   :  { %v12918_v32 = vld [vmem:[#allocation4 + $0x48c] ss:$36 sps:$4 sm:$0xff]   ;;  %v16985_v38 = vrot.slane %v14512_v5, 4  ;;  %v1979_v24 = vsel %vm13485_vm2, %v1568_v13, %v1978_v37  ;;  %v2668_v53 = vsel %vm13579_vm9, %v2663_v47, %v2667_v20  ;;  %3684 = vst [vmem:[#allocation4 + $0x4d0] sm:$0xf] %v3484_v61  ;;  %v2683_v58 = vshll.u32 %v2223_v18, 16 }
 0x205   :  { %v862_v55 = vld [vmem:[#allocation2 + $0x144] sm:$0x1]  ;;  %v12916_v22 = vld [vmem:[#allocation4 + $0x488] ss:$36 sps:$4 sm:$0xff]   ;;  %1980 = vst [vmem:[#allocation2 + $0x134] sm:$0x1] %v1979_v24  ;;  %v2678_v5 = vsel %vm13579_vm9, %v2673_v41, %v2677_v48  ;;  %v3487_v57 = vsel %vm13597_vm10, %v3485_v0, %v3486_v30  ;;  %9867 = vmatprep.mubr.bf16.mxu0 %v12918_v32 }
 0x206   :  { %v1567_v33 = vsel %vm13732_vm14, %v16985_v38, %v1566_v21  ;;  %3135 = vst [vmem:[#allocation4 + $0x484] sm:$0xf] %v2668_v53  ;;  %v2682_v2 = vrot.slane %v2680_v26, 4  ;;  %v2689_v1 = vshll.u32 %v2224_v19, 16  ;;  %v963_v21 = vld [vmem:[#allocation2 + $0x158] sm:$0x1]  ;;  %9868 = vmatmul.mubr.bf16.gmra.mxu0 %v12916_v22 }
 0x207   :  { %1977 = vst [vmem:[#allocation2 + $0x130] sm:$0xf] %v1567_v33  ;;  %3136 = vst [vmem:[#allocation4 + $0x4a8] sm:$0xf] %v2678_v5  ;;  %v2685_v18 = vrot.slane %v2683_v58, 5  ;;  %v2693_v20 = vshrl.u32 %v2224_v19, 16 }
 0x208   :  { %3685 = vst [vmem:[#allocation4 + $0x4f4] sm:$0xf] %v3487_v57  ;;  %v2699_v13 = vshll.u32 %v2225_v4, 16  ;;  %v14589_v47 = vmax.f32 %v14522_v39, 0.0  ;;  %v3221_v37 = vld [vmem:[#allocation2 + $0xf0] sm:$0xe] }
 0x209   :  { %v2691_v61 = vrot.slane %v2689_v1, 5  ;;  %v866_v48 = vsel %vm13485_vm2, 0, %v865_v49  ;;  %v14594_v30 = vmax.f32 %v14528_v60, 0.0  ;;  %v863_v41 = vsel %vm13485_vm2, 0, %v862_v55  ;;  %v14598_v0 = vld [vmem:[#allocation2 + $0xf4] sm:$0xf]  ;;  %v14604_v49 = vpop.f32.mrf.mxu0 }
 0x20a   :  { %16986 = vst [vmem:[#allocation55_spill] sm:$0xff] %v14589_v47  ;;  %v2686_v26 = vor.u32 %v2685_v18, %v2682_v2  ;;  %v2695_v19 = vrot.slane %v2693_v20, 4  ;;  %v2701_v4 = vrot.slane %v2699_v13, 5  ;;  %867 = vst [vmem:[#allocation2 + $0x150] sm:$0x1] %v866_v48  ;;  %v12495_v39 = vpack.c.bf16 %v14589_v47, %v14589_v47  ;;  %v12998_v55 = vld [vmem:[%s16842_s3 + $0x190] sm:$0xff]  }
 0x20b   :  { %16987 = vst [vmem:[#allocation56_spill] sm:$0xff] %v14594_v30  ;;  %864 = vst [vmem:[#allocation2 + $0x144] sm:$0x1] %v863_v41  ;;  %v14602_v32 = vld [vmem:[#allocation2 + $0xf8] sm:$0x1]  ;;  %v12493_v60 = vpack.c.bf16 %v14594_v30, %v14594_v30  ;;  %v14609_v33 = vmax.f32 %v14562_v44, 0.0  ;;  %10296 = vmatpush1.bf16.msra.mxu0 %v12998_v55 }
 0x20c   :  { %v3752_v38 = vld [vmem:[#allocation2 + $0x108] sm:$0xf]  ;;  %v964_v24 = vsel %vm13509_vm4, 0, %v963_v21  ;;  %v11942_v53 = vrot.slane %v3221_v37, 9  ;;  %v3753_v58 = vld [vmem:[#allocation2 + $0x10c] sm:$0xf]  ;;  %v2696_v5 = vor.u32 %v2695_v19, %v2691_v61  ;;  %10297 = vmatprep.subr.bf16.mxu0 %v16954_v15 }
 0x20d   :  { %16988 = vst [vmem:[#allocation57_spill] sm:$0xff] %v14609_v33  ;;  %3816 = vst [vmem:[#allocation4 + $0x564] sm:$0xf] %v3752_v38  ;;  %v2687_v22 = vrot.slane %v2686_v26, 4  ;;  %v1604_v57 = vshrl.u32 %v12495_v39, 16  ;;  %v1607_v2 = vshll.u32 %v12495_v39, 16  ;;  %v14621_v20 = vpack.c.bf16 %v14609_v33, %v14609_v33 }
 0x20e   :  { %965 = vst [vmem:[#allocation2 + $0x158] sm:$0x1] %v964_v24  ;;  %3817 = vst [vmem:[#allocation4 + $0x588] sm:$0xf] %v3753_v58  ;;  %v2082_v1 = vld [vmem:[#allocation2 + $0xfc] sm:$0xf] }
 0x20f   :  { %v13003_v44 = vld [vmem:[%s16842_s3 + $0x188] sm:$0xff]   ;;  %v1587_v18 = vshrl.u32 %v12493_v60, 16  ;;  %v1590_v21 = vshll.u32 %v12493_v60, 16  ;;  %v3490_v13 = vrot.slane %v14598_v0, 5  ;;  %v2083_v37 = vld [vmem:[#allocation2 + $0x100] sm:$0xf]  ;;  %v2692_v48 = vsel %vm13579_vm9, %v2687_v22, %v2691_v61  ;;  %v14631_v60 = vpop.f32.mrf.mxu0 }
 0x210   :  { %2146 = vst [vmem:[#allocation4 + $0x558] sm:$0xf] %v2082_v1  ;;  %v2697_v41 = vrot.slane %v2696_v5, 4  ;;  %v14626_v26 = vrot.slane %v1604_v57, 7  ;;  %v3493_v19 = vrot.slane %v14602_v32, 5  ;;  %10298 = vmatpush1.bf16.msra.mxu0 %v13003_v44  ;;  %v13007_v33 = vld [vmem:[%s16842_s3 + $0x180] sm:$0xff]  }
 0x211   :  { %v960_v39 = vld [vmem:[#allocation2 + $0x14c] sm:$0x1]  ;;  %v14629_v38 = vld [vmem:[#allocation2 + $0xf0] sm:$0xf]  ;;  %2147 = vst [vmem:[#allocation4 + $0x57c] sm:$0xf] %v2083_v37  ;;  %v3491_v61 = vsel %vm13597_vm10, %v11942_v53, %v3490_v13  ;;  %v14653_v37 = vpop.f32.mrf.mxu0  ;;  %10299 = vmatprep.subr.bf16.mxu0 %v16954_v15 }
 0x212   :  { %v12919_v0 = vld [vmem:[#allocation4 + $0x484] ss:$36 sps:$4 sm:$0xff]   ;;  %3137 = vst [vmem:[#allocation4 + $0x4cc] sm:$0xf] %v2692_v48  ;;  %v14634_v58 = vrot.slane %v1587_v18, 7  ;;  %v2702_v5 = vsel %vm13579_vm9, %v2697_v41, %v2701_v4  ;;  %v1609_v57 = vor.u32 %v1607_v2, %v14626_v26  ;;  %v1610_v1 = vrot.slane %v14626_v26, 4 }
 0x213   :  { %v12921_v24 = vld [vmem:[#allocation4 + $0x480] ss:$36 sps:$4 sm:$0xff]   ;;  %v12922_v22 = vld [vmem:[#allocation4 + $0x4d0] ss:$36 sps:$4 sm:$0xff]   ;;  %3686 = vst [vmem:[#allocation4 + $0x518] sm:$0xf] %v3491_v61  ;;  %9578 = vmatprep.mubr.bf16.mxu1 %v12919_v0  ;;  %v9743_v2 = vpop.f32.mrf.mxu0 }
 0x214   :  { %v14638_v55 = vld [vmem:[#allocation2 + $0xf4] sm:$0xf]  ;;  %v12924_v32 = vld [vmem:[#allocation4 + $0x4d4] ss:$36 sps:$4 sm:$0xff]   ;;  %v14647_v18 = vld [vmem:[%s16843_s2] ss:$0 sm:$0xff]  ;;  %v1592_v4 = vor.u32 %v1590_v21, %v14634_v58  ;;  %9579 = vmatmul.mubr.bf16.gmra.mxu1 %v12921_v24  ;;  %10300 = vmatpush1.bf16.msra.mxu0 %v13007_v33 }
 0x215   :  { %v14651_v53 = vadd.f32 %v14647_v18, %v14414_v8  ;;  %16989 = vst [vmem:[#allocation58_spill] sm:$0xff] %v14653_v37  ;;  %3138 = vst [vmem:[#allocation4 + $0x4f0] sm:$0xf] %v2702_v5  ;;  %v1995_v48 = vld [vmem:[#allocation2 + $0x150] sm:$0xf]  ;;  %v1612_v26 = vshrl.u32 %v14621_v20, 16  ;;  %v14660_v61 = vadd.f32 %v14647_v18, %v14434_v52  ;;  %9875 = vmatprep.mubr.bf16.mxu0 %v12924_v32  ;;  %10301 = vmatprep.subr.bf16.mxu0 %v16954_v15 }
 0x216   :  { %v1988_v41 = vld [vmem:[#allocation2 + $0x144] sm:$0xf]  ;;  %v1996_v8 = vsel %vm13716_vm12, %v1609_v57, %v1995_v48  ;;  %v1615_v0 = vshll.u32 %v14621_v20, 16  ;;  %v3492_v5 = vrot.slane %v3490_v13, 4  ;;  %v14666_v21 = vmax.f32 %v14566_v62, 0.0  ;;  %9876 = vmatmul.mubr.bf16.gmra.mxu0 %v12922_v22  ;;  %v13011_v62 = vld [vmem:[%s16842_s3 + $0x148] sm:$0xff]  }
 0x217   :  { %1997 = vst [vmem:[#allocation2 + $0x150] sm:$0xf] %v1996_v8  ;;  %v1989_v52 = vsel %vm13716_vm12, %v1592_v4, %v1988_v41  ;;  %v1614_v44 = vrot.slane %v1612_v26, 7  ;;  %v961_v24 = vsel %vm13509_vm4, 0, %v960_v39  ;;  %v2228_v32 = vld [vmem:[#allocation2 + $0xf8] sm:$0x1]  ;;  %v14686_v41 = vpop.f32.mrf.mxu0  ;;  %10025 = vmatpush2.bf16.msra.mxu1 %v13011_v62 }
 0x218   :  { %16990 = vst [vmem:[#allocation59_spill] sm:$0xff] %v14666_v21  ;;  %v2704_v20 = vshrl.u32 %v14629_v38, 16  ;;  %1990 = vst [vmem:[#allocation2 + $0x144] sm:$0xf] %v1989_v52  ;;  %v1999_v13 = vld [vmem:[#allocation2 + $0x158] sm:$0x1]  ;;  %v3494_v57 = vsel %vm13597_vm10, %v3492_v5, %v3493_v19  ;;  %v12494_v22 = vpack.c.bf16 %v14666_v21, %v14666_v21  ;;  %10026 = vmatprep.subr.bf16.mxu1 %v16954_v15 }
 0x219   :  { %962 = vst [vmem:[#allocation2 + $0x14c] sm:$0x1] %v961_v24  ;;  %v2707_v39 = vshll.u32 %v14629_v38, 16  ;;  %v2713_v48 = vshll.u32 %v14638_v55, 16  ;;  %v3224_v4 = vld [vmem:[#allocation2 + $0xfc] sm:$0xe]  ;;  %v1617_v26 = vor.u32 %v1615_v0, %v1614_v44  ;;  %v9746_v51 = vpop.f32.mrf.mxu0 }
 0x21a   :  { %v3225_v2 = vld [vmem:[#allocation2 + $0x100] sm:$0xf]  ;;  %16991 = vst [vmem:[#allocation60_spill] sm:$0xff] %v14686_v41  ;;  %v1619_v8 = vrot.slane %v1614_v44, 4  ;;  %3687 = vst [vmem:[#allocation4 + $0x53c] sm:$0xf] %v3494_v57  ;;  %v14700_v51 = vadd.f32 %v14647_v18, %v14451_v28 }
 0x21b   :  { %v2706_v52 = vrot.slane %v2704_v20, 4  ;;  %v2717_v47 = vshrl.u32 %v14638_v55, 16  ;;  %v3226_v30 = vld [vmem:[#allocation2 + $0x104] sm:$0x1]  ;;  %v13012_v19 = vld [vmem:[%s16842_s3 + $0x1f8] sm:$0xff]   ;;  %v1595_v38 = vshrl.u32 %v12494_v22, 16  ;;  %v1618_v0 = vsel %vm13732_vm14, %v1610_v1, %v1617_v26 }
 0x21c   :  { %v1598_v5 = vshll.u32 %v12494_v22, 16  ;;  %v2709_v24 = vrot.slane %v2707_v39, 5  ;;  %v2715_v21 = vrot.slane %v2713_v48, 5  ;;  %v2000_v33 = vsel %vm13485_vm2, %v1619_v8, %v1999_v13  ;;  %v2229_v20 = vld [vmem:[#allocation2 + $0xfc] sm:$0xf]  ;;  %10302 = vmatpush2.bf16.msra.mxu0 %v13012_v19 }
 0x21d   :  { %v2719_v55 = vrot.slane %v2717_v47, 4  ;;  %v2723_v44 = vshll.u32 %v2228_v32, 16  ;;  %v12926_v62 = vld [vmem:[#allocation4 + $0x4cc] ss:$36 sps:$4 sm:$0xff]   ;;  %1998 = vst [vmem:[#allocation2 + $0x154] sm:$0xf] %v1618_v0  ;;  %v14704_v48 = vadd.f32 %v14647_v18, %v14481_v29  ;;  %10303 = vmatprep.subr.bf16.mxu0 %v16954_v15 }
 0x21e   :  { %2001 = vst [vmem:[#allocation2 + $0x158] sm:$0x1] %v2000_v33  ;;  %v1597_v57 = vrot.slane %v1595_v38, 7  ;;  %v2710_v22 = vor.u32 %v2709_v24, %v2706_v52  ;;  %v2230_v39 = vld [vmem:[#allocation2 + $0x100] sm:$0xf]  ;;  %v11943_v47 = vrot.slane %v3224_v4, 9  ;;  %9586 = vmatprep.mubr.bf16.mxu1 %v12926_v62 }
 0x21f   :  { %v12929_v1 = vld [vmem:[#allocation4 + $0x4c8] ss:$36 sps:$4 sm:$0xff]   ;;  %v2720_v26 = vor.u32 %v2719_v55, %v2715_v21  ;;  %v2725_v13 = vrot.slane %v2723_v44, 5  ;;  %v3497_v32 = vrot.slane %v3225_v2, 5  ;;  %v2231_v8 = vld [vmem:[#allocation2 + $0x104] sm:$0x1] }
 0x220   :  { %v13016_v52 = vld [vmem:[%s16842_s3 + $0x1f0] sm:$0xff]   ;;  %v1600_v38 = vor.u32 %v1598_v5, %v1597_v57  ;;  %v1602_v24 = vrot.slane %v1597_v57, 4  ;;  %v2711_v28 = vrot.slane %v2710_v22, 4  ;;  %v3500_v0 = vrot.slane %v3226_v30, 5  ;;  %v871_v33 = vld [vmem:[#allocation2 + $0x168] sm:$0x1]  ;;  %9587 = vmatmul.mubr.bf16.gmra.mxu1 %v12929_v1 }
 0x221   :  { %v868_v43 = vld [vmem:[#allocation2 + $0x15c] sm:$0x1]  ;;  %v1992_v29 = vld [vmem:[#allocation2 + $0x14c] sm:$0x1]  ;;  %v2721_v55 = vrot.slane %v2720_v26, 4  ;;  %v3498_v4 = vsel %vm13597_vm10, %v11943_v47, %v3497_v32  ;;  %v3499_v2 = vrot.slane %v3497_v32, 4  ;;  %10304 = vmatpush2.bf16.msra.mxu0 %v13016_v52 }
 0x222   :  { %v2728_v19 = vshrl.u32 %v2229_v20, 16  ;;  %v12932_v44 = vld [vmem:[#allocation4 + $0x51c] ss:$36 sps:$4 sm:$0xff]   ;;  %v16992_v31 = vrot.slane %v14634_v58, 4  ;;  %v1993_v30 = vsel %vm13485_vm2, %v1602_v24, %v1992_v29  ;;  %v2716_v62 = vsel %vm13579_vm9, %v2711_v28, %v2715_v21  ;;  %3688 = vst [vmem:[#allocation4 + $0x560] sm:$0xf] %v3498_v4  ;;  %10305 = vmatprep.subr.bf16.mxu0 %v16954_v15 }
 0x223   :  { %v2731_v57 = vshll.u32 %v2229_v20, 16  ;;  %v969_v22 = vld [vmem:[#allocation2 + $0x170] sm:$0x1]  ;;  %v14720_v1 = vld [vmem:[#allocation2 + $0x108] sm:$0xe]  ;;  %v2726_v58 = vsel %vm13579_vm9, %v2721_v55, %v2725_v13  ;;  %v2737_v32 = vshll.u32 %v2230_v39, 16  ;;  %9883 = vmatprep.mubr.bf16.mxu0 %v12932_v44 }
 0x224   :  { %v1601_v5 = vsel %vm13732_vm14, %v16992_v31, %v1600_v38  ;;  %v12930_v26 = vld [vmem:[#allocation4 + $0x518] ss:$36 sps:$4 sm:$0xff]   ;;  %1994 = vst [vmem:[#allocation2 + $0x14c] sm:$0x1] %v1993_v30  ;;  %3139 = vst [vmem:[#allocation4 + $0x514] sm:$0xf] %v2716_v62  ;;  %v3501_v31 = vsel %vm13597_vm10, %v3499_v2, %v3500_v0 }
 0x225   :  { %1991 = vst [vmem:[#allocation2 + $0x148] sm:$0xf] %v1601_v5  ;;  %v2730_v47 = vrot.slane %v2728_v19, 4  ;;  %v13020_v21 = vld [vmem:[%s16842_s3 + $0x1e8] sm:$0xff]   ;;  %3140 = vst [vmem:[#allocation4 + $0x538] sm:$0xf] %v2726_v58  ;;  %9884 = vmatmul.mubr.bf16.gmra.mxu0 %v12930_v26 }
 0x226   :  { %3689 = vst [vmem:[#allocation4 + $0x584] sm:$0xf] %v3501_v31  ;;  %v2733_v20 = vrot.slane %v2731_v57, 5  ;;  %v2741_v38 = vshrl.u32 %v2230_v39, 16  ;;  %v2747_v24 = vshll.u32 %v2231_v8, 16  ;;  %v14730_v28 = vmax.f32 %v14651_v53, 0.0  ;;  %10306 = vmatpush2.bf16.msra.mxu0 %v13020_v21 }
 0x227   :  { %v14732_v13 = vld [vmem:[#allocation2 + $0x10c] sm:$0xf]  ;;  %v3754_v29 = vld [vmem:[#allocation2 + $0x114] sm:$0xf]  ;;  %v2739_v52 = vrot.slane %v2737_v32, 5  ;;  %v872_v0 = vsel %vm13485_vm2, 0, %v871_v33  ;;  %10307 = vmatprep.subr.bf16.mxu0 %v16954_v15 }
 0x228   :  { %16993 = vst [vmem:[#allocation61_spill] sm:$0xff] %v14730_v28  ;;  %v14738_v55 = vmax.f32 %v14660_v61, 0.0  ;;  %v869_v39 = vsel %vm13485_vm2, 0, %v868_v43  ;;  %v3755_v8 = vld [vmem:[#allocation2 + $0x118] sm:$0xf]  ;;  %v2734_v53 = vor.u32 %v2733_v20, %v2730_v47  ;;  %v2743_v4 = vrot.slane %v2741_v38, 4 }
 0x229   :  { %3818 = vst [vmem:[#allocation4 + $0x5ac] sm:$0xf] %v3754_v29  ;;  %v2749_v2 = vrot.slane %v2747_v24, 5  ;;  %873 = vst [vmem:[#allocation2 + $0x168] sm:$0x1] %v872_v0  ;;  %v12499_v19 = vpack.c.bf16 %v14730_v28, %v14730_v28  ;;  %v14749_v5 = vmax.f32 %v14700_v51, 0.0 }
 0x22a   :  { %16994 = vst [vmem:[#allocation62_spill] sm:$0xff] %v14738_v55  ;;  %870 = vst [vmem:[#allocation2 + $0x15c] sm:$0x1] %v869_v39  ;;  %v14744_v44 = vld [vmem:[#allocation2 + $0x110] sm:$0x1]  ;;  %v12497_v61 = vpack.c.bf16 %v14738_v55, %v14738_v55  ;;  %v970_v43 = vsel %vm13509_vm4, 0, %v969_v22  ;;  %v2744_v58 = vor.u32 %v2743_v4, %v2739_v52 }
 0x22b   :  { %3819 = vst [vmem:[#allocation4 + $0x5d0] sm:$0xf] %v3755_v8  ;;  %v2084_v33 = vld [vmem:[#allocation2 + $0x108] sm:$0xf]  ;;  %16995 = vst [vmem:[#allocation63_spill] sm:$0xff] %v14749_v5  ;;  %v11944_v30 = vrot.slane %v14720_v1, 9  ;;  %v12500_v32 = vpack.c.bf16 %v14749_v5, %v14749_v5  ;;  %v14769_v8 = vpop.f32.mrf.mxu0 }
 0x22c   :  { %v2085_v62 = vld [vmem:[#allocation2 + $0x10c] sm:$0xf]  ;;  %2148 = vst [vmem:[#allocation4 + $0x5a0] sm:$0xf] %v2084_v33  ;;  %v13024_v57 = vld [vmem:[%s16842_s3 + $0x1e0] sm:$0xff]   ;;  %v2735_v26 = vrot.slane %v2734_v53, 4 }
 0x22d   :  { %v1638_v31 = vshrl.u32 %v12499_v19, 16  ;;  %v1641_v47 = vshll.u32 %v12499_v19, 16  ;;  %971 = vst [vmem:[#allocation2 + $0x170] sm:$0x1] %v970_v43  ;;  %2149 = vst [vmem:[#allocation4 + $0x5c4] sm:$0xf] %v2085_v62  ;;  %10308 = vmatpush2.bf16.msra.mxu0 %v13024_v57 }
 0x22e   :  { %v13028_v51 = vld [vmem:[%s16842_s3 + $0x140] sm:$0xff]   ;;  %v1621_v22 = vshrl.u32 %v12497_v61, 16  ;;  %v1624_v1 = vshll.u32 %v12497_v61, 16  ;;  %v3504_v21 = vrot.slane %v14732_v13, 5  ;;  %v2740_v20 = vsel %vm13579_vm9, %v2735_v26, %v2739_v52  ;;  %v2232_v39 = vld [vmem:[#allocation2 + $0x108] sm:$0xf]  ;;  %v9751_v26 = vpop.f32.mrf.mxu0  ;;  %10309 = vmatprep.subr.bf16.mxu0 %v16954_v15 }
 0x22f   :  { %v2745_v38 = vrot.slane %v2744_v58, 4  ;;  %v14766_v24 = vrot.slane %v1638_v31, 7  ;;  %v3507_v29 = vrot.slane %v14744_v44, 5  ;;  %v966_v0 = vld [vmem:[#allocation2 + $0x164] sm:$0x1]  ;;  %10027 = vmatpush2.bf16.msra.mxu1 %v13028_v51  ;;  %v1646_v51 = vshrl.u32 %v12500_v32, 16 }
 0x230   :  { %v12933_v53 = vld [vmem:[#allocation4 + $0x514] ss:$36 sps:$4 sm:$0xff]   ;;  %3141 = vst [vmem:[#allocation4 + $0x55c] sm:$0xf] %v2740_v20  ;;  %v14771_v19 = vrot.slane %v1621_v22, 7  ;;  %v3505_v13 = vsel %vm13597_vm10, %v11944_v30, %v3504_v21  ;;  %v3506_v22 = vrot.slane %v3504_v21, 4 }
 0x231   :  { %v12935_v4 = vld [vmem:[#allocation4 + $0x510] ss:$36 sps:$4 sm:$0xff]   ;;  %v2233_v33 = vld [vmem:[#allocation2 + $0x10c] sm:$0xf]  ;;  %v12936_v52 = vld [vmem:[#allocation4 + $0x560] ss:$36 sps:$4 sm:$0xff]   ;;  %v2750_v44 = vsel %vm13579_vm9, %v2745_v38, %v2749_v2  ;;  %v1643_v43 = vor.u32 %v1641_v47, %v14766_v24  ;;  %9594 = vmatprep.mubr.bf16.mxu1 %v12933_v53 }
 0x232   :  { %v12938_v61 = vld [vmem:[#allocation4 + $0x564] ss:$36 sps:$4 sm:$0xff]   ;;  %v1644_v62 = vrot.slane %v14766_v24, 4  ;;  %3690 = vst [vmem:[#allocation4 + $0x5a8] sm:$0xf] %v3505_v13  ;;  %v1626_v30 = vor.u32 %v1624_v1, %v14771_v19  ;;  %9595 = vmatmul.mubr.bf16.gmra.mxu1 %v12935_v4  ;;  %v1649_v47 = vshll.u32 %v12500_v32, 16  ;;  %v14787_v24 = vpop.f32.mrf.mxu0 }
 0x233   :  { %3142 = vst [vmem:[#allocation4 + $0x580] sm:$0xf] %v2750_v44  ;;  %v2009_v58 = vld [vmem:[#allocation2 + $0x168] sm:$0xf]  ;;  %v2002_v31 = vld [vmem:[#allocation2 + $0x15c] sm:$0xf]  ;;  %9891 = vmatprep.mubr.bf16.mxu0 %v12938_v61 }
 0x234   :  { %v2010_v2 = vsel %vm13716_vm12, %v1643_v43, %v2009_v58  ;;  %v14785_v20 = vmax.f32 %v14704_v48, 0.0  ;;  %v2234_v38 = vld [vmem:[#allocation2 + $0x110] sm:$0x1]  ;;  %v13029_v1 = vld [vmem:[%s16842_s3 + $0x1d8] sm:$0xff]   ;;  %v2003_v53 = vsel %vm13716_vm12, %v1626_v30, %v2002_v31  ;;  %v1648_v4 = vrot.slane %v1646_v51, 7  ;;  %9892 = vmatmul.mubr.bf16.gmra.mxu0 %v12936_v52  ;;  %v9754_v30 = vpop.f32.mrf.mxu0 }
 0x235   :  { %2011 = vst [vmem:[#allocation2 + $0x168] sm:$0xf] %v2010_v2  ;;  %v2013_v13 = vld [vmem:[#allocation2 + $0x170] sm:$0x1]  ;;  %v967_v32 = vsel %vm13509_vm4, 0, %v966_v0  ;;  %v2752_v21 = vshrl.u32 %v2232_v39, 16  ;;  %v3508_v48 = vsel %vm13597_vm10, %v3506_v22, %v3507_v29  ;;  %10310 = vmatpush2.bf16.msra.mxu0 %v13029_v1 }
 0x236   :  { %16996 = vst [vmem:[#allocation64_spill] sm:$0xff] %v14785_v20  ;;  %2004 = vst [vmem:[#allocation2 + $0x15c] sm:$0xf] %v2003_v53  ;;  %v12498_v61 = vpack.c.bf16 %v14785_v20, %v14785_v20  ;;  %v2755_v44 = vshll.u32 %v2232_v39, 16  ;;  %v2761_v43 = vshll.u32 %v2233_v33, 16  ;;  %v1651_v31 = vor.u32 %v1649_v47, %v1648_v4  ;;  %10311 = vmatprep.subr.bf16.mxu0 %v16954_v15  ;;  %v13033_v29 = vld [vmem:[%s16842_s3 + $0x1d0] sm:$0xff]  }
 0x237   :  { %968 = vst [vmem:[#allocation2 + $0x164] sm:$0x1] %v967_v32  ;;  %v3230_v26 = vld [vmem:[#allocation2 + $0x114] sm:$0xe]  ;;  %v3231_v58 = vld [vmem:[#allocation2 + $0x118] sm:$0xf] }
 0x238   :  { %v1653_v52 = vrot.slane %v1648_v4, 4  ;;  %3691 = vst [vmem:[#allocation4 + $0x5cc] sm:$0xf] %v3508_v48  ;;  %v2754_v51 = vrot.slane %v2752_v21, 4  ;;  %v2765_v0 = vshrl.u32 %v2233_v33, 16  ;;  %v1629_v22 = vshrl.u32 %v12498_v61, 16 }
 0x239   :  { %v3232_v2 = vld [vmem:[#allocation2 + $0x11c] sm:$0x1]  ;;  %v1632_v53 = vshll.u32 %v12498_v61, 16  ;;  %v2757_v39 = vrot.slane %v2755_v44, 5  ;;  %v2763_v32 = vrot.slane %v2761_v43, 5  ;;  %v1652_v30 = vsel %vm13732_vm14, %v1644_v62, %v1651_v31  ;;  %v13034_v21 = vld [vmem:[%s16842_s3 + $0x1c8] sm:$0xff]   ;;  %10312 = vmatpush2.bf16.msra.mxu0 %v13033_v29 }
 0x23a   :  { %v2014_v47 = vsel %vm13485_vm2, %v1653_v52, %v2013_v13  ;;  %v2767_v1 = vrot.slane %v2765_v0, 4  ;;  %v2771_v4 = vshll.u32 %v2234_v38, 16  ;;  %v3756_v33 = vld [vmem:[#allocation2 + $0x120] sm:$0xf]  ;;  %v12940_v48 = vld [vmem:[#allocation4 + $0x55c] ss:$36 sps:$4 sm:$0xff]   ;;  %v623_v62 = vadd.f32 %v14647_v18, %v14495_v3  ;;  %10313 = vmatprep.subr.bf16.mxu0 %v16954_v15 }
 0x23b   :  { %2012 = vst [vmem:[#allocation2 + $0x16c] sm:$0xf] %v1652_v30  ;;  %2015 = vst [vmem:[#allocation2 + $0x170] sm:$0x1] %v2014_v47  ;;  %v12943_v57 = vld [vmem:[#allocation4 + $0x558] ss:$36 sps:$4 sm:$0xff]   ;;  %v2758_v44 = vor.u32 %v2757_v39, %v2754_v51  ;;  %9602 = vmatprep.mubr.bf16.mxu1 %v12940_v48 }
 0x23c   :  { %v1631_v61 = vrot.slane %v1629_v22, 7  ;;  %3820 = vst [vmem:[#allocation4 + $0x5f4] sm:$0xf] %v3756_v33  ;;  %v2768_v43 = vor.u32 %v2767_v1, %v2763_v32  ;;  %v2773_v13 = vrot.slane %v2771_v4, 5  ;;  %v11945_v31 = vrot.slane %v3230_v26, 9  ;;  %9603 = vmatmul.mubr.bf16.gmra.mxu1 %v12943_v57 }
 0x23d   :  { %v3511_v38 = vrot.slane %v3231_v58, 5  ;;  %v3757_v52 = vld [vmem:[#allocation2 + $0x124] sm:$0xf]  ;;  %v2759_v30 = vrot.slane %v2758_v44, 4  ;;  %v3514_v47 = vrot.slane %v3232_v2, 5  ;;  %v615_v26 = vadd.f32 %v14647_v18, %v14510_v16  ;;  %v14818_v58 = vpop.f32.mrf.mxu0  ;;  %10314 = vmatpush2.bf16.msra.mxu0 %v13034_v21 }
 0x23e   :  { %v1634_v0 = vor.u32 %v1632_v53, %v1631_v61  ;;  %v1636_v5 = vrot.slane %v1631_v61, 4  ;;  %3821 = vst [vmem:[#allocation4 + $0x618] sm:$0xf] %v3757_v52  ;;  %v2086_v22 = vld [vmem:[#allocation2 + $0x114] sm:$0xf]  ;;  %v2769_v39 = vrot.slane %v2768_v43, 4  ;;  %10315 = vmatprep.subr.bf16.mxu0 %v16954_v15 }
 0x23f   :  { %v2006_v51 = vld [vmem:[#allocation2 + $0x164] sm:$0x1]  ;;  %v3512_v3 = vsel %vm13597_vm10, %v11945_v31, %v3511_v38  ;;  %v3513_v29 = vrot.slane %v3511_v38, 4  ;;  %v2087_v1 = vld [vmem:[#allocation2 + $0x118] sm:$0xf]  ;;  %v16997_v2 = vrot.slane %v14771_v19, 4  ;;  %v2764_v48 = vsel %vm13579_vm9, %v2759_v30, %v2763_v32  ;;  %v14836_v31 = vpop.f32.mrf.mxu1 }
 0x240   :  { %2150 = vst [vmem:[#allocation4 + $0x5e8] sm:$0xf] %v2086_v22  ;;  %v12944_v53 = vld [vmem:[#allocation4 + $0x5a8] ss:$36 sps:$4 sm:$0xff]   ;;  %v2007_v33 = vsel %vm13485_vm2, %v1636_v5, %v2006_v51  ;;  %3692 = vst [vmem:[#allocation4 + $0x5f0] sm:$0xf] %v3512_v3  ;;  %v2774_v16 = vsel %vm13579_vm9, %v2769_v39, %v2773_v13  ;;  %v626_v32 = vadd.f32 %v14647_v18, %v14535_v6 }
 0x241   :  { %v12946_v4 = vld [vmem:[#allocation4 + $0x5ac] ss:$36 sps:$4 sm:$0xff]   ;;  %v1635_v57 = vsel %vm13732_vm14, %v16997_v2, %v1634_v0  ;;  %2151 = vst [vmem:[#allocation4 + $0x60c] sm:$0xf] %v2087_v1  ;;  %v14828_v61 = vmax.f32 %v623_v62, 0.0  ;;  %v3515_v19 = vsel %vm13597_vm10, %v3513_v29, %v3514_v47  ;;  %v9759_v62 = vpop.f32.mrf.mxu0  ;;  %v14843_v22 = vmax.f32 %v615_v26, 0.0  ;;  %v9462_v39 = vpop.f32.mrf.mxu1 }
 0x242   :  { %2005 = vst [vmem:[#allocation2 + $0x160] sm:$0xf] %v1635_v57  ;;  %2008 = vst [vmem:[#allocation2 + $0x164] sm:$0x1] %v2007_v33  ;;  %v2235_v44 = vld [vmem:[#allocation2 + $0x114] sm:$0xf]  ;;  %9899 = vmatprep.mubr.bf16.mxu0 %v12946_v4 }
 0x243   :  { %16998 = vst [vmem:[#allocation65_spill] sm:$0xff] %v14828_v61  ;;  %3143 = vst [vmem:[#allocation4 + $0x5a4] sm:$0xf] %v2764_v48  ;;  %v2236_v43 = vld [vmem:[#allocation2 + $0x118] sm:$0xf]  ;;  %v2776_v21 = vshrl.u32 %v2235_v44, 16  ;;  %9900 = vmatmul.mubr.bf16.gmra.mxu0 %v12944_v53  ;;  %v12503_v6 = vpack.c.bf16 %v14828_v61, %v14828_v61  ;;  %v14845_v3 = vpop.f32.mrf.mxu0 }
 0x244   :  { %v2237_v5 = vld [vmem:[#allocation2 + $0x11c] sm:$0x1]  ;;  %3144 = vst [vmem:[#allocation4 + $0x5c8] sm:$0xf] %v2774_v16  ;;  %3693 = vst [vmem:[#allocation4 + $0x614] sm:$0xf] %v3515_v19 }
 0x245   :  { %v2779_v13 = vshll.u32 %v2235_v44, 16  ;;  %v2785_v38 = vshll.u32 %v2236_v43, 16  ;;  %v2789_v52 = vshrl.u32 %v2236_v43, 16  ;;  %v877_v0 = vld [vmem:[#allocation2 + $0x180] sm:$0x1]  ;;  %v2795_v30 = vshll.u32 %v2237_v5, 16  ;;  %v14852_v44 = vpop.f32.mrf.mxu1  ;;  %v9762_v43 = vpop.f32.mrf.mxu0 }
 0x246   :  { %v878_v47 = vsel %vm13485_vm2, 0, %v877_v0  ;;  %16999 = vst [vmem:[#allocation66_spill] sm:$0xff] %v14843_v22  ;;  %v874_v51 = vld [vmem:[#allocation2 + $0x174] sm:$0x1]  ;;  %v13041_v29 = vld [vmem:[%s16842_s3 + $0x1c0] sm:$0xff]   ;;  %v2778_v1 = vrot.slane %v2776_v21, 4  ;;  %v12501_v21 = vpack.c.bf16 %v14843_v22, %v14843_v22 }
 0x247   :  { %v2781_v4 = vrot.slane %v2779_v13, 5  ;;  %v2787_v53 = vrot.slane %v2785_v38, 5  ;;  %v2791_v2 = vrot.slane %v2789_v52, 4  ;;  %879 = vst [vmem:[#allocation2 + $0x180] sm:$0x1] %v878_v47  ;;  %v2797_v33 = vrot.slane %v2795_v30, 5  ;;  %10316 = vmatpush2.bf16.msra.mxu0 %v13041_v29  ;;  %v14865_v39 = vpop.f32.mrf.mxu0 }
 0x248   :  { %v975_v57 = vld [vmem:[#allocation2 + $0x188] sm:$0x1]  ;;  %v1672_v48 = vshrl.u32 %v12503_v6, 16  ;;  %v1675_v16 = vshll.u32 %v12503_v6, 16  ;;  %v875_v26 = vsel %vm13485_vm2, 0, %v874_v51  ;;  %v14856_v13 = vmax.f32 %v626_v32, 0.0  ;;  %v9465_v51 = vpop.f32.mrf.mxu1 }
 0x249   :  { %v3233_v19 = vld [vmem:[#allocation2 + $0x120] sm:$0xe]  ;;  %v2782_v5 = vor.u32 %v2781_v4, %v2778_v1  ;;  %v2792_v62 = vor.u32 %v2791_v2, %v2787_v53  ;;  %876 = vst [vmem:[#allocation2 + $0x174] sm:$0x1] %v875_v26  ;;  %v3234_v38 = vld [vmem:[#allocation2 + $0x124] sm:$0xf] }
 0x24a   :  { %17000 = vst [vmem:[#allocation67_spill] sm:$0xff] %v14856_v13  ;;  %v13042_v52 = vld [vmem:[%s16842_s3 + $0x238] sm:$0xff]   ;;  %v14861_v0 = vrot.slane %v1672_v48, 7  ;;  %v976_v30 = vsel %vm13509_vm4, 0, %v975_v57  ;;  %v11946_v47 = vrot.slane %v3233_v19, 9  ;;  %v3518_v6 = vrot.slane %v3234_v38, 5  ;;  %v9767_v38 = vpop.f32.mrf.mxu0 }
 0x24b   :  { %v2783_v29 = vrot.slane %v2782_v5, 4  ;;  %v2793_v1 = vrot.slane %v2792_v62, 4  ;;  %v1655_v4 = vshrl.u32 %v12501_v21, 16  ;;  %977 = vst [vmem:[#allocation2 + $0x188] sm:$0x1] %v976_v30  ;;  %v12504_v32 = vpack.c.bf16 %v14856_v13, %v14856_v13  ;;  %12669 = vmatprep.subr.bf16.mxu1 %v13042_v52  ;;  %v14875_v62 = vpop.f32.mrf.mxu1 }
 0x24c   :  { %v3235_v2 = vld [vmem:[#allocation2 + $0x128] sm:$0x1]  ;;  %v12947_v26 = vld [vmem:[#allocation4 + $0x5a4] ss:$36 sps:$4 sm:$0xff]   ;;  %v1677_v43 = vor.u32 %v1675_v16, %v14861_v0  ;;  %v3519_v19 = vsel %vm13597_vm10, %v11946_v47, %v3518_v6  ;;  %v618_v5 = vadd.f32 %v14647_v18, %v14551_v10  ;;  %v12950_v30 = vld [vmem:[#allocation4 + $0x5f0] ss:$36 sps:$4 sm:$0xff]   ;;  %v639_v47 = vadd.f32 %v14647_v18, %v14568_v46  ;;  %v14885_v28 = vpop.f32.mrf.mxu0 }
 0x24d   :  { %v12949_v48 = vld [vmem:[#allocation4 + $0x5a0] ss:$36 sps:$4 sm:$0xff]   ;;  %v12952_v51 = vld [vmem:[#allocation4 + $0x5f4] ss:$36 sps:$4 sm:$0xff]   ;;  %v2788_v52 = vsel %vm13579_vm9, %v2783_v29, %v2787_v53  ;;  %v2798_v13 = vsel %vm13579_vm9, %v2793_v1, %v2797_v33  ;;  %v14881_v16 = vrot.slane %v1655_v4, 7  ;;  %9610 = vmatprep.mubr.bf16.mxu1 %v12947_v26  ;;  %v1658_v57 = vshll.u32 %v12501_v21, 16  ;;  %v9470_v20 = vpop.f32.mrf.mxu1 }
 0x24e   :  { %3694 = vst [vmem:[#allocation4 + $0x638] sm:$0xf] %v3519_v19  ;;  %3145 = vst [vmem:[#allocation4 + $0x5ec] sm:$0xf] %v2788_v52  ;;  %v2023_v10 = vld [vmem:[#allocation2 + $0x180] sm:$0xf]  ;;  %9611 = vmatmul.mubr.bf16.gmra.mxu1 %v12949_v48  ;;  %9907 = vmatprep.mubr.bf16.mxu0 %v12952_v51  ;;  %v9770_v26 = vpop.f32.mrf.mxu0 }
 0x24f   :  { %3146 = vst [vmem:[#allocation4 + $0x610] sm:$0xf] %v2798_v13  ;;  %v1680_v38 = vshrl.u32 %v12504_v32, 16  ;;  %v1683_v61 = vshll.u32 %v12504_v32, 16  ;;  %v3520_v22 = vrot.slane %v3518_v6, 4  ;;  %v2024_v53 = vsel %vm13716_vm12, %v1677_v43, %v2023_v10  ;;  %9908 = vmatmul.mubr.bf16.gmra.mxu0 %v12950_v30  ;;  %v14893_v32 = vpop.f32.mrf.mxu1 }
 0x250   :  { %v3521_v29 = vrot.slane %v3235_v2, 5  ;;  %v3758_v46 = vld [vmem:[#allocation2 + $0x12c] sm:$0xf]  ;;  %v3759_v1 = vld [vmem:[#allocation2 + $0x130] sm:$0xf]  ;;  %v1660_v13 = vor.u32 %v1658_v57, %v14881_v16  ;;  %v14891_v20 = vmax.f32 %v618_v5, 0.0 }
 0x251   :  { %2025 = vst [vmem:[#allocation2 + $0x180] sm:$0xf] %v2024_v53  ;;  %v2016_v21 = vld [vmem:[#allocation2 + $0x174] sm:$0xf]  ;;  %v1682_v4 = vrot.slane %v1680_v38, 7  ;;  %v14899_v57 = vmax.f32 %v639_v47, 0.0  ;;  %v9473_v38 = vpop.f32.mrf.mxu1  ;;  %v14905_v53 = vpop.f32.mrf.mxu0 }
 0x252   :  { %3822 = vst [vmem:[#allocation4 + $0x63c] sm:$0xf] %v3758_v46  ;;  %3823 = vst [vmem:[#allocation4 + $0x660] sm:$0xf] %v3759_v1  ;;  %v972_v6 = vld [vmem:[#allocation2 + $0x17c] sm:$0x1]  ;;  %v3522_v48 = vsel %vm13597_vm10, %v3520_v22, %v3521_v29  ;;  %v2017_v30 = vsel %vm13716_vm12, %v1660_v13, %v2016_v21  ;;  %v12502_v10 = vpack.c.bf16 %v14891_v20, %v14891_v20 }
 0x253   :  { %17001 = vst [vmem:[#allocation68_spill] sm:$0xff] %v14891_v20  ;;  %v973_v2 = vsel %vm13509_vm4, 0, %v972_v6  ;;  %v2088_v43 = vld [vmem:[#allocation2 + $0x120] sm:$0xf]  ;;  %v2089_v19 = vld [vmem:[#allocation2 + $0x124] sm:$0xf]  ;;  %v1685_v51 = vor.u32 %v1683_v61, %v1682_v4  ;;  %v14909_v61 = vpack.c.bf16 %v14899_v57, %v14899_v57 }
 0x254   :  { %17002 = vst [vmem:[#allocation69_spill] sm:$0xff] %v14899_v57  ;;  %v1687_v5 = vrot.slane %v1682_v4, 4  ;;  %v2027_v52 = vld [vmem:[#allocation2 + $0x188] sm:$0x1]  ;;  %3695 = vst [vmem:[#allocation4 + $0x65c] sm:$0xf] %v3522_v48 }
 0x255   :  { %974 = vst [vmem:[#allocation2 + $0x17c] sm:$0x1] %v973_v2  ;;  %2152 = vst [vmem:[#allocation4 + $0x630] sm:$0xf] %v2088_v43  ;;  %v2238_v22 = vld [vmem:[#allocation2 + $0x120] sm:$0xf]  ;;  %v14917_v43 = vpop.f32.mrf.mxu1 }
 0x256   :  { %2153 = vst [vmem:[#allocation4 + $0x654] sm:$0xf] %v2089_v19  ;;  %2018 = vst [vmem:[#allocation2 + $0x174] sm:$0xf] %v2017_v30  ;;  %v2239_v47 = vld [vmem:[#allocation2 + $0x124] sm:$0xf]  ;;  %v2028_v4 = vsel %vm13485_vm2, %v1687_v5, %v2027_v52  ;;  %v9775_v19 = vpop.f32.mrf.mxu0 }
 0x257   :  { %v2240_v29 = vld [vmem:[#allocation2 + $0x128] sm:$0x1]  ;;  %v2800_v46 = vshrl.u32 %v2238_v22, 16  ;;  %v2803_v1 = vshll.u32 %v2238_v22, 16  ;;  %v17003_v13 = vrot.slane %v14861_v0, 4  ;;  %v1663_v6 = vshrl.u32 %v12502_v10, 16 }
 0x258   :  { %v1666_v26 = vshll.u32 %v12502_v10, 16  ;;  %v3236_v48 = vld [vmem:[#allocation2 + $0x12c] sm:$0xe]  ;;  %v3237_v2 = vld [vmem:[#allocation2 + $0x130] sm:$0xf]  ;;  %v2809_v57 = vshll.u32 %v2239_v47, 16  ;;  %v14919_v55 = vpop.f32.mrf.mxu0 }
 0x259   :  { %v1686_v21 = vsel %vm13732_vm14, %v17003_v13, %v1685_v51  ;;  %v12954_v30 = vld [vmem:[#allocation4 + $0x5ec] ss:$36 sps:$4 sm:$0xff]   ;;  %2029 = vst [vmem:[#allocation2 + $0x188] sm:$0x1] %v2028_v4  ;;  %v2802_v22 = vrot.slane %v2800_v46, 4  ;;  %v2805_v38 = vrot.slane %v2803_v1, 5  ;;  %v9478_v13 = vpop.f32.mrf.mxu1 }
 0x25a   :  { %2026 = vst [vmem:[#allocation2 + $0x184] sm:$0xf] %v1686_v21  ;;  %v12957_v33 = vld [vmem:[#allocation4 + $0x5e8] ss:$36 sps:$4 sm:$0xff]   ;;  %v1665_v0 = vrot.slane %v1663_v6, 7  ;;  %v2813_v20 = vshrl.u32 %v2239_v47, 16  ;;  %9618 = vmatprep.mubr.bf16.mxu1 %v12954_v30  ;;  %v9778_v47 = vpop.f32.mrf.mxu0 }
 0x25b   :  { %v2819_v51 = vshll.u32 %v2240_v29, 16  ;;  %v2806_v5 = vor.u32 %v2805_v38, %v2802_v22  ;;  %v3238_v52 = vld [vmem:[#allocation2 + $0x134] sm:$0x1]  ;;  %v11947_v10 = vrot.slane %v3236_v48, 9  ;;  %v3525_v25 = vrot.slane %v3237_v2, 5  ;;  %9619 = vmatmul.mubr.bf16.gmra.mxu1 %v12957_v33  ;;  %v14922_v6 = vpop.f32.mrf.mxu1 }
 0x25c   :  { %v1706_v19 = vshrl.u32 %v14909_v61, 16  ;;  %v1668_v21 = vor.u32 %v1666_v26, %v1665_v0  ;;  %v1670_v4 = vrot.slane %v1665_v0, 4  ;;  %v2811_v46 = vrot.slane %v2809_v57, 5  ;;  %v3760_v42 = vld [vmem:[#allocation2 + $0x138] sm:$0xf] }
 0x25d   :  { %v2815_v1 = vrot.slane %v2813_v20, 4  ;;  %v12958_v29 = vld [vmem:[#allocation4 + $0x638] ss:$36 sps:$4 sm:$0xff]   ;;  %v2807_v59 = vrot.slane %v2806_v5, 4  ;;  %v3526_v30 = vsel %vm13597_vm10, %v11947_v10, %v3525_v25  ;;  %3824 = vst [vmem:[#allocation4 + $0x684] sm:$0xf] %v3760_v42  ;;  %v631_v48 = vadd.f32 %v14647_v18, %v14582_v12  ;;  %v9481_v0 = vpop.f32.mrf.mxu1 }
 0x25e   :  { %v12960_v13 = vld [vmem:[#allocation4 + $0x63c] ss:$36 sps:$4 sm:$0xff]   ;;  %v17004_v33 = vrot.slane %v14881_v16, 4  ;;  %v2020_v20 = vld [vmem:[#allocation2 + $0x17c] sm:$0x1]  ;;  %v2821_v2 = vrot.slane %v2819_v51, 5  ;;  %v14952_v0 = vpop.f32.mrf.mxu0 }
 0x25f   :  { %v2816_v26 = vor.u32 %v2815_v1, %v2811_v46  ;;  %v3527_v22 = vrot.slane %v3525_v25, 4  ;;  %3696 = vst [vmem:[#allocation4 + $0x680] sm:$0xf] %v3526_v30  ;;  %v3761_v38 = vld [vmem:[#allocation2 + $0x13c] sm:$0xf]  ;;  %9915 = vmatprep.mubr.bf16.mxu0 %v12960_v13  ;;  %v2021_v42 = vsel %vm13485_vm2, %v1670_v4, %v2020_v20  ;;  %v2812_v12 = vsel %vm13579_vm9, %v2807_v59, %v2811_v46 }
 0x260   :  { %v1669_v57 = vsel %vm13732_vm14, %v17004_v33, %v1668_v21  ;;  %v3528_v5 = vrot.slane %v3238_v52, 5  ;;  %3825 = vst [vmem:[#allocation4 + $0x6a8] sm:$0xf] %v3761_v38  ;;  %v2090_v16 = vld [vmem:[#allocation2 + $0x12c] sm:$0xf]  ;;  %v14936_v21 = vrot.slane %v1706_v19, 7  ;;  %9916 = vmatmul.mubr.bf16.gmra.mxu0 %v12958_v29  ;;  %v642_v4 = vadd.f32 %v14647_v18, %v14604_v49 }
 0x261   :  { %2019 = vst [vmem:[#allocation2 + $0x178] sm:$0xf] %v1669_v57  ;;  %v2091_v10 = vld [vmem:[#allocation2 + $0x130] sm:$0xf]  ;;  %2022 = vst [vmem:[#allocation2 + $0x17c] sm:$0x1] %v2021_v42  ;;  %v634_v59 = vadd.f32 %v14647_v18, %v14631_v60 }
 0x262   :  { %v2817_v51 = vrot.slane %v2816_v26, 4  ;;  %3147 = vst [vmem:[#allocation4 + $0x634] sm:$0xf] %v2812_v12  ;;  %2154 = vst [vmem:[#allocation4 + $0x678] sm:$0xf] %v2090_v16  ;;  %v1709_v47 = vshll.u32 %v14909_v61, 16  ;;  %v3529_v52 = vsel %vm13597_vm10, %v3527_v22, %v3528_v5 }
 0x263   :  { %2155 = vst [vmem:[#allocation4 + $0x69c] sm:$0xf] %v2091_v10  ;;  %v2241_v25 = vld [vmem:[#allocation2 + $0x12c] sm:$0xf]  ;;  %v2242_v1 = vld [vmem:[#allocation2 + $0x130] sm:$0xf] }
 0x264   :  { %v2243_v19 = vld [vmem:[#allocation2 + $0x134] sm:$0x1]  ;;  %v2824_v46 = vshrl.u32 %v2241_v25, 16  ;;  %v2827_v13 = vshll.u32 %v2241_v25, 16  ;;  %v2833_v30 = vshll.u32 %v2242_v1, 16  ;;  %v2822_v29 = vsel %vm13579_vm9, %v2817_v51, %v2821_v2 }
 0x265   :  { %3697 = vst [vmem:[#allocation4 + $0x6a4] sm:$0xf] %v3529_v52  ;;  %v2837_v33 = vshrl.u32 %v2242_v1, 16  ;;  %v2843_v57 = vshll.u32 %v2243_v19, 16  ;;  %v883_v61 = vld [vmem:[#allocation2 + $0x198] sm:$0x1]  ;;  %v14948_v20 = vor.u32 %v1709_v47, %v14936_v21  ;;  %v9783_v52 = vpop.f32.mrf.mxu0 }
 0x266   :  { %v880_v49 = vld [vmem:[#allocation2 + $0x18c] sm:$0x1]  ;;  %3148 = vst [vmem:[#allocation4 + $0x658] sm:$0xf] %v2822_v29  ;;  %v2826_v60 = vrot.slane %v2824_v46, 4  ;;  %v2829_v18 = vrot.slane %v2827_v13, 5  ;;  %v14965_v29 = vpop.f32.mrf.mxu1 }
 0x267   :  { %v2835_v26 = vrot.slane %v2833_v30, 5  ;;  %v884_v22 = vsel %vm13485_vm2, 0, %v883_v61  ;;  %v981_v38 = vld [vmem:[#allocation2 + $0x1a0] sm:$0x1]  ;;  %v2839_v42 = vrot.slane %v2837_v33, 4  ;;  %v2845_v2 = vrot.slane %v2843_v57, 5 }
 0x268   :  { %885 = vst [vmem:[#allocation2 + $0x198] sm:$0x1] %v884_v22  ;;  %v14955_v5 = vmax.f32 %v631_v48, 0.0  ;;  %v3239_v16 = vld [vmem:[#allocation2 + $0x138] sm:$0xe]  ;;  %v2830_v10 = vor.u32 %v2829_v18, %v2826_v60  ;;  %v881_v51 = vsel %vm13485_vm2, 0, %v880_v49  ;;  %v14971_v60 = vpop.f32.mrf.mxu0 }
 0x269   :  { %v14959_v25 = vmax.f32 %v642_v4, 0.0  ;;  %v982_v1 = vsel %vm13509_vm4, 0, %v981_v38  ;;  %v3240_v47 = vld [vmem:[#allocation2 + $0x13c] sm:$0xf]  ;;  %v2840_v19 = vor.u32 %v2839_v42, %v2835_v26  ;;  %882 = vst [vmem:[#allocation2 + $0x18c] sm:$0x1] %v881_v51  ;;  %v9486_v51 = vpop.f32.mrf.mxu1 }
 0x26a   :  { %17005 = vst [vmem:[#allocation70_spill] sm:$0xff] %v14955_v5  ;;  %v12505_v46 = vpack.c.bf16 %v14955_v5, %v14955_v5  ;;  %983 = vst [vmem:[#allocation2 + $0x1a0] sm:$0x1] %v982_v1  ;;  %v3241_v48 = vld [vmem:[#allocation2 + $0x140] sm:$0x1]  ;;  %v11948_v13 = vrot.slane %v3239_v16, 9 }
 0x26b   :  { %17006 = vst [vmem:[#allocation71_spill] sm:$0xff] %v14959_v25  ;;  %v3532_v30 = vrot.slane %v3240_v47, 5  ;;  %v2831_v33 = vrot.slane %v2830_v10, 4  ;;  %v12508_v4 = vpack.c.bf16 %v14959_v25, %v14959_v25  ;;  %v3535_v57 = vrot.slane %v3241_v48, 5  ;;  %v3762_v61 = vld [vmem:[#allocation2 + $0x144] sm:$0xf]  ;;  %v14981_v51 = vpop.f32.mrf.mxu1 }
 0x26c   :  { %v14969_v49 = vmax.f32 %v634_v59, 0.0  ;;  %v2841_v18 = vrot.slane %v2840_v19, 4  ;;  %v1689_v22 = vshrl.u32 %v12505_v46, 16  ;;  %v1692_v38 = vshll.u32 %v12505_v46, 16  ;;  %v3763_v16 = vld [vmem:[#allocation2 + $0x148] sm:$0xf]  ;;  %v9786_v19 = vpop.f32.mrf.mxu0 }
 0x26d   :  { %v3533_v42 = vsel %vm13597_vm10, %v11948_v13, %v3532_v30  ;;  %3826 = vst [vmem:[#allocation4 + $0x6cc] sm:$0xf] %v3762_v61  ;;  %v12964_v1 = vld [vmem:[#allocation4 + $0x680] ss:$36 sps:$4 sm:$0xff]   ;;  %v2836_v47 = vsel %vm13579_vm9, %v2831_v33, %v2835_v26  ;;  %v1714_v52 = vshrl.u32 %v12508_v4, 16  ;;  %v1717_v33 = vshll.u32 %v12508_v4, 16 }
 0x26e   :  { %17007 = vst [vmem:[#allocation72_spill] sm:$0xff] %v14969_v49  ;;  %v12966_v10 = vld [vmem:[#allocation4 + $0x684] ss:$36 sps:$4 sm:$0xff]   ;;  %3698 = vst [vmem:[#allocation4 + $0x6c8] sm:$0xf] %v3533_v42  ;;  %v12506_v59 = vpack.c.bf16 %v14969_v49, %v14969_v49  ;;  %v2846_v13 = vsel %vm13579_vm9, %v2841_v18, %v2845_v2  ;;  %v1691_v61 = vrot.slane %v1689_v22, 7  ;;  %v9489_v22 = vpop.f32.mrf.mxu1 }
 0x26f   :  { %3827 = vst [vmem:[#allocation4 + $0x6f0] sm:$0xf] %v3763_v16  ;;  %v12961_v48 = vld [vmem:[#allocation4 + $0x634] ss:$36 sps:$4 sm:$0xff]   ;;  %3149 = vst [vmem:[#allocation4 + $0x67c] sm:$0xf] %v2836_v47  ;;  %9923 = vmatprep.mubr.bf16.mxu0 %v12966_v10  ;;  %v14986_v47 = vpop.f32.mrf.mxu0 }
 0x270   :  { %v12963_v46 = vld [vmem:[#allocation4 + $0x630] ss:$36 sps:$4 sm:$0xff]   ;;  %3150 = vst [vmem:[#allocation4 + $0x6a0] sm:$0xf] %v2846_v13  ;;  %v2037_v12 = vld [vmem:[#allocation2 + $0x198] sm:$0xf]  ;;  %9626 = vmatprep.mubr.bf16.mxu1 %v12961_v48  ;;  %v1694_v25 = vor.u32 %v1692_v38, %v1691_v61  ;;  %9924 = vmatmul.mubr.bf16.gmra.mxu0 %v12964_v1  ;;  %v14994_v13 = vpop.f32.mrf.mxu1 }
 0x271   :  { %v1716_v26 = vrot.slane %v1714_v52, 7  ;;  %v3534_v42 = vrot.slane %v3532_v30, 4  ;;  %v1697_v16 = vshrl.u32 %v12506_v59, 16  ;;  %v2038_v19 = vsel %vm13716_vm12, %v14948_v20, %v2037_v12  ;;  %v978_v49 = vld [vmem:[#allocation2 + $0x194] sm:$0x1]  ;;  %9627 = vmatmul.mubr.bf16.gmra.mxu1 %v12963_v46 }
 0x272   :  { %v1700_v2 = vshll.u32 %v12506_v59, 16  ;;  %v2092_v18 = vld [vmem:[#allocation2 + $0x138] sm:$0xf]  ;;  %2039 = vst [vmem:[#allocation2 + $0x198] sm:$0xf] %v2038_v19  ;;  %v979_v20 = vsel %vm13509_vm4, 0, %v978_v49 }
 0x273   :  { %v2030_v10 = vld [vmem:[#allocation2 + $0x18c] sm:$0xf]  ;;  %v1719_v52 = vor.u32 %v1717_v33, %v1716_v26  ;;  %v1721_v4 = vrot.slane %v1716_v26, 4  ;;  %v2041_v30 = vld [vmem:[#allocation2 + $0x1a0] sm:$0x1]  ;;  %v3536_v48 = vsel %vm13597_vm10, %v3534_v42, %v3535_v57  ;;  %v1695_v12 = vrot.slane %v1691_v61, 4  ;;  %v9791_v26 = vpop.f32.mrf.mxu0 }
 0x274   :  { %2156 = vst [vmem:[#allocation4 + $0x6c0] sm:$0xf] %v2092_v18  ;;  %v2031_v38 = vsel %vm13716_vm12, %v1694_v25, %v2030_v10  ;;  %3699 = vst [vmem:[#allocation4 + $0x6ec] sm:$0xf] %v3536_v48  ;;  %v1699_v1 = vrot.slane %v1697_v16, 7  ;;  %v17008_v33 = vrot.slane %v14936_v21, 4  ;;  %v9494_v18 = vpop.f32.mrf.mxu1 }
 0x275   :  { %980 = vst [vmem:[#allocation2 + $0x194] sm:$0x1] %v979_v20  ;;  %v2093_v59 = vld [vmem:[#allocation2 + $0x13c] sm:$0xf]  ;;  %v2244_v46 = vld [vmem:[#allocation2 + $0x138] sm:$0xf]  ;;  %v2042_v57 = vsel %vm13485_vm2, %v1721_v4, %v2041_v30  ;;  %v15002_v22 = vpop.f32.mrf.mxu0 }
 0x276   :  { %2032 = vst [vmem:[#allocation2 + $0x18c] sm:$0xf] %v2031_v38  ;;  %v1720_v54 = vsel %vm13732_vm14, %v17008_v33, %v1719_v52  ;;  %2157 = vst [vmem:[#allocation4 + $0x6e4] sm:$0xf] %v2093_v59  ;;  %v2245_v14 = vld [vmem:[#allocation2 + $0x13c] sm:$0xf]  ;;  %v1702_v42 = vor.u32 %v1700_v2, %v1699_v1  ;;  %v15006_v59 = vpop.f32.mrf.mxu1 }
 0x277   :  { %v2246_v25 = vld [vmem:[#allocation2 + $0x140] sm:$0x1]  ;;  %v2848_v49 = vshrl.u32 %v2244_v46, 16  ;;  %v2851_v61 = vshll.u32 %v2244_v46, 16  ;;  %2040 = vst [vmem:[#allocation2 + $0x19c] sm:$0xf] %v1720_v54  ;;  %v9794_v46 = vpop.f32.mrf.mxu0 }
 0x278   :  { %2043 = vst [vmem:[#allocation2 + $0x1a0] sm:$0x1] %v2042_v57  ;;  %v2857_v16 = vshll.u32 %v2245_v14, 16  ;;  %v2861_v19 = vshrl.u32 %v2245_v14, 16  ;;  %v2867_v48 = vshll.u32 %v2246_v25, 16  ;;  %v1703_v4 = vsel %vm13732_vm14, %v1695_v12, %v1702_v42  ;;  %v9497_v5 = vpop.f32.mrf.mxu1 }
 0x279   :  { %v2850_v21 = vrot.slane %v2848_v49, 4  ;;  %v2853_v10 = vrot.slane %v2851_v61, 5  ;;  %v3242_v52 = vld [vmem:[#allocation2 + $0x144] sm:$0xe]  ;;  %v12968_v20 = vld [vmem:[#allocation4 + $0x67c] ss:$36 sps:$4 sm:$0xff]  }
 0x27a   :  { %v12971_v38 = vld [vmem:[#allocation4 + $0x678] ss:$36 sps:$4 sm:$0xff]   ;;  %v2859_v30 = vrot.slane %v2857_v16, 5  ;;  %v1704_v26 = vrot.slane %v1699_v1, 4  ;;  %2033 = vst [vmem:[#allocation2 + $0x190] sm:$0xf] %v1703_v4  ;;  %9634 = vmatprep.mubr.bf16.mxu1 %v12968_v20 }
 0x27b   :  { %v2854_v2 = vor.u32 %v2853_v10, %v2850_v21  ;;  %v2863_v33 = vrot.slane %v2861_v19, 4  ;;  %v3243_v54 = vld [vmem:[#allocation2 + $0x148] sm:$0xf]  ;;  %v3244_v57 = vld [vmem:[#allocation2 + $0x14c] sm:$0x1]  ;;  %v2869_v14 = vrot.slane %v2867_v48, 5  ;;  %9635 = vmatmul.mubr.bf16.gmra.mxu1 %v12971_v38 }
 0x27c   :  { %v11949_v49 = vrot.slane %v3242_v52, 9  ;;  %v3539_v25 = vrot.slane %v3243_v54, 5  ;;  %v3542_v61 = vrot.slane %v3244_v57, 5  ;;  %v3764_v18 = vld [vmem:[#allocation2 + $0x150] sm:$0xf] }
 0x27d   :  { %v12972_v34 = vld [vmem:[#allocation4 + $0x6c8] ss:$36 sps:$4 sm:$0xff]   ;;  %v2855_v42 = vrot.slane %v2854_v2, 4  ;;  %v2864_v16 = vor.u32 %v2863_v33, %v2859_v30  ;;  %3828 = vst [vmem:[#allocation4 + $0x714] sm:$0xf] %v3764_v18 }
 0x27e   :  { %v12974_v12 = vld [vmem:[#allocation4 + $0x6cc] ss:$36 sps:$4 sm:$0xff]   ;;  %v2034_v46 = vld [vmem:[#allocation2 + $0x194] sm:$0x1]  ;;  %v3540_v1 = vsel %vm13597_vm10, %v11949_v49, %v3539_v25  ;;  %v3541_v19 = vrot.slane %v3539_v25, 4 }
 0x27f   :  { %v3765_v21 = vld [vmem:[#allocation2 + $0x154] sm:$0xf]  ;;  %9931 = vmatprep.mubr.bf16.mxu0 %v12974_v12  ;;  %v2035_v10 = vsel %vm13485_vm2, %v1704_v26, %v2034_v46  ;;  %v2860_v48 = vsel %vm13579_vm9, %v2855_v42, %v2859_v30  ;;  %v2865_v5 = vrot.slane %v2864_v16, 4  ;;  %3700 = vst [vmem:[#allocation4 + $0x710] sm:$0xf] %v3540_v1  ;;  %v15016_v26 = vpop.f32.mrf.mxu1 }
 0x280   :  { %3829 = vst [vmem:[#allocation4 + $0x738] sm:$0xf] %v3765_v21  ;;  %v2094_v52 = vld [vmem:[#allocation2 + $0x144] sm:$0xf]  ;;  %v2095_v20 = vld [vmem:[#allocation2 + $0x148] sm:$0xf]  ;;  %9932 = vmatmul.mubr.bf16.gmra.mxu0 %v12972_v34  ;;  %v3543_v38 = vsel %vm13597_vm10, %v3541_v19, %v3542_v61  ;;  %v15020_v19 = vpop.f32.mrf.mxu0 }
 0x281   :  { %2036 = vst [vmem:[#allocation2 + $0x194] sm:$0x1] %v2035_v10  ;;  %3151 = vst [vmem:[#allocation4 + $0x6c4] sm:$0xf] %v2860_v48  ;;  %v2247_v4 = vld [vmem:[#allocation2 + $0x144] sm:$0xf]  ;;  %v2870_v30 = vsel %vm13579_vm9, %v2865_v5, %v2869_v14  ;;  %v9502_v61 = vpop.f32.mrf.mxu1 }
 0x282   :  { %2158 = vst [vmem:[#allocation4 + $0x708] sm:$0xf] %v2094_v52  ;;  %2159 = vst [vmem:[#allocation4 + $0x72c] sm:$0xf] %v2095_v20  ;;  %v2248_v2 = vld [vmem:[#allocation2 + $0x148] sm:$0xf] }
 0x283   :  { %v2249_v45 = vld [vmem:[#allocation2 + $0x14c] sm:$0x1]  ;;  %3701 = vst [vmem:[#allocation4 + $0x734] sm:$0xf] %v3543_v38  ;;  %v2872_v33 = vshrl.u32 %v2247_v4, 16  ;;  %v2875_v54 = vshll.u32 %v2247_v4, 16  ;;  %v15022_v52 = vpop.f32.mrf.mxu1 }
 0x284   :  { %v2881_v57 = vshll.u32 %v2248_v2, 16  ;;  %v3245_v49 = vld [vmem:[#allocation2 + $0x150] sm:$0xe]  ;;  %3152 = vst [vmem:[#allocation4 + $0x6e8] sm:$0xf] %v2870_v30  ;;  %v2885_v25 = vshrl.u32 %v2248_v2, 16 }
 0x285   :  { %v2891_v18 = vshll.u32 %v2249_v45, 16  ;;  %v3246_v34 = vld [vmem:[#allocation2 + $0x154] sm:$0xf]  ;;  %v2874_v12 = vrot.slane %v2872_v33, 4  ;;  %v2877_v42 = vrot.slane %v2875_v54, 5  ;;  %v11950_v1 = vrot.slane %v3245_v49, 9  ;;  %v9799_v45 = vpop.f32.mrf.mxu0 }
 0x286   :  { %v2883_v16 = vrot.slane %v2881_v57, 5  ;;  %v3247_v46 = vld [vmem:[#allocation2 + $0x158] sm:$0x1]  ;;  %v2887_v21 = vrot.slane %v2885_v25, 4  ;;  %v3546_v14 = vrot.slane %v3246_v34, 5  ;;  %v9505_v25 = vpop.f32.mrf.mxu1 }
 0x287   :  { %v2893_v10 = vrot.slane %v2891_v18, 5  ;;  %v3549_v48 = vrot.slane %v3247_v46, 5  ;;  %v3766_v5 = vld [vmem:[#allocation2 + $0x15c] sm:$0xf]  ;;  %v2878_v20 = vor.u32 %v2877_v42, %v2874_v12  ;;  %v3767_v38 = vld [vmem:[#allocation2 + $0x160] sm:$0xf]  ;;  %v15026_v42 = vpop.f32.mrf.mxu0 }
 0x288   :  { %3830 = vst [vmem:[#allocation4 + $0x75c] sm:$0xf] %v3766_v5  ;;  %v2096_v4 = vld [vmem:[#allocation2 + $0x150] sm:$0xf]  ;;  %v2097_v2 = vld [vmem:[#allocation2 + $0x154] sm:$0xf]  ;;  %v2888_v30 = vor.u32 %v2887_v21, %v2883_v16  ;;  %v3547_v33 = vsel %vm13597_vm10, %v11950_v1, %v3546_v14 }
 0x289   :  { %v3548_v54 = vrot.slane %v3546_v14, 4  ;;  %3831 = vst [vmem:[#allocation4 + $0x780] sm:$0xf] %v3767_v38  ;;  %2160 = vst [vmem:[#allocation4 + $0x750] sm:$0xf] %v2096_v4  ;;  %v2879_v18 = vrot.slane %v2878_v20, 4  ;;  %v15032_v20 = vpop.f32.mrf.mxu1  ;;  %v9802_v45 = vpop.f32.mrf.mxu0 }
 0x28a   :  { %2161 = vst [vmem:[#allocation4 + $0x774] sm:$0xf] %v2097_v2  ;;  %v2250_v57 = vld [vmem:[#allocation2 + $0x150] sm:$0xf]  ;;  %v2251_v49 = vld [vmem:[#allocation2 + $0x154] sm:$0xf] }
 0x28b   :  { %3702 = vst [vmem:[#allocation4 + $0x758] sm:$0xf] %v3547_v33  ;;  %v2252_v34 = vld [vmem:[#allocation2 + $0x158] sm:$0x1]  ;;  %v2896_v61 = vshrl.u32 %v2250_v57, 16  ;;  %v2899_v12 = vshll.u32 %v2250_v57, 16  ;;  %v3550_v1 = vsel %vm13597_vm10, %v3548_v54, %v3549_v48  ;;  %v2884_v4 = vsel %vm13579_vm9, %v2879_v18, %v2883_v16 }
 0x28c   :  { %v12978_v46 = vld [vmem:[#allocation4 + $0x710] ss:$36 sps:$4 sm:$0xff]   ;;  %v2889_v21 = vrot.slane %v2888_v30, 4  ;;  %v12975_v14 = vld [vmem:[#allocation4 + $0x6c4] ss:$36 sps:$4 sm:$0xff]   ;;  %v2905_v30 = vshll.u32 %v2251_v49, 16 }
 0x28d   :  { %v12980_v5 = vld [vmem:[#allocation4 + $0x714] ss:$36 sps:$4 sm:$0xff]   ;;  %v12977_v38 = vld [vmem:[#allocation4 + $0x6c0] ss:$36 sps:$4 sm:$0xff]   ;;  %3703 = vst [vmem:[#allocation4 + $0x77c] sm:$0xf] %v3550_v1  ;;  %9642 = vmatprep.mubr.bf16.mxu1 %v12975_v14 }
 0x28e   :  { %v2898_v2 = vrot.slane %v2896_v61, 4  ;;  %9939 = vmatprep.mubr.bf16.mxu0 %v12980_v5  ;;  %v2894_v33 = vsel %vm13579_vm9, %v2889_v21, %v2893_v10  ;;  %3153 = vst [vmem:[#allocation4 + $0x70c] sm:$0xf] %v2884_v4  ;;  %v2901_v57 = vrot.slane %v2899_v12, 5  ;;  %v2909_v25 = vshrl.u32 %v2251_v49, 16  ;;  %v9510_v61 = vpop.f32.mrf.mxu1  ;;  %9643 = vmatmul.mubr.bf16.gmra.mxu1 %v12977_v38  ;;  %v15036_v10 = vpop.f32.mrf.mxu0 }
 0x28f   :  { %v3248_v9 = vld [vmem:[#allocation2 + $0x15c] sm:$0xe]  ;;  %3154 = vst [vmem:[#allocation4 + $0x730] sm:$0xf] %v2894_v33  ;;  %9940 = vmatmul.mubr.bf16.gmra.mxu0 %v12978_v46  ;;  %v2915_v48 = vshll.u32 %v2252_v34, 16  ;;  %v2907_v45 = vrot.slane %v2905_v30, 5 }
 0x290   :  { %v3249_v54 = vld [vmem:[#allocation2 + $0x160] sm:$0xf]  ;;  %v3250_v16 = vld [vmem:[#allocation2 + $0x164] sm:$0x1]  ;;  %v11951_v18 = vrot.slane %v3248_v9, 9  ;;  %v2902_v1 = vor.u32 %v2901_v57, %v2898_v2  ;;  %v2911_v5 = vrot.slane %v2909_v25, 4  ;;  %v15038_v4 = vpop.f32.mrf.mxu1  ;;  %v9807_v33 = vpop.f32.mrf.mxu0 }
 0x291   :  { %v3553_v27 = vrot.slane %v3249_v54, 5  ;;  %v3768_v40 = vld [vmem:[#allocation2 + $0x168] sm:$0xf]  ;;  %17009 = vst [vmem:[#allocation73_spill] sm:$0xff] %v15036_v10  ;;  %v2917_v12 = vrot.slane %v2915_v48, 5  ;;  %v3556_v21 = vrot.slane %v3250_v16, 5 }
 0x292   :  { %v3769_v49 = vld [vmem:[#allocation2 + $0x16c] sm:$0xf]  ;;  %3832 = vst [vmem:[#allocation4 + $0x7a4] sm:$0xf] %v3768_v40  ;;  %v2098_v14 = vld [vmem:[#allocation2 + $0x15c] sm:$0xf]  ;;  %v2912_v46 = vor.u32 %v2911_v5, %v2907_v45  ;;  %v9513_v48 = vpop.f32.mrf.mxu1 }
 0x293   :  { %v2903_v34 = vrot.slane %v2902_v1, 4  ;;  %v3554_v9 = vsel %vm13597_vm10, %v11951_v18, %v3553_v27  ;;  %v3555_v38 = vrot.slane %v3553_v27, 4  ;;  %3833 = vst [vmem:[#allocation4 + $0x7c8] sm:$0xf] %v3769_v49  ;;  %v2099_v2 = vld [vmem:[#allocation2 + $0x160] sm:$0xf]  ;;  %v15046_v27 = vpop.f32.mrf.mxu0 }
 0x294   :  { %2162 = vst [vmem:[#allocation4 + $0x798] sm:$0xf] %v2098_v14  ;;  %3704 = vst [vmem:[#allocation4 + $0x7a0] sm:$0xf] %v3554_v9  ;;  %v2253_v57 = vld [vmem:[#allocation2 + $0x15c] sm:$0xf] }
 0x295   :  { %2163 = vst [vmem:[#allocation4 + $0x7bc] sm:$0xf] %v2099_v2  ;;  %v2254_v30 = vld [vmem:[#allocation2 + $0x160] sm:$0xf]  ;;  %v2255_v25 = vld [vmem:[#allocation2 + $0x164] sm:$0x1]  ;;  %v2908_v16 = vsel %vm13579_vm9, %v2903_v34, %v2907_v45  ;;  %v3557_v18 = vsel %vm13597_vm10, %v3555_v38, %v3556_v21  ;;  %v9810_v45 = vpop.f32.mrf.mxu0 }
 0x296   :  { %v12986_v40 = vld [vmem:[#allocation4 + $0x758] ss:$36 sps:$4 sm:$0xff]   ;;  %v2913_v61 = vrot.slane %v2912_v46, 4  ;;  %17010 = vst [vmem:[#allocation74_spill] sm:$0xff] %v15046_v27  ;;  %3155 = vst [vmem:[#allocation4 + $0x754] sm:$0xf] %v2908_v16 }
 0x297   :  { %v12988_v54 = vld [vmem:[#allocation4 + $0x75c] ss:$36 sps:$4 sm:$0xff]   ;;  %3705 = vst [vmem:[#allocation4 + $0x7c4] sm:$0xf] %v3557_v18  ;;  %v2920_v1 = vshrl.u32 %v2253_v57, 16  ;;  %v2923_v5 = vshll.u32 %v2253_v57, 16 }
 0x298   :  { %v2929_v49 = vshll.u32 %v2254_v30, 16  ;;  %v2933_v14 = vshrl.u32 %v2254_v30, 16  ;;  %v12982_v9 = vld [vmem:[#allocation4 + $0x70c] ss:$36 sps:$4 sm:$0xff]   ;;  %9947 = vmatprep.mubr.bf16.mxu0 %v12988_v54  ;;  %v2918_v33 = vsel %vm13579_vm9, %v2913_v61, %v2917_v12  ;;  %v2939_v48 = vshll.u32 %v2255_v25, 16  ;;  %v15050_v61 = vpop.f32.mrf.mxu0 }
 0x299   :  { %v12985_v2 = vld [vmem:[#allocation4 + $0x708] ss:$36 sps:$4 sm:$0xff]   ;;  %3156 = vst [vmem:[#allocation4 + $0x778] sm:$0xf] %v2918_v33  ;;  %9948 = vmatmul.mubr.bf16.gmra.mxu0 %v12986_v40  ;;  %v2922_v34 = vrot.slane %v2920_v1, 4  ;;  %v2925_v21 = vrot.slane %v2923_v5, 5  ;;  %9650 = vmatprep.mubr.bf16.mxu1 %v12982_v9  ;;  %v15054_v33 = vpop.f32.mrf.mxu1 }
 0x29a   :  { %v2931_v46 = vrot.slane %v2929_v49, 5  ;;  %v2935_v38 = vrot.slane %v2933_v14, 4  ;;  %v3251_v16 = vld [vmem:[#allocation2 + $0x168] sm:$0xe]  ;;  %v2941_v18 = vrot.slane %v2939_v48, 5  ;;  %9651 = vmatmul.mubr.bf16.gmra.mxu1 %v12985_v2  ;;  %17011 = vst [vmem:[#allocation75_spill] sm:$0xff] %v15050_v61 }
 0x29b   :  { %v3252_v57 = vld [vmem:[#allocation2 + $0x16c] sm:$0xf]  ;;  %v3253_v7 = vld [vmem:[#allocation2 + $0x170] sm:$0x1]  ;;  %v11952_v30 = vrot.slane %v3251_v16, 9  ;;  %v2926_v17 = vor.u32 %v2925_v21, %v2922_v34 }
 0x29c   :  { %v2936_v54 = vor.u32 %v2935_v38, %v2931_v46  ;;  %v3560_v56 = vrot.slane %v3252_v57, 5  ;;  %v3563_v63 = vrot.slane %v3253_v7, 5  ;;  %v3770_v12 = vld [vmem:[#allocation2 + $0x174] sm:$0xf]  ;;  %v3771_v25 = vld [vmem:[#allocation2 + $0x178] sm:$0xf]  ;;  %v9815_v7 = vpop.f32.mrf.mxu0 }
 0x29d   :  { %3834 = vst [vmem:[#allocation4 + $0x7ec] sm:$0xf] %v3770_v12  ;;  %3835 = vst [vmem:[#allocation4 + $0x810] sm:$0xf] %v3771_v25  ;;  %v2100_v40 = vld [vmem:[#allocation2 + $0x168] sm:$0xf] }
 0x29e   :  { %v2101_v1 = vld [vmem:[#allocation2 + $0x16c] sm:$0xf]  ;;  %v2927_v5 = vrot.slane %v2926_v17, 4  ;;  %v2937_v49 = vrot.slane %v2936_v54, 4  ;;  %v3561_v14 = vsel %vm13597_vm10, %v11952_v30, %v3560_v56  ;;  %v3562_v9 = vrot.slane %v3560_v56, 4  ;;  %v9518_v30 = vpop.f32.mrf.mxu1  ;;  %v15062_v54 = vpop.f32.mrf.mxu0 }
 0x29f   :  { %2164 = vst [vmem:[#allocation4 + $0x7e0] sm:$0xf] %v2100_v40  ;;  %2165 = vst [vmem:[#allocation4 + $0x804] sm:$0xf] %v2101_v1  ;;  %v2256_v2 = vld [vmem:[#allocation2 + $0x168] sm:$0xf] }
 0x2a0   :  { %v12992_v48 = vld [vmem:[#allocation4 + $0x7a0] ss:$36 sps:$4 sm:$0xff]   ;;  %3706 = vst [vmem:[#allocation4 + $0x7e8] sm:$0xf] %v3561_v14  ;;  %v2944_v45 = vshrl.u32 %v2256_v2, 16  ;;  %v2947_v34 = vshll.u32 %v2256_v2, 16  ;;  %v2932_v38 = vsel %vm13579_vm9, %v2927_v5, %v2931_v46  ;;  %v2942_v17 = vsel %vm13579_vm9, %v2937_v49, %v2941_v18  ;;  %v15064_v49 = vpop.f32.mrf.mxu1 }
 0x2a1   :  { %v12994_v21 = vld [vmem:[#allocation4 + $0x7a4] ss:$36 sps:$4 sm:$0xff]   ;;  %v3564_v56 = vsel %vm13597_vm10, %v3562_v9, %v3563_v63  ;;  %v2257_v16 = vld [vmem:[#allocation2 + $0x16c] sm:$0xf]  ;;  %v2258_v57 = vld [vmem:[#allocation2 + $0x170] sm:$0x1]  ;;  %v9818_v63 = vpop.f32.mrf.mxu0 }
 0x2a2   :  { %17012 = vst [vmem:[#allocation76_spill] sm:$0xff] %v15062_v54  ;;  %v12989_v12 = vld [vmem:[#allocation4 + $0x754] ss:$36 sps:$4 sm:$0xff]   ;;  %3157 = vst [vmem:[#allocation4 + $0x79c] sm:$0xf] %v2932_v38  ;;  %v2946_v40 = vrot.slane %v2944_v45, 4  ;;  %9955 = vmatprep.mubr.bf16.mxu0 %v12994_v21  ;;  %v9521_v21 = vpop.f32.mrf.mxu1 }
 0x2a3   :  { %v12991_v25 = vld [vmem:[#allocation4 + $0x750] ss:$36 sps:$4 sm:$0xff]   ;;  %3158 = vst [vmem:[#allocation4 + $0x7c0] sm:$0xf] %v2942_v17  ;;  %3707 = vst [vmem:[#allocation4 + $0x80c] sm:$0xf] %v3564_v56  ;;  %9658 = vmatprep.mubr.bf16.mxu1 %v12989_v12  ;;  %9956 = vmatmul.mubr.bf16.gmra.mxu0 %v12992_v48 }
 0x2a4   :  { %v2949_v1 = vrot.slane %v2947_v34, 5  ;;  %v2953_v46 = vshll.u32 %v2257_v16, 16  ;;  %v2957_v5 = vshrl.u32 %v2257_v16, 16  ;;  %v2963_v14 = vshll.u32 %v2258_v57, 16  ;;  %v3254_v18 = vld [vmem:[#allocation2 + $0x174] sm:$0xe]  ;;  %9659 = vmatmul.mubr.bf16.gmra.mxu1 %v12991_v25  ;;  %v15066_v63 = vpop.f32.mrf.mxu1  ;;  %v15068_v25 = vpop.f32.mrf.mxu0 }
 0x2a5   :  { %v3255_v9 = vld [vmem:[#allocation2 + $0x178] sm:$0xf]  ;;  %v3256_v2 = vld [vmem:[#allocation2 + $0x17c] sm:$0x1]  ;;  %v11953_v7 = vrot.slane %v3254_v18, 9  ;;  %17013 = vst [vmem:[#allocation77_spill] sm:$0xff] %v15066_v63 }
 0x2a6   :  { %v2950_v30 = vor.u32 %v2949_v1, %v2946_v40  ;;  %v2955_v38 = vrot.slane %v2953_v46, 5  ;;  %v2959_v17 = vrot.slane %v2957_v5, 4  ;;  %v2965_v56 = vrot.slane %v2963_v14, 5  ;;  %v3772_v45 = vld [vmem:[#allocation2 + $0x180] sm:$0xf]  ;;  %17014 = vst [vmem:[#allocation78_spill] sm:$0xff] %v15068_v25 }
 0x2a7   :  { %v3567_v34 = vrot.slane %v3255_v9, 5  ;;  %v3570_v41 = vrot.slane %v3256_v2, 5  ;;  %v3773_v16 = vld [vmem:[#allocation2 + $0x184] sm:$0xf]  ;;  %3836 = vst [vmem:[#allocation4 + $0x834] sm:$0xf] %v3772_v45  ;;  %v9823_v45 = vpop.f32.mrf.mxu0 }
 0x2a8   :  { %v2102_v57 = vld [vmem:[#allocation2 + $0x174] sm:$0xf]  ;;  %v2951_v37 = vrot.slane %v2950_v30, 4  ;;  %v2960_v35 = vor.u32 %v2959_v17, %v2955_v38  ;;  %3837 = vst [vmem:[#allocation4 + $0x858] sm:$0xf] %v3773_v16  ;;  %v9526_v17 = vpop.f32.mrf.mxu1 }
 0x2a9   :  { %v2103_v12 = vld [vmem:[#allocation2 + $0x178] sm:$0xf]  ;;  %2166 = vst [vmem:[#allocation4 + $0x828] sm:$0xf] %v2102_v57  ;;  %v2259_v48 = vld [vmem:[#allocation2 + $0x174] sm:$0xf]  ;;  %v3568_v40 = vsel %vm13597_vm10, %v11953_v7, %v3567_v34 }
 0x2aa   :  { %v3569_v1 = vrot.slane %v3567_v34, 4  ;;  %2167 = vst [vmem:[#allocation4 + $0x84c] sm:$0xf] %v2103_v12  ;;  %v2260_v46 = vld [vmem:[#allocation2 + $0x178] sm:$0xf]  ;;  %v2968_v14 = vshrl.u32 %v2259_v48, 16  ;;  %v2956_v9 = vsel %vm13579_vm9, %v2951_v37, %v2955_v38  ;;  %v15078_v38 = vpop.f32.mrf.mxu1 }
 0x2ab   :  { %v2261_v5 = vld [vmem:[#allocation2 + $0x17c] sm:$0x1]  ;;  %v12996_v18 = vld [vmem:[#allocation4 + $0x79c] ss:$36 sps:$4 sm:$0xff]   ;;  %v2961_v2 = vrot.slane %v2960_v35, 4  ;;  %v2971_v30 = vshll.u32 %v2259_v48, 16  ;;  %v15080_v48 = vpop.f32.mrf.mxu0 }
 0x2ac   :  { %3708 = vst [vmem:[#allocation4 + $0x830] sm:$0xf] %v3568_v40  ;;  %v12999_v21 = vld [vmem:[#allocation4 + $0x798] ss:$36 sps:$4 sm:$0xff]   ;;  %v13000_v16 = vld [vmem:[#allocation4 + $0x7e8] ss:$36 sps:$4 sm:$0xff]   ;;  %v3571_v7 = vsel %vm13597_vm10, %v3569_v1, %v3570_v41  ;;  %9666 = vmatprep.mubr.bf16.mxu1 %v12996_v18 }
 0x2ad   :  { %3159 = vst [vmem:[#allocation4 + $0x7e4] sm:$0xf] %v2956_v9  ;;  %v2970_v34 = vrot.slane %v2968_v14, 4  ;;  %v13002_v57 = vld [vmem:[#allocation4 + $0x7ec] ss:$36 sps:$4 sm:$0xff]   ;;  %v2966_v12 = vsel %vm13579_vm9, %v2961_v2, %v2965_v56  ;;  %v2973_v23 = vrot.slane %v2971_v30, 5  ;;  %9667 = vmatmul.mubr.bf16.gmra.mxu1 %v12999_v21  ;;  %v9529_v56 = vpop.f32.mrf.mxu1  ;;  %v9826_v2 = vpop.f32.mrf.mxu0 }
 0x2ae   :  { %3709 = vst [vmem:[#allocation4 + $0x854] sm:$0xf] %v3571_v7  ;;  %v2977_v37 = vshll.u32 %v2260_v46, 16  ;;  %v2981_v35 = vshrl.u32 %v2260_v46, 16  ;;  %17015 = vst [vmem:[#allocation79_spill] sm:$0xff] %v15078_v38  ;;  %v2987_v40 = vshll.u32 %v2261_v5, 16  ;;  %9963 = vmatprep.mubr.bf16.mxu0 %v13002_v57 }
 0x2af   :  { %17016 = vst [vmem:[#allocation80_spill] sm:$0xff] %v15080_v48  ;;  %3160 = vst [vmem:[#allocation4 + $0x808] sm:$0xf] %v2966_v12  ;;  %v3257_v9 = vld [vmem:[#allocation2 + $0x180] sm:$0xe]  ;;  %v2974_v41 = vor.u32 %v2973_v23, %v2970_v34  ;;  %9964 = vmatmul.mubr.bf16.gmra.mxu0 %v13000_v16 }
 0x2b0   :  { %v3258_v17 = vld [vmem:[#allocation2 + $0x184] sm:$0xf]  ;;  %v2979_v1 = vrot.slane %v2977_v37, 5  ;;  %v2983_v14 = vrot.slane %v2981_v35, 4  ;;  %v3259_v18 = vld [vmem:[#allocation2 + $0x188] sm:$0x1] }
 0x2b1   :  { %v11954_v45 = vrot.slane %v3257_v9, 9  ;;  %v3574_v30 = vrot.slane %v3258_v17, 5  ;;  %v3577_v46 = vrot.slane %v3259_v18, 5  ;;  %v3774_v7 = vld [vmem:[#allocation2 + $0x18c] sm:$0xf]  ;;  %v2975_v15 = vrot.slane %v2974_v41, 4 }
 0x2b2   :  { %v2984_v25 = vor.u32 %v2983_v14, %v2979_v1  ;;  %v2989_v48 = vrot.slane %v2987_v40, 5  ;;  %v3775_v12 = vld [vmem:[#allocation2 + $0x190] sm:$0xf]  ;;  %3838 = vst [vmem:[#allocation4 + $0x87c] sm:$0xf] %v3774_v7  ;;  %v15086_v40 = vpop.f32.mrf.mxu1 }
 0x2b3   :  { %v2104_v5 = vld [vmem:[#allocation2 + $0x180] sm:$0xf]  ;;  %v3575_v21 = vsel %vm13597_vm10, %v11954_v45, %v3574_v30  ;;  %v3576_v23 = vrot.slane %v3574_v30, 4  ;;  %3839 = vst [vmem:[#allocation4 + $0x8a0] sm:$0xf] %v3775_v12  ;;  %v2980_v16 = vsel %vm13579_vm9, %v2975_v15, %v2979_v1  ;;  %17017 = vst [vmem:[#allocation81_spill] sm:$0xff] %v15086_v40  ;;  %v15092_v1 = vpop.f32.mrf.mxu0 }
 0x2b4   :  { %v2105_v34 = vld [vmem:[#allocation2 + $0x184] sm:$0xf]  ;;  %2168 = vst [vmem:[#allocation4 + $0x870] sm:$0xf] %v2104_v5  ;;  %v2262_v57 = vld [vmem:[#allocation2 + $0x180] sm:$0xf] }
 0x2b5   :  { %v2985_v37 = vrot.slane %v2984_v25, 4  ;;  %3710 = vst [vmem:[#allocation4 + $0x878] sm:$0xf] %v3575_v21  ;;  %2169 = vst [vmem:[#allocation4 + $0x894] sm:$0xf] %v2105_v34  ;;  %v3578_v14 = vsel %vm13597_vm10, %v3576_v23, %v3577_v46  ;;  %v2992_v18 = vshrl.u32 %v2262_v57, 16  ;;  %v9534_v25 = vpop.f32.mrf.mxu1 }
 0x2b6   :  { %v2263_v35 = vld [vmem:[#allocation2 + $0x184] sm:$0xf]  ;;  %v2264_v9 = vld [vmem:[#allocation2 + $0x188] sm:$0x1]  ;;  %3161 = vst [vmem:[#allocation4 + $0x82c] sm:$0xf] %v2980_v16 }
 0x2b7   :  { %v13008_v17 = vld [vmem:[#allocation4 + $0x830] ss:$36 sps:$4 sm:$0xff]   ;;  %v13004_v45 = vld [vmem:[#allocation4 + $0x7e0] ss:$36 sps:$4 sm:$0xff]   ;;  %v2990_v2 = vsel %vm13579_vm9, %v2985_v37, %v2989_v48  ;;  %3711 = vst [vmem:[#allocation4 + $0x89c] sm:$0xf] %v3578_v14  ;;  %v15094_v54 = vpop.f32.mrf.mxu1  ;;  %v9831_v48 = vpop.f32.mrf.mxu0 }
 0x2b8   :  { %v13010_v41 = vld [vmem:[#allocation4 + $0x834] ss:$36 sps:$4 sm:$0xff]   ;;  %v13006_v56 = vld [vmem:[#allocation4 + $0x7e4] ss:$36 sps:$4 sm:$0xff]   ;;  %v2995_v15 = vshll.u32 %v2262_v57, 16  ;;  %17018 = vst [vmem:[#allocation82_spill] sm:$0xff] %v15092_v1 }
 0x2b9   :  { %9971 = vmatprep.mubr.bf16.mxu0 %v13010_v41  ;;  %3162 = vst [vmem:[#allocation4 + $0x850] sm:$0xf] %v2990_v2  ;;  %v2994_v30 = vrot.slane %v2992_v18, 4  ;;  %v3001_v7 = vshll.u32 %v2263_v35, 16  ;;  %v3005_v12 = vshrl.u32 %v2263_v35, 16  ;;  %v3011_v5 = vshll.u32 %v2264_v9, 16  ;;  %9674 = vmatprep.mubr.bf16.mxu1 %v13006_v56  ;;  %v9537_v56 = vpop.f32.mrf.mxu1 }
 0x2ba   :  { %v3260_v21 = vld [vmem:[#allocation2 + $0x18c] sm:$0xe]  ;;  %v2997_v46 = vrot.slane %v2995_v15, 5  ;;  %v3261_v23 = vld [vmem:[#allocation2 + $0x190] sm:$0xf]  ;;  %17019 = vst [vmem:[#allocation83_spill] sm:$0xff] %v15094_v54  ;;  %9675 = vmatmul.mubr.bf16.gmra.mxu1 %v13004_v45  ;;  %9972 = vmatmul.mubr.bf16.gmra.mxu0 %v13008_v17  ;;  %v15096_v15 = vpop.f32.mrf.mxu0 }
 0x2bb   :  { %v3262_v34 = vld [vmem:[#allocation2 + $0x194] sm:$0x1]  ;;  %v11955_v16 = vrot.slane %v3260_v21, 9  ;;  %v3003_v57 = vrot.slane %v3001_v7, 5  ;;  %v3007_v37 = vrot.slane %v3005_v12, 4  ;;  %v3581_v14 = vrot.slane %v3261_v23, 5 }
 0x2bc   :  { %v3776_v41 = vld [vmem:[#allocation2 + $0x198] sm:$0xf]  ;;  %v2998_v2 = vor.u32 %v2997_v46, %v2994_v30  ;;  %v3013_v18 = vrot.slane %v3011_v5, 5  ;;  %v3584_v25 = vrot.slane %v3262_v34, 5  ;;  %v3777_v35 = vld [vmem:[#allocation2 + $0x19c] sm:$0xf]  ;;  %v9834_v5 = vpop.f32.mrf.mxu0 }
 0x2bd   :  { %3840 = vst [vmem:[#allocation4 + $0x8c4] sm:$0xf] %v3776_v41  ;;  %v2106_v9 = vld [vmem:[#allocation2 + $0x18c] sm:$0xf]  ;;  %17020 = vst [vmem:[#allocation84_spill] sm:$0xff] %v15096_v15  ;;  %v3008_v1 = vor.u32 %v3007_v37, %v3003_v57  ;;  %v3582_v21 = vsel %vm13597_vm10, %v11955_v16, %v3581_v14  ;;  %v3583_v48 = vrot.slane %v3581_v14, 4  ;;  %v15106_v15 = vpop.f32.mrf.mxu1 }
 0x2be   :  { %3841 = vst [vmem:[#allocation4 + $0x8e8] sm:$0xf] %v3777_v35  ;;  %v2107_v17 = vld [vmem:[#allocation2 + $0x190] sm:$0xf]  ;;  %2170 = vst [vmem:[#allocation4 + $0x8b8] sm:$0xf] %v2106_v9 }
 0x2bf   :  { %v2265_v45 = vld [vmem:[#allocation2 + $0x18c] sm:$0xf]  ;;  %v2999_v7 = vrot.slane %v2998_v2, 4  ;;  %3712 = vst [vmem:[#allocation4 + $0x8c0] sm:$0xf] %v3582_v21  ;;  %v3009_v34 = vrot.slane %v3008_v1, 4  ;;  %v3585_v37 = vsel %vm13597_vm10, %v3583_v48, %v3584_v25 }
 0x2c0   :  { %2171 = vst [vmem:[#allocation4 + $0x8dc] sm:$0xf] %v2107_v17  ;;  %v2266_v30 = vld [vmem:[#allocation2 + $0x190] sm:$0xf]  ;;  %v2267_v12 = vld [vmem:[#allocation2 + $0x194] sm:$0x1] }
 0x2c1   :  { %v13017_v46 = vld [vmem:[#allocation4 + $0x878] ss:$36 sps:$4 sm:$0xff]   ;;  %v13013_v41 = vld [vmem:[#allocation4 + $0x828] ss:$36 sps:$4 sm:$0xff]   ;;  %v3004_v16 = vsel %vm13579_vm9, %v2999_v7, %v3003_v57  ;;  %3713 = vst [vmem:[#allocation4 + $0x8e4] sm:$0xf] %v3585_v37  ;;  %v3014_v2 = vsel %vm13579_vm9, %v3009_v34, %v3013_v18 }
 0x2c2   :  { %v13019_v23 = vld [vmem:[#allocation4 + $0x87c] ss:$36 sps:$4 sm:$0xff]   ;;  %v13015_v56 = vld [vmem:[#allocation4 + $0x82c] ss:$36 sps:$4 sm:$0xff]   ;;  %v3016_v14 = vshrl.u32 %v2265_v45, 16  ;;  %v3019_v35 = vshll.u32 %v2265_v45, 16 }
 0x2c3   :  { %9979 = vmatprep.mubr.bf16.mxu0 %v13019_v23  ;;  %3163 = vst [vmem:[#allocation4 + $0x874] sm:$0xf] %v3004_v16  ;;  %v3025_v9 = vshll.u32 %v2266_v30, 16  ;;  %v3029_v21 = vshrl.u32 %v2266_v30, 16  ;;  %v5379_v17 = vld [vmem:[#allocation2 + $0x18] sm:$0xf]  ;;  %9682 = vmatprep.mubr.bf16.mxu1 %v13015_v56 }
 0x2c4   :  { %3164 = vst [vmem:[#allocation4 + $0x898] sm:$0xf] %v3014_v2  ;;  %v3018_v1 = vrot.slane %v3016_v14, 4  ;;  %v3035_v25 = vshll.u32 %v2267_v12, 16  ;;  %v5380_v48 = vld [vmem:[#allocation2 + $0x1c] sm:$0xf]  ;;  %9683 = vmatmul.mubr.bf16.gmra.mxu1 %v13013_v41  ;;  %9980 = vmatmul.mubr.bf16.gmra.mxu0 %v13017_v46  ;;  %v9542_v14 = vpop.f32.mrf.mxu1 }
 0x2c5   :  { %5443 = vst [vmem:[#allocation4 + $0x18] sm:$0xf] %v5379_v17  ;;  %v5507_v5 = vld [vmem:[#allocation2 + $0x18] sm:$0xf]  ;;  %17021 = vst [vmem:[#allocation85_spill] sm:$0xff] %v15106_v15  ;;  %v3021_v57 = vrot.slane %v3019_v35, 5 }
 0x2c6   :  { %v3027_v7 = vrot.slane %v3025_v9, 5  ;;  %v3031_v23 = vrot.slane %v3029_v21, 4  ;;  %5444 = vst [vmem:[#allocation4 + $0x3c] sm:$0xf] %v5380_v48  ;;  %v5508_v18 = vld [vmem:[#allocation2 + $0x1c] sm:$0xf]  ;;  %v15108_v21 = vpop.f32.mrf.mxu1  ;;  %v15110_v48 = vpop.f32.mrf.mxu0 }
 0x2c7   :  { %v5604_v45 = vshrl.u32 %v5507_v5, 16  ;;  %v3037_v34 = vrot.slane %v3035_v25, 5  ;;  %v5509_v30 = vld [vmem:[#allocation2 + $0x20] sm:$0x1]  ;;  %v5607_v37 = vshll.u32 %v5507_v5, 16  ;;  %v5613_v56 = vshll.u32 %v5508_v18, 16 }
 0x2c8   :  { %v5617_v16 = vshrl.u32 %v5508_v18, 16  ;;  %v3022_v12 = vor.u32 %v3021_v57, %v3018_v1  ;;  %v3032_v2 = vor.u32 %v3031_v23, %v3027_v7  ;;  %v5623_v61 = vshll.u32 %v5509_v30, 16  ;;  %v3842_v27 = vld [vmem:[#allocation2 + $0xc] sm:$0xf]  ;;  %v3843_v35 = vld [vmem:[#allocation2 + $0x10] sm:$0xf]  ;;  %v9545_v23 = vpop.f32.mrf.mxu1 }
 0x2c9   :  { %v5606_v17 = vrot.slane %v5604_v45, 4  ;;  %v5609_v15 = vrot.slane %v5607_v37, 5  ;;  %v5615_v41 = vrot.slane %v5613_v56, 5  ;;  %v3939_v9 = vshrl.u32 %v3842_v27, 16  ;;  %17022 = vst [vmem:[#allocation86_spill] sm:$0xff] %v15108_v21  ;;  %17023 = vst [vmem:[#allocation87_spill] sm:$0xff] %v15110_v48  ;;  %v9839_v45 = vpop.f32.mrf.mxu0 }
 0x2ca   :  { %v5619_v46 = vrot.slane %v5617_v16, 4  ;;  %v13025_v25 = vld [vmem:[#allocation4 + $0x8c0] ss:$36 sps:$4 sm:$0xff]   ;;  %v3023_v5 = vrot.slane %v3022_v12, 4  ;;  %v3033_v10 = vrot.slane %v3032_v2, 4  ;;  %v5625_v1 = vrot.slane %v5623_v61, 5 }
 0x2cb   :  { %v13027_v54 = vld [vmem:[#allocation4 + $0x8c4] ss:$36 sps:$4 sm:$0xff]   ;;  %v5610_v18 = vor.u32 %v5609_v15, %v5606_v17  ;;  %v13021_v30 = vld [vmem:[#allocation4 + $0x870] ss:$36 sps:$4 sm:$0xff]   ;;  %v3941_v16 = vrot.slane %v3939_v9, 4  ;;  %v3942_v2 = vshll.u32 %v3842_v27, 16  ;;  %v15116_v17 = vpop.f32.mrf.mxu0 }
 0x2cc   :  { %v5620_v14 = vor.u32 %v5619_v46, %v5615_v41  ;;  %v3844_v57 = vld [vmem:[#allocation2 + $0x14] sm:$0x1]  ;;  %v13023_v37 = vld [vmem:[#allocation4 + $0x874] ss:$36 sps:$4 sm:$0xff]   ;;  %9987 = vmatprep.mubr.bf16.mxu0 %v13027_v54  ;;  %v3028_v56 = vsel %vm13579_vm9, %v3023_v5, %v3027_v7  ;;  %v3038_v48 = vsel %vm13579_vm9, %v3033_v10, %v3037_v34  ;;  %v4834_v15 = vld [vmem:[#allocation2 + $0xc] sm:$0xe] }
 0x2cd   :  { %3165 = vst [vmem:[#allocation4 + $0x8bc] sm:$0xf] %v3028_v56  ;;  %v5611_v21 = vrot.slane %v5610_v18, 4  ;;  %17024 = vst [vmem:[#allocation88_spill] sm:$0xff] %v15116_v17  ;;  %9690 = vmatprep.mubr.bf16.mxu1 %v13023_v37  ;;  %9988 = vmatmul.mubr.bf16.gmra.mxu0 %v13025_v25  ;;  %v3948_v61 = vshll.u32 %v3843_v35, 16  ;;  %v3952_v46 = vshrl.u32 %v3843_v35, 16  ;;  %v9842_v18 = vpop.f32.mrf.mxu0 }
 0x2ce   :  { %v5621_v12 = vrot.slane %v5620_v14, 4  ;;  %3166 = vst [vmem:[#allocation4 + $0x8e0] sm:$0xf] %v3038_v48  ;;  %v3958_v54 = vshll.u32 %v3844_v57, 16  ;;  %v4835_v23 = vld [vmem:[#allocation2 + $0x10] sm:$0xf]  ;;  %9691 = vmatmul.mubr.bf16.gmra.mxu1 %v13021_v30 }
 0x2cf   :  { %v11956_v45 = vrot.slane %v4834_v15, 9  ;;  %v5616_v7 = vsel %vm13579_vm9, %v5611_v21, %v5615_v41  ;;  %v3944_v34 = vrot.slane %v3942_v2, 5  ;;  %v4836_v27 = vld [vmem:[#allocation2 + $0x14] sm:$0x1]  ;;  %v5028_v9 = vrot.slane %v4835_v23, 5  ;;  %v15124_v56 = vpop.f32.mrf.mxu0 }
 0x2d0   :  { %v5626_v10 = vsel %vm13579_vm9, %v5621_v12, %v5625_v1  ;;  %v5381_v5 = vld [vmem:[#allocation2 + $0x24] sm:$0xf]  ;;  %6435 = vst [vmem:[#allocation4 + $0x1c] sm:$0xf] %v5616_v7  ;;  %v3950_v48 = vrot.slane %v3948_v61, 5  ;;  %v3954_v25 = vrot.slane %v3952_v46, 4 }
 0x2d1   :  { %6436 = vst [vmem:[#allocation4 + $0x40] sm:$0xf] %v5626_v10  ;;  %v3960_v35 = vrot.slane %v3958_v54, 5  ;;  %v5382_v14 = vld [vmem:[#allocation2 + $0x28] sm:$0xf]  ;;  %v3945_v57 = vor.u32 %v3944_v34, %v3941_v16  ;;  %v5029_v30 = vsel %vm13597_vm10, %v11956_v45, %v5028_v9  ;;  %v5030_v41 = vrot.slane %v5028_v9, 4  ;;  %v15128_v10 = vpop.f32.mrf.mxu1  ;;  %v9847_v34 = vpop.f32.mrf.mxu0 }
 0x2d2   :  { %5445 = vst [vmem:[#allocation4 + $0x60] sm:$0xf] %v5381_v5  ;;  %v5031_v21 = vrot.slane %v4836_v27, 5  ;;  %5446 = vst [vmem:[#allocation4 + $0x84] sm:$0xf] %v5382_v14  ;;  %v3955_v12 = vor.u32 %v3954_v25, %v3950_v48 }
 0x2d3   :  { %v5510_v1 = vld [vmem:[#allocation2 + $0x24] sm:$0xf]  ;;  %v5511_v37 = vld [vmem:[#allocation2 + $0x28] sm:$0xf]  ;;  %17025 = vst [vmem:[#allocation89_spill] sm:$0xff] %v15124_v56  ;;  %v3946_v54 = vrot.slane %v3945_v57, 4  ;;  %v15132_v56 = vpop.f32.mrf.mxu0 }
 0x2d4   :  { %5314 = vst [vmem:[#allocation4 + $0x14] sm:$0xf] %v5029_v30  ;;  %v5512_v2 = vld [vmem:[#allocation2 + $0x2c] sm:$0x1]  ;;  %v5628_v15 = vshrl.u32 %v5510_v1, 16  ;;  %v5631_v61 = vshll.u32 %v5510_v1, 16  ;;  %v5032_v16 = vsel %vm13597_vm10, %v5030_v41, %v5031_v21  ;;  %v9550_v1 = vpop.f32.mrf.mxu1 }
 0x2d5   :  { %v5637_v46 = vshll.u32 %v5511_v37, 16  ;;  %v5641_v23 = vshrl.u32 %v5511_v37, 16  ;;  %v5647_v7 = vshll.u32 %v5512_v2, 16  ;;  %v3845_v45 = vld [vmem:[#allocation2 + $0x18] sm:$0xf]  ;;  %17026 = vst [vmem:[#allocation90_spill] sm:$0xff] %v15128_v10  ;;  %v3951_v30 = vsel %vm13579_vm9, %v3946_v54, %v3950_v48  ;;  %v9850_v48 = vpop.f32.mrf.mxu0 }
 0x2d6   :  { %v3956_v27 = vrot.slane %v3955_v12, 4  ;;  %5315 = vst [vmem:[#allocation4 + $0x38] sm:$0xf] %v5032_v16  ;;  %v5630_v9 = vrot.slane %v5628_v15, 4  ;;  %v5633_v5 = vrot.slane %v5631_v61, 5  ;;  %17027 = vst [vmem:[#allocation91_spill] sm:$0xff] %v15132_v56  ;;  %v15136_v34 = vpop.f32.mrf.mxu1 }
 0x2d7   :  { %v5639_v18 = vrot.slane %v5637_v46, 5  ;;  %v13030_v25 = vld [vmem:[#allocation4 + $0x8b8] ss:$36 sps:$4 sm:$0xff]   ;;  %v5643_v57 = vrot.slane %v5641_v23, 4  ;;  %4770 = vst [vmem:[#allocation4 + $0x10] sm:$0xf] %v3951_v30 }
 0x2d8   :  { %v13032_v14 = vld [vmem:[#allocation4 + $0x8bc] ss:$36 sps:$4 sm:$0xff]   ;;  %v3961_v41 = vsel %vm13579_vm9, %v3956_v27, %v3960_v35  ;;  %v5634_v21 = vor.u32 %v5633_v5, %v5630_v9  ;;  %v3846_v37 = vld [vmem:[#allocation2 + $0x1c] sm:$0xf]  ;;  %v3847_v12 = vld [vmem:[#allocation2 + $0x20] sm:$0x1] }
 0x2d9   :  { %v3963_v2 = vshrl.u32 %v3845_v45, 16  ;;  %9698 = vmatprep.mubr.bf16.mxu1 %v13032_v14  ;;  %v13035_v15 = vld [vmem:[#allocation4 + $0x18] ss:$36 sps:$4 sm:$0xff]   ;;  %4771 = vst [vmem:[#allocation4 + $0x34] sm:$0xf] %v3961_v41  ;;  %v5644_v61 = vor.u32 %v5643_v57, %v5639_v18  ;;  %v3966_v46 = vshll.u32 %v3845_v45, 16  ;;  %v9553_v14 = vpop.f32.mrf.mxu1 }
 0x2da   :  { %v3972_v16 = vshll.u32 %v3846_v37, 16  ;;  %17028 = vst [vmem:[#allocation92_spill] sm:$0xff] %v15136_v34  ;;  %9699 = vmatmul.mubr.bf16.gmra.mxu1 %v13030_v25  ;;  %v13037_v54 = vld [vmem:[#allocation4 + $0x1c] ss:$36 sps:$4 sm:$0xff]   ;;  %v5635_v23 = vrot.slane %v5634_v21, 4  ;;  %v3976_v56 = vshrl.u32 %v3846_v37, 16 }
 0x2db   :  { %v3965_v1 = vrot.slane %v3963_v2, 4  ;;  %v3982_v35 = vshll.u32 %v3847_v12, 16  ;;  %v5645_v27 = vrot.slane %v5644_v61, 4  ;;  %v5649_v9 = vrot.slane %v5647_v7, 5  ;;  %v4837_v17 = vld [vmem:[#allocation2 + $0x18] sm:$0xe]  ;;  %10317 = vmatprep.mubr.bf16.mxu0 %v13037_v54  ;;  %v15142_v61 = vpop.f32.mrf.mxu1 }
 0x2dc   :  { %v3968_v5 = vrot.slane %v3966_v46, 5  ;;  %v3974_v30 = vrot.slane %v3972_v16, 5  ;;  %v5640_v45 = vsel %vm13579_vm9, %v5635_v23, %v5639_v18  ;;  %v3978_v57 = vrot.slane %v3976_v56, 4  ;;  %v4838_v41 = vld [vmem:[#allocation2 + $0x1c] sm:$0xf]  ;;  %10318 = vmatmul.mubr.bf16.vlgmr.msra.gmra.mxu0 %v13035_v15  ;;  %17029 = vst [vmem:[#allocation93_spill] sm:$0xff] %v15142_v61 }
 0x2dd   :  { %v4839_v34 = vld [vmem:[#allocation2 + $0x20] sm:$0x1]  ;;  %v5650_v25 = vsel %vm13579_vm9, %v5645_v27, %v5649_v9  ;;  %6437 = vst [vmem:[#allocation4 + $0x64] sm:$0xf] %v5640_v45  ;;  %v11957_v37 = vrot.slane %v4837_v17, 9  ;;  %v5035_v12 = vrot.slane %v4838_v41, 5  ;;  %v9558_v9 = vpop.f32.mrf.mxu1 }
 0x2de   :  { %v3969_v21 = vor.u32 %v3968_v5, %v3965_v1  ;;  %v5383_v7 = vld [vmem:[#allocation2 + $0x30] sm:$0xf]  ;;  %v5384_v2 = vld [vmem:[#allocation2 + $0x34] sm:$0xf]  ;;  %6438 = vst [vmem:[#allocation4 + $0x88] sm:$0xf] %v5650_v25  ;;  %v3979_v46 = vor.u32 %v3978_v57, %v3974_v30  ;;  %v15157_v9 = vpop.f32.mrf.mxu0 }
 0x2df   :  { %v3984_v16 = vrot.slane %v3982_v35, 5  ;;  %v5038_v48 = vrot.slane %v4839_v34, 5  ;;  %5447 = vst [vmem:[#allocation4 + $0xa8] sm:$0xf] %v5383_v7  ;;  %5448 = vst [vmem:[#allocation4 + $0xcc] sm:$0xf] %v5384_v2  ;;  %v5036_v54 = vsel %vm13597_vm10, %v11957_v37, %v5035_v12  ;;  %v15153_v37 = vpop.f32.mrf.mxu1 }
 0x2e0   :  { %v5513_v56 = vld [vmem:[#allocation2 + $0x30] sm:$0xf]  ;;  %v5514_v18 = vld [vmem:[#allocation2 + $0x34] sm:$0xf]  ;;  %v3970_v15 = vrot.slane %v3969_v21, 4  ;;  %v5037_v23 = vrot.slane %v5035_v12, 4 }
 0x2e1   :  { %v5515_v1 = vld [vmem:[#allocation2 + $0x38] sm:$0x1]  ;;  %v5652_v17 = vshrl.u32 %v5513_v56, 16  ;;  %v13067_v27 = vld [vmem:[%s16842_s3 + $0x230] sm:$0xff]   ;;  %v13038_v5 = vld [vmem:[#allocation4 + $0x10] ss:$36 sps:$4 sm:$0xff]  }
 0x2e2   :  { %v13040_v14 = vld [vmem:[#allocation4 + $0x14] ss:$36 sps:$4 sm:$0xff]   ;;  %v3980_v35 = vrot.slane %v3979_v46, 4  ;;  %5316 = vst [vmem:[#allocation4 + $0x5c] sm:$0xf] %v5036_v54  ;;  %v3975_v34 = vsel %vm13579_vm9, %v3970_v15, %v3974_v30  ;;  %v5039_v45 = vsel %vm13597_vm10, %v5037_v23, %v5038_v48  ;;  %v5655_v41 = vshll.u32 %v5513_v56, 16 }
 0x2e3   :  { %v5654_v57 = vrot.slane %v5652_v17, 4  ;;  %v3848_v25 = vld [vmem:[#allocation2 + $0x24] sm:$0xf]  ;;  %v3849_v21 = vld [vmem:[#allocation2 + $0x28] sm:$0xf]  ;;  %17030 = vst [vmem:[#allocation94_spill] sm:$0xff] %v15153_v37  ;;  %10028 = vmatprep.mubr.bf16.mxu1 %v13040_v14  ;;  %v9561_v17 = vpop.f32.mrf.mxu1 }
 0x2e4   :  { %v3985_v12 = vsel %vm13579_vm9, %v3980_v35, %v3984_v16  ;;  %4772 = vst [vmem:[#allocation4 + $0x58] sm:$0xf] %v3975_v34  ;;  %5317 = vst [vmem:[#allocation4 + $0x80] sm:$0xf] %v5039_v45  ;;  %v5661_v7 = vshll.u32 %v5514_v18, 16  ;;  %v5665_v2 = vshrl.u32 %v5514_v18, 16  ;;  %10029 = vmatmul.mubr.bf16.vlgmr.msra.gmra.mxu1 %v13038_v5 }
 0x2e5   :  { %v5671_v46 = vshll.u32 %v5515_v1, 16  ;;  %v3850_v54 = vld [vmem:[#allocation2 + $0x2c] sm:$0x1]  ;;  %4773 = vst [vmem:[#allocation4 + $0x7c] sm:$0xf] %v3985_v12  ;;  %v5657_v30 = vrot.slane %v5655_v41, 5  ;;  %v9855_v12 = vpop.f32.mrf.mxu0 }
 0x2e6   :  { %v3987_v48 = vshrl.u32 %v3848_v25, 16  ;;  %v3990_v15 = vshll.u32 %v3848_v25, 16  ;;  %v3996_v56 = vshll.u32 %v3849_v21, 16  ;;  %v4840_v23 = vld [vmem:[#allocation2 + $0x24] sm:$0xe]  ;;  %17031 = vst [vmem:[#allocation95_spill] sm:$0xff] %v15157_v9 }
 0x2e7   :  { %v13271_v16 = vld [vmem:[%s16842_s3 + $0x238] sm:$0xff]   ;;  %v5663_v14 = vrot.slane %v5661_v7, 5  ;;  %v5667_v35 = vrot.slane %v5665_v2, 4  ;;  %v5673_v18 = vrot.slane %v5671_v46, 5  ;;  %v4000_v1 = vshrl.u32 %v3849_v21, 16  ;;  %v13092_v5 = vld [vmem:[%s16842_s3 + $0x228] sm:$0xff]   ;;  %v15165_v40 = vpop.f32.mrf.mxu0 }
 0x2e8   :  { %12670 = vmatpush3.bf16.msra.mxu1 %v13271_v16  ;;  %v13043_v34 = vld [vmem:[#allocation4 + $0x60] ss:$36 sps:$4 sm:$0xff]   ;;  %v5658_v41 = vor.u32 %v5657_v30, %v5654_v57  ;;  %v3989_v25 = vrot.slane %v3987_v48, 4  ;;  %v3992_v9 = vrot.slane %v3990_v15, 5  ;;  %v3998_v37 = vrot.slane %v3996_v56, 5  ;;  %17032 = vst [vmem:[#allocation96_spill] sm:$0xff] %v15165_v40 }
 0x2e9   :  { %v13045_v45 = vld [vmem:[#allocation4 + $0x64] ss:$36 sps:$4 sm:$0xff]   ;;  %12671 = vmatprep.subr.bf16.mxu1 %v13067_v27  ;;  %v5668_v17 = vor.u32 %v5667_v35, %v5663_v14  ;;  %v4002_v61 = vrot.slane %v4000_v1, 4  ;;  %v4841_v10 = vld [vmem:[#allocation2 + $0x28] sm:$0xf]  ;;  %v4006_v2 = vshll.u32 %v3850_v54, 16 }
 0x2ea   :  { %10325 = vmatprep.mubr.bf16.mxu0 %v13045_v45  ;;  %v5659_v7 = vrot.slane %v5658_v41, 4  ;;  %v4842_v46 = vld [vmem:[#allocation2 + $0x2c] sm:$0x1]  ;;  %v11958_v21 = vrot.slane %v4840_v23, 9  ;;  %v5042_v16 = vrot.slane %v4841_v10, 5  ;;  %v3993_v63 = vor.u32 %v3992_v9, %v3989_v25  ;;  %v9858_v23 = vpop.f32.mrf.mxu0 }
 0x2eb   :  { %10326 = vmatmul.mubr.bf16.gmra.mxu0 %v13043_v34  ;;  %v5669_v38 = vrot.slane %v5668_v17, 4  ;;  %v4003_v57 = vor.u32 %v4002_v61, %v3998_v37  ;;  %v5045_v30 = vrot.slane %v4842_v46, 5  ;;  %v5385_v48 = vld [vmem:[#allocation2 + $0x3c] sm:$0xf]  ;;  %v5386_v12 = vld [vmem:[#allocation2 + $0x40] sm:$0xf] }
 0x2ec   :  { %12672 = vmatpush3.bf16.msra.mxu1 %v13067_v27  ;;  %v5664_v15 = vsel %vm13579_vm9, %v5659_v7, %v5663_v14  ;;  %v4008_v56 = vrot.slane %v4006_v2, 5  ;;  %v5043_v54 = vsel %vm13597_vm10, %v11958_v21, %v5042_v16  ;;  %v5044_v35 = vrot.slane %v5042_v16, 4  ;;  %5449 = vst [vmem:[#allocation4 + $0xf0] sm:$0xf] %v5385_v48  ;;  %5450 = vst [vmem:[#allocation4 + $0x114] sm:$0xf] %v5386_v12  ;;  %v15178_v7 = vpop.f32.mrf.mxu1  ;;  %v15182_v21 = vpop.f32.mrf.mxu0 }
 0x2ed   :  { %v5516_v10 = vld [vmem:[#allocation2 + $0x3c] sm:$0xf]  ;;  %12673 = vmatprep.subr.bf16.mxu1 %v13092_v5  ;;  %v13117_v61 = vld [vmem:[%s16842_s3 + $0x220] sm:$0xff]   ;;  %v13046_v9 = vld [vmem:[#allocation4 + $0x58] ss:$36 sps:$4 sm:$0xff]   ;;  %v5674_v27 = vsel %vm13579_vm9, %v5669_v38, %v5673_v18  ;;  %v3994_v14 = vrot.slane %v3993_v63, 4 }
 0x2ee   :  { %v13048_v1 = vld [vmem:[#allocation4 + $0x5c] ss:$36 sps:$4 sm:$0xff]   ;;  %6439 = vst [vmem:[#allocation4 + $0xac] sm:$0xf] %v5664_v15  ;;  %5318 = vst [vmem:[#allocation4 + $0xa4] sm:$0xf] %v5043_v54  ;;  %v5046_v45 = vsel %vm13597_vm10, %v5044_v35, %v5045_v30  ;;  %v9566_v15 = vpop.f32.mrf.mxu1 }
 0x2ef   :  { %6440 = vst [vmem:[#allocation4 + $0xd0] sm:$0xf] %v5674_v27  ;;  %v4004_v34 = vrot.slane %v4003_v57, 4  ;;  %v5517_v41 = vld [vmem:[#allocation2 + $0x40] sm:$0xf]  ;;  %v5676_v17 = vshrl.u32 %v5516_v10, 16  ;;  %10036 = vmatprep.mubr.bf16.mxu1 %v13048_v1  ;;  %v3999_v2 = vsel %vm13579_vm9, %v3994_v14, %v3998_v37  ;;  %v9863_v1 = vpop.f32.mrf.mxu0 }
 0x2f0   :  { %v5518_v25 = vld [vmem:[#allocation2 + $0x44] sm:$0x1]  ;;  %5319 = vst [vmem:[#allocation4 + $0xc8] sm:$0xf] %v5046_v45  ;;  %v5679_v46 = vshll.u32 %v5516_v10, 16  ;;  %v5685_v38 = vshll.u32 %v5517_v41, 16  ;;  %12674 = vmatpush3.bf16.msra.mxu1 %v13092_v5 }
 0x2f1   :  { %v5689_v18 = vshrl.u32 %v5517_v41, 16  ;;  %v3851_v63 = vld [vmem:[#allocation2 + $0x30] sm:$0xf]  ;;  %17033 = vst [vmem:[#allocation97_spill] sm:$0xff] %v15182_v21  ;;  %10037 = vmatmul.mubr.bf16.gmra.mxu1 %v13046_v9  ;;  %v4009_v16 = vsel %vm13579_vm9, %v4004_v34, %v4008_v56  ;;  %4774 = vst [vmem:[#allocation4 + $0xa0] sm:$0xf] %v3999_v2  ;;  %12675 = vmatprep.subr.bf16.mxu1 %v13117_v61  ;;  %v15186_v56 = vpop.f32.mrf.mxu1 }
 0x2f2   :  { %v5678_v57 = vrot.slane %v5676_v17, 4  ;;  %v5695_v30 = vshll.u32 %v5518_v25, 16  ;;  %v3852_v48 = vld [vmem:[#allocation2 + $0x34] sm:$0xf]  ;;  %v3853_v12 = vld [vmem:[#allocation2 + $0x38] sm:$0x1] }
 0x2f3   :  { %4775 = vst [vmem:[#allocation4 + $0xc4] sm:$0xf] %v4009_v16  ;;  %v5681_v37 = vrot.slane %v5679_v46, 5  ;;  %v5687_v54 = vrot.slane %v5685_v38, 5  ;;  %v5691_v35 = vrot.slane %v5689_v18, 4  ;;  %v4011_v10 = vshrl.u32 %v3851_v63, 16  ;;  %v15188_v16 = vpop.f32.mrf.mxu0 }
 0x2f4   :  { %v4843_v23 = vld [vmem:[#allocation2 + $0x30] sm:$0xe]  ;;  %v5697_v27 = vrot.slane %v5695_v30, 5  ;;  %v4014_v5 = vshll.u32 %v3851_v63, 16  ;;  %v4020_v9 = vshll.u32 %v3852_v48, 16  ;;  %v4024_v14 = vshrl.u32 %v3852_v48, 16  ;;  %12676 = vmatpush3.bf16.msra.mxu1 %v13117_v61  ;;  %v9569_v63 = vpop.f32.mrf.mxu1 }
 0x2f5   :  { %v4844_v45 = vld [vmem:[#allocation2 + $0x34] sm:$0xf]  ;;  %17034 = vst [vmem:[#allocation98_spill] sm:$0xff] %v15186_v56  ;;  %v5682_v34 = vor.u32 %v5681_v37, %v5678_v57  ;;  %v5692_v41 = vor.u32 %v5691_v35, %v5687_v54  ;;  %v4013_v25 = vrot.slane %v4011_v10, 4  ;;  %v4030_v17 = vshll.u32 %v3853_v12, 16  ;;  %17035 = vst [vmem:[#allocation99_spill] sm:$0xff] %v15188_v16  ;;  %v9866_v40 = vpop.f32.mrf.mxu0 }
 0x2f6   :  { %v4845_v2 = vld [vmem:[#allocation2 + $0x38] sm:$0x1]  ;;  %v5387_v15 = vld [vmem:[#allocation2 + $0x48] sm:$0xf]  ;;  %v4016_v46 = vrot.slane %v4014_v5, 5  ;;  %v4022_v38 = vrot.slane %v4020_v9, 5 }
 0x2f7   :  { %v4026_v18 = vrot.slane %v4024_v14, 4  ;;  %v11959_v1 = vrot.slane %v4843_v23, 9  ;;  %5451 = vst [vmem:[#allocation4 + $0x138] sm:$0xf] %v5387_v15  ;;  %v13049_v30 = vld [vmem:[#allocation4 + $0xa8] ss:$36 sps:$4 sm:$0xff]   ;;  %v15192_v15 = vpop.f32.mrf.mxu1 }
 0x2f8   :  { %v13051_v48 = vld [vmem:[#allocation4 + $0xac] ss:$36 sps:$4 sm:$0xff]   ;;  %v5683_v21 = vrot.slane %v5682_v34, 4  ;;  %v5693_v56 = vrot.slane %v5692_v41, 4  ;;  %v4017_v57 = vor.u32 %v4016_v46, %v4013_v25  ;;  %v4032_v35 = vrot.slane %v4030_v17, 5  ;;  %17036 = vst [vmem:[#allocation100_spill] sm:$0xff] %v15192_v15 }
 0x2f9   :  { %v4027_v37 = vor.u32 %v4026_v18, %v4022_v38  ;;  %v5388_v12 = vld [vmem:[#allocation2 + $0x4c] sm:$0xf]  ;;  %v5519_v10 = vld [vmem:[#allocation2 + $0x48] sm:$0xf]  ;;  %10333 = vmatprep.mubr.bf16.mxu0 %v13051_v48  ;;  %v5049_v5 = vrot.slane %v4844_v45, 5  ;;  %v5052_v9 = vrot.slane %v4845_v2, 5  ;;  %v9574_v2 = vpop.f32.mrf.mxu1 }
 0x2fa   :  { %v5688_v61 = vsel %vm13579_vm9, %v5683_v21, %v5687_v54  ;;  %5452 = vst [vmem:[#allocation4 + $0x15c] sm:$0xf] %v5388_v12  ;;  %v5520_v23 = vld [vmem:[#allocation2 + $0x4c] sm:$0xf]  ;;  %v5700_v14 = vshrl.u32 %v5519_v10, 16  ;;  %10334 = vmatmul.mubr.bf16.gmra.mxu0 %v13049_v30  ;;  %v5698_v40 = vsel %vm13579_vm9, %v5693_v56, %v5697_v27  ;;  %v4018_v41 = vrot.slane %v4017_v57, 4 }
 0x2fb   :  { %v13052_v63 = vld [vmem:[#allocation4 + $0xa0] ss:$36 sps:$4 sm:$0xff]   ;;  %6441 = vst [vmem:[#allocation4 + $0xf4] sm:$0xf] %v5688_v61  ;;  %6442 = vst [vmem:[#allocation4 + $0x118] sm:$0xf] %v5698_v40  ;;  %v5050_v21 = vsel %vm13597_vm10, %v11959_v1, %v5049_v5 }
 0x2fc   :  { %v13054_v34 = vld [vmem:[#allocation4 + $0xa4] ss:$36 sps:$4 sm:$0xff]   ;;  %v4028_v25 = vrot.slane %v4027_v37, 4  ;;  %v5051_v54 = vrot.slane %v5049_v5, 4  ;;  %v5521_v45 = vld [vmem:[#allocation2 + $0x50] sm:$0x1]  ;;  %v4023_v46 = vsel %vm13579_vm9, %v4018_v41, %v4022_v38  ;;  %v15204_v5 = vpop.f32.mrf.mxu1  ;;  %v15206_v38 = vpop.f32.mrf.mxu0 }
 0x2fd   :  { %v5702_v17 = vrot.slane %v5700_v14, 4  ;;  %10044 = vmatprep.mubr.bf16.mxu1 %v13054_v34  ;;  %5320 = vst [vmem:[#allocation4 + $0xec] sm:$0xf] %v5050_v21  ;;  %v5703_v18 = vshll.u32 %v5519_v10, 16  ;;  %v5709_v30 = vshll.u32 %v5520_v23, 16  ;;  %v5713_v48 = vshrl.u32 %v5520_v23, 16 }
 0x2fe   :  { %v3854_v27 = vld [vmem:[#allocation2 + $0x3c] sm:$0xf]  ;;  %10045 = vmatmul.mubr.bf16.gmra.mxu1 %v13052_v63  ;;  %v4033_v56 = vsel %vm13579_vm9, %v4028_v25, %v4032_v35  ;;  %4776 = vst [vmem:[#allocation4 + $0xe8] sm:$0xf] %v4023_v46  ;;  %v5053_v1 = vsel %vm13597_vm10, %v5051_v54, %v5052_v9  ;;  %v5719_v57 = vshll.u32 %v5521_v45, 16  ;;  %17037 = vst [vmem:[#allocation101_spill] sm:$0xff] %v15204_v5  ;;  %v9577_v21 = vpop.f32.mrf.mxu1  ;;  %v9871_v54 = vpop.f32.mrf.mxu0 }
 0x2ff   :  { %v3855_v37 = vld [vmem:[#allocation2 + $0x40] sm:$0xf]  ;;  %v3856_v12 = vld [vmem:[#allocation2 + $0x44] sm:$0x1]  ;;  %v4035_v61 = vshrl.u32 %v3854_v27, 16  ;;  %17038 = vst [vmem:[#allocation102_spill] sm:$0xff] %v15206_v38 }
 0x300   :  { %4777 = vst [vmem:[#allocation4 + $0x10c] sm:$0xf] %v4033_v56  ;;  %5321 = vst [vmem:[#allocation4 + $0x110] sm:$0xf] %v5053_v1  ;;  %v5705_v10 = vrot.slane %v5703_v18, 5  ;;  %v5711_v23 = vrot.slane %v5709_v30, 5 }
 0x301   :  { %v5715_v14 = vrot.slane %v5713_v48, 4  ;;  %v4038_v63 = vshll.u32 %v3854_v27, 16  ;;  %v4846_v34 = vld [vmem:[#allocation2 + $0x3c] sm:$0xe]  ;;  %v5721_v35 = vrot.slane %v5719_v57, 5  ;;  %v4037_v40 = vrot.slane %v4035_v61, 4  ;;  %v15208_v48 = vpop.f32.mrf.mxu0 }
 0x302   :  { %v4044_v41 = vshll.u32 %v3855_v37, 16  ;;  %v4048_v25 = vshrl.u32 %v3855_v37, 16  ;;  %v4847_v9 = vld [vmem:[#allocation2 + $0x40] sm:$0xf]  ;;  %v5706_v45 = vor.u32 %v5705_v10, %v5702_v17  ;;  %v4054_v16 = vshll.u32 %v3856_v12, 16  ;;  %17039 = vst [vmem:[#allocation103_spill] sm:$0xff] %v15208_v48 }
 0x303   :  { %v5716_v2 = vor.u32 %v5715_v14, %v5711_v23  ;;  %v4040_v46 = vrot.slane %v4038_v63, 5  ;;  %v4848_v5 = vld [vmem:[#allocation2 + $0x44] sm:$0x1]  ;;  %v5389_v38 = vld [vmem:[#allocation2 + $0x54] sm:$0xf]  ;;  %v11960_v18 = vrot.slane %v4846_v34, 9  ;;  %v9874_v14 = vpop.f32.mrf.mxu0 }
 0x304   :  { %v4046_v56 = vrot.slane %v4044_v41, 5  ;;  %v4050_v1 = vrot.slane %v4048_v25, 4  ;;  %v5056_v30 = vrot.slane %v4847_v9, 5  ;;  %5453 = vst [vmem:[#allocation4 + $0x180] sm:$0xf] %v5389_v38  ;;  %v5707_v61 = vrot.slane %v5706_v45, 4 }
 0x305   :  { %v13055_v27 = vld [vmem:[#allocation4 + $0xf0] ss:$36 sps:$4 sm:$0xff]   ;;  %v4041_v37 = vor.u32 %v4040_v46, %v4037_v40  ;;  %v5717_v15 = vrot.slane %v5716_v2, 4  ;;  %v4056_v54 = vrot.slane %v4054_v16, 5  ;;  %v5390_v12 = vld [vmem:[#allocation2 + $0x58] sm:$0xf] }
 0x306   :  { %v13057_v57 = vld [vmem:[#allocation4 + $0xf4] ss:$36 sps:$4 sm:$0xff]   ;;  %v4051_v21 = vor.u32 %v4050_v1, %v4046_v56  ;;  %v5057_v17 = vsel %vm13597_vm10, %v11960_v18, %v5056_v30  ;;  %v5522_v10 = vld [vmem:[#allocation2 + $0x54] sm:$0xf]  ;;  %v5712_v63 = vsel %vm13579_vm9, %v5707_v61, %v5711_v23  ;;  %v5058_v34 = vrot.slane %v5056_v30, 4  ;;  %v15220_v30 = vpop.f32.mrf.mxu1 }
 0x307   :  { %10341 = vmatprep.mubr.bf16.mxu0 %v13057_v57  ;;  %v4042_v38 = vrot.slane %v4041_v37, 4  ;;  %v5059_v41 = vrot.slane %v4848_v5, 5  ;;  %5322 = vst [vmem:[#allocation4 + $0x134] sm:$0xf] %v5057_v17  ;;  %5454 = vst [vmem:[#allocation4 + $0x1a4] sm:$0xf] %v5390_v12  ;;  %v5722_v16 = vsel %vm13579_vm9, %v5717_v15, %v5721_v35 }
 0x308   :  { %v5523_v25 = vld [vmem:[#allocation2 + $0x58] sm:$0xf]  ;;  %v13060_v9 = vld [vmem:[#allocation4 + $0xec] ss:$36 sps:$4 sm:$0xff]   ;;  %10342 = vmatmul.mubr.bf16.gmra.mxu0 %v13055_v27  ;;  %6443 = vst [vmem:[#allocation4 + $0x13c] sm:$0xf] %v5712_v63  ;;  %v9582_v14 = vpop.f32.mrf.mxu1 }
 0x309   :  { %v13058_v40 = vld [vmem:[#allocation4 + $0xe8] ss:$36 sps:$4 sm:$0xff]   ;;  %v4052_v45 = vrot.slane %v4051_v21, 4  ;;  %6444 = vst [vmem:[#allocation4 + $0x160] sm:$0xf] %v5722_v16  ;;  %v4047_v2 = vsel %vm13579_vm9, %v4042_v38, %v4046_v56  ;;  %v5060_v23 = vsel %vm13597_vm10, %v5058_v34, %v5059_v41  ;;  %v5724_v5 = vshrl.u32 %v5522_v10, 16  ;;  %10052 = vmatprep.mubr.bf16.mxu1 %v13060_v9  ;;  %v15224_v56 = vpop.f32.mrf.mxu0 }
 0x30a   :  { %v5524_v46 = vld [vmem:[#allocation2 + $0x5c] sm:$0x1]  ;;  %v5727_v1 = vshll.u32 %v5522_v10, 16  ;;  %v3857_v18 = vld [vmem:[#allocation2 + $0x48] sm:$0xf]  ;;  %17040 = vst [vmem:[#allocation104_spill] sm:$0xff] %v15220_v30  ;;  %10053 = vmatmul.mubr.bf16.gmra.mxu1 %v13058_v40 }
 0x30b   :  { %v4057_v27 = vsel %vm13579_vm9, %v4052_v45, %v4056_v54  ;;  %4778 = vst [vmem:[#allocation4 + $0x130] sm:$0xf] %v4047_v2  ;;  %5323 = vst [vmem:[#allocation4 + $0x158] sm:$0xf] %v5060_v23  ;;  %v5733_v15 = vshll.u32 %v5523_v25, 16  ;;  %v5737_v35 = vshrl.u32 %v5523_v25, 16  ;;  %v9879_v9 = vpop.f32.mrf.mxu0 }
 0x30c   :  { %v5743_v57 = vshll.u32 %v5524_v46, 16  ;;  %v3858_v61 = vld [vmem:[#allocation2 + $0x4c] sm:$0xf]  ;;  %17041 = vst [vmem:[#allocation105_spill] sm:$0xff] %v15224_v56  ;;  %4779 = vst [vmem:[#allocation4 + $0x154] sm:$0xf] %v4057_v27  ;;  %v15226_v46 = vpop.f32.mrf.mxu1 }
 0x30d   :  { %v5726_v37 = vrot.slane %v5724_v5, 4  ;;  %v5729_v21 = vrot.slane %v5727_v1, 5  ;;  %v3859_v17 = vld [vmem:[#allocation2 + $0x50] sm:$0x1]  ;;  %v4059_v12 = vshrl.u32 %v3857_v18, 16  ;;  %v4062_v10 = vshll.u32 %v3857_v18, 16  ;;  %v15228_v18 = vpop.f32.mrf.mxu0 }
 0x30e   :  { %v5735_v63 = vrot.slane %v5733_v15, 5  ;;  %v5739_v38 = vrot.slane %v5737_v35, 4  ;;  %v5745_v34 = vrot.slane %v5743_v57, 5  ;;  %v4068_v54 = vshll.u32 %v3858_v61, 16  ;;  %v4849_v41 = vld [vmem:[#allocation2 + $0x48] sm:$0xe]  ;;  %v9585_v9 = vpop.f32.mrf.mxu1 }
 0x30f   :  { %v5730_v16 = vor.u32 %v5729_v21, %v5726_v37  ;;  %v4061_v25 = vrot.slane %v4059_v12, 4  ;;  %v4064_v45 = vrot.slane %v4062_v10, 5  ;;  %v4072_v2 = vshrl.u32 %v3858_v61, 16  ;;  %v4850_v23 = vld [vmem:[#allocation2 + $0x4c] sm:$0xf]  ;;  %17042 = vst [vmem:[#allocation106_spill] sm:$0xff] %v15226_v46  ;;  %v9882_v61 = vpop.f32.mrf.mxu0 }
 0x310   :  { %v5740_v40 = vor.u32 %v5739_v38, %v5735_v63  ;;  %v4070_v5 = vrot.slane %v4068_v54, 5  ;;  %v4078_v1 = vshll.u32 %v3859_v17, 16  ;;  %v4851_v27 = vld [vmem:[#allocation2 + $0x50] sm:$0x1]  ;;  %v11961_v56 = vrot.slane %v4849_v41, 9  ;;  %17043 = vst [vmem:[#allocation107_spill] sm:$0xff] %v15228_v18 }
 0x311   :  { %v5731_v15 = vrot.slane %v5730_v16, 4  ;;  %v4065_v35 = vor.u32 %v4064_v45, %v4061_v25  ;;  %v4074_v57 = vrot.slane %v4072_v2, 4  ;;  %v5063_v14 = vrot.slane %v4850_v23, 5  ;;  %v5391_v48 = vld [vmem:[#allocation2 + $0x60] sm:$0xf] }
 0x312   :  { %v13061_v37 = vld [vmem:[#allocation4 + $0x138] ss:$36 sps:$4 sm:$0xff]   ;;  %v5741_v12 = vrot.slane %v5740_v40, 4  ;;  %5455 = vst [vmem:[#allocation4 + $0x1c8] sm:$0xf] %v5391_v48  ;;  %v4080_v54 = vrot.slane %v4078_v1, 5  ;;  %v15236_v48 = vpop.f32.mrf.mxu1 }
 0x313   :  { %v13063_v21 = vld [vmem:[#allocation4 + $0x13c] ss:$36 sps:$4 sm:$0xff]   ;;  %v5736_v10 = vsel %vm13579_vm9, %v5731_v15, %v5735_v63  ;;  %v4066_v38 = vrot.slane %v4065_v35, 4  ;;  %v4075_v17 = vor.u32 %v4074_v57, %v4070_v5  ;;  %v5392_v41 = vld [vmem:[#allocation2 + $0x64] sm:$0xf]  ;;  %v5064_v45 = vsel %vm13597_vm10, %v11961_v56, %v5063_v14  ;;  %17044 = vst [vmem:[#allocation108_spill] sm:$0xff] %v15236_v48 }
 0x314   :  { %10349 = vmatprep.mubr.bf16.mxu0 %v13063_v21  ;;  %v13064_v18 = vld [vmem:[#allocation4 + $0x130] ss:$36 sps:$4 sm:$0xff]   ;;  %v5746_v25 = vsel %vm13579_vm9, %v5741_v12, %v5745_v34  ;;  %6445 = vst [vmem:[#allocation4 + $0x184] sm:$0xf] %v5736_v10  ;;  %v5065_v2 = vrot.slane %v5063_v14, 4  ;;  %v5066_v40 = vrot.slane %v4851_v27, 5  ;;  %v9590_v9 = vpop.f32.mrf.mxu1 }
 0x315   :  { %v13066_v16 = vld [vmem:[#allocation4 + $0x134] ss:$36 sps:$4 sm:$0xff]   ;;  %5456 = vst [vmem:[#allocation4 + $0x1ec] sm:$0xf] %v5392_v41  ;;  %10350 = vmatmul.mubr.bf16.gmra.mxu0 %v13061_v37  ;;  %6446 = vst [vmem:[#allocation4 + $0x1a8] sm:$0xf] %v5746_v25  ;;  %v4071_v63 = vsel %vm13579_vm9, %v4066_v38, %v4070_v5  ;;  %v15246_v25 = vpop.f32.mrf.mxu0 }
 0x316   :  { %v4076_v23 = vrot.slane %v4075_v17, 4  ;;  %5324 = vst [vmem:[#allocation4 + $0x17c] sm:$0xf] %v5064_v45  ;;  %v5525_v1 = vld [vmem:[#allocation2 + $0x60] sm:$0xf]  ;;  %10060 = vmatprep.mubr.bf16.mxu1 %v13066_v16  ;;  %v5067_v5 = vsel %vm13597_vm10, %v5065_v2, %v5066_v40  ;;  %v15244_v16 = vpop.f32.mrf.mxu1  ;;  %17046 = vst [vmem:[#allocation110_spill] sm:$0xff] %v15246_v25 }
 0x317   :  { %v5526_v15 = vld [vmem:[#allocation2 + $0x64] sm:$0xf]  ;;  %4780 = vst [vmem:[#allocation4 + $0x178] sm:$0xf] %v4071_v63  ;;  %v5527_v34 = vld [vmem:[#allocation2 + $0x68] sm:$0x1]  ;;  %10061 = vmatmul.mubr.bf16.gmra.mxu1 %v13064_v18 }
 0x318   :  { %v5748_v35 = vshrl.u32 %v5525_v1, 16  ;;  %v5751_v57 = vshll.u32 %v5525_v1, 16  ;;  %v5757_v56 = vshll.u32 %v5526_v15, 16  ;;  %v5761_v14 = vshrl.u32 %v5526_v15, 16  ;;  %v3860_v27 = vld [vmem:[#allocation2 + $0x54] sm:$0xf] }
 0x319   :  { %v4081_v37 = vsel %vm13579_vm9, %v4076_v23, %v4080_v54  ;;  %v5767_v21 = vshll.u32 %v5527_v34, 16  ;;  %v3861_v12 = vld [vmem:[#allocation2 + $0x58] sm:$0xf]  ;;  %5325 = vst [vmem:[#allocation4 + $0x1a0] sm:$0xf] %v5067_v5  ;;  %17045 = vst [vmem:[#allocation109_spill] sm:$0xff] %v15244_v16 }
 0x31a   :  { %4781 = vst [vmem:[#allocation4 + $0x19c] sm:$0xf] %v4081_v37  ;;  %v5750_v61 = vrot.slane %v5748_v35, 4  ;;  %v5753_v10 = vrot.slane %v5751_v57, 5  ;;  %v5759_v38 = vrot.slane %v5757_v56, 5  ;;  %v5763_v17 = vrot.slane %v5761_v14, 4  ;;  %v9593_v35 = vpop.f32.mrf.mxu1  ;;  %v9887_v57 = vpop.f32.mrf.mxu0 }
 0x31b   :  { %v3862_v41 = vld [vmem:[#allocation2 + $0x5c] sm:$0x1]  ;;  %v5769_v18 = vrot.slane %v5767_v21, 5  ;;  %v4083_v45 = vshrl.u32 %v3860_v27, 16  ;;  %v4086_v54 = vshll.u32 %v3860_v27, 16  ;;  %v4092_v63 = vshll.u32 %v3861_v12, 16 }
 0x31c   :  { %v4852_v23 = vld [vmem:[#allocation2 + $0x54] sm:$0xe]  ;;  %v5754_v2 = vor.u32 %v5753_v10, %v5750_v61  ;;  %v5764_v40 = vor.u32 %v5763_v17, %v5759_v38  ;;  %v4096_v1 = vshrl.u32 %v3861_v12, 16  ;;  %v4102_v15 = vshll.u32 %v3862_v41, 16  ;;  %v4853_v34 = vld [vmem:[#allocation2 + $0x58] sm:$0xf]  ;;  %v15251_v48 = vpop.f32.mrf.mxu0 }
 0x31d   :  { %v4854_v9 = vld [vmem:[#allocation2 + $0x5c] sm:$0x1]  ;;  %v4085_v56 = vrot.slane %v4083_v45, 4  ;;  %v4088_v14 = vrot.slane %v4086_v54, 5  ;;  %v4094_v37 = vrot.slane %v4092_v63, 5  ;;  %v11962_v5 = vrot.slane %v4852_v23, 9 }
 0x31e   :  { %v13142_v21 = vld [vmem:[%s16842_s3 + $0x218] sm:$0xff]   ;;  %v13068_v25 = vld [vmem:[#allocation4 + $0x180] ss:$36 sps:$4 sm:$0xff]   ;;  %v5755_v16 = vrot.slane %v5754_v2, 4  ;;  %17047 = vst [vmem:[#allocation111_spill] sm:$0xff] %v15251_v48  ;;  %v5765_v61 = vrot.slane %v5764_v40, 4  ;;  %v9890_v57 = vpop.f32.mrf.mxu0 }
 0x31f   :  { %v13070_v27 = vld [vmem:[#allocation4 + $0x184] ss:$36 sps:$4 sm:$0xff]   ;;  %v4089_v12 = vor.u32 %v4088_v14, %v4085_v56  ;;  %v4098_v10 = vrot.slane %v4096_v1, 4  ;;  %v4104_v17 = vrot.slane %v4102_v15, 5  ;;  %v5393_v41 = vld [vmem:[#allocation2 + $0x6c] sm:$0xf]  ;;  %12677 = vmatprep.subr.bf16.mxu1 %v13142_v21 }
 0x320   :  { %10357 = vmatprep.mubr.bf16.mxu0 %v13070_v27  ;;  %v5760_v45 = vsel %vm13579_vm9, %v5755_v16, %v5759_v38  ;;  %v5070_v54 = vrot.slane %v4853_v34, 5  ;;  %v5073_v63 = vrot.slane %v4854_v9, 5  ;;  %v5394_v23 = vld [vmem:[#allocation2 + $0x70] sm:$0xf]  ;;  %5457 = vst [vmem:[#allocation4 + $0x210] sm:$0xf] %v5393_v41  ;;  %12678 = vmatpush3.bf16.msra.mxu1 %v13142_v21  ;;  %v5770_v40 = vsel %vm13579_vm9, %v5765_v61, %v5769_v18  ;;  %v15261_v61 = vpop.f32.mrf.mxu1 }
 0x321   :  { %v5528_v35 = vld [vmem:[#allocation2 + $0x6c] sm:$0xf]  ;;  %10358 = vmatmul.mubr.bf16.gmra.mxu0 %v13068_v25  ;;  %6447 = vst [vmem:[#allocation4 + $0x1cc] sm:$0xf] %v5760_v45  ;;  %v4090_v1 = vrot.slane %v4089_v12, 4  ;;  %v4099_v15 = vor.u32 %v4098_v10, %v4094_v37  ;;  %17048 = vst [vmem:[#allocation112_spill] sm:$0xff] %v15261_v61 }
 0x322   :  { %v13071_v2 = vld [vmem:[#allocation4 + $0x178] ss:$36 sps:$4 sm:$0xff]   ;;  %5458 = vst [vmem:[#allocation4 + $0x234] sm:$0xf] %v5394_v23  ;;  %6448 = vst [vmem:[#allocation4 + $0x1f0] sm:$0xf] %v5770_v40  ;;  %v5071_v38 = vsel %vm13597_vm10, %v11962_v5, %v5070_v54  ;;  %v9598_v40 = vpop.f32.mrf.mxu1 }
 0x323   :  { %v13073_v46 = vld [vmem:[#allocation4 + $0x17c] ss:$36 sps:$4 sm:$0xff]   ;;  %v5072_v16 = vrot.slane %v5070_v54, 4  ;;  %v5530_v9 = vld [vmem:[#allocation2 + $0x74] sm:$0x1]  ;;  %v5772_v56 = vshrl.u32 %v5528_v35, 16  ;;  %v4095_v14 = vsel %vm13579_vm9, %v4090_v1, %v4094_v37 }
 0x324   :  { %v5529_v34 = vld [vmem:[#allocation2 + $0x70] sm:$0xf]  ;;  %10068 = vmatprep.mubr.bf16.mxu1 %v13073_v46  ;;  %v4100_v25 = vrot.slane %v4099_v15, 4  ;;  %5326 = vst [vmem:[#allocation4 + $0x1c4] sm:$0xf] %v5071_v38  ;;  %v5775_v21 = vshll.u32 %v5528_v35, 16  ;;  %v15265_v46 = vpop.f32.mrf.mxu0 }
 0x325   :  { %v5781_v18 = vshll.u32 %v5529_v34, 16  ;;  %v3863_v27 = vld [vmem:[#allocation2 + $0x60] sm:$0xf]  ;;  %10069 = vmatmul.mubr.bf16.gmra.mxu1 %v13071_v2  ;;  %4782 = vst [vmem:[#allocation4 + $0x1c0] sm:$0xf] %v4095_v14  ;;  %v5074_v5 = vsel %vm13597_vm10, %v5072_v16, %v5073_v63  ;;  %v5774_v12 = vrot.slane %v5772_v56, 4 }
 0x326   :  { %v5785_v10 = vshrl.u32 %v5529_v34, 16  ;;  %v5791_v41 = vshll.u32 %v5530_v9, 16  ;;  %v3864_v45 = vld [vmem:[#allocation2 + $0x64] sm:$0xf]  ;;  %17049 = vst [vmem:[#allocation113_spill] sm:$0xff] %v15265_v46  ;;  %v4105_v37 = vsel %vm13579_vm9, %v4100_v25, %v4104_v17  ;;  %v5777_v54 = vrot.slane %v5775_v21, 5  ;;  %v9895_v38 = vpop.f32.mrf.mxu0  ;;  %v15269_v46 = vpop.f32.mrf.mxu1 }
 0x327   :  { %5327 = vst [vmem:[#allocation4 + $0x1e8] sm:$0xf] %v5074_v5  ;;  %v5783_v23 = vrot.slane %v5781_v18, 5  ;;  %v3865_v35 = vld [vmem:[#allocation2 + $0x68] sm:$0x1]  ;;  %v4107_v57 = vshrl.u32 %v3863_v27, 16 }
 0x328   :  { %4783 = vst [vmem:[#allocation4 + $0x1e4] sm:$0xf] %v4105_v37  ;;  %v5787_v2 = vrot.slane %v5785_v10, 4  ;;  %v4110_v1 = vshll.u32 %v3863_v27, 16  ;;  %v4116_v15 = vshll.u32 %v3864_v45, 16  ;;  %v5778_v16 = vor.u32 %v5777_v54, %v5774_v12  ;;  %17050 = vst [vmem:[#allocation114_spill] sm:$0xff] %v15269_v46  ;;  %v15271_v48 = vpop.f32.mrf.mxu0  ;;  %v9601_v40 = vpop.f32.mrf.mxu1 }
 0x329   :  { %v4855_v63 = vld [vmem:[#allocation2 + $0x60] sm:$0xe]  ;;  %v5793_v34 = vrot.slane %v5791_v41, 5  ;;  %v4109_v9 = vrot.slane %v4107_v57, 4  ;;  %v4120_v56 = vshrl.u32 %v3864_v45, 16  ;;  %v4126_v18 = vshll.u32 %v3865_v35, 16 }
 0x32a   :  { %v4856_v14 = vld [vmem:[#allocation2 + $0x64] sm:$0xf]  ;;  %v5788_v17 = vor.u32 %v5787_v2, %v5783_v23  ;;  %v4112_v25 = vrot.slane %v4110_v1, 5  ;;  %v4118_v21 = vrot.slane %v4116_v15, 5  ;;  %v4857_v5 = vld [vmem:[#allocation2 + $0x68] sm:$0x1]  ;;  %v9898_v45 = vpop.f32.mrf.mxu0 }
 0x32b   :  { %17051 = vst [vmem:[#allocation115_spill] sm:$0xff] %v15271_v48  ;;  %v13076_v37 = vld [vmem:[#allocation4 + $0x1cc] ss:$36 sps:$4 sm:$0xff]   ;;  %v5779_v10 = vrot.slane %v5778_v16, 4  ;;  %v11963_v27 = vrot.slane %v4855_v63, 9  ;;  %v4122_v41 = vrot.slane %v4120_v56, 4 }
 0x32c   :  { %v13074_v61 = vld [vmem:[#allocation4 + $0x1c8] ss:$36 sps:$4 sm:$0xff]   ;;  %v5789_v38 = vrot.slane %v5788_v17, 4  ;;  %v4113_v12 = vor.u32 %v4112_v25, %v4109_v9  ;;  %10365 = vmatprep.mubr.bf16.mxu0 %v13076_v37  ;;  %v5077_v2 = vrot.slane %v4856_v14, 5  ;;  %v5080_v1 = vrot.slane %v4857_v5, 5  ;;  %v15277_v25 = vpop.f32.mrf.mxu1 }
 0x32d   :  { %v5395_v54 = vld [vmem:[#allocation2 + $0x78] sm:$0xf]  ;;  %v5784_v57 = vsel %vm13579_vm9, %v5779_v10, %v5783_v23  ;;  %v5396_v35 = vld [vmem:[#allocation2 + $0x7c] sm:$0xf]  ;;  %10366 = vmatmul.mubr.bf16.gmra.mxu0 %v13074_v61  ;;  %v4123_v16 = vor.u32 %v4122_v41, %v4118_v21  ;;  %v4128_v17 = vrot.slane %v4126_v18, 5  ;;  %17052 = vst [vmem:[#allocation116_spill] sm:$0xff] %v15277_v25 }
 0x32e   :  { %5459 = vst [vmem:[#allocation4 + $0x258] sm:$0xf] %v5395_v54  ;;  %v5794_v15 = vsel %vm13579_vm9, %v5789_v38, %v5793_v34  ;;  %6449 = vst [vmem:[#allocation4 + $0x214] sm:$0xf] %v5784_v57  ;;  %v4114_v63 = vrot.slane %v4113_v12, 4  ;;  %v5078_v23 = vsel %vm13597_vm10, %v11963_v27, %v5077_v2  ;;  %v5079_v14 = vrot.slane %v5077_v2, 4  ;;  %v9606_v38 = vpop.f32.mrf.mxu1 }
 0x32f   :  { %5460 = vst [vmem:[#allocation4 + $0x27c] sm:$0xf] %v5396_v35  ;;  %v5531_v9 = vld [vmem:[#allocation2 + $0x78] sm:$0xf]  ;;  %v5532_v56 = vld [vmem:[#allocation2 + $0x7c] sm:$0xf] }
 0x330   :  { %v13077_v37 = vld [vmem:[#allocation4 + $0x1c0] ss:$36 sps:$4 sm:$0xff]   ;;  %6450 = vst [vmem:[#allocation4 + $0x238] sm:$0xf] %v5794_v15  ;;  %v4119_v61 = vsel %vm13579_vm9, %v4114_v63, %v4118_v21  ;;  %v4124_v34 = vrot.slane %v4123_v16, 4  ;;  %v5796_v10 = vshrl.u32 %v5531_v9, 16  ;;  %v5081_v12 = vsel %vm13597_vm10, %v5079_v14, %v5080_v1  ;;  %v15287_v63 = vpop.f32.mrf.mxu1  ;;  %v15289_v16 = vpop.f32.mrf.mxu0 }
 0x331   :  { %v13079_v40 = vld [vmem:[#allocation4 + $0x1c4] ss:$36 sps:$4 sm:$0xff]   ;;  %5328 = vst [vmem:[#allocation4 + $0x20c] sm:$0xf] %v5078_v23  ;;  %v5533_v5 = vld [vmem:[#allocation2 + $0x80] sm:$0x1] }
 0x332   :  { %v5799_v18 = vshll.u32 %v5531_v9, 16  ;;  %10076 = vmatprep.mubr.bf16.mxu1 %v13079_v40  ;;  %4784 = vst [vmem:[#allocation4 + $0x208] sm:$0xf] %v4119_v61  ;;  %v5805_v41 = vshll.u32 %v5532_v56, 16  ;;  %v5809_v54 = vshrl.u32 %v5532_v56, 16  ;;  %v5815_v45 = vshll.u32 %v5533_v5, 16 }
 0x333   :  { %v3866_v57 = vld [vmem:[#allocation2 + $0x6c] sm:$0xf]  ;;  %10077 = vmatmul.mubr.bf16.gmra.mxu1 %v13077_v37  ;;  %v4129_v27 = vsel %vm13579_vm9, %v4124_v34, %v4128_v17  ;;  %5329 = vst [vmem:[#allocation4 + $0x230] sm:$0xf] %v5081_v12  ;;  %v5798_v21 = vrot.slane %v5796_v10, 4  ;;  %17053 = vst [vmem:[#allocation117_spill] sm:$0xff] %v15287_v63  ;;  %v9609_v34 = vpop.f32.mrf.mxu1  ;;  %v9903_v10 = vpop.f32.mrf.mxu0 }
 0x334   :  { %v5801_v2 = vrot.slane %v5799_v18, 5  ;;  %v3867_v35 = vld [vmem:[#allocation2 + $0x70] sm:$0xf]  ;;  %v3868_v15 = vld [vmem:[#allocation2 + $0x74] sm:$0x1]  ;;  %17054 = vst [vmem:[#allocation118_spill] sm:$0xff] %v15289_v16 }
 0x335   :  { %4785 = vst [vmem:[#allocation4 + $0x22c] sm:$0xf] %v4129_v27  ;;  %v5807_v9 = vrot.slane %v5805_v41, 5  ;;  %v5811_v1 = vrot.slane %v5809_v54, 4  ;;  %v5817_v40 = vrot.slane %v5815_v45, 5  ;;  %v4131_v56 = vshrl.u32 %v3866_v57, 16  ;;  %v15291_v41 = vpop.f32.mrf.mxu0 }
 0x336   :  { %v4858_v23 = vld [vmem:[#allocation2 + $0x6c] sm:$0xe]  ;;  %v5802_v14 = vor.u32 %v5801_v2, %v5798_v21  ;;  %v4134_v37 = vshll.u32 %v3866_v57, 16  ;;  %v4140_v61 = vshll.u32 %v3867_v35, 16  ;;  %v4144_v5 = vshrl.u32 %v3867_v35, 16  ;;  %17055 = vst [vmem:[#allocation119_spill] sm:$0xff] %v15291_v41 }
 0x337   :  { %v4859_v17 = vld [vmem:[#allocation2 + $0x70] sm:$0xf]  ;;  %v5812_v18 = vor.u32 %v5811_v1, %v5807_v9  ;;  %v4133_v38 = vrot.slane %v4131_v56, 4  ;;  %v4150_v12 = vshll.u32 %v3868_v15, 16  ;;  %v4860_v48 = vld [vmem:[#allocation2 + $0x74] sm:$0x1] }
 0x338   :  { %v11964_v63 = vrot.slane %v4858_v23, 9  ;;  %v13080_v25 = vld [vmem:[#allocation4 + $0x210] ss:$36 sps:$4 sm:$0xff]   ;;  %v5803_v27 = vrot.slane %v5802_v14, 4  ;;  %v4136_v45 = vrot.slane %v4134_v37, 5  ;;  %v4142_v46 = vrot.slane %v4140_v61, 5  ;;  %v9906_v23 = vpop.f32.mrf.mxu0 }
 0x339   :  { %v13082_v16 = vld [vmem:[#allocation4 + $0x214] ss:$36 sps:$4 sm:$0xff]   ;;  %v5813_v54 = vrot.slane %v5812_v18, 4  ;;  %v4146_v21 = vrot.slane %v4144_v5, 4  ;;  %v4152_v35 = vrot.slane %v4150_v12, 5  ;;  %v5084_v1 = vrot.slane %v4859_v17, 5 }
 0x33a   :  { %v5397_v57 = vld [vmem:[#allocation2 + $0x84] sm:$0xf]  ;;  %10373 = vmatprep.mubr.bf16.mxu0 %v13082_v16  ;;  %v5808_v2 = vsel %vm13579_vm9, %v5803_v27, %v5807_v9  ;;  %v5087_v56 = vrot.slane %v4860_v48, 5  ;;  %v5398_v15 = vld [vmem:[#allocation2 + $0x88] sm:$0xf]  ;;  %v4137_v34 = vor.u32 %v4136_v45, %v4133_v38 }
 0x33b   :  { %5461 = vst [vmem:[#allocation4 + $0x2a0] sm:$0xf] %v5397_v57  ;;  %10374 = vmatmul.mubr.bf16.gmra.mxu0 %v13080_v25  ;;  %v5818_v14 = vsel %vm13579_vm9, %v5813_v54, %v5817_v40  ;;  %6451 = vst [vmem:[#allocation4 + $0x25c] sm:$0xf] %v5808_v2  ;;  %v4147_v37 = vor.u32 %v4146_v21, %v4142_v46  ;;  %v5534_v61 = vld [vmem:[#allocation2 + $0x84] sm:$0xf]  ;;  %v5085_v48 = vsel %vm13597_vm10, %v11964_v63, %v5084_v1  ;;  %v15299_v54 = vpop.f32.mrf.mxu1 }
 0x33c   :  { %5462 = vst [vmem:[#allocation4 + $0x2c4] sm:$0xf] %v5398_v15  ;;  %v5535_v5 = vld [vmem:[#allocation2 + $0x88] sm:$0xf]  ;;  %v5536_v16 = vld [vmem:[#allocation2 + $0x8c] sm:$0x1]  ;;  %v15303_v15 = vpop.f32.mrf.mxu0 }
 0x33d   :  { %v13083_v10 = vld [vmem:[#allocation4 + $0x208] ss:$36 sps:$4 sm:$0xff]   ;;  %6452 = vst [vmem:[#allocation4 + $0x280] sm:$0xf] %v5818_v14  ;;  %v5086_v9 = vrot.slane %v5084_v1, 4  ;;  %v4138_v17 = vrot.slane %v4137_v34, 4 }
 0x33e   :  { %v13085_v18 = vld [vmem:[#allocation4 + $0x20c] ss:$36 sps:$4 sm:$0xff]   ;;  %v4148_v12 = vrot.slane %v4147_v37, 4  ;;  %5330 = vst [vmem:[#allocation4 + $0x254] sm:$0xf] %v5085_v48  ;;  %v5820_v25 = vshrl.u32 %v5534_v61, 16 }
 0x33f   :  { %v5823_v27 = vshll.u32 %v5534_v61, 16  ;;  %v3869_v40 = vld [vmem:[#allocation2 + $0x78] sm:$0xf]  ;;  %17056 = vst [vmem:[#allocation120_spill] sm:$0xff] %v15299_v54  ;;  %10084 = vmatprep.mubr.bf16.mxu1 %v13085_v18  ;;  %v5088_v38 = vsel %vm13597_vm10, %v5086_v9, %v5087_v56  ;;  %v5829_v45 = vshll.u32 %v5535_v5, 16  ;;  %v5833_v21 = vshrl.u32 %v5535_v5, 16  ;;  %v9614_v61 = vpop.f32.mrf.mxu1 }
 0x340   :  { %v5839_v57 = vshll.u32 %v5536_v16, 16  ;;  %v3870_v2 = vld [vmem:[#allocation2 + $0x7c] sm:$0xf]  ;;  %17057 = vst [vmem:[#allocation121_spill] sm:$0xff] %v15303_v15  ;;  %10085 = vmatmul.mubr.bf16.gmra.mxu1 %v13083_v10  ;;  %v4143_v63 = vsel %vm13579_vm9, %v4138_v17, %v4142_v46  ;;  %v4153_v1 = vsel %vm13579_vm9, %v4148_v12, %v4152_v35  ;;  %5331 = vst [vmem:[#allocation4 + $0x278] sm:$0xf] %v5088_v38  ;;  %v9911_v10 = vpop.f32.mrf.mxu0 }
 0x341   :  { %v5822_v23 = vrot.slane %v5820_v25, 4  ;;  %v5825_v14 = vrot.slane %v5823_v27, 5  ;;  %v3871_v34 = vld [vmem:[#allocation2 + $0x80] sm:$0x1]  ;;  %v4861_v37 = vld [vmem:[#allocation2 + $0x78] sm:$0xe]  ;;  %v15309_v35 = vpop.f32.mrf.mxu1 }
 0x342   :  { %4786 = vst [vmem:[#allocation4 + $0x250] sm:$0xf] %v4143_v63  ;;  %4787 = vst [vmem:[#allocation4 + $0x274] sm:$0xf] %v4153_v1  ;;  %v5831_v56 = vrot.slane %v5829_v45, 5  ;;  %v5835_v5 = vrot.slane %v5833_v21, 4  ;;  %v15311_v63 = vpop.f32.mrf.mxu0 }
 0x343   :  { %v5841_v16 = vrot.slane %v5839_v57, 5  ;;  %v4155_v18 = vshrl.u32 %v3869_v40, 16  ;;  %v4862_v48 = vld [vmem:[#allocation2 + $0x7c] sm:$0xf]  ;;  %v5826_v9 = vor.u32 %v5825_v14, %v5822_v23  ;;  %v4158_v15 = vshll.u32 %v3869_v40, 16  ;;  %17058 = vst [vmem:[#allocation122_spill] sm:$0xff] %v15309_v35  ;;  %v9617_v1 = vpop.f32.mrf.mxu1 }
 0x344   :  { %v4164_v46 = vshll.u32 %v3870_v2, 16  ;;  %v4168_v17 = vshrl.u32 %v3870_v2, 16  ;;  %v4863_v41 = vld [vmem:[#allocation2 + $0x80] sm:$0x1]  ;;  %v5836_v12 = vor.u32 %v5835_v5, %v5831_v56  ;;  %v4174_v27 = vshll.u32 %v3871_v34, 16  ;;  %17059 = vst [vmem:[#allocation123_spill] sm:$0xff] %v15311_v63  ;;  %v9914_v54 = vpop.f32.mrf.mxu0 }
 0x345   :  { %v4157_v25 = vrot.slane %v4155_v18, 4  ;;  %v11965_v38 = vrot.slane %v4861_v37, 9  ;;  %v5399_v61 = vld [vmem:[#allocation2 + $0x90] sm:$0xf]  ;;  %v13086_v45 = vld [vmem:[#allocation4 + $0x258] ss:$36 sps:$4 sm:$0xff]   ;;  %v15317_v54 = vpop.f32.mrf.mxu1 }
 0x346   :  { %v13088_v21 = vld [vmem:[#allocation4 + $0x25c] ss:$36 sps:$4 sm:$0xff]   ;;  %v5827_v57 = vrot.slane %v5826_v9, 4  ;;  %5463 = vst [vmem:[#allocation4 + $0x2e8] sm:$0xf] %v5399_v61  ;;  %v5837_v10 = vrot.slane %v5836_v12, 4 }
 0x347   :  { %v4160_v23 = vrot.slane %v4158_v15, 5  ;;  %v4166_v40 = vrot.slane %v4164_v46, 5  ;;  %v4170_v14 = vrot.slane %v4168_v17, 4  ;;  %v5400_v2 = vld [vmem:[#allocation2 + $0x94] sm:$0xf]  ;;  %10381 = vmatprep.mubr.bf16.mxu0 %v13088_v21  ;;  %v4176_v34 = vrot.slane %v4174_v27, 5 }
 0x348   :  { %v5832_v5 = vsel %vm13579_vm9, %v5827_v57, %v5831_v56  ;;  %v5091_v37 = vrot.slane %v4862_v48, 5  ;;  %v5094_v18 = vrot.slane %v4863_v41, 5  ;;  %5464 = vst [vmem:[#allocation4 + $0x30c] sm:$0xf] %v5400_v2  ;;  %v5537_v63 = vld [vmem:[#allocation2 + $0x90] sm:$0xf]  ;;  %10382 = vmatmul.mubr.bf16.gmra.mxu0 %v13086_v45  ;;  %v5842_v9 = vsel %vm13579_vm9, %v5837_v10, %v5841_v16 }
 0x349   :  { %6453 = vst [vmem:[#allocation4 + $0x2a4] sm:$0xf] %v5832_v5  ;;  %v4161_v12 = vor.u32 %v4160_v23, %v4157_v25  ;;  %v4171_v15 = vor.u32 %v4170_v14, %v4166_v40  ;;  %v5538_v46 = vld [vmem:[#allocation2 + $0x94] sm:$0xf]  ;;  %v5539_v17 = vld [vmem:[#allocation2 + $0x98] sm:$0x1]  ;;  %v9622_v25 = vpop.f32.mrf.mxu1 }
 0x34a   :  { %v5844_v61 = vshrl.u32 %v5537_v63, 16  ;;  %17060 = vst [vmem:[#allocation124_spill] sm:$0xff] %v15317_v54  ;;  %v13089_v21 = vld [vmem:[#allocation4 + $0x250] ss:$36 sps:$4 sm:$0xff]   ;;  %6454 = vst [vmem:[#allocation4 + $0x2c8] sm:$0xf] %v5842_v9  ;;  %v5092_v56 = vsel %vm13597_vm10, %v11965_v38, %v5091_v37 }
 0x34b   :  { %v5093_v41 = vrot.slane %v5091_v37, 4  ;;  %v5847_v48 = vshll.u32 %v5537_v63, 16  ;;  %v13091_v27 = vld [vmem:[#allocation4 + $0x254] ss:$36 sps:$4 sm:$0xff]   ;;  %v4162_v45 = vrot.slane %v4161_v12, 4  ;;  %v4172_v57 = vrot.slane %v4171_v15, 4 }
 0x34c   :  { %5332 = vst [vmem:[#allocation4 + $0x29c] sm:$0xf] %v5092_v56  ;;  %v5846_v16 = vrot.slane %v5844_v61, 4  ;;  %v5853_v1 = vshll.u32 %v5538_v46, 16  ;;  %v5857_v14 = vshrl.u32 %v5538_v46, 16  ;;  %v5863_v2 = vshll.u32 %v5539_v17, 16  ;;  %10092 = vmatprep.mubr.bf16.mxu1 %v13091_v27  ;;  %v15327_v61 = vpop.f32.mrf.mxu1  ;;  %v15329_v56 = vpop.f32.mrf.mxu0 }
 0x34d   :  { %v5095_v10 = vsel %vm13597_vm10, %v5093_v41, %v5094_v18  ;;  %v5849_v23 = vrot.slane %v5847_v48, 5  ;;  %v3872_v5 = vld [vmem:[#allocation2 + $0x84] sm:$0xf]  ;;  %v4167_v38 = vsel %vm13579_vm9, %v4162_v45, %v4166_v40  ;;  %v4177_v63 = vsel %vm13579_vm9, %v4172_v57, %v4176_v34  ;;  %v3873_v9 = vld [vmem:[#allocation2 + $0x88] sm:$0xf]  ;;  %17061 = vst [vmem:[#allocation125_spill] sm:$0xff] %v15327_v61  ;;  %10093 = vmatmul.mubr.bf16.gmra.mxu1 %v13089_v21 }
 0x34e   :  { %5333 = vst [vmem:[#allocation4 + $0x2c0] sm:$0xf] %v5095_v10  ;;  %v5855_v37 = vrot.slane %v5853_v1, 5  ;;  %v3874_v12 = vld [vmem:[#allocation2 + $0x8c] sm:$0x1]  ;;  %v4179_v15 = vshrl.u32 %v3872_v5, 16  ;;  %v9625_v1 = vpop.f32.mrf.mxu1  ;;  %v9919_v25 = vpop.f32.mrf.mxu0 }
 0x34f   :  { %17062 = vst [vmem:[#allocation126_spill] sm:$0xff] %v15329_v56  ;;  %4788 = vst [vmem:[#allocation4 + $0x298] sm:$0xf] %v4167_v38  ;;  %v5850_v18 = vor.u32 %v5849_v23, %v5846_v16  ;;  %v5859_v46 = vrot.slane %v5857_v14, 4  ;;  %v5865_v17 = vrot.slane %v5863_v2, 5  ;;  %v4182_v41 = vshll.u32 %v3872_v5, 16 }
 0x350   :  { %4789 = vst [vmem:[#allocation4 + $0x2bc] sm:$0xf] %v4177_v63  ;;  %v4864_v40 = vld [vmem:[#allocation2 + $0x84] sm:$0xe]  ;;  %v4181_v48 = vrot.slane %v4179_v15, 4  ;;  %v4188_v27 = vshll.u32 %v3873_v9, 16  ;;  %v15331_v16 = vpop.f32.mrf.mxu0 }
 0x351   :  { %v4192_v34 = vshrl.u32 %v3873_v9, 16  ;;  %v4198_v45 = vshll.u32 %v3874_v12, 16  ;;  %v4865_v57 = vld [vmem:[#allocation2 + $0x88] sm:$0xf]  ;;  %v5851_v10 = vrot.slane %v5850_v18, 4  ;;  %v5860_v54 = vor.u32 %v5859_v46, %v5855_v37  ;;  %17063 = vst [vmem:[#allocation127_spill] sm:$0xff] %v15331_v16 }
 0x352   :  { %v4184_v61 = vrot.slane %v4182_v41, 5  ;;  %v4866_v35 = vld [vmem:[#allocation2 + $0x8c] sm:$0x1]  ;;  %v11966_v56 = vrot.slane %v4864_v40, 9  ;;  %v13093_v21 = vld [vmem:[#allocation4 + $0x2a0] ss:$36 sps:$4 sm:$0xff]   ;;  %v9922_v40 = vpop.f32.mrf.mxu0 }
 0x353   :  { %v13095_v38 = vld [vmem:[#allocation4 + $0x2a4] ss:$36 sps:$4 sm:$0xff]   ;;  %v4190_v63 = vrot.slane %v4188_v27, 5  ;;  %v5856_v23 = vsel %vm13579_vm9, %v5851_v10, %v5855_v37  ;;  %v5861_v14 = vrot.slane %v5860_v54, 4  ;;  %v4194_v5 = vrot.slane %v4192_v34, 4 }
 0x354   :  { %v4185_v2 = vor.u32 %v4184_v61, %v4181_v48  ;;  %v5401_v9 = vld [vmem:[#allocation2 + $0x9c] sm:$0xf]  ;;  %v5402_v12 = vld [vmem:[#allocation2 + $0xa0] sm:$0xf]  ;;  %10389 = vmatprep.mubr.bf16.mxu0 %v13095_v38  ;;  %6455 = vst [vmem:[#allocation4 + $0x2ec] sm:$0xf] %v5856_v23 }
 0x355   :  { %v4200_v15 = vrot.slane %v4198_v45, 5  ;;  %v5098_v18 = vrot.slane %v4865_v57, 5  ;;  %v5101_v46 = vrot.slane %v4866_v35, 5  ;;  %5465 = vst [vmem:[#allocation4 + $0x330] sm:$0xf] %v5401_v9  ;;  %v13167_v27 = vld [vmem:[%s16842_s3 + $0x210] sm:$0xff]   ;;  %10390 = vmatmul.mubr.bf16.gmra.mxu0 %v13093_v21  ;;  %v5866_v54 = vsel %vm13579_vm9, %v5861_v14, %v5865_v17 }
 0x356   :  { %5466 = vst [vmem:[#allocation4 + $0x354] sm:$0xf] %v5402_v12  ;;  %v5540_v41 = vld [vmem:[#allocation2 + $0x9c] sm:$0xf]  ;;  %v4186_v37 = vrot.slane %v4185_v2, 4  ;;  %v4195_v61 = vor.u32 %v4194_v5, %v4190_v63  ;;  %12679 = vmatprep.subr.bf16.mxu1 %v13167_v27 }
 0x357   :  { %v5541_v48 = vld [vmem:[#allocation2 + $0xa0] sm:$0xf]  ;;  %v5542_v34 = vld [vmem:[#allocation2 + $0xa4] sm:$0x1]  ;;  %v5868_v1 = vshrl.u32 %v5540_v41, 16  ;;  %v5099_v35 = vsel %vm13597_vm10, %v11966_v56, %v5098_v18  ;;  %v5100_v57 = vrot.slane %v5098_v18, 4  ;;  %12680 = vmatpush3.bf16.msra.mxu1 %v13167_v27 }
 0x358   :  { %v13096_v45 = vld [vmem:[#allocation4 + $0x298] ss:$36 sps:$4 sm:$0xff]   ;;  %6456 = vst [vmem:[#allocation4 + $0x310] sm:$0xf] %v5866_v54  ;;  %v5871_v25 = vshll.u32 %v5540_v41, 16  ;;  %v4191_v21 = vsel %vm13579_vm9, %v4186_v37, %v4190_v63  ;;  %v4196_v38 = vrot.slane %v4195_v61, 4 }
 0x359   :  { %v13098_v10 = vld [vmem:[#allocation4 + $0x29c] ss:$36 sps:$4 sm:$0xff]   ;;  %5334 = vst [vmem:[#allocation4 + $0x2e4] sm:$0xf] %v5099_v35  ;;  %v5870_v17 = vrot.slane %v5868_v1, 4  ;;  %v5877_v23 = vshll.u32 %v5541_v48, 16  ;;  %v5102_v14 = vsel %vm13597_vm10, %v5100_v57, %v5101_v46  ;;  %v15348_v1 = vpop.f32.mrf.mxu0 }
 0x35a   :  { %4790 = vst [vmem:[#allocation4 + $0x2e0] sm:$0xf] %v4191_v21  ;;  %v5873_v2 = vrot.slane %v5871_v25, 5  ;;  %v5881_v5 = vshrl.u32 %v5541_v48, 16  ;;  %v5887_v9 = vshll.u32 %v5542_v34, 16  ;;  %10100 = vmatprep.mubr.bf16.mxu1 %v13098_v10  ;;  %v4201_v12 = vsel %vm13579_vm9, %v4196_v38, %v4200_v15  ;;  %17064 = vst [vmem:[#allocation128_spill] sm:$0xff] %v15348_v1  ;;  %v15350_v25 = vpop.f32.mrf.mxu1 }
 0x35b   :  { %v3875_v56 = vld [vmem:[#allocation2 + $0x90] sm:$0xf]  ;;  %5335 = vst [vmem:[#allocation4 + $0x308] sm:$0xf] %v5102_v14  ;;  %v5879_v18 = vrot.slane %v5877_v23, 5  ;;  %10101 = vmatmul.mubr.bf16.gmra.mxu1 %v13096_v45  ;;  %17065 = vst [vmem:[#allocation129_spill] sm:$0xff] %v15350_v25  ;;  %v9927_v45 = vpop.f32.mrf.mxu0 }
 0x35c   :  { %v3876_v63 = vld [vmem:[#allocation2 + $0x94] sm:$0xf]  ;;  %v3877_v41 = vld [vmem:[#allocation2 + $0x98] sm:$0x1]  ;;  %v4203_v40 = vshrl.u32 %v3875_v56, 16  ;;  %v5874_v27 = vor.u32 %v5873_v2, %v5870_v17  ;;  %v5883_v54 = vrot.slane %v5881_v5, 4  ;;  %v9630_v5 = vpop.f32.mrf.mxu1 }
 0x35d   :  { %4791 = vst [vmem:[#allocation4 + $0x304] sm:$0xf] %v4201_v12  ;;  %v5889_v37 = vrot.slane %v5887_v9, 5  ;;  %v4206_v61 = vshll.u32 %v3875_v56, 16  ;;  %v4867_v46 = vld [vmem:[#allocation2 + $0x90] sm:$0xe]  ;;  %v15354_v1 = vpop.f32.mrf.mxu0 }
 0x35e   :  { %v4205_v48 = vrot.slane %v4203_v40, 4  ;;  %v4212_v34 = vshll.u32 %v3876_v63, 16  ;;  %v4216_v35 = vshrl.u32 %v3876_v63, 16  ;;  %v4222_v57 = vshll.u32 %v3877_v41, 16  ;;  %v4868_v38 = vld [vmem:[#allocation2 + $0x94] sm:$0xf]  ;;  %v15356_v45 = vpop.f32.mrf.mxu1 }
 0x35f   :  { %v5875_v15 = vrot.slane %v5874_v27, 4  ;;  %v5884_v10 = vor.u32 %v5883_v54, %v5879_v18  ;;  %v4208_v21 = vrot.slane %v4206_v61, 5  ;;  %v4869_v23 = vld [vmem:[#allocation2 + $0x98] sm:$0x1]  ;;  %v13101_v17 = vld [vmem:[#allocation4 + $0x2ec] ss:$36 sps:$4 sm:$0xff]  }
 0x360   :  { %v13099_v14 = vld [vmem:[#allocation4 + $0x2e8] ss:$36 sps:$4 sm:$0xff]   ;;  %v4214_v2 = vrot.slane %v4212_v34, 5  ;;  %v4218_v40 = vrot.slane %v4216_v35, 4  ;;  %v5403_v63 = vld [vmem:[#allocation2 + $0xa8] sm:$0xf]  ;;  %10397 = vmatprep.mubr.bf16.mxu0 %v13101_v17 }
 0x361   :  { %v5880_v9 = vsel %vm13579_vm9, %v5875_v15, %v5879_v18  ;;  %v5885_v56 = vrot.slane %v5884_v10, 4  ;;  %v4209_v12 = vor.u32 %v4208_v21, %v4205_v48  ;;  %v5404_v41 = vld [vmem:[#allocation2 + $0xac] sm:$0xf]  ;;  %17066 = vst [vmem:[#allocation130_spill] sm:$0xff] %v15354_v1  ;;  %v11967_v27 = vrot.slane %v4867_v46, 9  ;;  %17067 = vst [vmem:[#allocation131_spill] sm:$0xff] %v15356_v45  ;;  %10398 = vmatmul.mubr.bf16.gmra.mxu0 %v13099_v14  ;;  %v9930_v21 = vpop.f32.mrf.mxu0 }
 0x362   :  { %6457 = vst [vmem:[#allocation4 + $0x334] sm:$0xf] %v5880_v9  ;;  %v5105_v54 = vrot.slane %v4868_v38, 5  ;;  %v5108_v61 = vrot.slane %v4869_v23, 5  ;;  %5467 = vst [vmem:[#allocation4 + $0x378] sm:$0xf] %v5403_v63  ;;  %v4219_v48 = vor.u32 %v4218_v40, %v4214_v2  ;;  %v9633_v23 = vpop.f32.mrf.mxu1 }
 0x363   :  { %5468 = vst [vmem:[#allocation4 + $0x39c] sm:$0xf] %v5404_v41  ;;  %v5890_v18 = vsel %vm13579_vm9, %v5885_v56, %v5889_v37  ;;  %v4210_v34 = vrot.slane %v4209_v12, 4  ;;  %v4224_v35 = vrot.slane %v4222_v57, 5  ;;  %v5543_v15 = vld [vmem:[#allocation2 + $0xa8] sm:$0xf] }
 0x364   :  { %v5544_v10 = vld [vmem:[#allocation2 + $0xac] sm:$0xf]  ;;  %v13102_v5 = vld [vmem:[#allocation4 + $0x2e0] ss:$36 sps:$4 sm:$0xff]   ;;  %6458 = vst [vmem:[#allocation4 + $0x358] sm:$0xf] %v5890_v18  ;;  %v5106_v46 = vsel %vm13597_vm10, %v11967_v27, %v5105_v54  ;;  %v15366_v27 = vpop.f32.mrf.mxu1 }
 0x365   :  { %v13104_v17 = vld [vmem:[#allocation4 + $0x2e4] ss:$36 sps:$4 sm:$0xff]   ;;  %v5107_v38 = vrot.slane %v5105_v54, 4  ;;  %v4215_v14 = vsel %vm13579_vm9, %v4210_v34, %v4214_v2  ;;  %v4220_v9 = vrot.slane %v4219_v48, 4  ;;  %5336 = vst [vmem:[#allocation4 + $0x32c] sm:$0xf] %v5106_v46 }
 0x366   :  { %v5545_v37 = vld [vmem:[#allocation2 + $0xb0] sm:$0x1]  ;;  %v5892_v56 = vshrl.u32 %v5543_v15, 16  ;;  %v5895_v12 = vshll.u32 %v5543_v15, 16  ;;  %10108 = vmatprep.mubr.bf16.mxu1 %v13104_v17  ;;  %4792 = vst [vmem:[#allocation4 + $0x328] sm:$0xf] %v4215_v14 }
 0x367   :  { %v5109_v57 = vsel %vm13597_vm10, %v5107_v38, %v5108_v61  ;;  %v5901_v40 = vshll.u32 %v5544_v10, 16  ;;  %v5905_v63 = vshrl.u32 %v5544_v10, 16  ;;  %v5911_v41 = vshll.u32 %v5545_v37, 16  ;;  %v3878_v18 = vld [vmem:[#allocation2 + $0x9c] sm:$0xf]  ;;  %17068 = vst [vmem:[#allocation132_spill] sm:$0xff] %v15366_v27  ;;  %10109 = vmatmul.mubr.bf16.gmra.mxu1 %v13102_v5  ;;  %v9638_v10 = vpop.f32.mrf.mxu1  ;;  %v15370_v27 = vpop.f32.mrf.mxu0 }
 0x368   :  { %v4225_v2 = vsel %vm13579_vm9, %v4220_v9, %v4224_v35  ;;  %5337 = vst [vmem:[#allocation4 + $0x350] sm:$0xf] %v5109_v57  ;;  %v5894_v54 = vrot.slane %v5892_v56, 4  ;;  %v5897_v34 = vrot.slane %v5895_v12, 5  ;;  %v3879_v48 = vld [vmem:[#allocation2 + $0xa0] sm:$0xf] }
 0x369   :  { %v3880_v15 = vld [vmem:[#allocation2 + $0xa4] sm:$0x1]  ;;  %4793 = vst [vmem:[#allocation4 + $0x34c] sm:$0xf] %v4225_v2  ;;  %v5903_v21 = vrot.slane %v5901_v40, 5  ;;  %v5907_v17 = vrot.slane %v5905_v63, 4  ;;  %v15372_v16 = vpop.f32.mrf.mxu1  ;;  %v9935_v2 = vpop.f32.mrf.mxu0 }
 0x36a   :  { %v5913_v46 = vrot.slane %v5911_v41, 5  ;;  %v4227_v61 = vshrl.u32 %v3878_v18, 16  ;;  %v4870_v38 = vld [vmem:[#allocation2 + $0x9c] sm:$0xe]  ;;  %v5898_v23 = vor.u32 %v5897_v34, %v5894_v54  ;;  %v4230_v14 = vshll.u32 %v3878_v18, 16  ;;  %17069 = vst [vmem:[#allocation133_spill] sm:$0xff] %v15370_v27 }
 0x36b   :  { %v4236_v37 = vshll.u32 %v3879_v48, 16  ;;  %v4240_v1 = vshrl.u32 %v3879_v48, 16  ;;  %v4871_v5 = vld [vmem:[#allocation2 + $0xa0] sm:$0xf]  ;;  %v5908_v35 = vor.u32 %v5907_v17, %v5903_v21  ;;  %v4246_v56 = vshll.u32 %v3880_v15, 16  ;;  %17070 = vst [vmem:[#allocation134_spill] sm:$0xff] %v15372_v16  ;;  %v9641_v48 = vpop.f32.mrf.mxu1  ;;  %v15376_v16 = vpop.f32.mrf.mxu0 }
 0x36c   :  { %v4229_v9 = vrot.slane %v4227_v61, 4  ;;  %v4872_v12 = vld [vmem:[#allocation2 + $0xa4] sm:$0x1]  ;;  %v11968_v57 = vrot.slane %v4870_v38, 9  ;;  %v5899_v41 = vrot.slane %v5898_v23, 4  ;;  %v4232_v10 = vrot.slane %v4230_v14, 5 }
 0x36d   :  { %v13105_v40 = vld [vmem:[#allocation4 + $0x330] ss:$36 sps:$4 sm:$0xff]   ;;  %v5909_v45 = vrot.slane %v5908_v35, 4  ;;  %v4238_v54 = vrot.slane %v4236_v37, 5  ;;  %v4242_v18 = vrot.slane %v4240_v1, 4  ;;  %v4248_v61 = vrot.slane %v4246_v56, 5 }
 0x36e   :  { %v13107_v63 = vld [vmem:[#allocation4 + $0x334] ss:$36 sps:$4 sm:$0xff]   ;;  %v5405_v34 = vld [vmem:[#allocation2 + $0xb4] sm:$0xf]  ;;  %v5904_v17 = vsel %vm13579_vm9, %v5899_v41, %v5903_v21  ;;  %v5112_v15 = vrot.slane %v4871_v5, 5  ;;  %v5115_v27 = vrot.slane %v4872_v12, 5  ;;  %v4233_v14 = vor.u32 %v4232_v10, %v4229_v9  ;;  %v9938_v12 = vpop.f32.mrf.mxu0 }
 0x36f   :  { %10405 = vmatprep.mubr.bf16.mxu0 %v13107_v63  ;;  %v5406_v38 = vld [vmem:[#allocation2 + $0xb8] sm:$0xf]  ;;  %5469 = vst [vmem:[#allocation4 + $0x3c0] sm:$0xf] %v5405_v34  ;;  %17071 = vst [vmem:[#allocation135_spill] sm:$0xff] %v15376_v16  ;;  %v5914_v23 = vsel %vm13579_vm9, %v5909_v45, %v5913_v46  ;;  %v4243_v1 = vor.u32 %v4242_v18, %v4238_v54  ;;  %v15390_v16 = vpop.f32.mrf.mxu1 }
 0x370   :  { %10406 = vmatmul.mubr.bf16.gmra.mxu0 %v13105_v40  ;;  %6459 = vst [vmem:[#allocation4 + $0x37c] sm:$0xf] %v5904_v17  ;;  %5470 = vst [vmem:[#allocation4 + $0x3e4] sm:$0xf] %v5406_v38  ;;  %v5546_v37 = vld [vmem:[#allocation2 + $0xb4] sm:$0xf]  ;;  %v5113_v5 = vsel %vm13597_vm10, %v11968_v57, %v5112_v15 }
 0x371   :  { %v5547_v35 = vld [vmem:[#allocation2 + $0xb8] sm:$0xf]  ;;  %v5548_v63 = vld [vmem:[#allocation2 + $0xbc] sm:$0x1]  ;;  %6460 = vst [vmem:[#allocation4 + $0x3a0] sm:$0xf] %v5914_v23  ;;  %v9646_v25 = vpop.f32.mrf.mxu1 }
 0x372   :  { %v13108_v2 = vld [vmem:[#allocation4 + $0x328] ss:$36 sps:$4 sm:$0xff]   ;;  %v5114_v56 = vrot.slane %v5112_v15, 4  ;;  %v4234_v41 = vrot.slane %v4233_v14, 4  ;;  %v4244_v40 = vrot.slane %v4243_v1, 4  ;;  %v5916_v34 = vshrl.u32 %v5546_v37, 16 }
 0x373   :  { %v13110_v21 = vld [vmem:[#allocation4 + $0x32c] ss:$36 sps:$4 sm:$0xff]   ;;  %5338 = vst [vmem:[#allocation4 + $0x374] sm:$0xf] %v5113_v5  ;;  %v5919_v45 = vshll.u32 %v5546_v37, 16  ;;  %v5925_v10 = vshll.u32 %v5547_v35, 16 }
 0x374   :  { %v3881_v46 = vld [vmem:[#allocation2 + $0xa8] sm:$0xf]  ;;  %10116 = vmatprep.mubr.bf16.mxu1 %v13110_v21  ;;  %v5116_v9 = vsel %vm13597_vm10, %v5114_v56, %v5115_v27  ;;  %v5929_v18 = vshrl.u32 %v5547_v35, 16  ;;  %v5935_v48 = vshll.u32 %v5548_v63, 16  ;;  %v3882_v17 = vld [vmem:[#allocation2 + $0xac] sm:$0xf]  ;;  %v4239_v57 = vsel %vm13579_vm9, %v4234_v41, %v4238_v54  ;;  %v15388_v41 = vpop.f32.mrf.mxu0 }
 0x375   :  { %10117 = vmatmul.mubr.bf16.gmra.mxu1 %v13108_v2  ;;  %v4249_v15 = vsel %vm13579_vm9, %v4244_v40, %v4248_v61  ;;  %5339 = vst [vmem:[#allocation4 + $0x398] sm:$0xf] %v5116_v9  ;;  %v5918_v38 = vrot.slane %v5916_v34, 4  ;;  %v5921_v23 = vrot.slane %v5919_v45, 5  ;;  %v3883_v14 = vld [vmem:[#allocation2 + $0xb0] sm:$0x1] }
 0x376   :  { %v4873_v1 = vld [vmem:[#allocation2 + $0xa8] sm:$0xe]  ;;  %4794 = vst [vmem:[#allocation4 + $0x370] sm:$0xf] %v4239_v57  ;;  %4795 = vst [vmem:[#allocation4 + $0x394] sm:$0xf] %v4249_v15 }
 0x377   :  { %v5927_v37 = vrot.slane %v5925_v10, 5  ;;  %v5931_v27 = vrot.slane %v5929_v18, 4  ;;  %v5937_v21 = vrot.slane %v5935_v48, 5  ;;  %v4251_v35 = vshrl.u32 %v3881_v46, 16  ;;  %v4874_v63 = vld [vmem:[#allocation2 + $0xac] sm:$0xf]  ;;  %v9943_v48 = vpop.f32.mrf.mxu0 }
 0x378   :  { %v5922_v5 = vor.u32 %v5921_v23, %v5918_v38  ;;  %v4254_v2 = vshll.u32 %v3881_v46, 16  ;;  %v4260_v56 = vshll.u32 %v3882_v17, 16  ;;  %v4264_v12 = vshrl.u32 %v3882_v17, 16  ;;  %v4875_v54 = vld [vmem:[#allocation2 + $0xb0] sm:$0x1]  ;;  %17072 = vst [vmem:[#allocation136_spill] sm:$0xff] %v15388_v41 }
 0x379   :  { %v5932_v61 = vor.u32 %v5931_v27, %v5927_v37  ;;  %v4253_v40 = vrot.slane %v4251_v35, 4  ;;  %v4270_v34 = vshll.u32 %v3883_v14, 16  ;;  %v11969_v45 = vrot.slane %v4873_v1, 9  ;;  %v5407_v9 = vld [vmem:[#allocation2 + $0xc0] sm:$0xf]  ;;  %17073 = vst [vmem:[#allocation137_spill] sm:$0xff] %v15390_v16  ;;  %v15394_v16 = vpop.f32.mrf.mxu0 }
 0x37a   :  { %v13111_v57 = vld [vmem:[#allocation4 + $0x378] ss:$36 sps:$4 sm:$0xff]   ;;  %v5923_v18 = vrot.slane %v5922_v5, 4  ;;  %5471 = vst [vmem:[#allocation4 + $0x408] sm:$0xf] %v5407_v9  ;;  %v4256_v38 = vrot.slane %v4254_v2, 5  ;;  %v15398_v9 = vpop.f32.mrf.mxu1 }
 0x37b   :  { %v13113_v10 = vld [vmem:[#allocation4 + $0x37c] ss:$36 sps:$4 sm:$0xff]   ;;  %v5933_v15 = vrot.slane %v5932_v61, 4  ;;  %v4262_v46 = vrot.slane %v4260_v56, 5  ;;  %v4266_v23 = vrot.slane %v4264_v12, 4  ;;  %v4272_v14 = vrot.slane %v4270_v34, 5 }
 0x37c   :  { %v5408_v17 = vld [vmem:[#allocation2 + $0xc4] sm:$0xf]  ;;  %10413 = vmatprep.mubr.bf16.mxu0 %v13113_v10  ;;  %v5928_v27 = vsel %vm13579_vm9, %v5923_v18, %v5927_v37  ;;  %v5119_v1 = vrot.slane %v4874_v63, 5  ;;  %v5122_v35 = vrot.slane %v4875_v54, 5  ;;  %v5549_v41 = vld [vmem:[#allocation2 + $0xc0] sm:$0xf]  ;;  %v4257_v2 = vor.u32 %v4256_v38, %v4253_v40  ;;  %v9946_v10 = vpop.f32.mrf.mxu0 }
 0x37d   :  { %5472 = vst [vmem:[#allocation4 + $0x42c] sm:$0xf] %v5408_v17  ;;  %17074 = vst [vmem:[#allocation138_spill] sm:$0xff] %v15394_v16  ;;  %10414 = vmatmul.mubr.bf16.gmra.mxu0 %v13111_v57  ;;  %v5938_v5 = vsel %vm13579_vm9, %v5933_v15, %v5937_v21  ;;  %v4267_v56 = vor.u32 %v4266_v23, %v4262_v46  ;;  %v5550_v12 = vld [vmem:[#allocation2 + $0xc4] sm:$0xf]  ;;  %v5940_v61 = vshrl.u32 %v5549_v41, 16  ;;  %v9649_v15 = vpop.f32.mrf.mxu1 }
 0x37e   :  { %6461 = vst [vmem:[#allocation4 + $0x3c4] sm:$0xf] %v5928_v27  ;;  %v5551_v25 = vld [vmem:[#allocation2 + $0xc8] sm:$0x1]  ;;  %17075 = vst [vmem:[#allocation139_spill] sm:$0xff] %v15398_v9  ;;  %v5120_v63 = vsel %vm13597_vm10, %v11969_v45, %v5119_v1  ;;  %v5121_v54 = vrot.slane %v5119_v1, 4  ;;  %v15404_v16 = vpop.f32.mrf.mxu0 }
 0x37f   :  { %v13114_v37 = vld [vmem:[#allocation4 + $0x370] ss:$36 sps:$4 sm:$0xff]   ;;  %6462 = vst [vmem:[#allocation4 + $0x3e8] sm:$0xf] %v5938_v5  ;;  %v5943_v34 = vshll.u32 %v5549_v41, 16  ;;  %v4258_v18 = vrot.slane %v4257_v2, 4 }
 0x380   :  { %v13116_v57 = vld [vmem:[#allocation4 + $0x374] ss:$36 sps:$4 sm:$0xff]   ;;  %v4268_v48 = vrot.slane %v4267_v56, 4  ;;  %5340 = vst [vmem:[#allocation4 + $0x3bc] sm:$0xf] %v5120_v63  ;;  %v5942_v21 = vrot.slane %v5940_v61, 4  ;;  %v5123_v38 = vsel %vm13597_vm10, %v5121_v54, %v5122_v35  ;;  %v9951_v10 = vpop.f32.mrf.mxu0 }
 0x381   :  { %v5949_v40 = vshll.u32 %v5550_v12, 16  ;;  %v5945_v23 = vrot.slane %v5943_v34, 5  ;;  %v5953_v17 = vshrl.u32 %v5550_v12, 16  ;;  %v5959_v27 = vshll.u32 %v5551_v25, 16  ;;  %v3884_v5 = vld [vmem:[#allocation2 + $0xb4] sm:$0xf]  ;;  %10124 = vmatprep.mubr.bf16.mxu1 %v13116_v57  ;;  %v15410_v34 = vpop.f32.mrf.mxu1 }
 0x382   :  { %17076 = vst [vmem:[#allocation140_spill] sm:$0xff] %v15404_v16  ;;  %v4263_v41 = vsel %vm13579_vm9, %v4258_v18, %v4262_v46  ;;  %v4273_v45 = vsel %vm13579_vm9, %v4268_v48, %v4272_v14  ;;  %5341 = vst [vmem:[#allocation4 + $0x3e0] sm:$0xf] %v5123_v38  ;;  %v3885_v2 = vld [vmem:[#allocation2 + $0xb8] sm:$0xf]  ;;  %v4275_v61 = vshrl.u32 %v3884_v5, 16  ;;  %10125 = vmatmul.mubr.bf16.gmra.mxu1 %v13114_v37 }
 0x383   :  { %v5951_v1 = vrot.slane %v5949_v40, 5  ;;  %v3886_v56 = vld [vmem:[#allocation2 + $0xbc] sm:$0x1]  ;;  %4796 = vst [vmem:[#allocation4 + $0x3b8] sm:$0xf] %v4263_v41  ;;  %v5946_v35 = vor.u32 %v5945_v23, %v5942_v21  ;;  %v5955_v12 = vrot.slane %v5953_v17, 4  ;;  %v9654_v41 = vpop.f32.mrf.mxu1 }
 0x384   :  { %4797 = vst [vmem:[#allocation4 + $0x3dc] sm:$0xf] %v4273_v45  ;;  %v5961_v25 = vrot.slane %v5959_v27, 5  ;;  %v4278_v63 = vshll.u32 %v3884_v5, 16  ;;  %v4876_v54 = vld [vmem:[#allocation2 + $0xb4] sm:$0xe]  ;;  %v15412_v45 = vpop.f32.mrf.mxu0 }
 0x385   :  { %17077 = vst [vmem:[#allocation141_spill] sm:$0xff] %v15410_v34  ;;  %v4277_v46 = vrot.slane %v4275_v61, 4  ;;  %v4284_v57 = vshll.u32 %v3885_v2, 16  ;;  %v4288_v18 = vshrl.u32 %v3885_v2, 16  ;;  %v4294_v14 = vshll.u32 %v3886_v56, 16  ;;  %17078 = vst [vmem:[#allocation142_spill] sm:$0xff] %v15412_v45  ;;  %v15416_v34 = vpop.f32.mrf.mxu1 }
 0x386   :  { %v4877_v48 = vld [vmem:[#allocation2 + $0xb8] sm:$0xf]  ;;  %v5947_v40 = vrot.slane %v5946_v35, 4  ;;  %v5956_v15 = vor.u32 %v5955_v12, %v5951_v1  ;;  %v4280_v38 = vrot.slane %v4278_v63, 5  ;;  %v4878_v16 = vld [vmem:[#allocation2 + $0xbc] sm:$0x1]  ;;  %v9954_v35 = vpop.f32.mrf.mxu0 }
 0x387   :  { %v11970_v37 = vrot.slane %v4876_v54, 9  ;;  %v13118_v21 = vld [vmem:[#allocation4 + $0x3c0] ss:$36 sps:$4 sm:$0xff]   ;;  %v4286_v17 = vrot.slane %v4284_v57, 5  ;;  %v4290_v10 = vrot.slane %v4288_v18, 4  ;;  %17079 = vst [vmem:[#allocation143_spill] sm:$0xff] %v15416_v34 }
 0x388   :  { %v13120_v23 = vld [vmem:[#allocation4 + $0x3c4] ss:$36 sps:$4 sm:$0xff]   ;;  %v5952_v27 = vsel %vm13579_vm9, %v5947_v40, %v5951_v1  ;;  %v5957_v5 = vrot.slane %v5956_v15, 4  ;;  %v4281_v61 = vor.u32 %v4280_v38, %v4277_v46  ;;  %v3887_v2 = vld [vmem:[#allocation2 + $0xc0] sm:$0xf]  ;;  %v4296_v12 = vrot.slane %v4294_v14, 5  ;;  %v9657_v38 = vpop.f32.mrf.mxu1 }
 0x389   :  { %v3888_v56 = vld [vmem:[#allocation2 + $0xc4] sm:$0xf]  ;;  %10421 = vmatprep.mubr.bf16.mxu0 %v13120_v23  ;;  %6463 = vst [vmem:[#allocation4 + $0x40c] sm:$0xf] %v5952_v27  ;;  %v5126_v63 = vrot.slane %v4877_v48, 5  ;;  %v5129_v54 = vrot.slane %v4878_v16, 5  ;;  %v4291_v40 = vor.u32 %v4290_v10, %v4286_v17  ;;  %v15422_v16 = vpop.f32.mrf.mxu0 }
 0x38a   :  { %v3889_v41 = vld [vmem:[#allocation2 + $0xc8] sm:$0x1]  ;;  %v4299_v45 = vshrl.u32 %v3887_v2, 16  ;;  %10422 = vmatmul.mubr.bf16.gmra.mxu0 %v13118_v21  ;;  %v5962_v57 = vsel %vm13579_vm9, %v5957_v5, %v5961_v25  ;;  %v4282_v1 = vrot.slane %v4281_v61, 4  ;;  %v4302_v46 = vshll.u32 %v3887_v2, 16  ;;  %17080 = vst [vmem:[#allocation144_spill] sm:$0xff] %v15422_v16  ;;  %v15426_v10 = vpop.f32.mrf.mxu1 }
 0x38b   :  { %v4879_v18 = vld [vmem:[#allocation2 + $0xc0] sm:$0xe]  ;;  %v4880_v15 = vld [vmem:[#allocation2 + $0xc4] sm:$0xf]  ;;  %v13121_v9 = vld [vmem:[#allocation4 + $0x3b8] ss:$36 sps:$4 sm:$0xff]   ;;  %v5127_v23 = vsel %vm13597_vm10, %v11970_v37, %v5126_v63  ;;  %v9959_v38 = vpop.f32.mrf.mxu0 }
 0x38c   :  { %6464 = vst [vmem:[#allocation4 + $0x430] sm:$0xf] %v5962_v57  ;;  %v5128_v14 = vrot.slane %v5126_v63, 4  ;;  %v4301_v48 = vrot.slane %v4299_v45, 4  ;;  %v13123_v27 = vld [vmem:[#allocation4 + $0x3bc] ss:$36 sps:$4 sm:$0xff]   ;;  %v4287_v21 = vsel %vm13579_vm9, %v4282_v1, %v4286_v17 }
 0x38d   :  { %v4292_v25 = vrot.slane %v4291_v40, 4  ;;  %5342 = vst [vmem:[#allocation4 + $0x404] sm:$0xf] %v5127_v23  ;;  %v4304_v5 = vrot.slane %v4302_v46, 5  ;;  %v4308_v61 = vshll.u32 %v3888_v56, 16  ;;  %17081 = vst [vmem:[#allocation145_spill] sm:$0xff] %v15426_v10  ;;  %10132 = vmatprep.mubr.bf16.mxu1 %v13123_v27  ;;  %v9662_v10 = vpop.f32.mrf.mxu1 }
 0x38e   :  { %v13192_v2 = vld [vmem:[%s16842_s3 + $0x208] sm:$0xff]   ;;  %4798 = vst [vmem:[#allocation4 + $0x400] sm:$0xf] %v4287_v21  ;;  %v5130_v37 = vsel %vm13597_vm10, %v5128_v14, %v5129_v54  ;;  %v4312_v45 = vshrl.u32 %v3888_v56, 16  ;;  %v4318_v35 = vshll.u32 %v3889_v41, 16  ;;  %v11971_v57 = vrot.slane %v4879_v18, 9  ;;  %10133 = vmatmul.mubr.bf16.gmra.mxu1 %v13121_v9  ;;  %v15435_v14 = vpop.f32.mrf.mxu0 }
 0x38f   :  { %v4881_v63 = vld [vmem:[#allocation2 + $0xc8] sm:$0x1]  ;;  %v4297_v17 = vsel %vm13579_vm9, %v4292_v25, %v4296_v12  ;;  %5343 = vst [vmem:[#allocation4 + $0x428] sm:$0xf] %v5130_v37  ;;  %v4305_v1 = vor.u32 %v4304_v5, %v4301_v48  ;;  %v4310_v40 = vrot.slane %v4308_v61, 5  ;;  %v5133_v46 = vrot.slane %v4880_v15, 5  ;;  %12681 = vmatprep.subr.bf16.mxu1 %v13192_v2  ;;  %v15439_v25 = vpop.f32.mrf.mxu1 }
 0x390   :  { %v5409_v23 = vld [vmem:[#allocation2 + $0xcc] sm:$0xf]  ;;  %v5410_v16 = vld [vmem:[#allocation2 + $0xd0] sm:$0xf]  ;;  %4799 = vst [vmem:[#allocation4 + $0x424] sm:$0xf] %v4297_v17  ;;  %12682 = vmatpush3.bf16.msra.mxu1 %v13192_v2 }
 0x391   :  { %v4314_v54 = vrot.slane %v4312_v45, 4  ;;  %v4320_v56 = vrot.slane %v4318_v35, 5  ;;  %v5136_v41 = vrot.slane %v4881_v63, 5  ;;  %5473 = vst [vmem:[#allocation4 + $0x450] sm:$0xf] %v5409_v23  ;;  %17082 = vst [vmem:[#allocation146_spill] sm:$0xff] %v15435_v14  ;;  %v5134_v12 = vsel %vm13597_vm10, %v11971_v57, %v5133_v46  ;;  %v9665_v17 = vpop.f32.mrf.mxu1 }
 0x392   :  { %5474 = vst [vmem:[#allocation4 + $0x474] sm:$0xf] %v5410_v16  ;;  %v5552_v18 = vld [vmem:[#allocation2 + $0xcc] sm:$0xf]  ;;  %v4306_v27 = vrot.slane %v4305_v1, 4  ;;  %v5135_v48 = vrot.slane %v5133_v46, 4  ;;  %v9962_v16 = vpop.f32.mrf.mxu0 }
 0x393   :  { %v5553_v15 = vld [vmem:[#allocation2 + $0xd0] sm:$0xf]  ;;  %v5964_v21 = vshrl.u32 %v5552_v18, 16  ;;  %17083 = vst [vmem:[#allocation147_spill] sm:$0xff] %v15439_v25  ;;  %v4315_v9 = vor.u32 %v4314_v54, %v4310_v40  ;;  %5344 = vst [vmem:[#allocation4 + $0x44c] sm:$0xf] %v5134_v12  ;;  %v15445_v16 = vpop.f32.mrf.mxu1 }
 0x394   :  { %v5554_v5 = vld [vmem:[#allocation2 + $0xd4] sm:$0x1]  ;;  %v5967_v61 = vshll.u32 %v5552_v18, 16  ;;  %v5973_v10 = vshll.u32 %v5553_v15, 16  ;;  %v5977_v37 = vshrl.u32 %v5553_v15, 16  ;;  %v4311_v63 = vsel %vm13579_vm9, %v4306_v27, %v4310_v40  ;;  %17084 = vst [vmem:[#allocation148_spill] sm:$0xff] %v15445_v16 }
 0x395   :  { %v13124_v45 = vld [vmem:[#allocation4 + $0x408] ss:$36 sps:$4 sm:$0xff]   ;;  %v5137_v57 = vsel %vm13597_vm10, %v5135_v48, %v5136_v41  ;;  %v5966_v38 = vrot.slane %v5964_v21, 4  ;;  %v4316_v1 = vrot.slane %v4315_v9, 4  ;;  %4800 = vst [vmem:[#allocation4 + $0x448] sm:$0xf] %v4311_v63 }
 0x396   :  { %v13126_v35 = vld [vmem:[#allocation4 + $0x40c] ss:$36 sps:$4 sm:$0xff]   ;;  %5345 = vst [vmem:[#allocation4 + $0x470] sm:$0xf] %v5137_v57  ;;  %v5969_v2 = vrot.slane %v5967_v61, 5  ;;  %v5975_v46 = vrot.slane %v5973_v10, 5  ;;  %v15449_v61 = vpop.f32.mrf.mxu0 }
 0x397   :  { %v5979_v23 = vrot.slane %v5977_v37, 4  ;;  %v5411_v54 = vld [vmem:[#allocation2 + $0xf0] sm:$0xf]  ;;  %10429 = vmatprep.mubr.bf16.mxu0 %v13126_v35  ;;  %v5983_v18 = vshll.u32 %v5554_v5, 16  ;;  %v5412_v12 = vld [vmem:[#allocation2 + $0xf4] sm:$0xf]  ;;  %v4321_v40 = vsel %vm13579_vm9, %v4316_v1, %v4320_v56  ;;  %v9670_v35 = vpop.f32.mrf.mxu1 }
 0x398   :  { %5475 = vst [vmem:[#allocation4 + $0x498] sm:$0xf] %v5411_v54  ;;  %v5555_v15 = vld [vmem:[#allocation2 + $0xf0] sm:$0xf]  ;;  %10430 = vmatmul.mubr.bf16.gmra.mxu0 %v13124_v45  ;;  %v5970_v41 = vor.u32 %v5969_v2, %v5966_v38  ;;  %5476 = vst [vmem:[#allocation4 + $0x4bc] sm:$0xf] %v5412_v12  ;;  %v9967_v14 = vpop.f32.mrf.mxu0 }
 0x399   :  { %v5980_v27 = vor.u32 %v5979_v23, %v5975_v46  ;;  %v5556_v48 = vld [vmem:[#allocation2 + $0xf4] sm:$0xf]  ;;  %v5557_v21 = vld [vmem:[#allocation2 + $0xf8] sm:$0x1]  ;;  %v5988_v9 = vshrl.u32 %v5555_v15, 16  ;;  %17085 = vst [vmem:[#allocation149_spill] sm:$0xff] %v15449_v61  ;;  %v15451_v12 = vpop.f32.mrf.mxu1 }
 0x39a   :  { %v13127_v10 = vld [vmem:[#allocation4 + $0x400] ss:$36 sps:$4 sm:$0xff]   ;;  %4801 = vst [vmem:[#allocation4 + $0x46c] sm:$0xf] %v4321_v40  ;;  %v5985_v5 = vrot.slane %v5983_v18, 5  ;;  %v5971_v63 = vrot.slane %v5970_v41, 4  ;;  %v15457_v14 = vpop.f32.mrf.mxu0 }
 0x39b   :  { %v13129_v37 = vld [vmem:[#allocation4 + $0x404] ss:$36 sps:$4 sm:$0xff]   ;;  %v5981_v57 = vrot.slane %v5980_v27, 4  ;;  %v5990_v17 = vrot.slane %v5988_v9, 4  ;;  %v5991_v45 = vshll.u32 %v5555_v15, 16  ;;  %v5997_v56 = vshll.u32 %v5556_v48, 16  ;;  %v9673_v61 = vpop.f32.mrf.mxu1 }
 0x39c   :  { %v3890_v54 = vld [vmem:[#allocation2 + $0xe4] sm:$0xf]  ;;  %10140 = vmatprep.mubr.bf16.mxu1 %v13129_v37  ;;  %v6001_v38 = vshrl.u32 %v5556_v48, 16  ;;  %v6007_v1 = vshll.u32 %v5557_v21, 16  ;;  %v3891_v2 = vld [vmem:[#allocation2 + $0xe8] sm:$0xf]  ;;  %v5976_v40 = vsel %vm13579_vm9, %v5971_v63, %v5975_v46  ;;  %v9970_v25 = vpop.f32.mrf.mxu0 }
 0x39d   :  { %v4323_v23 = vshrl.u32 %v3890_v54, 16  ;;  %17086 = vst [vmem:[#allocation150_spill] sm:$0xff] %v15451_v12  ;;  %10141 = vmatmul.mubr.bf16.gmra.mxu1 %v13127_v10  ;;  %v5986_v18 = vsel %vm13579_vm9, %v5981_v57, %v5985_v5  ;;  %v5993_v41 = vrot.slane %v5991_v45, 5  ;;  %v3892_v27 = vld [vmem:[#allocation2 + $0xec] sm:$0x1]  ;;  %v4326_v15 = vshll.u32 %v3890_v54, 16 }
 0x39e   :  { %v4882_v9 = vld [vmem:[#allocation2 + $0xe4] sm:$0xe]  ;;  %17087 = vst [vmem:[#allocation151_spill] sm:$0xff] %v15457_v14  ;;  %6465 = vst [vmem:[#allocation4 + $0x454] sm:$0xf] %v5976_v40  ;;  %v5999_v48 = vrot.slane %v5997_v56, 5  ;;  %v15459_v56 = vpop.f32.mrf.mxu1 }
 0x39f   :  { %6466 = vst [vmem:[#allocation4 + $0x478] sm:$0xf] %v5986_v18  ;;  %v6003_v21 = vrot.slane %v6001_v38, 4  ;;  %v6009_v37 = vrot.slane %v6007_v1, 5  ;;  %v4325_v35 = vrot.slane %v4323_v23, 4  ;;  %v5994_v10 = vor.u32 %v5993_v41, %v5990_v17  ;;  %17088 = vst [vmem:[#allocation152_spill] sm:$0xff] %v15459_v56  ;;  %v15461_v38 = vpop.f32.mrf.mxu0 }
 0x3a0   :  { %v4328_v12 = vrot.slane %v4326_v15, 5  ;;  %v4332_v16 = vshll.u32 %v3891_v2, 16  ;;  %v4336_v46 = vshrl.u32 %v3891_v2, 16  ;;  %v4883_v63 = vld [vmem:[#allocation2 + $0xe8] sm:$0xf]  ;;  %v4342_v57 = vshll.u32 %v3892_v27, 16 }
 0x3a1   :  { %v6004_v5 = vor.u32 %v6003_v21, %v5999_v48  ;;  %v4884_v45 = vld [vmem:[#allocation2 + $0xec] sm:$0x1]  ;;  %v11972_v54 = vrot.slane %v4882_v9, 9  ;;  %v5140_v34 = vrot.slane %v4883_v63, 5  ;;  %v13130_v30 = vld [vmem:[#allocation4 + $0x448] ss:$36 sps:$4 sm:$0xff]   ;;  %v9678_v21 = vpop.f32.mrf.mxu1 }
 0x3a2   :  { %v13132_v14 = vld [vmem:[#allocation4 + $0x44c] ss:$36 sps:$4 sm:$0xff]   ;;  %v5995_v40 = vrot.slane %v5994_v10, 4  ;;  %v4329_v18 = vor.u32 %v4328_v12, %v4325_v35  ;;  %17089 = vst [vmem:[#allocation153_spill] sm:$0xff] %v15461_v38  ;;  %v4334_v17 = vrot.slane %v4332_v16, 5  ;;  %v4338_v1 = vrot.slane %v4336_v46, 4  ;;  %v9975_v35 = vpop.f32.mrf.mxu0 }
 0x3a3   :  { %v6005_v61 = vrot.slane %v6004_v5, 4  ;;  %v4344_v23 = vrot.slane %v4342_v57, 5  ;;  %v5413_v2 = vld [vmem:[#allocation2 + $0xfc] sm:$0xf]  ;;  %10148 = vmatprep.mubr.bf16.mxu1 %v13132_v14  ;;  %v5141_v27 = vsel %vm13597_vm10, %v11972_v54, %v5140_v34  ;;  %v5142_v15 = vrot.slane %v5140_v34, 4 }
 0x3a4   :  { %v6000_v25 = vsel %vm13579_vm9, %v5995_v40, %v5999_v48  ;;  %v4330_v41 = vrot.slane %v4329_v18, 4  ;;  %v5414_v9 = vld [vmem:[#allocation2 + $0x100] sm:$0xf]  ;;  %5477 = vst [vmem:[#allocation4 + $0x4e0] sm:$0xf] %v5413_v2  ;;  %v4339_v10 = vor.u32 %v4338_v1, %v4334_v17  ;;  %v5143_v46 = vrot.slane %v4884_v45, 5  ;;  %v15471_v40 = vpop.f32.mrf.mxu1  ;;  %v15473_v18 = vpop.f32.mrf.mxu0 }
 0x3a5   :  { %v5558_v12 = vld [vmem:[#allocation2 + $0xfc] sm:$0xf]  ;;  %v6010_v16 = vsel %vm13579_vm9, %v6005_v61, %v6009_v37  ;;  %6467 = vst [vmem:[#allocation4 + $0x49c] sm:$0xf] %v6000_v25  ;;  %5346 = vst [vmem:[#allocation4 + $0x494] sm:$0xf] %v5141_v27  ;;  %10149 = vmatmul.mubr.bf16.gmra.mxu1 %v13130_v30 }
 0x3a6   :  { %5478 = vst [vmem:[#allocation4 + $0x504] sm:$0xf] %v5414_v9  ;;  %v5559_v14 = vld [vmem:[#allocation2 + $0x100] sm:$0xf]  ;;  %v5560_v48 = vld [vmem:[#allocation2 + $0x104] sm:$0x1]  ;;  %v4335_v34 = vsel %vm13579_vm9, %v4330_v41, %v4334_v17  ;;  %v5144_v45 = vsel %vm13597_vm10, %v5142_v15, %v5143_v46  ;;  %v9681_v9 = vpop.f32.mrf.mxu1 }
 0x3a7   :  { %v6012_v63 = vshrl.u32 %v5558_v12, 16  ;;  %v13133_v5 = vld [vmem:[#allocation4 + $0x450] ss:$36 sps:$4 sm:$0xff]   ;;  %6468 = vst [vmem:[#allocation4 + $0x4c0] sm:$0xf] %v6010_v16  ;;  %v6015_v57 = vshll.u32 %v5558_v12, 16  ;;  %v9978_v12 = vpop.f32.mrf.mxu0 }
 0x3a8   :  { %v6021_v54 = vshll.u32 %v5559_v14, 16  ;;  %17090 = vst [vmem:[#allocation154_spill] sm:$0xff] %v15471_v40  ;;  %17091 = vst [vmem:[#allocation155_spill] sm:$0xff] %v15473_v18  ;;  %v13135_v37 = vld [vmem:[#allocation4 + $0x454] ss:$36 sps:$4 sm:$0xff]   ;;  %v4340_v61 = vrot.slane %v4339_v10, 4 }
 0x3a9   :  { %4802 = vst [vmem:[#allocation4 + $0x490] sm:$0xf] %v4335_v34  ;;  %v6014_v1 = vrot.slane %v6012_v63, 4  ;;  %v6025_v2 = vshrl.u32 %v5559_v14, 16  ;;  %v15477_v25 = vld [vmem:[#allocation2 + $0x2c] sm:$0x1]  ;;  %10437 = vmatprep.mubr.bf16.mxu0 %v13135_v37 }
 0x3aa   :  { %5347 = vst [vmem:[#allocation4 + $0x4b8] sm:$0xf] %v5144_v45  ;;  %v6017_v30 = vrot.slane %v6015_v57, 5  ;;  %v6023_v27 = vrot.slane %v6021_v54, 5  ;;  %v6031_v17 = vshll.u32 %v5560_v48, 16  ;;  %v4345_v21 = vsel %vm13579_vm9, %v4340_v61, %v4344_v23  ;;  %10438 = vmatmul.mubr.bf16.gmra.mxu0 %v13133_v5  ;;  %v15481_v54 = vpop.f32.mrf.mxu1  ;;  %v15483_v48 = vpop.f32.mrf.mxu0 }
 0x3ab   :  { %v3893_v41 = vld [vmem:[#allocation2 + $0xf0] sm:$0xf]  ;;  %v6027_v35 = vrot.slane %v6025_v2, 4  ;;  %v3894_v16 = vld [vmem:[#allocation2 + $0xf4] sm:$0xf]  ;;  %17092 = vst [vmem:[#allocation156_spill] sm:$0xff] %v15481_v54 }
 0x3ac   :  { %v3895_v10 = vld [vmem:[#allocation2 + $0xf8] sm:$0x1]  ;;  %v4347_v34 = vshrl.u32 %v3893_v41, 16  ;;  %4803 = vst [vmem:[#allocation4 + $0x4b4] sm:$0xf] %v4345_v21  ;;  %v6018_v15 = vor.u32 %v6017_v30, %v6014_v1  ;;  %v6033_v46 = vrot.slane %v6031_v17, 5  ;;  %v9686_v5 = vpop.f32.mrf.mxu1  ;;  %v9983_v21 = vpop.f32.mrf.mxu0 }
 0x3ad   :  { %v4350_v14 = vshll.u32 %v3893_v41, 16  ;;  %v4356_v63 = vshll.u32 %v3894_v16, 16  ;;  %v4885_v57 = vld [vmem:[#allocation2 + $0xf0] sm:$0xe]  ;;  %17093 = vst [vmem:[#allocation157_spill] sm:$0xff] %v15483_v48  ;;  %v6028_v45 = vor.u32 %v6027_v35, %v6023_v27  ;;  %v4360_v9 = vshrl.u32 %v3894_v16, 16 }
 0x3ae   :  { %v4349_v37 = vrot.slane %v4347_v34, 4  ;;  %v4366_v12 = vshll.u32 %v3895_v10, 16  ;;  %v4886_v23 = vld [vmem:[#allocation2 + $0xf4] sm:$0xf]  ;;  %v6019_v61 = vrot.slane %v6018_v15, 4  ;;  %v17094_v1 = vrot.slane %v13825_v11, 5  ;;  %v15492_v15 = vpop.f32.mrf.mxu1 }
 0x3af   :  { %v4352_v2 = vrot.slane %v4350_v14, 5  ;;  %v4358_v18 = vrot.slane %v4356_v63, 5  ;;  %v4887_v38 = vld [vmem:[#allocation2 + $0xf8] sm:$0x1]  ;;  %v13138_v41 = vld [vmem:[#allocation4 + $0x49c] ss:$36 sps:$4 sm:$0xff]   ;;  %v15494_v14 = vpop.f32.mrf.mxu0 }
 0x3b0   :  { %v15487_v30 = vrot.slane %v17094_v1, 4  ;;  %v6029_v54 = vrot.slane %v6028_v45, 4  ;;  %v13136_v48 = vld [vmem:[#allocation4 + $0x498] ss:$36 sps:$4 sm:$0xff]   ;;  %v6024_v35 = vsel %vm13579_vm9, %v6019_v61, %v6023_v27  ;;  %v4362_v10 = vrot.slane %v4360_v9, 4  ;;  %17095 = vst [vmem:[#allocation158_spill] sm:$0xff] %v15492_v15  ;;  %10445 = vmatprep.mubr.bf16.mxu0 %v13138_v41 }
 0x3b1   :  { %v4353_v16 = vor.u32 %v4352_v2, %v4349_v37  ;;  %v5415_v34 = vld [vmem:[#allocation2 + $0x108] sm:$0xf]  ;;  %17096 = vst [vmem:[#allocation159_spill] sm:$0xff] %v15494_v14  ;;  %6469 = vst [vmem:[#allocation4 + $0x4e4] sm:$0xf] %v6024_v35  ;;  %v11973_v63 = vrot.slane %v4885_v57, 9  ;;  %v9689_v2 = vpop.f32.mrf.mxu1  ;;  %v9986_v17 = vpop.f32.mrf.mxu0 }
 0x3b2   :  { %v6034_v11 = vsel %vm13579_vm9, %v6029_v54, %v6033_v46  ;;  %v5147_v5 = vrot.slane %v4886_v23, 5  ;;  %v5150_v21 = vrot.slane %v4887_v38, 5  ;;  %v5416_v45 = vld [vmem:[#allocation2 + $0x10c] sm:$0xf]  ;;  %5479 = vst [vmem:[#allocation4 + $0x528] sm:$0xf] %v5415_v34  ;;  %v4363_v27 = vor.u32 %v4362_v10, %v4358_v18  ;;  %10446 = vmatmul.mubr.bf16.gmra.mxu0 %v13136_v48 }
 0x3b3   :  { %6470 = vst [vmem:[#allocation4 + $0x508] sm:$0xf] %v6034_v11  ;;  %v4354_v1 = vrot.slane %v4353_v16, 4  ;;  %v4368_v37 = vrot.slane %v4366_v12, 5  ;;  %5480 = vst [vmem:[#allocation4 + $0x54c] sm:$0xf] %v5416_v45  ;;  %v15502_v16 = vpop.f32.mrf.mxu0  ;;  %v15506_v48 = vpop.f32.mrf.mxu1 }
 0x3b4   :  { %v5561_v9 = vld [vmem:[#allocation2 + $0x108] sm:$0xf]  ;;  %v5562_v61 = vld [vmem:[#allocation2 + $0x10c] sm:$0xf]  ;;  %v13139_v14 = vld [vmem:[#allocation4 + $0x490] ss:$36 sps:$4 sm:$0xff]   ;;  %v5148_v46 = vsel %vm13597_vm10, %v11973_v63, %v5147_v5 }
 0x3b5   :  { %v13141_v41 = vld [vmem:[#allocation4 + $0x494] ss:$36 sps:$4 sm:$0xff]   ;;  %v5149_v54 = vrot.slane %v5147_v5, 4  ;;  %v4359_v38 = vsel %vm13579_vm9, %v4354_v1, %v4358_v18  ;;  %v4364_v57 = vrot.slane %v4363_v27, 4  ;;  %5348 = vst [vmem:[#allocation4 + $0x4dc] sm:$0xf] %v5148_v46 }
 0x3b6   :  { %v5563_v23 = vld [vmem:[#allocation2 + $0x110] sm:$0x1]  ;;  %v6036_v35 = vshrl.u32 %v5561_v9, 16  ;;  %v6039_v12 = vshll.u32 %v5561_v9, 16  ;;  %17097 = vst [vmem:[#allocation160_spill] sm:$0xff] %v15502_v16  ;;  %10156 = vmatprep.mubr.bf16.mxu1 %v13141_v41  ;;  %v6045_v10 = vshll.u32 %v5562_v61, 16  ;;  %v9991_v9 = vpop.f32.mrf.mxu0 }
 0x3b7   :  { %4804 = vst [vmem:[#allocation4 + $0x4d8] sm:$0xf] %v4359_v38  ;;  %v5151_v17 = vsel %vm13597_vm10, %v5149_v54, %v5150_v21  ;;  %v6049_v34 = vshrl.u32 %v5562_v61, 16  ;;  %v6055_v11 = vshll.u32 %v5563_v23, 16  ;;  %v3896_v63 = vld [vmem:[#allocation2 + $0xfc] sm:$0xf]  ;;  %10157 = vmatmul.mubr.bf16.gmra.mxu1 %v13139_v14  ;;  %v4369_v18 = vsel %vm13579_vm9, %v4364_v57, %v4368_v37  ;;  %v9694_v54 = vpop.f32.mrf.mxu1 }
 0x3b8   :  { %17098 = vst [vmem:[#allocation161_spill] sm:$0xff] %v15506_v48  ;;  %5349 = vst [vmem:[#allocation4 + $0x500] sm:$0xf] %v5151_v17  ;;  %v6038_v5 = vrot.slane %v6036_v35, 4  ;;  %v6041_v45 = vrot.slane %v6039_v12, 5  ;;  %v6047_v2 = vrot.slane %v6045_v10, 5  ;;  %v15510_v15 = vpop.f32.mrf.mxu0 }
 0x3b9   :  { %v3897_v1 = vld [vmem:[#allocation2 + $0x100] sm:$0xf]  ;;  %v3898_v27 = vld [vmem:[#allocation2 + $0x104] sm:$0x1]  ;;  %4805 = vst [vmem:[#allocation4 + $0x4fc] sm:$0xf] %v4369_v18  ;;  %v15512_v17 = vpop.f32.mrf.mxu1 }
 0x3ba   :  { %v6051_v41 = vrot.slane %v6049_v34, 4  ;;  %v6057_v21 = vrot.slane %v6055_v11, 5  ;;  %v4371_v46 = vshrl.u32 %v3896_v63, 16  ;;  %v4888_v61 = vld [vmem:[#allocation2 + $0xfc] sm:$0xe]  ;;  %v6042_v38 = vor.u32 %v6041_v45, %v6038_v5  ;;  %17099 = vst [vmem:[#allocation162_spill] sm:$0xff] %v15510_v15  ;;  %v9994_v40 = vpop.f32.mrf.mxu0 }
 0x3bb   :  { %v4374_v23 = vshll.u32 %v3896_v63, 16  ;;  %v4380_v16 = vshll.u32 %v3897_v1, 16  ;;  %v4384_v14 = vshrl.u32 %v3897_v1, 16  ;;  %v4889_v48 = vld [vmem:[#allocation2 + $0x100] sm:$0xf]  ;;  %17100 = vst [vmem:[#allocation163_spill] sm:$0xff] %v15512_v17  ;;  %v9697_v56 = vpop.f32.mrf.mxu1 }
 0x3bc   :  { %v13143_v37 = vld [vmem:[#allocation4 + $0x4e0] ss:$36 sps:$4 sm:$0xff]   ;;  %v6052_v35 = vor.u32 %v6051_v41, %v6047_v2  ;;  %v4373_v12 = vrot.slane %v4371_v46, 4  ;;  %v6043_v18 = vrot.slane %v6042_v38, 4  ;;  %v4890_v9 = vld [vmem:[#allocation2 + $0x104] sm:$0x1] }
 0x3bd   :  { %v13145_v57 = vld [vmem:[#allocation4 + $0x4e4] ss:$36 sps:$4 sm:$0xff]   ;;  %v4376_v10 = vrot.slane %v4374_v23, 5  ;;  %v4382_v34 = vrot.slane %v4380_v16, 5  ;;  %v4386_v11 = vrot.slane %v4384_v14, 4  ;;  %v4390_v63 = vshll.u32 %v3898_v27, 16 }
 0x3be   :  { %10453 = vmatprep.mubr.bf16.mxu0 %v13145_v57  ;;  %v6053_v5 = vrot.slane %v6052_v35, 4  ;;  %v11974_v45 = vrot.slane %v4888_v61, 9  ;;  %v5154_v1 = vrot.slane %v4889_v48, 5  ;;  %v5417_v54 = vld [vmem:[#allocation2 + $0x114] sm:$0xf]  ;;  %v6048_v41 = vsel %vm13579_vm9, %v6043_v18, %v6047_v2  ;;  %v15520_v57 = vpop.f32.mrf.mxu1 }
 0x3bf   :  { %10454 = vmatmul.mubr.bf16.gmra.mxu0 %v13143_v37  ;;  %v4377_v46 = vor.u32 %v4376_v10, %v4373_v12  ;;  %v4387_v15 = vor.u32 %v4386_v11, %v4382_v34  ;;  %v5157_v17 = vrot.slane %v4890_v9, 5  ;;  %v5418_v38 = vld [vmem:[#allocation2 + $0x118] sm:$0xf]  ;;  %5481 = vst [vmem:[#allocation4 + $0x570] sm:$0xf] %v5417_v54  ;;  %v4392_v23 = vrot.slane %v4390_v63, 5 }
 0x3c0   :  { %v5564_v16 = vld [vmem:[#allocation2 + $0x114] sm:$0xf]  ;;  %v6058_v40 = vsel %vm13579_vm9, %v6053_v5, %v6057_v21  ;;  %6471 = vst [vmem:[#allocation4 + $0x52c] sm:$0xf] %v6048_v41  ;;  %v5155_v48 = vsel %vm13597_vm10, %v11974_v45, %v5154_v1  ;;  %v5156_v27 = vrot.slane %v5154_v1, 4  ;;  %17101 = vst [vmem:[#allocation164_spill] sm:$0xff] %v15520_v57 }
 0x3c1   :  { %5482 = vst [vmem:[#allocation4 + $0x594] sm:$0xf] %v5418_v38  ;;  %v5565_v56 = vld [vmem:[#allocation2 + $0x118] sm:$0xf]  ;;  %v5566_v61 = vld [vmem:[#allocation2 + $0x11c] sm:$0x1] }
 0x3c2   :  { %v13146_v14 = vld [vmem:[#allocation4 + $0x4d8] ss:$36 sps:$4 sm:$0xff]   ;;  %6472 = vst [vmem:[#allocation4 + $0x550] sm:$0xf] %v6058_v40  ;;  %v4378_v37 = vrot.slane %v4377_v46, 4  ;;  %v4388_v35 = vrot.slane %v4387_v15, 4  ;;  %v5158_v21 = vsel %vm13597_vm10, %v5156_v27, %v5157_v17  ;;  %v9702_v15 = vpop.f32.mrf.mxu1 }
 0x3c3   :  { %v13148_v2 = vld [vmem:[#allocation4 + $0x4dc] ss:$36 sps:$4 sm:$0xff]   ;;  %5350 = vst [vmem:[#allocation4 + $0x524] sm:$0xf] %v5155_v48  ;;  %v6060_v12 = vshrl.u32 %v5564_v16, 16  ;;  %v6063_v18 = vshll.u32 %v5564_v16, 16  ;;  %v15531_v16 = vpop.f32.mrf.mxu0 }
 0x3c4   :  { %v3899_v10 = vld [vmem:[#allocation2 + $0x108] sm:$0xf]  ;;  %v13217_v11 = vld [vmem:[%s16842_s3 + $0x200] sm:$0xff]   ;;  %10164 = vmatprep.mubr.bf16.mxu1 %v13148_v2  ;;  %v4383_v9 = vsel %vm13579_vm9, %v4378_v37, %v4382_v34  ;;  %5351 = vst [vmem:[#allocation4 + $0x548] sm:$0xf] %v5158_v21  ;;  %v6069_v5 = vshll.u32 %v5565_v56, 16  ;;  %v4393_v17 = vsel %vm13579_vm9, %v4388_v35, %v4392_v23  ;;  %v15538_v23 = vpop.f32.mrf.mxu1 }
 0x3c5   :  { %v6073_v63 = vshrl.u32 %v5565_v56, 16  ;;  %v6079_v45 = vshll.u32 %v5566_v61, 16  ;;  %v3900_v1 = vld [vmem:[#allocation2 + $0x10c] sm:$0xf]  ;;  %10165 = vmatmul.mubr.bf16.gmra.mxu1 %v13146_v14  ;;  %4806 = vst [vmem:[#allocation4 + $0x520] sm:$0xf] %v4383_v9  ;;  %12683 = vmatprep.subr.bf16.mxu1 %v13217_v11 }
 0x3c6   :  { %v6062_v54 = vrot.slane %v6060_v12, 4  ;;  %v6065_v41 = vrot.slane %v6063_v18, 5  ;;  %v3901_v46 = vld [vmem:[#allocation2 + $0x110] sm:$0x1]  ;;  %v4395_v38 = vshrl.u32 %v3899_v10, 16  ;;  %17102 = vst [vmem:[#allocation165_spill] sm:$0xff] %v15531_v16  ;;  %12684 = vmatpush3.bf16.msra.mxu1 %v13217_v11  ;;  %v10321_v12 = vpop.f32.mrf.mxu0 }
 0x3c7   :  { %v15536_v34 = vld [vmem:[%s16844_s4] ss:$0 sm:$0xff]  ;;  %4807 = vst [vmem:[#allocation4 + $0x544] sm:$0xf] %v4393_v17  ;;  %v6071_v40 = vrot.slane %v6069_v5, 5  ;;  %v6075_v48 = vrot.slane %v6073_v63, 4  ;;  %v9705_v17 = vpop.f32.mrf.mxu1 }
 0x3c8   :  { %v6081_v27 = vrot.slane %v6079_v45, 5  ;;  %v4398_v56 = vshll.u32 %v3899_v10, 16  ;;  %v4891_v61 = vld [vmem:[#allocation2 + $0x108] sm:$0xe]  ;;  %17103 = vst [vmem:[#allocation166_spill] sm:$0xff] %v15538_v23  ;;  %v6066_v14 = vor.u32 %v6065_v41, %v6062_v54  ;;  %v4397_v2 = vrot.slane %v4395_v38, 4  ;;  %v15544_v11 = vpop.f32.mrf.mxu0 }
 0x3c9   :  { %v4404_v37 = vshll.u32 %v3900_v1, 16  ;;  %v4408_v35 = vshrl.u32 %v3900_v1, 16  ;;  %v4892_v21 = vld [vmem:[#allocation2 + $0x10c] sm:$0xf]  ;;  %v6076_v18 = vor.u32 %v6075_v48, %v6071_v40  ;;  %v4414_v15 = vshll.u32 %v3901_v46, 16  ;;  %17104 = vst [vmem:[#allocation167_spill] sm:$0xff] %v15544_v11 }
 0x3ca   :  { %v4400_v9 = vrot.slane %v4398_v56, 5  ;;  %v4893_v16 = vld [vmem:[#allocation2 + $0x110] sm:$0x1]  ;;  %v11975_v57 = vrot.slane %v4891_v61, 9  ;;  %v15542_v5 = vadd.f32 %v15536_v34, %v14836_v31  ;;  %v13149_v10 = vld [vmem:[#allocation4 + $0x528] ss:$36 sps:$4 sm:$0xff]   ;;  %v15548_v31 = vpop.f32.mrf.mxu1  ;;  %v10324_v23 = vpop.f32.mrf.mxu0 }
 0x3cb   :  { %v13151_v63 = vld [vmem:[#allocation4 + $0x52c] ss:$36 sps:$4 sm:$0xff]   ;;  %v6067_v45 = vrot.slane %v6066_v14, 4  ;;  %v6077_v54 = vrot.slane %v6076_v18, 4  ;;  %v4406_v1 = vrot.slane %v4404_v37, 5  ;;  %v4410_v38 = vrot.slane %v4408_v35, 4 }
 0x3cc   :  { %v4401_v41 = vor.u32 %v4400_v9, %v4397_v2  ;;  %v5419_v12 = vld [vmem:[#allocation2 + $0x120] sm:$0xf]  ;;  %10461 = vmatprep.mubr.bf16.mxu0 %v13151_v63  ;;  %v4416_v48 = vrot.slane %v4414_v15, 5  ;;  %v5161_v56 = vrot.slane %v4892_v21, 5  ;;  %v5164_v61 = vrot.slane %v4893_v16, 5  ;;  %17105 = vst [vmem:[#allocation168_spill] sm:$0xff] %v15548_v31  ;;  %v10032_v15 = vpop.f32.mrf.mxu1 }
 0x3cd   :  { %v6072_v46 = vsel %vm13579_vm9, %v6067_v45, %v6071_v40  ;;  %v5420_v17 = vld [vmem:[#allocation2 + $0x124] sm:$0xf]  ;;  %5483 = vst [vmem:[#allocation4 + $0x5b8] sm:$0xf] %v5419_v12  ;;  %v15552_v14 = vadd.f32 %v15536_v34, %v14852_v44  ;;  %10462 = vmatmul.mubr.bf16.gmra.mxu0 %v13149_v10  ;;  %v6082_v2 = vsel %vm13579_vm9, %v6077_v54, %v6081_v27  ;;  %v5567_v40 = vld [vmem:[#allocation2 + $0x120] sm:$0xf] }
 0x3ce   :  { %6473 = vst [vmem:[#allocation4 + $0x574] sm:$0xf] %v6072_v46  ;;  %v4402_v37 = vrot.slane %v4401_v41, 4  ;;  %v4411_v35 = vor.u32 %v4410_v38, %v4406_v1  ;;  %5484 = vst [vmem:[#allocation4 + $0x5dc] sm:$0xf] %v5420_v17  ;;  %v15558_v16 = vadd.f32 %v15536_v34, %v14875_v62  ;;  %v15562_v23 = vadd.f32 %v15536_v34, %v14893_v32 }
 0x3cf   :  { %v5568_v21 = vld [vmem:[#allocation2 + $0x124] sm:$0xf]  ;;  %v13152_v44 = vld [vmem:[#allocation4 + $0x520] ss:$36 sps:$4 sm:$0xff]   ;;  %6474 = vst [vmem:[#allocation4 + $0x598] sm:$0xf] %v6082_v2  ;;  %v5162_v27 = vsel %vm13597_vm10, %v11975_v57, %v5161_v56  ;;  %v15570_v57 = vpop.f32.mrf.mxu1 }
 0x3d0   :  { %v13154_v18 = vld [vmem:[#allocation4 + $0x524] ss:$36 sps:$4 sm:$0xff]   ;;  %v5163_v9 = vrot.slane %v5161_v56, 4  ;;  %v4407_v10 = vsel %vm13579_vm9, %v4402_v37, %v4406_v1  ;;  %v4412_v63 = vrot.slane %v4411_v35, 4  ;;  %5352 = vst [vmem:[#allocation4 + $0x56c] sm:$0xf] %v5162_v27  ;;  %v15574_v56 = vadd.f32 %v15536_v34, %v14917_v43 }
 0x3d1   :  { %v5569_v45 = vld [vmem:[#allocation2 + $0x128] sm:$0x1]  ;;  %v6084_v62 = vshrl.u32 %v5567_v40, 16  ;;  %v6087_v54 = vshll.u32 %v5567_v40, 16  ;;  %10172 = vmatprep.mubr.bf16.mxu1 %v13154_v18  ;;  %4808 = vst [vmem:[#allocation4 + $0x568] sm:$0xf] %v4407_v10  ;;  %v10035_v15 = vpop.f32.mrf.mxu1 }
 0x3d2   :  { %v5165_v32 = vsel %vm13597_vm10, %v5163_v9, %v5164_v61  ;;  %v6093_v41 = vshll.u32 %v5568_v21, 16  ;;  %v6097_v38 = vshrl.u32 %v5568_v21, 16  ;;  %v6103_v12 = vshll.u32 %v5569_v45, 16  ;;  %v3902_v46 = vld [vmem:[#allocation2 + $0x114] sm:$0xf]  ;;  %17106 = vst [vmem:[#allocation169_spill] sm:$0xff] %v15570_v57  ;;  %10173 = vmatmul.mubr.bf16.gmra.mxu1 %v13152_v44  ;;  %v15578_v61 = vpop.f32.mrf.mxu0 }
 0x3d3   :  { %v4417_v1 = vsel %vm13579_vm9, %v4412_v63, %v4416_v48  ;;  %5353 = vst [vmem:[#allocation4 + $0x590] sm:$0xf] %v5165_v32  ;;  %v6086_v17 = vrot.slane %v6084_v62, 4  ;;  %v6089_v2 = vrot.slane %v6087_v54, 5  ;;  %v3903_v37 = vld [vmem:[#allocation2 + $0x118] sm:$0xf]  ;;  %v10038_v15 = vpop.f32.mrf.mxu1 }
 0x3d4   :  { %v3904_v35 = vld [vmem:[#allocation2 + $0x11c] sm:$0x1]  ;;  %17107 = vst [vmem:[#allocation170_spill] sm:$0xff] %v15578_v61  ;;  %4809 = vst [vmem:[#allocation4 + $0x58c] sm:$0xf] %v4417_v1  ;;  %v6095_v40 = vrot.slane %v6093_v41, 5  ;;  %v10329_v48 = vpop.f32.mrf.mxu0  ;;  %v15582_v1 = vadd.f32 %v15536_v34, %v14922_v6  ;;  %v15586_v41 = vadd.f32 %v15536_v34, %v14965_v29 }
 0x3d5   :  { %v6099_v21 = vrot.slane %v6097_v38, 4  ;;  %v6105_v18 = vrot.slane %v6103_v12, 5  ;;  %v4419_v27 = vshrl.u32 %v3902_v46, 16  ;;  %v4894_v9 = vld [vmem:[#allocation2 + $0x114] sm:$0xe]  ;;  %v6090_v43 = vor.u32 %v6089_v2, %v6086_v17 }
 0x3d6   :  { %v4422_v10 = vshll.u32 %v3902_v46, 16  ;;  %v4428_v44 = vshll.u32 %v3903_v37, 16  ;;  %v4432_v45 = vshrl.u32 %v3903_v37, 16  ;;  %v4895_v11 = vld [vmem:[#allocation2 + $0x118] sm:$0xf]  ;;  %v4438_v54 = vshll.u32 %v3904_v35, 16  ;;  %v15590_v2 = vpop.f32.mrf.mxu0 }
 0x3d7   :  { %v6100_v63 = vor.u32 %v6099_v21, %v6095_v40  ;;  %v4421_v62 = vrot.slane %v4419_v27, 4  ;;  %v4896_v32 = vld [vmem:[#allocation2 + $0x11c] sm:$0x1]  ;;  %v11976_v57 = vrot.slane %v4894_v9, 9  ;;  %v13155_v38 = vld [vmem:[#allocation4 + $0x570] ss:$36 sps:$4 sm:$0xff]   ;;  %v9750_v17 = vadd.f32 %v14769_v8, %v15542_v5 }
 0x3d8   :  { %v13157_v12 = vld [vmem:[#allocation4 + $0x574] ss:$36 sps:$4 sm:$0xff]   ;;  %v6091_v46 = vrot.slane %v6090_v43, 4  ;;  %v4424_v35 = vrot.slane %v4422_v10, 5  ;;  %v4430_v21 = vrot.slane %v4428_v44, 5  ;;  %v4434_v27 = vrot.slane %v4432_v45, 4  ;;  %v10332_v43 = vpop.f32.mrf.mxu0 }
 0x3d9   :  { %v6101_v37 = vrot.slane %v6100_v63, 4  ;;  %v5421_v9 = vld [vmem:[#allocation2 + $0x12c] sm:$0xf]  ;;  %10469 = vmatprep.mubr.bf16.mxu0 %v13157_v12  ;;  %v4440_v29 = vrot.slane %v4438_v54, 5  ;;  %v5168_v48 = vrot.slane %v4895_v11, 5  ;;  %v5171_v61 = vrot.slane %v4896_v32, 5 }
 0x3da   :  { %v6096_v6 = vsel %vm13579_vm9, %v6091_v46, %v6095_v40  ;;  %v5422_v31 = vld [vmem:[#allocation2 + $0x130] sm:$0xf]  ;;  %5485 = vst [vmem:[#allocation4 + $0x600] sm:$0xf] %v5421_v9  ;;  %10470 = vmatmul.mubr.bf16.gmra.mxu0 %v13155_v38  ;;  %v4425_v5 = vor.u32 %v4424_v35, %v4421_v62  ;;  %v4435_v10 = vor.u32 %v4434_v27, %v4430_v21  ;;  %v5570_v44 = vld [vmem:[#allocation2 + $0x12c] sm:$0xf]  ;;  %v10040_v40 = vpop.f32.mrf.mxu1 }
 0x3db   :  { %v6106_v8 = vsel %vm13579_vm9, %v6101_v37, %v6105_v18  ;;  %6475 = vst [vmem:[#allocation4 + $0x5bc] sm:$0xf] %v6096_v6  ;;  %5486 = vst [vmem:[#allocation4 + $0x624] sm:$0xf] %v5422_v31  ;;  %v5571_v45 = vld [vmem:[#allocation2 + $0x130] sm:$0xf]  ;;  %v15596_v12 = vadd.f32 %v10038_v15, %v9750_v17  ;;  %v15600_v11 = vadd.f32 %v15536_v34, %v14981_v51 }
 0x3dc   :  { %v5572_v63 = vld [vmem:[#allocation2 + $0x134] sm:$0x1]  ;;  %v13158_v54 = vld [vmem:[#allocation4 + $0x568] ss:$36 sps:$4 sm:$0xff]   ;;  %6476 = vst [vmem:[#allocation4 + $0x5e0] sm:$0xf] %v6106_v8  ;;  %v5169_v18 = vsel %vm13597_vm10, %v11976_v57, %v5168_v48  ;;  %v9753_v31 = vadd.f32 %v14787_v24, %v15552_v14  ;;  %v10041_v27 = vpop.f32.mrf.mxu1 }
 0x3dd   :  { %v13160_v32 = vld [vmem:[#allocation4 + $0x56c] ss:$36 sps:$4 sm:$0xff]   ;;  %v5170_v38 = vrot.slane %v5168_v48, 4  ;;  %v4426_v62 = vrot.slane %v4425_v5, 4  ;;  %v4436_v46 = vrot.slane %v4435_v10, 4  ;;  %v6108_v17 = vshrl.u32 %v5570_v44, 16 }
 0x3de   :  { %5354 = vst [vmem:[#allocation4 + $0x5b4] sm:$0xf] %v5169_v18  ;;  %v6111_v37 = vshll.u32 %v5570_v44, 16  ;;  %v3905_v35 = vld [vmem:[#allocation2 + $0x120] sm:$0xf]  ;;  %10180 = vmatprep.mubr.bf16.mxu1 %v13160_v32  ;;  %v6117_v9 = vshll.u32 %v5571_v45, 16  ;;  %v10043_v10 = vpop.f32.mrf.mxu1 }
 0x3df   :  { %v5172_v51 = vsel %vm13597_vm10, %v5170_v38, %v5171_v61  ;;  %v6121_v15 = vshrl.u32 %v5571_v45, 16  ;;  %v6127_v6 = vshll.u32 %v5572_v63, 16  ;;  %v3906_v43 = vld [vmem:[#allocation2 + $0x124] sm:$0xf]  ;;  %10181 = vmatmul.mubr.bf16.gmra.mxu1 %v13158_v54  ;;  %v4431_v57 = vsel %vm13579_vm9, %v4426_v62, %v4430_v21  ;;  %v3907_v8 = vld [vmem:[#allocation2 + $0x128] sm:$0x1]  ;;  %v15612_v62 = vpop.f32.mrf.mxu0 }
 0x3e0   :  { %v4441_v24 = vsel %vm13579_vm9, %v4436_v46, %v4440_v29  ;;  %5355 = vst [vmem:[#allocation4 + $0x5d8] sm:$0xf] %v5172_v51  ;;  %v6110_v14 = vrot.slane %v6108_v17, 4  ;;  %v6113_v48 = vrot.slane %v6111_v37, 5  ;;  %v4897_v5 = vld [vmem:[#allocation2 + $0x120] sm:$0xe] }
 0x3e1   :  { %4810 = vst [vmem:[#allocation4 + $0x5b0] sm:$0xf] %v4431_v57  ;;  %4811 = vst [vmem:[#allocation4 + $0x5d4] sm:$0xf] %v4441_v24  ;;  %v6119_v61 = vrot.slane %v6117_v9, 5  ;;  %v6123_v44 = vrot.slane %v6121_v15, 4  ;;  %v15614_v9 = vadd.f32 %v10041_v27, %v9753_v31  ;;  %v9758_v15 = vadd.f32 %v14818_v58, %v15558_v16 }
 0x3e2   :  { %v6129_v45 = vrot.slane %v6127_v6, 5  ;;  %v4443_v63 = vshrl.u32 %v3905_v35, 16  ;;  %v4898_v40 = vld [vmem:[#allocation2 + $0x124] sm:$0xf]  ;;  %v6114_v54 = vor.u32 %v6113_v48, %v6110_v14  ;;  %v4446_v32 = vshll.u32 %v3905_v35, 16  ;;  %v10337_v35 = vpop.f32.mrf.mxu0 }
 0x3e3   :  { %v4452_v18 = vshll.u32 %v3906_v43, 16  ;;  %v4456_v21 = vshrl.u32 %v3906_v43, 16  ;;  %v4899_v38 = vld [vmem:[#allocation2 + $0x128] sm:$0x1]  ;;  %v6124_v29 = vor.u32 %v6123_v44, %v6119_v61  ;;  %v4462_v17 = vshll.u32 %v3907_v8, 16  ;;  %v10046_v44 = vpop.f32.mrf.mxu1 }
 0x3e4   :  { %v4445_v46 = vrot.slane %v4443_v63, 4  ;;  %v11977_v37 = vrot.slane %v4897_v5, 9  ;;  %v5423_v51 = vld [vmem:[#allocation2 + $0x138] sm:$0xf]  ;;  %v13161_v10 = vld [vmem:[#allocation4 + $0x5b8] ss:$36 sps:$4 sm:$0xff]   ;;  %v15620_v6 = vadd.f32 %v14845_v3, %v15562_v23  ;;  %v15624_v16 = vpop.f32.mrf.mxu0 }
 0x3e5   :  { %v13163_v57 = vld [vmem:[#allocation4 + $0x5bc] ss:$36 sps:$4 sm:$0xff]   ;;  %v6115_v24 = vrot.slane %v6114_v54, 4  ;;  %5487 = vst [vmem:[#allocation4 + $0x648] sm:$0xf] %v5423_v51  ;;  %v6125_v43 = vrot.slane %v6124_v29, 4  ;;  %v10048_v51 = vpop.f32.mrf.mxu1 }
 0x3e6   :  { %v4448_v14 = vrot.slane %v4446_v32, 5  ;;  %v4454_v48 = vrot.slane %v4452_v18, 5  ;;  %v4458_v8 = vrot.slane %v4456_v21, 4  ;;  %v5424_v5 = vld [vmem:[#allocation2 + $0x13c] sm:$0xf]  ;;  %10477 = vmatprep.mubr.bf16.mxu0 %v13163_v57  ;;  %v4464_v31 = vrot.slane %v4462_v17, 5 }
 0x3e7   :  { %v6120_v63 = vsel %vm13579_vm9, %v6115_v24, %v6119_v61  ;;  %v5175_v27 = vrot.slane %v4898_v40, 5  ;;  %v5178_v54 = vrot.slane %v4899_v38, 5  ;;  %5488 = vst [vmem:[#allocation4 + $0x66c] sm:$0xf] %v5424_v5  ;;  %v5573_v58 = vld [vmem:[#allocation2 + $0x138] sm:$0xf]  ;;  %10478 = vmatmul.mubr.bf16.gmra.mxu0 %v13161_v10  ;;  %v6130_v3 = vsel %vm13579_vm9, %v6125_v43, %v6129_v45  ;;  %v10340_v10 = vpop.f32.mrf.mxu0 }
 0x3e8   :  { %6477 = vst [vmem:[#allocation4 + $0x604] sm:$0xf] %v6120_v63  ;;  %v4449_v23 = vor.u32 %v4448_v14, %v4445_v46  ;;  %v4459_v32 = vor.u32 %v4458_v8, %v4454_v48  ;;  %v5574_v18 = vld [vmem:[#allocation2 + $0x13c] sm:$0xf]  ;;  %v5575_v21 = vld [vmem:[#allocation2 + $0x140] sm:$0x1]  ;;  %v15630_v17 = vadd.f32 %v10046_v44, %v9758_v15  ;;  %v10049_v14 = vpop.f32.mrf.mxu1 }
 0x3e9   :  { %v6132_v29 = vshrl.u32 %v5573_v58, 16  ;;  %v13164_v57 = vld [vmem:[#allocation4 + $0x5b0] ss:$36 sps:$4 sm:$0xff]   ;;  %6478 = vst [vmem:[#allocation4 + $0x628] sm:$0xf] %v6130_v3  ;;  %v5176_v61 = vsel %vm13597_vm10, %v11977_v37, %v5175_v27  ;;  %v5177_v40 = vrot.slane %v5175_v27, 4 }
 0x3ea   :  { %v6135_v38 = vshll.u32 %v5573_v58, 16  ;;  %v13166_v24 = vld [vmem:[#allocation4 + $0x5b4] ss:$36 sps:$4 sm:$0xff]   ;;  %v4450_v35 = vrot.slane %v4449_v23, 4  ;;  %v4460_v45 = vrot.slane %v4459_v32, 4  ;;  %v6141_v43 = vshll.u32 %v5574_v18, 16  ;;  %v10051_v32 = vpop.f32.mrf.mxu1 }
 0x3eb   :  { %5356 = vst [vmem:[#allocation4 + $0x5fc] sm:$0xf] %v5176_v61  ;;  %v6134_v46 = vrot.slane %v6132_v29, 4  ;;  %v5179_v8 = vsel %vm13597_vm10, %v5177_v40, %v5178_v54  ;;  %v6145_v63 = vshrl.u32 %v5574_v18, 16  ;;  %v6151_v3 = vshll.u32 %v5575_v21, 16  ;;  %10188 = vmatprep.mubr.bf16.mxu1 %v13166_v24 }
 0x3ec   :  { %v6137_v5 = vrot.slane %v6135_v38, 5  ;;  %v3908_v51 = vld [vmem:[#allocation2 + $0x12c] sm:$0xf]  ;;  %v4455_v37 = vsel %vm13579_vm9, %v4450_v35, %v4454_v48  ;;  %v4465_v15 = vsel %vm13579_vm9, %v4460_v45, %v4464_v31  ;;  %5357 = vst [vmem:[#allocation4 + $0x620] sm:$0xf] %v5179_v8  ;;  %v6143_v44 = vrot.slane %v6141_v43, 5  ;;  %10189 = vmatmul.mubr.bf16.gmra.mxu1 %v13164_v57  ;;  %v15638_v31 = vpop.f32.mrf.mxu0 }
 0x3ed   :  { %v3909_v27 = vld [vmem:[#allocation2 + $0x130] sm:$0xf]  ;;  %v3910_v58 = vld [vmem:[#allocation2 + $0x134] sm:$0x1]  ;;  %v4467_v23 = vshrl.u32 %v3908_v51, 16  ;;  %v6147_v18 = vrot.slane %v6145_v63, 4 }
 0x3ee   :  { %4812 = vst [vmem:[#allocation4 + $0x5f8] sm:$0xf] %v4455_v37  ;;  %4813 = vst [vmem:[#allocation4 + $0x61c] sm:$0xf] %v4465_v15  ;;  %v6138_v54 = vor.u32 %v6137_v5, %v6134_v46  ;;  %v6153_v21 = vrot.slane %v6151_v3, 5  ;;  %v4470_v29 = vshll.u32 %v3908_v51, 16  ;;  %v15641_v46 = vadd.f32 %v10049_v14, %v15620_v6  ;;  %v10345_v63 = vpop.f32.mrf.mxu0 }
 0x3ef   :  { %v4900_v61 = vld [vmem:[#allocation2 + $0x12c] sm:$0xe]  ;;  %v4469_v40 = vrot.slane %v4467_v23, 4  ;;  %v4476_v38 = vshll.u32 %v3909_v27, 16  ;;  %v4480_v48 = vshrl.u32 %v3909_v27, 16  ;;  %v4486_v10 = vshll.u32 %v3910_v58, 16 }
 0x3f0   :  { %v4901_v24 = vld [vmem:[#allocation2 + $0x130] sm:$0xf]  ;;  %v6139_v35 = vrot.slane %v6138_v54, 4  ;;  %v6148_v45 = vor.u32 %v6147_v18, %v6143_v44  ;;  %v4472_v43 = vrot.slane %v4470_v29, 5  ;;  %v4902_v8 = vld [vmem:[#allocation2 + $0x134] sm:$0x1]  ;;  %v9766_v5 = vadd.f32 %v14865_v39, %v15574_v56  ;;  %v10054_v29 = vpop.f32.mrf.mxu1 }
 0x3f1   :  { %v11978_v32 = vrot.slane %v4900_v61, 9  ;;  %v13168_v57 = vld [vmem:[#allocation4 + $0x600] ss:$36 sps:$4 sm:$0xff]   ;;  %v4478_v15 = vrot.slane %v4476_v38, 5  ;;  %v9769_v3 = vadd.f32 %v14885_v28, %v15582_v1  ;;  %v4482_v23 = vrot.slane %v4480_v48, 4  ;;  %v15651_v28 = vpop.f32.mrf.mxu0 }
 0x3f2   :  { %v13170_v37 = vld [vmem:[#allocation4 + $0x604] ss:$36 sps:$4 sm:$0xff]   ;;  %v6144_v51 = vsel %vm13579_vm9, %v6139_v35, %v6143_v44  ;;  %v6149_v27 = vrot.slane %v6148_v45, 4  ;;  %v4473_v58 = vor.u32 %v4472_v43, %v4469_v40  ;;  %v5425_v54 = vld [vmem:[#allocation2 + $0x144] sm:$0xf]  ;;  %v4488_v6 = vrot.slane %v4486_v10, 5  ;;  %v10056_v45 = vpop.f32.mrf.mxu1 }
 0x3f3   :  { %v5426_v18 = vld [vmem:[#allocation2 + $0x148] sm:$0xf]  ;;  %10485 = vmatprep.mubr.bf16.mxu0 %v13170_v37  ;;  %6479 = vst [vmem:[#allocation4 + $0x64c] sm:$0xf] %v6144_v51  ;;  %v5182_v14 = vrot.slane %v4901_v24, 5  ;;  %v5185_v61 = vrot.slane %v4902_v8, 5  ;;  %v15649_v56 = vadd.f32 %v10054_v29, %v9766_v5  ;;  %v4483_v40 = vor.u32 %v4482_v23, %v4478_v15  ;;  %v10348_v37 = vpop.f32.mrf.mxu0 }
 0x3f4   :  { %5489 = vst [vmem:[#allocation4 + $0x690] sm:$0xf] %v5425_v54  ;;  %5490 = vst [vmem:[#allocation4 + $0x6b4] sm:$0xf] %v5426_v18  ;;  %v5576_v39 = vld [vmem:[#allocation2 + $0x144] sm:$0xf]  ;;  %10486 = vmatmul.mubr.bf16.gmra.mxu0 %v13168_v57  ;;  %v6154_v1 = vsel %vm13579_vm9, %v6149_v27, %v6153_v21  ;;  %v10057_v23 = vpop.f32.mrf.mxu1 }
 0x3f5   :  { %v4474_v44 = vrot.slane %v4473_v58, 4  ;;  %v5577_v38 = vld [vmem:[#allocation2 + $0x148] sm:$0xf]  ;;  %v5578_v48 = vld [vmem:[#allocation2 + $0x14c] sm:$0x1]  ;;  %v6156_v35 = vshrl.u32 %v5576_v39, 16  ;;  %v5183_v24 = vsel %vm13597_vm10, %v11978_v32, %v5182_v14 }
 0x3f6   :  { %v13171_v10 = vld [vmem:[#allocation4 + $0x5f8] ss:$36 sps:$4 sm:$0xff]   ;;  %6480 = vst [vmem:[#allocation4 + $0x670] sm:$0xf] %v6154_v1  ;;  %v5184_v43 = vrot.slane %v5182_v14, 4  ;;  %v6159_v8 = vshll.u32 %v5576_v39, 16 }
 0x3f7   :  { %v17108_v5 = vrot.slane %v15477_v25, 5  ;;  %v13173_v57 = vld [vmem:[#allocation4 + $0x5fc] ss:$36 sps:$4 sm:$0xff]   ;;  %v4479_v63 = vsel %vm13579_vm9, %v4474_v44, %v4478_v15  ;;  %v4484_v51 = vrot.slane %v4483_v40, 4  ;;  %5358 = vst [vmem:[#allocation4 + $0x644] sm:$0xf] %v5183_v24  ;;  %v15668_v44 = vadd.f32 %v10057_v23, %v9769_v3  ;;  %v10059_v40 = vpop.f32.mrf.mxu1 }
 0x3f8   :  { %v6158_v27 = vrot.slane %v6156_v35, 4  ;;  %v6165_v58 = vshll.u32 %v5577_v38, 16  ;;  %4814 = vst [vmem:[#allocation4 + $0x640] sm:$0xf] %v4479_v63  ;;  %v5186_v32 = vsel %vm13597_vm10, %v5184_v43, %v5185_v61  ;;  %v6161_v54 = vrot.slane %v6159_v8, 5  ;;  %10196 = vmatprep.mubr.bf16.mxu1 %v13173_v57 }
 0x3f9   :  { %v6704_v21 = vsel %vm13597_vm10, %v15487_v30, %v17108_v5  ;;  %v6169_v25 = vshrl.u32 %v5577_v38, 16  ;;  %v6175_v18 = vshll.u32 %v5578_v48, 16  ;;  %v3911_v29 = vld [vmem:[#allocation2 + $0x138] sm:$0xf]  ;;  %v4489_v30 = vsel %vm13579_vm9, %v4484_v51, %v4488_v6  ;;  %5359 = vst [vmem:[#allocation4 + $0x668] sm:$0xf] %v5186_v32  ;;  %10197 = vmatmul.mubr.bf16.gmra.mxu1 %v13171_v10  ;;  %v15670_v6 = vpop.f32.mrf.mxu0 }
 0x3fa   :  { %6982 = vst [vmem:[#allocation4 + $0x8c] sm:$0xf] %v6704_v21  ;;  %v6167_v15 = vrot.slane %v6165_v58, 5  ;;  %v3912_v14 = vld [vmem:[#allocation2 + $0x13c] sm:$0xf]  ;;  %v4491_v1 = vshrl.u32 %v3911_v29, 16  ;;  %v6162_v35 = vor.u32 %v6161_v54, %v6158_v27  ;;  %v15674_v5 = vadd.f32 %v15536_v34, %v14994_v13  ;;  %v10062_v54 = vpop.f32.mrf.mxu1 }
 0x3fb   :  { %v3913_v39 = vld [vmem:[#allocation2 + $0x140] sm:$0x1]  ;;  %4815 = vst [vmem:[#allocation4 + $0x664] sm:$0xf] %v4489_v30  ;;  %v6171_v61 = vrot.slane %v6169_v25, 4  ;;  %v6177_v45 = vrot.slane %v6175_v18, 5  ;;  %v15678_v51 = vadd.f32 %v15536_v34, %v15006_v59  ;;  %v15682_v27 = vadd.f32 %v15536_v34, %v15016_v26  ;;  %v10353_v25 = vpop.f32.mrf.mxu0 }
 0x3fc   :  { %v4494_v38 = vshll.u32 %v3911_v29, 16  ;;  %v4903_v48 = vld [vmem:[#allocation2 + $0x138] sm:$0xe]  ;;  %v4493_v24 = vrot.slane %v4491_v1, 4  ;;  %v4500_v43 = vshll.u32 %v3912_v14, 16  ;;  %v4504_v8 = vshrl.u32 %v3912_v14, 16 }
 0x3fd   :  { %v4510_v37 = vshll.u32 %v3913_v39, 16  ;;  %v6163_v3 = vrot.slane %v6162_v35, 4  ;;  %v6172_v21 = vor.u32 %v6171_v61, %v6167_v15  ;;  %v4904_v10 = vld [vmem:[#allocation2 + $0x13c] sm:$0xf]  ;;  %v4905_v63 = vld [vmem:[#allocation2 + $0x140] sm:$0x1]  ;;  %v9774_v13 = vadd.f32 %v14905_v53, %v15586_v41  ;;  %v10064_v61 = vpop.f32.mrf.mxu1  ;;  %v15688_v53 = vpop.f32.mrf.mxu0 }
 0x3fe   :  { %v4496_v57 = vrot.slane %v4494_v38, 5  ;;  %v13174_v58 = vld [vmem:[#allocation4 + $0x648] ss:$36 sps:$4 sm:$0xff]   ;;  %v4502_v32 = vrot.slane %v4500_v43, 5  ;;  %v4506_v14 = vrot.slane %v4504_v8, 4  ;;  %v11979_v1 = vrot.slane %v4903_v48, 9 }
 0x3ff   :  { %v13176_v23 = vld [vmem:[#allocation4 + $0x64c] ss:$36 sps:$4 sm:$0xff]   ;;  %v6168_v18 = vsel %vm13579_vm9, %v6163_v3, %v6167_v15  ;;  %v6173_v29 = vrot.slane %v6172_v21, 4  ;;  %v5427_v59 = vld [vmem:[#allocation2 + $0x150] sm:$0xf]  ;;  %v4512_v26 = vrot.slane %v4510_v37, 5  ;;  %v15692_v8 = vadd.f32 %v10062_v54, %v9774_v13 }
 0x400   :  { %v4497_v30 = vor.u32 %v4496_v57, %v4493_v24  ;;  %v5428_v39 = vld [vmem:[#allocation2 + $0x154] sm:$0xf]  ;;  %10493 = vmatprep.mubr.bf16.mxu0 %v13176_v23  ;;  %6481 = vst [vmem:[#allocation4 + $0x694] sm:$0xf] %v6168_v18  ;;  %v5189_v40 = vrot.slane %v4904_v10, 5  ;;  %v5192_v35 = vrot.slane %v4905_v63, 5  ;;  %v4507_v38 = vor.u32 %v4506_v14, %v4502_v32  ;;  %v10065_v10 = vpop.f32.mrf.mxu1  ;;  %v10356_v63 = vpop.f32.mrf.mxu0 }
 0x401   :  { %5491 = vst [vmem:[#allocation4 + $0x6d8] sm:$0xf] %v5427_v59  ;;  %5492 = vst [vmem:[#allocation4 + $0x6fc] sm:$0xf] %v5428_v39  ;;  %10494 = vmatmul.mubr.bf16.gmra.mxu0 %v13174_v58  ;;  %v6178_v41 = vsel %vm13579_vm9, %v6173_v29, %v6177_v45  ;;  %v5579_v24 = vld [vmem:[#allocation2 + $0x150] sm:$0xf]  ;;  %v15696_v48 = vadd.f32 %v15536_v34, %v15022_v52  ;;  %v9777_v45 = vadd.f32 %v14919_v55, %v15600_v11 }
 0x402   :  { %v4498_v15 = vrot.slane %v4497_v30, 4  ;;  %v5580_v43 = vld [vmem:[#allocation2 + $0x154] sm:$0xf]  ;;  %6482 = vst [vmem:[#allocation4 + $0x6b8] sm:$0xf] %v6178_v41  ;;  %v5190_v21 = vsel %vm13597_vm10, %v11979_v1, %v5189_v40  ;;  %v5191_v57 = vrot.slane %v5189_v40, 4  ;;  %v10067_v55 = vpop.f32.mrf.mxu1 }
 0x403   :  { %v13177_v37 = vld [vmem:[#allocation4 + $0x640] ss:$36 sps:$4 sm:$0xff]   ;;  %v4508_v23 = vrot.slane %v4507_v38, 4  ;;  %5360 = vst [vmem:[#allocation4 + $0x68c] sm:$0xf] %v5190_v21  ;;  %v6180_v52 = vshrl.u32 %v5579_v24, 16  ;;  %v15708_v40 = vadd.f32 %v10065_v10, %v9777_v45  ;;  %v15714_v10 = vadd.f32 %v15536_v34, %v15032_v20 }
 0x404   :  { %v13179_v3 = vld [vmem:[#allocation4 + $0x644] ss:$36 sps:$4 sm:$0xff]   ;;  %v4503_v58 = vsel %vm13579_vm9, %v4498_v15, %v4502_v32  ;;  %v6183_v54 = vshll.u32 %v5579_v24, 16  ;;  %v5193_v25 = vsel %vm13597_vm10, %v5191_v57, %v5192_v35  ;;  %v6189_v18 = vshll.u32 %v5580_v43, 16  ;;  %v3914_v14 = vld [vmem:[#allocation2 + $0x144] sm:$0xf]  ;;  %v15710_v24 = vpop.f32.mrf.mxu0 }
 0x405   :  { %v5581_v13 = vld [vmem:[#allocation2 + $0x158] sm:$0x1]  ;;  %10204 = vmatprep.mubr.bf16.mxu1 %v13179_v3  ;;  %4816 = vst [vmem:[#allocation4 + $0x688] sm:$0xf] %v4503_v58  ;;  %v6193_v29 = vshrl.u32 %v5580_v43, 16  ;;  %v4513_v11 = vsel %vm13579_vm9, %v4508_v23, %v4512_v26  ;;  %v6182_v32 = vrot.slane %v6180_v52, 4  ;;  %v15718_v52 = vadd.f32 %v15536_v34, %v15038_v4 }
 0x406   :  { %v6199_v30 = vshll.u32 %v5581_v13, 16  ;;  %10205 = vmatmul.mubr.bf16.gmra.mxu1 %v13177_v37  ;;  %5361 = vst [vmem:[#allocation4 + $0x6b0] sm:$0xf] %v5193_v25  ;;  %v6185_v59 = vrot.slane %v6183_v54, 5  ;;  %v3915_v39 = vld [vmem:[#allocation2 + $0x148] sm:$0xf]  ;;  %v10361_v45 = vpop.f32.mrf.mxu0 }
 0x407   :  { %v3916_v1 = vld [vmem:[#allocation2 + $0x14c] sm:$0x1]  ;;  %4817 = vst [vmem:[#allocation4 + $0x6ac] sm:$0xf] %v4513_v11  ;;  %v6191_v61 = vrot.slane %v6189_v18, 5  ;;  %v6195_v41 = vrot.slane %v6193_v29, 4  ;;  %v9782_v29 = vadd.f32 %v14952_v0, %v15674_v5 }
 0x408   :  { %v6201_v35 = vrot.slane %v6199_v30, 5  ;;  %v4515_v15 = vshrl.u32 %v3914_v14, 16  ;;  %v4906_v38 = vld [vmem:[#allocation2 + $0x144] sm:$0xe]  ;;  %v6186_v43 = vor.u32 %v6185_v59, %v6182_v32  ;;  %v4518_v37 = vshll.u32 %v3914_v14, 16  ;;  %v10070_v30 = vpop.f32.mrf.mxu1 }
 0x409   :  { %v4524_v3 = vshll.u32 %v3915_v39, 16  ;;  %v4528_v21 = vshrl.u32 %v3915_v39, 16  ;;  %v4907_v26 = vld [vmem:[#allocation2 + $0x148] sm:$0xf]  ;;  %v6196_v57 = vor.u32 %v6195_v41, %v6191_v61  ;;  %v4534_v58 = vshll.u32 %v3916_v1, 16  ;;  %v15722_v39 = vpop.f32.mrf.mxu0 }
 0x40a   :  { %v4517_v63 = vrot.slane %v4515_v15, 4  ;;  %v4908_v23 = vld [vmem:[#allocation2 + $0x14c] sm:$0x1]  ;;  %v11980_v13 = vrot.slane %v4906_v38, 9  ;;  %v13180_v54 = vld [vmem:[#allocation4 + $0x690] ss:$36 sps:$4 sm:$0xff]   ;;  %v10072_v38 = vpop.f32.mrf.mxu1 }
 0x40b   :  { %v13182_v25 = vld [vmem:[#allocation4 + $0x694] ss:$36 sps:$4 sm:$0xff]   ;;  %v6187_v18 = vrot.slane %v6186_v43, 4  ;;  %v6197_v14 = vrot.slane %v6196_v57, 4  ;;  %v4520_v55 = vrot.slane %v4518_v37, 5  ;;  %v4526_v11 = vrot.slane %v4524_v3, 5 }
 0x40c   :  { %v4530_v32 = vrot.slane %v4528_v21, 4  ;;  %v5429_v59 = vld [vmem:[#allocation2 + $0x15c] sm:$0xf]  ;;  %10501 = vmatprep.mubr.bf16.mxu0 %v13182_v25  ;;  %v4536_v4 = vrot.slane %v4534_v58, 5  ;;  %v5196_v1 = vrot.slane %v4907_v26, 5  ;;  %v5199_v41 = vrot.slane %v4908_v23, 5 }
 0x40d   :  { %v6192_v20 = vsel %vm13579_vm9, %v6187_v18, %v6191_v61  ;;  %v5430_v15 = vld [vmem:[#allocation2 + $0x160] sm:$0xf]  ;;  %5493 = vst [vmem:[#allocation4 + $0x720] sm:$0xf] %v5429_v59  ;;  %10502 = vmatmul.mubr.bf16.gmra.mxu0 %v13180_v54  ;;  %v6202_v0 = vsel %vm13579_vm9, %v6197_v14, %v6201_v35  ;;  %v4521_v5 = vor.u32 %v4520_v55, %v4517_v63  ;;  %v5582_v37 = vld [vmem:[#allocation2 + $0x15c] sm:$0xf]  ;;  %v10364_v61 = vpop.f32.mrf.mxu0  ;;  %v10073_v54 = vpop.f32.mrf.mxu1 }
 0x40e   :  { %6483 = vst [vmem:[#allocation4 + $0x6dc] sm:$0xf] %v6192_v20  ;;  %v4531_v43 = vor.u32 %v4530_v32, %v4526_v11  ;;  %5494 = vst [vmem:[#allocation4 + $0x744] sm:$0xf] %v5430_v15  ;;  %v5583_v3 = vld [vmem:[#allocation2 + $0x160] sm:$0xf]  ;;  %v15728_v57 = vadd.f32 %v10070_v30, %v9782_v29  ;;  %v15732_v26 = vadd.f32 %v15536_v34, %v15054_v33 }
 0x40f   :  { %v5584_v21 = vld [vmem:[#allocation2 + $0x164] sm:$0x1]  ;;  %v13183_v58 = vld [vmem:[#allocation4 + $0x688] ss:$36 sps:$4 sm:$0xff]   ;;  %6484 = vst [vmem:[#allocation4 + $0x700] sm:$0xf] %v6202_v0  ;;  %v5197_v35 = vsel %vm13597_vm10, %v11980_v13, %v5196_v1  ;;  %v9785_v63 = vadd.f32 %v14971_v60, %v15678_v51  ;;  %v10075_v13 = vpop.f32.mrf.mxu1 }
 0x410   :  { %v13185_v23 = vld [vmem:[#allocation4 + $0x68c] ss:$36 sps:$4 sm:$0xff]   ;;  %v5198_v45 = vrot.slane %v5196_v1, 4  ;;  %v4522_v25 = vrot.slane %v4521_v5, 4  ;;  %v4532_v18 = vrot.slane %v4531_v43, 4  ;;  %v6204_v29 = vshrl.u32 %v5582_v37, 16 }
 0x411   :  { %5362 = vst [vmem:[#allocation4 + $0x6d4] sm:$0xf] %v5197_v35  ;;  %v6207_v30 = vshll.u32 %v5582_v37, 16  ;;  %v3917_v14 = vld [vmem:[#allocation2 + $0x150] sm:$0xf]  ;;  %10212 = vmatprep.mubr.bf16.mxu1 %v13185_v23  ;;  %v6213_v34 = vshll.u32 %v5583_v3, 16 }
 0x412   :  { %v5200_v33 = vsel %vm13597_vm10, %v5198_v45, %v5199_v41  ;;  %v6217_v55 = vshrl.u32 %v5583_v3, 16  ;;  %v6223_v32 = vshll.u32 %v5584_v21, 16  ;;  %v3918_v59 = vld [vmem:[#allocation2 + $0x154] sm:$0xf]  ;;  %10213 = vmatmul.mubr.bf16.gmra.mxu1 %v13183_v58  ;;  %v4527_v60 = vsel %vm13579_vm9, %v4522_v25, %v4526_v11  ;;  %v3919_v15 = vld [vmem:[#allocation2 + $0x158] sm:$0x1]  ;;  %v15744_v3 = vpop.f32.mrf.mxu0 }
 0x413   :  { %v4537_v51 = vsel %vm13579_vm9, %v4532_v18, %v4536_v4  ;;  %5363 = vst [vmem:[#allocation4 + $0x6f8] sm:$0xf] %v5200_v33  ;;  %v6206_v20 = vrot.slane %v6204_v29, 4  ;;  %v6209_v1 = vrot.slane %v6207_v30, 5  ;;  %v4909_v38 = vld [vmem:[#allocation2 + $0x150] sm:$0xe] }
 0x414   :  { %4818 = vst [vmem:[#allocation4 + $0x6d0] sm:$0xf] %v4527_v60  ;;  %4819 = vst [vmem:[#allocation4 + $0x6f4] sm:$0xf] %v4537_v51  ;;  %v6215_v41 = vrot.slane %v6213_v34, 5  ;;  %v6219_v0 = vrot.slane %v6217_v55, 4  ;;  %v10369_v29 = vpop.f32.mrf.mxu0  ;;  %v15746_v55 = vadd.f32 %v10073_v54, %v9785_v63 }
 0x415   :  { %v6225_v5 = vrot.slane %v6223_v32, 5  ;;  %v4539_v43 = vshrl.u32 %v3917_v14, 16  ;;  %v4910_v37 = vld [vmem:[#allocation2 + $0x154] sm:$0xf]  ;;  %v6210_v21 = vor.u32 %v6209_v1, %v6206_v20  ;;  %v4542_v61 = vshll.u32 %v3917_v14, 16  ;;  %v10078_v1 = vpop.f32.mrf.mxu1 }
 0x416   :  { %v4548_v11 = vshll.u32 %v3918_v59, 16  ;;  %v4552_v58 = vshrl.u32 %v3918_v59, 16  ;;  %v4911_v23 = vld [vmem:[#allocation2 + $0x158] sm:$0x1]  ;;  %v6220_v4 = vor.u32 %v6219_v0, %v6215_v41  ;;  %v4558_v45 = vshll.u32 %v3919_v15, 16  ;;  %v15754_v15 = vpop.f32.mrf.mxu0 }
 0x417   :  { %v4541_v35 = vrot.slane %v4539_v43, 4  ;;  %v11981_v25 = vrot.slane %v4909_v38, 9  ;;  %v5431_v18 = vld [vmem:[#allocation2 + $0x168] sm:$0xf]  ;;  %v13188_v33 = vld [vmem:[#allocation4 + $0x6dc] ss:$36 sps:$4 sm:$0xff]   ;;  %v9790_v32 = vadd.f32 %v14986_v47, %v15682_v27  ;;  %v15752_v14 = vadd.f32 %v15002_v22, %v15696_v48 }
 0x418   :  { %v13186_v30 = vld [vmem:[#allocation4 + $0x6d8] ss:$36 sps:$4 sm:$0xff]   ;;  %v6211_v34 = vrot.slane %v6210_v21, 4  ;;  %5495 = vst [vmem:[#allocation4 + $0x768] sm:$0xf] %v5431_v18  ;;  %v6221_v59 = vrot.slane %v6220_v4, 4  ;;  %10509 = vmatprep.mubr.bf16.mxu0 %v13188_v33 }
 0x419   :  { %v4544_v13 = vrot.slane %v4542_v61, 5  ;;  %v4550_v60 = vrot.slane %v4548_v11, 5  ;;  %v4554_v51 = vrot.slane %v4552_v58, 4  ;;  %v5432_v20 = vld [vmem:[#allocation2 + $0x16c] sm:$0xf]  ;;  %17109 = vst [vmem:[#allocation171_spill] sm:$0xff] %v15754_v15  ;;  %10510 = vmatmul.mubr.bf16.gmra.mxu0 %v13186_v30  ;;  %v10080_v11 = vpop.f32.mrf.mxu1  ;;  %v10372_v58 = vpop.f32.mrf.mxu0 }
 0x41a   :  { %v6216_v63 = vsel %vm13579_vm9, %v6211_v34, %v6215_v41  ;;  %v4560_v54 = vrot.slane %v4558_v45, 5  ;;  %v5203_v38 = vrot.slane %v4910_v37, 5  ;;  %v5206_v0 = vrot.slane %v4911_v23, 5  ;;  %5496 = vst [vmem:[#allocation4 + $0x78c] sm:$0xf] %v5432_v20 }
 0x41b   :  { %v5585_v47 = vld [vmem:[#allocation2 + $0x168] sm:$0xf]  ;;  %v6226_v22 = vsel %vm13579_vm9, %v6221_v59, %v6225_v5  ;;  %6485 = vst [vmem:[#allocation4 + $0x724] sm:$0xf] %v6216_v63  ;;  %v4545_v27 = vor.u32 %v4544_v13, %v4541_v35  ;;  %v4555_v48 = vor.u32 %v4554_v51, %v4550_v60  ;;  %v5586_v43 = vld [vmem:[#allocation2 + $0x16c] sm:$0xf]  ;;  %v15762_v45 = vadd.f32 %v10078_v1, %v9790_v32  ;;  %v10081_v33 = vpop.f32.mrf.mxu1 }
 0x41c   :  { %v5587_v21 = vld [vmem:[#allocation2 + $0x170] sm:$0x1]  ;;  %v6228_v61 = vshrl.u32 %v5585_v47, 16  ;;  %v13189_v4 = vld [vmem:[#allocation4 + $0x6d0] ss:$36 sps:$4 sm:$0xff]   ;;  %v5204_v41 = vsel %vm13597_vm10, %v11981_v25, %v5203_v38  ;;  %v5205_v37 = vrot.slane %v5203_v38, 4 }
 0x41d   :  { %6486 = vst [vmem:[#allocation4 + $0x748] sm:$0xf] %v6226_v22  ;;  %v6231_v23 = vshll.u32 %v5585_v47, 16  ;;  %v13191_v18 = vld [vmem:[#allocation4 + $0x6d4] ss:$36 sps:$4 sm:$0xff]   ;;  %v4546_v29 = vrot.slane %v4545_v27, 4  ;;  %v10083_v22 = vpop.f32.mrf.mxu1 }
 0x41e   :  { %v4556_v5 = vrot.slane %v4555_v48, 4  ;;  %5364 = vst [vmem:[#allocation4 + $0x71c] sm:$0xf] %v5204_v41  ;;  %v6230_v35 = vrot.slane %v6228_v61, 4  ;;  %v6237_v30 = vshll.u32 %v5586_v43, 16  ;;  %v5207_v34 = vsel %vm13597_vm10, %v5205_v37, %v5206_v0  ;;  %10220 = vmatprep.mubr.bf16.mxu1 %v13191_v18  ;;  %v15770_v61 = vpop.f32.mrf.mxu0 }
 0x41f   :  { %v6233_v59 = vrot.slane %v6231_v23, 5  ;;  %v6241_v13 = vshrl.u32 %v5586_v43, 16  ;;  %v6247_v51 = vshll.u32 %v5587_v21, 16  ;;  %v3920_v20 = vld [vmem:[#allocation2 + $0x15c] sm:$0xf]  ;;  %v4551_v25 = vsel %vm13579_vm9, %v4546_v29, %v4550_v60  ;;  %10221 = vmatmul.mubr.bf16.gmra.mxu1 %v13189_v4 }
 0x420   :  { %v4561_v32 = vsel %vm13579_vm9, %v4556_v5, %v4560_v54  ;;  %5365 = vst [vmem:[#allocation4 + $0x740] sm:$0xf] %v5207_v34  ;;  %v6239_v1 = vrot.slane %v6237_v30, 5  ;;  %v3921_v63 = vld [vmem:[#allocation2 + $0x160] sm:$0xf]  ;;  %v4563_v47 = vshrl.u32 %v3920_v20, 16  ;;  %v10377_v4 = vpop.f32.mrf.mxu0 }
 0x421   :  { %v3922_v38 = vld [vmem:[#allocation2 + $0x164] sm:$0x1]  ;;  %4820 = vst [vmem:[#allocation4 + $0x718] sm:$0xf] %v4551_v25  ;;  %4821 = vst [vmem:[#allocation4 + $0x73c] sm:$0xf] %v4561_v32  ;;  %v6234_v0 = vor.u32 %v6233_v59, %v6230_v35  ;;  %v9801_v4 = vadd.f32 %v15026_v42, %v15718_v52 }
 0x422   :  { %v6243_v27 = vrot.slane %v6241_v13, 4  ;;  %v6249_v48 = vrot.slane %v6247_v51, 5  ;;  %v4566_v43 = vshll.u32 %v3920_v20, 16  ;;  %v4912_v21 = vld [vmem:[#allocation2 + $0x15c] sm:$0xe]  ;;  %v4565_v60 = vrot.slane %v4563_v47, 4 }
 0x423   :  { %v4572_v11 = vshll.u32 %v3921_v63, 16  ;;  %v4576_v58 = vshrl.u32 %v3921_v63, 16  ;;  %v4582_v54 = vshll.u32 %v3922_v38, 16  ;;  %v4913_v41 = vld [vmem:[#allocation2 + $0x160] sm:$0xf]  ;;  %v6235_v37 = vrot.slane %v6234_v0, 4  ;;  %v10086_v0 = vpop.f32.mrf.mxu1 }
 0x424   :  { %v6244_v23 = vor.u32 %v6243_v27, %v6239_v1  ;;  %v4568_v18 = vrot.slane %v4566_v43, 5  ;;  %v4914_v29 = vld [vmem:[#allocation2 + $0x164] sm:$0x1]  ;;  %v11982_v5 = vrot.slane %v4912_v21, 9  ;;  %v15775_v35 = vld [vmem:[%s16844_s4] ss:$0 sm:$0xff]  ;;  %v15782_v51 = vadd.f32 %v10081_v33, %v15752_v14 }
 0x425   :  { %v15779_v30 = vadd.f32 %v15775_v35, %v15064_v49  ;;  %v13193_v34 = vld [vmem:[#allocation4 + $0x720] ss:$36 sps:$4 sm:$0xff]   ;;  %v4574_v13 = vrot.slane %v4572_v11, 5  ;;  %v9798_v20 = vadd.f32 %v15020_v19, %v15714_v10  ;;  %v6240_v25 = vsel %vm13579_vm9, %v6235_v37, %v6239_v1  ;;  %v5434_v22 = vld [vmem:[#allocation2 + $0x178] sm:$0xf]  ;;  %v15788_v49 = vpop.f32.mrf.mxu0  ;;  %v10088_v37 = vpop.f32.mrf.mxu1 }
 0x426   :  { %v13195_v59 = vld [vmem:[#allocation4 + $0x724] ss:$36 sps:$4 sm:$0xff]   ;;  %17110 = vst [vmem:[#allocation172_spill] sm:$0xff] %v15782_v51  ;;  %v6245_v32 = vrot.slane %v6244_v23, 4  ;;  %v4569_v63 = vor.u32 %v4568_v18, %v4565_v60  ;;  %v4578_v38 = vrot.slane %v4576_v58, 4  ;;  %17111 = vst [vmem:[#allocation173_spill] sm:$0xff] %v15788_v49 }
 0x427   :  { %v5433_v47 = vld [vmem:[#allocation2 + $0x174] sm:$0xf]  ;;  %10517 = vmatprep.mubr.bf16.mxu0 %v13195_v59  ;;  %6487 = vst [vmem:[#allocation4 + $0x76c] sm:$0xf] %v6240_v25  ;;  %v4584_v27 = vrot.slane %v4582_v54, 5  ;;  %v5210_v43 = vrot.slane %v4913_v41, 5  ;;  %v15790_v19 = vadd.f32 %v10086_v0, %v9798_v20  ;;  %v10380_v23 = vpop.f32.mrf.mxu0 }
 0x428   :  { %v5213_v14 = vrot.slane %v4914_v29, 5  ;;  %5497 = vst [vmem:[#allocation4 + $0x7b0] sm:$0xf] %v5433_v47  ;;  %5498 = vst [vmem:[#allocation4 + $0x7d4] sm:$0xf] %v5434_v22  ;;  %10518 = vmatmul.mubr.bf16.gmra.mxu0 %v13193_v34  ;;  %v6250_v10 = vsel %vm13579_vm9, %v6245_v32, %v6249_v48  ;;  %v4570_v1 = vrot.slane %v4569_v63, 4  ;;  %v4579_v21 = vor.u32 %v4578_v38, %v4574_v13  ;;  %v10089_v32 = vpop.f32.mrf.mxu1 }
 0x429   :  { %v5588_v33 = vld [vmem:[#allocation2 + $0x174] sm:$0xf]  ;;  %v5589_v60 = vld [vmem:[#allocation2 + $0x178] sm:$0xf]  ;;  %v5590_v11 = vld [vmem:[#allocation2 + $0x17c] sm:$0x1]  ;;  %v5211_v54 = vsel %vm13597_vm10, %v11982_v5, %v5210_v43 }
 0x42a   :  { %v6252_v58 = vshrl.u32 %v5588_v33, 16  ;;  %v13196_v18 = vld [vmem:[#allocation4 + $0x718] ss:$36 sps:$4 sm:$0xff]   ;;  %6488 = vst [vmem:[#allocation4 + $0x790] sm:$0xf] %v6250_v10  ;;  %v5212_v41 = vrot.slane %v5210_v43, 4  ;;  %v4575_v48 = vsel %vm13579_vm9, %v4570_v1, %v4574_v13  ;;  %v10091_v10 = vpop.f32.mrf.mxu1 }
 0x42b   :  { %v6255_v29 = vshll.u32 %v5588_v33, 16  ;;  %v13198_v34 = vld [vmem:[#allocation4 + $0x71c] ss:$36 sps:$4 sm:$0xff]   ;;  %v4580_v59 = vrot.slane %v4579_v21, 4  ;;  %5366 = vst [vmem:[#allocation4 + $0x764] sm:$0xf] %v5211_v54  ;;  %v15804_v33 = vadd.f32 %v10089_v32, %v9801_v4 }
 0x42c   :  { %v6254_v20 = vrot.slane %v6252_v58, 4  ;;  %v6261_v25 = vshll.u32 %v5589_v60, 16  ;;  %4822 = vst [vmem:[#allocation4 + $0x760] sm:$0xf] %v4575_v48  ;;  %v5214_v63 = vsel %vm13597_vm10, %v5212_v41, %v5213_v14  ;;  %v6265_v5 = vshrl.u32 %v5589_v60, 16  ;;  %10228 = vmatprep.mubr.bf16.mxu1 %v13198_v34  ;;  %v15806_v58 = vpop.f32.mrf.mxu0  ;;  %v17113_v41 = vld [vmem:[#allocation77_spill] sm:$0xff] }
 0x42d   :  { %v6257_v38 = vrot.slane %v6255_v29, 5  ;;  %v6271_v47 = vshll.u32 %v5590_v11, 16  ;;  %v3923_v22 = vld [vmem:[#allocation2 + $0x168] sm:$0xf]  ;;  %v4585_v42 = vsel %vm13579_vm9, %v4580_v59, %v4584_v27  ;;  %5367 = vst [vmem:[#allocation4 + $0x788] sm:$0xf] %v5214_v63  ;;  %10229 = vmatmul.mubr.bf16.gmra.mxu1 %v13196_v18  ;;  %v15810_v29 = vadd.f32 %v15775_v35, %v17113_v41 }
 0x42e   :  { %v6263_v52 = vrot.slane %v6261_v25, 5  ;;  %v3924_v13 = vld [vmem:[#allocation2 + $0x16c] sm:$0xf]  ;;  %v3925_v0 = vld [vmem:[#allocation2 + $0x170] sm:$0x1]  ;;  %v4587_v43 = vshrl.u32 %v3923_v22, 16 }
 0x42f   :  { %4823 = vst [vmem:[#allocation4 + $0x784] sm:$0xf] %v4585_v42  ;;  %v6258_v1 = vor.u32 %v6257_v38, %v6254_v20  ;;  %v6267_v14 = vrot.slane %v6265_v5, 4  ;;  %v6273_v21 = vrot.slane %v6271_v47, 5  ;;  %v4590_v60 = vshll.u32 %v3923_v22, 16  ;;  %17112 = vst [vmem:[#allocation174_spill] sm:$0xff] %v15806_v58  ;;  %v10385_v20 = vpop.f32.mrf.mxu0 }
 0x430   :  { %v4915_v11 = vld [vmem:[#allocation2 + $0x168] sm:$0xe]  ;;  %v4589_v37 = vrot.slane %v4587_v43, 4  ;;  %v4596_v23 = vshll.u32 %v3924_v13, 16  ;;  %v4600_v27 = vshrl.u32 %v3924_v13, 16  ;;  %v4606_v54 = vshll.u32 %v3925_v0, 16 }
 0x431   :  { %v6259_v4 = vrot.slane %v6258_v1, 4  ;;  %v6268_v34 = vor.u32 %v6267_v14, %v6263_v52  ;;  %v4592_v48 = vrot.slane %v4590_v60, 5  ;;  %v4916_v18 = vld [vmem:[#allocation2 + $0x16c] sm:$0xf]  ;;  %v4917_v59 = vld [vmem:[#allocation2 + $0x170] sm:$0x1]  ;;  %v15824_v41 = vpop.f32.mrf.mxu0 }
 0x432   :  { %v17114_v25 = vld [vmem:[#allocation79_spill] sm:$0xff]  ;;  %v17115_v63 = vld [vmem:[#allocation81_spill] sm:$0xff]  ;;  %v13199_v5 = vld [vmem:[#allocation4 + $0x768] ss:$36 sps:$4 sm:$0xff]   ;;  %v4598_v22 = vrot.slane %v4596_v23, 5  ;;  %v4602_v1 = vrot.slane %v4600_v27, 4  ;;  %v10094_v23 = vpop.f32.mrf.mxu1 }
 0x433   :  { %v15814_v32 = vadd.f32 %v15775_v35, %v17114_v25  ;;  %v15818_v38 = vadd.f32 %v15775_v35, %v17115_v63  ;;  %v13201_v47 = vld [vmem:[#allocation4 + $0x76c] ss:$36 sps:$4 sm:$0xff]   ;;  %v17116_v42 = vld [vmem:[#allocation73_spill] sm:$0xff]  ;;  %v6264_v0 = vsel %vm13579_vm9, %v6259_v4, %v6263_v52  ;;  %v6269_v43 = vrot.slane %v6268_v34, 4  ;;  %v5436_v60 = vld [vmem:[#allocation2 + $0x184] sm:$0xf] }
 0x434   :  { %v9806_v13 = vadd.f32 %v17116_v42, %v15732_v26  ;;  %v4593_v10 = vor.u32 %v4592_v48, %v4589_v37  ;;  %v5435_v14 = vld [vmem:[#allocation2 + $0x180] sm:$0xf]  ;;  %17117 = vst [vmem:[#allocation77_spill] sm:$0xff] %v15824_v41  ;;  %10525 = vmatprep.mubr.bf16.mxu0 %v13201_v47  ;;  %6489 = vst [vmem:[#allocation4 + $0x7b4] sm:$0xf] %v6264_v0  ;;  %v4608_v20 = vrot.slane %v4606_v54, 5  ;;  %v10388_v48 = vpop.f32.mrf.mxu0  ;;  %v10096_v42 = vpop.f32.mrf.mxu1 }
 0x435   :  { %v11983_v25 = vrot.slane %v4915_v11, 9  ;;  %v5217_v63 = vrot.slane %v4916_v18, 5  ;;  %v5220_v58 = vrot.slane %v4917_v59, 5  ;;  %5499 = vst [vmem:[#allocation4 + $0x7f8] sm:$0xf] %v5435_v14  ;;  %10526 = vmatmul.mubr.bf16.gmra.mxu0 %v13199_v5  ;;  %v6274_v26 = vsel %vm13579_vm9, %v6269_v43, %v6273_v21  ;;  %v17119_v47 = vld [vmem:[#allocation83_spill] sm:$0xff] }
 0x436   :  { %5500 = vst [vmem:[#allocation4 + $0x81c] sm:$0xf] %v5436_v60  ;;  %v4594_v52 = vrot.slane %v4593_v10, 4  ;;  %v4603_v37 = vor.u32 %v4602_v1, %v4598_v22  ;;  %v5591_v27 = vld [vmem:[#allocation2 + $0x180] sm:$0xf]  ;;  %v15828_v34 = vadd.f32 %v10094_v23, %v9806_v13  ;;  %v15832_v54 = vadd.f32 %v15775_v35, %v17119_v47  ;;  %v17120_v21 = vld [vmem:[#allocation74_spill] sm:$0xff]  ;;  %v10097_v48 = vpop.f32.mrf.mxu1 }
 0x437   :  { %v5592_v4 = vld [vmem:[#allocation2 + $0x184] sm:$0xf]  ;;  %v13202_v11 = vld [vmem:[#allocation4 + $0x760] ss:$36 sps:$4 sm:$0xff]   ;;  %6490 = vst [vmem:[#allocation4 + $0x7d8] sm:$0xf] %v6274_v26  ;;  %v5218_v59 = vsel %vm13597_vm10, %v11983_v25, %v5217_v63  ;;  %v9809_v0 = vadd.f32 %v17120_v21, %v15779_v30  ;;  %v15846_v21 = vpop.f32.mrf.mxu0 }
 0x438   :  { %17118 = vst [vmem:[#allocation79_spill] sm:$0xff] %v15828_v34  ;;  %v13204_v18 = vld [vmem:[#allocation4 + $0x764] ss:$36 sps:$4 sm:$0xff]   ;;  %v5219_v5 = vrot.slane %v5217_v63, 4  ;;  %v4599_v13 = vsel %vm13579_vm9, %v4594_v52, %v4598_v22  ;;  %v4604_v43 = vrot.slane %v4603_v37, 4  ;;  %v6276_v1 = vshrl.u32 %v5591_v27, 16  ;;  %v10099_v42 = vpop.f32.mrf.mxu1 }
 0x439   :  { %5368 = vst [vmem:[#allocation4 + $0x7ac] sm:$0xf] %v5218_v59  ;;  %v5593_v10 = vld [vmem:[#allocation2 + $0x188] sm:$0x1]  ;;  %v6279_v14 = vshll.u32 %v5591_v27, 16  ;;  %10236 = vmatprep.mubr.bf16.mxu1 %v13204_v18  ;;  %v6285_v23 = vshll.u32 %v5592_v4, 16  ;;  %v15844_v27 = vadd.f32 %v10097_v48, %v9809_v0  ;;  %v10393_v48 = vpop.f32.mrf.mxu0 }
 0x43a   :  { %4824 = vst [vmem:[#allocation4 + $0x7a8] sm:$0xf] %v4599_v13  ;;  %v5221_v60 = vsel %vm13597_vm10, %v5219_v5, %v5220_v58  ;;  %v6289_v25 = vshrl.u32 %v5592_v4, 16  ;;  %v6295_v63 = vshll.u32 %v5593_v10, 16  ;;  %v3926_v26 = vld [vmem:[#allocation2 + $0x174] sm:$0xf]  ;;  %10237 = vmatmul.mubr.bf16.gmra.mxu1 %v13202_v11  ;;  %v4609_v30 = vsel %vm13579_vm9, %v4604_v43, %v4608_v20 }
 0x43b   :  { %5369 = vst [vmem:[#allocation4 + $0x7d0] sm:$0xf] %v5221_v60  ;;  %v6278_v22 = vrot.slane %v6276_v1, 4  ;;  %v6281_v52 = vrot.slane %v6279_v14, 5  ;;  %v3927_v37 = vld [vmem:[#allocation2 + $0x178] sm:$0xf]  ;;  %v15858_v48 = vpop.f32.mrf.mxu0 }
 0x43c   :  { %v3928_v47 = vld [vmem:[#allocation2 + $0x17c] sm:$0x1]  ;;  %17121 = vst [vmem:[#allocation81_spill] sm:$0xff] %v15844_v27  ;;  %4825 = vst [vmem:[#allocation4 + $0x7cc] sm:$0xf] %v4609_v30  ;;  %v6287_v18 = vrot.slane %v6285_v23, 5 }
 0x43d   :  { %v6291_v59 = vrot.slane %v6289_v25, 4  ;;  %v6297_v58 = vrot.slane %v6295_v63, 5  ;;  %v4611_v5 = vshrl.u32 %v3926_v26, 16  ;;  %v4918_v4 = vld [vmem:[#allocation2 + $0x174] sm:$0xe]  ;;  %17122 = vst [vmem:[#allocation73_spill] sm:$0xff] %v15846_v21  ;;  %v6282_v11 = vor.u32 %v6281_v52, %v6278_v22 }
 0x43e   :  { %v4614_v13 = vshll.u32 %v3926_v26, 16  ;;  %v4620_v10 = vshll.u32 %v3927_v37, 16  ;;  %v4624_v20 = vshrl.u32 %v3927_v37, 16  ;;  %v4919_v43 = vld [vmem:[#allocation2 + $0x178] sm:$0xf]  ;;  %v4630_v60 = vshll.u32 %v3928_v47, 16 }
 0x43f   :  { %v6292_v1 = vor.u32 %v6291_v59, %v6287_v18  ;;  %v4613_v14 = vrot.slane %v4611_v5, 4  ;;  %v4920_v41 = vld [vmem:[#allocation2 + $0x17c] sm:$0x1]  ;;  %v11984_v0 = vrot.slane %v4918_v4, 9  ;;  %v17123_v30 = vld [vmem:[#allocation85_spill] sm:$0xff]  ;;  %v6283_v26 = vrot.slane %v6282_v11, 4  ;;  %v10102_v11 = vpop.f32.mrf.mxu1 }
 0x440   :  { %v15850_v23 = vadd.f32 %v15775_v35, %v17123_v30  ;;  %v17124_v25 = vld [vmem:[#allocation86_spill] sm:$0xff]  ;;  %v13205_v42 = vld [vmem:[#allocation4 + $0x7b0] ss:$36 sps:$4 sm:$0xff]   ;;  %v4616_v5 = vrot.slane %v4614_v13, 5  ;;  %v4622_v47 = vrot.slane %v4620_v10, 5  ;;  %v4626_v27 = vrot.slane %v4624_v20, 4 }
 0x441   :  { %v15854_v63 = vadd.f32 %v15775_v35, %v17124_v25  ;;  %v13207_v22 = vld [vmem:[#allocation4 + $0x7b4] ss:$36 sps:$4 sm:$0xff]   ;;  %v6293_v59 = vrot.slane %v6292_v1, 4  ;;  %v5437_v4 = vld [vmem:[#allocation2 + $0x18c] sm:$0xf]  ;;  %17126 = vst [vmem:[#allocation83_spill] sm:$0xff] %v15858_v48  ;;  %v6288_v30 = vsel %vm13579_vm9, %v6283_v26, %v6287_v18  ;;  %v10396_v18 = vpop.f32.mrf.mxu0 }
 0x442   :  { %v17125_v52 = vld [vmem:[#allocation75_spill] sm:$0xff]  ;;  %10533 = vmatprep.mubr.bf16.mxu0 %v13207_v22  ;;  %v4632_v21 = vrot.slane %v4630_v60, 5  ;;  %v5224_v25 = vrot.slane %v4919_v43, 5  ;;  %v5227_v34 = vrot.slane %v4920_v41, 5  ;;  %v5438_v15 = vld [vmem:[#allocation2 + $0x190] sm:$0xf]  ;;  %v4617_v13 = vor.u32 %v4616_v5, %v4613_v14  ;;  %v10104_v14 = vpop.f32.mrf.mxu1 }
 0x443   :  { %v9814_v37 = vadd.f32 %v17125_v52, %v15810_v29  ;;  %5501 = vst [vmem:[#allocation4 + $0x840] sm:$0xf] %v5437_v4  ;;  %10534 = vmatmul.mubr.bf16.gmra.mxu0 %v13205_v42  ;;  %v6298_v29 = vsel %vm13579_vm9, %v6293_v59, %v6297_v58  ;;  %6491 = vst [vmem:[#allocation4 + $0x7fc] sm:$0xf] %v6288_v30  ;;  %v4627_v10 = vor.u32 %v4626_v27, %v4622_v47  ;;  %v5594_v20 = vld [vmem:[#allocation2 + $0x18c] sm:$0xf] }
 0x444   :  { %5502 = vst [vmem:[#allocation4 + $0x864] sm:$0xf] %v5438_v15  ;;  %v5595_v1 = vld [vmem:[#allocation2 + $0x190] sm:$0xf]  ;;  %v5596_v22 = vld [vmem:[#allocation2 + $0x194] sm:$0x1]  ;;  %v5225_v58 = vsel %vm13597_vm10, %v11984_v0, %v5224_v25  ;;  %v10105_v0 = vpop.f32.mrf.mxu1 }
 0x445   :  { %v15864_v52 = vadd.f32 %v10102_v11, %v9814_v37  ;;  %v17128_v60 = vld [vmem:[#allocation90_spill] sm:$0xff]  ;;  %6492 = vst [vmem:[#allocation4 + $0x820] sm:$0xf] %v6298_v29  ;;  %v5226_v42 = vrot.slane %v5224_v25, 4  ;;  %v17129_v15 = vld [vmem:[#allocation76_spill] sm:$0xff]  ;;  %v4618_v59 = vrot.slane %v4617_v13, 4 }
 0x446   :  { %v15868_v41 = vadd.f32 %v15775_v35, %v17128_v60  ;;  %v13208_v43 = vld [vmem:[#allocation4 + $0x7a8] ss:$36 sps:$4 sm:$0xff]   ;;  %v9817_v27 = vadd.f32 %v17129_v15, %v15814_v32  ;;  %v4628_v5 = vrot.slane %v4627_v10, 4  ;;  %5370 = vst [vmem:[#allocation4 + $0x7f4] sm:$0xf] %v5225_v58  ;;  %v6300_v37 = vshrl.u32 %v5594_v20, 16  ;;  %v10107_v14 = vpop.f32.mrf.mxu1 }
 0x447   :  { %17127 = vst [vmem:[#allocation74_spill] sm:$0xff] %v15864_v52  ;;  %v13210_v26 = vld [vmem:[#allocation4 + $0x7ac] ss:$36 sps:$4 sm:$0xff]   ;;  %v6303_v4 = vshll.u32 %v5594_v20, 16  ;;  %v5228_v11 = vsel %vm13597_vm10, %v5226_v42, %v5227_v34  ;;  %v6309_v18 = vshll.u32 %v5595_v1, 16  ;;  %v6313_v29 = vshrl.u32 %v5595_v1, 16 }
 0x448   :  { %v3929_v30 = vld [vmem:[#allocation2 + $0x180] sm:$0xf]  ;;  %10244 = vmatprep.mubr.bf16.mxu1 %v13210_v26  ;;  %v6319_v60 = vshll.u32 %v5596_v22, 16  ;;  %v3930_v48 = vld [vmem:[#allocation2 + $0x184] sm:$0xf]  ;;  %v4623_v25 = vsel %vm13579_vm9, %v4618_v59, %v4622_v47  ;;  %v4633_v32 = vsel %vm13579_vm9, %v4628_v5, %v4632_v21  ;;  %v6302_v13 = vrot.slane %v6300_v37, 4 }
 0x449   :  { %10245 = vmatmul.mubr.bf16.gmra.mxu1 %v13208_v43  ;;  %5371 = vst [vmem:[#allocation4 + $0x818] sm:$0xf] %v5228_v11  ;;  %v6305_v10 = vrot.slane %v6303_v4, 5  ;;  %v3931_v20 = vld [vmem:[#allocation2 + $0x188] sm:$0x1]  ;;  %v6311_v34 = vrot.slane %v6309_v18, 5  ;;  %v15880_v43 = vpop.f32.mrf.mxu0 }
 0x44a   :  { %v4921_v26 = vld [vmem:[#allocation2 + $0x180] sm:$0xe]  ;;  %4826 = vst [vmem:[#allocation4 + $0x7f0] sm:$0xf] %v4623_v25  ;;  %4827 = vst [vmem:[#allocation4 + $0x814] sm:$0xf] %v4633_v32 }
 0x44b   :  { %v6315_v58 = vrot.slane %v6313_v29, 4  ;;  %v6321_v1 = vrot.slane %v6319_v60, 5  ;;  %v4635_v22 = vshrl.u32 %v3929_v30, 16  ;;  %v4922_v42 = vld [vmem:[#allocation2 + $0x184] sm:$0xf]  ;;  %17130 = vst [vmem:[#allocation85_spill] sm:$0xff] %v15880_v43  ;;  %v6306_v15 = vor.u32 %v6305_v10, %v6302_v13  ;;  %v10401_v25 = vpop.f32.mrf.mxu0 }
 0x44c   :  { %v4638_v47 = vshll.u32 %v3929_v30, 16  ;;  %v4644_v59 = vshll.u32 %v3930_v48, 16  ;;  %v4648_v52 = vshrl.u32 %v3930_v48, 16  ;;  %v4923_v21 = vld [vmem:[#allocation2 + $0x188] sm:$0x1]  ;;  %v4654_v4 = vshll.u32 %v3931_v20, 16 }
 0x44d   :  { %v6316_v5 = vor.u32 %v6315_v58, %v6311_v34  ;;  %v4637_v37 = vrot.slane %v4635_v22, 4  ;;  %v11985_v11 = vrot.slane %v4921_v26, 9  ;;  %v5439_v51 = vld [vmem:[#allocation2 + $0x198] sm:$0xf]  ;;  %v13211_v32 = vld [vmem:[#allocation4 + $0x7f8] ss:$36 sps:$4 sm:$0xff]   ;;  %v15882_v60 = vadd.f32 %v10105_v0, %v9817_v27  ;;  %v10110_v22 = vpop.f32.mrf.mxu1  ;;  %v15890_v25 = vpop.f32.mrf.mxu0 }
 0x44e   :  { %v13213_v18 = vld [vmem:[#allocation4 + $0x7fc] ss:$36 sps:$4 sm:$0xff]   ;;  %v6307_v29 = vrot.slane %v6306_v15, 4  ;;  %5503 = vst [vmem:[#allocation4 + $0x888] sm:$0xf] %v5439_v51  ;;  %v17132_v14 = vld [vmem:[#allocation78_spill] sm:$0xff] }
 0x44f   :  { %17131 = vst [vmem:[#allocation86_spill] sm:$0xff] %v15882_v60  ;;  %v9822_v43 = vadd.f32 %v17132_v14, %v15818_v38  ;;  %v17133_v30 = vld [vmem:[#allocation80_spill] sm:$0xff]  ;;  %v6317_v48 = vrot.slane %v6316_v5, 4  ;;  %v4640_v10 = vrot.slane %v4638_v47, 5  ;;  %v4646_v58 = vrot.slane %v4644_v59, 5  ;;  %17134 = vst [vmem:[#allocation75_spill] sm:$0xff] %v15890_v25  ;;  %10541 = vmatprep.mubr.bf16.mxu0 %v13213_v18  ;;  %v10404_v18 = vpop.f32.mrf.mxu0 }
 0x450   :  { %v15888_v13 = vadd.f32 %v17133_v30, %v15832_v54  ;;  %v4650_v20 = vrot.slane %v4648_v52, 4  ;;  %v5440_v26 = vld [vmem:[#allocation2 + $0x19c] sm:$0xf]  ;;  %v6312_v51 = vsel %vm13579_vm9, %v6307_v29, %v6311_v34  ;;  %v4656_v27 = vrot.slane %v4654_v4, 5  ;;  %v5597_v38 = vld [vmem:[#allocation2 + $0x198] sm:$0xf]  ;;  %10542 = vmatmul.mubr.bf16.gmra.mxu0 %v13211_v32  ;;  %v10112_v30 = vpop.f32.mrf.mxu1 }
 0x451   :  { %v5231_v0 = vrot.slane %v4922_v42, 5  ;;  %v5234_v15 = vrot.slane %v4923_v21, 5  ;;  %5504 = vst [vmem:[#allocation4 + $0x8ac] sm:$0xf] %v5440_v26  ;;  %v6322_v54 = vsel %vm13579_vm9, %v6317_v48, %v6321_v1  ;;  %6493 = vst [vmem:[#allocation4 + $0x844] sm:$0xf] %v6312_v51  ;;  %v4641_v47 = vor.u32 %v4640_v10, %v4637_v37 }
 0x452   :  { %v4651_v52 = vor.u32 %v4650_v20, %v4646_v58  ;;  %v5598_v59 = vld [vmem:[#allocation2 + $0x19c] sm:$0xf]  ;;  %v5599_v5 = vld [vmem:[#allocation2 + $0x1a0] sm:$0x1]  ;;  %v6324_v14 = vshrl.u32 %v5597_v38, 16  ;;  %v6327_v21 = vshll.u32 %v5597_v38, 16  ;;  %v15898_v4 = vadd.f32 %v10110_v22, %v9822_v43  ;;  %v10113_v10 = vpop.f32.mrf.mxu1 }
 0x453   :  { %v13214_v25 = vld [vmem:[#allocation4 + $0x7f0] ss:$36 sps:$4 sm:$0xff]   ;;  %6494 = vst [vmem:[#allocation4 + $0x868] sm:$0xf] %v6322_v54  ;;  %v5232_v34 = vsel %vm13597_vm10, %v11985_v11, %v5231_v0  ;;  %v5233_v42 = vrot.slane %v5231_v0, 4  ;;  %v4642_v29 = vrot.slane %v4641_v47, 4 }
 0x454   :  { %17135 = vst [vmem:[#allocation90_spill] sm:$0xff] %v15898_v4  ;;  %v13216_v32 = vld [vmem:[#allocation4 + $0x7f4] ss:$36 sps:$4 sm:$0xff]   ;;  %v4652_v1 = vrot.slane %v4651_v52, 4  ;;  %5372 = vst [vmem:[#allocation4 + $0x83c] sm:$0xf] %v5232_v34  ;;  %v10115_v52 = vpop.f32.mrf.mxu1  ;;  %v15906_v34 = vpop.f32.mrf.mxu0 }
 0x455   :  { %v6326_v37 = vrot.slane %v6324_v14, 4  ;;  %v6333_v48 = vshll.u32 %v5598_v59, 16  ;;  %v5235_v20 = vsel %vm13597_vm10, %v5233_v42, %v5234_v15  ;;  %v6329_v26 = vrot.slane %v6327_v21, 5  ;;  %v3932_v30 = vld [vmem:[#allocation2 + $0x18c] sm:$0xf]  ;;  %10252 = vmatprep.mubr.bf16.mxu1 %v13216_v32  ;;  %17136 = vst [vmem:[#allocation76_spill] sm:$0xff] %v15906_v34 }
 0x456   :  { %v6337_v51 = vshrl.u32 %v5598_v59, 16  ;;  %v6343_v54 = vshll.u32 %v5599_v5, 16  ;;  %v4647_v11 = vsel %vm13579_vm9, %v4642_v29, %v4646_v58  ;;  %v4657_v43 = vsel %vm13579_vm9, %v4652_v1, %v4656_v27  ;;  %5373 = vst [vmem:[#allocation4 + $0x860] sm:$0xf] %v5235_v20  ;;  %v3933_v0 = vld [vmem:[#allocation2 + $0x190] sm:$0xf]  ;;  %10253 = vmatmul.mubr.bf16.gmra.mxu1 %v13214_v25  ;;  %v10409_v25 = vpop.f32.mrf.mxu0 }
 0x457   :  { %v6335_v22 = vrot.slane %v6333_v48, 5  ;;  %v3934_v38 = vld [vmem:[#allocation2 + $0x194] sm:$0x1]  ;;  %v4659_v47 = vshrl.u32 %v3932_v30, 16  ;;  %4828 = vst [vmem:[#allocation4 + $0x838] sm:$0xf] %v4647_v11  ;;  %v6330_v15 = vor.u32 %v6329_v26, %v6326_v37  ;;  %v10118_v25 = vpop.f32.mrf.mxu1 }
 0x458   :  { %4829 = vst [vmem:[#allocation4 + $0x85c] sm:$0xf] %v4657_v43  ;;  %v6339_v59 = vrot.slane %v6337_v51, 4  ;;  %v6345_v5 = vrot.slane %v6343_v54, 5  ;;  %v4662_v14 = vshll.u32 %v3932_v30, 16  ;;  %v4668_v42 = vshll.u32 %v3933_v0, 16 }
 0x459   :  { %v4924_v18 = vld [vmem:[#allocation2 + $0x18c] sm:$0xe]  ;;  %v4661_v58 = vrot.slane %v4659_v47, 4  ;;  %v4672_v21 = vshrl.u32 %v3933_v0, 16  ;;  %v4678_v27 = vshll.u32 %v3934_v38, 16  ;;  %v6331_v29 = vrot.slane %v6330_v15, 4 }
 0x45a   :  { %v4925_v32 = vld [vmem:[#allocation2 + $0x190] sm:$0xf]  ;;  %v6340_v1 = vor.u32 %v6339_v59, %v6335_v22  ;;  %v4664_v48 = vrot.slane %v4662_v14, 5  ;;  %v4926_v20 = vld [vmem:[#allocation2 + $0x194] sm:$0x1]  ;;  %v11986_v52 = vrot.slane %v4924_v18, 9  ;;  %v15913_v30 = vadd.f32 %v10113_v10, %v15888_v13 }
 0x45b   :  { %v17137_v11 = vld [vmem:[#allocation92_spill] sm:$0xff]  ;;  %v13218_v26 = vld [vmem:[#allocation4 + $0x840] ss:$36 sps:$4 sm:$0xff]   ;;  %v4670_v54 = vrot.slane %v4668_v42, 5  ;;  %v17139_v43 = vld [vmem:[#allocation82_spill] sm:$0xff]  ;;  %v6336_v38 = vsel %vm13579_vm9, %v6331_v29, %v6335_v22  ;;  %v4674_v59 = vrot.slane %v4672_v21, 4 }
 0x45c   :  { %v15910_v37 = vadd.f32 %v15775_v35, %v17137_v11  ;;  %v13220_v51 = vld [vmem:[#allocation4 + $0x844] ss:$36 sps:$4 sm:$0xff]   ;;  %17138 = vst [vmem:[#allocation78_spill] sm:$0xff] %v15913_v30  ;;  %v9830_v0 = vadd.f32 %v17139_v43, %v15850_v23  ;;  %v6341_v47 = vrot.slane %v6340_v1, 4  ;;  %v4665_v15 = vor.u32 %v4664_v48, %v4661_v58  ;;  %v3936_v18 = vld [vmem:[#allocation2 + $0x19c] sm:$0xf]  ;;  %v15919_v11 = vpop.f32.mrf.mxu0  ;;  %v10120_v48 = vpop.f32.mrf.mxu1 }
 0x45d   :  { %v3935_v14 = vld [vmem:[#allocation2 + $0x198] sm:$0xf]  ;;  %17140 = vst [vmem:[#allocation80_spill] sm:$0xff] %v15919_v11  ;;  %10549 = vmatprep.mubr.bf16.mxu0 %v13220_v51  ;;  %6495 = vst [vmem:[#allocation4 + $0x88c] sm:$0xf] %v6336_v38  ;;  %v4680_v42 = vrot.slane %v4678_v27, 5  ;;  %v4675_v29 = vor.u32 %v4674_v59, %v4670_v54 }
 0x45e   :  { %v5238_v34 = vrot.slane %v4925_v32, 5  ;;  %v5241_v13 = vrot.slane %v4926_v20, 5  ;;  %v3937_v10 = vld [vmem:[#allocation2 + $0x1a0] sm:$0x1]  ;;  %v4683_v30 = vshrl.u32 %v3935_v14, 16  ;;  %10550 = vmatmul.mubr.bf16.gmra.mxu0 %v13218_v26  ;;  %v6346_v23 = vsel %vm13579_vm9, %v6341_v47, %v6345_v5  ;;  %v10412_v43 = vpop.f32.mrf.mxu0  ;;  %v10121_v59 = vpop.f32.mrf.mxu1  ;;  %v17255_v60 = vld [vmem:[#allocation156_spill] sm:$0xff] }
 0x45f   :  { %v4666_v22 = vrot.slane %v4665_v15, 4  ;;  %v4686_v58 = vshll.u32 %v3935_v14, 16  ;;  %v4927_v21 = vld [vmem:[#allocation2 + $0x198] sm:$0xe]  ;;  %v4928_v1 = vld [vmem:[#allocation2 + $0x19c] sm:$0xf]  ;;  %v15925_v51 = vadd.f32 %v10118_v25, %v9830_v0 }
 0x460   :  { %v13221_v4 = vld [vmem:[#allocation4 + $0x838] ss:$36 sps:$4 sm:$0xff]   ;;  %6496 = vst [vmem:[#allocation4 + $0x8b0] sm:$0xf] %v6346_v23  ;;  %v5239_v27 = vsel %vm13597_vm10, %v11986_v52, %v5238_v34  ;;  %v5240_v32 = vrot.slane %v5238_v34, 4  ;;  %v4685_v20 = vrot.slane %v4683_v30, 4 }
 0x461   :  { %17141 = vst [vmem:[#allocation92_spill] sm:$0xff] %v15925_v51  ;;  %v13223_v26 = vld [vmem:[#allocation4 + $0x83c] ss:$36 sps:$4 sm:$0xff]   ;;  %v4671_v5 = vsel %vm13579_vm9, %v4666_v22, %v4670_v54  ;;  %v4676_v38 = vrot.slane %v4675_v29, 4  ;;  %5374 = vst [vmem:[#allocation4 + $0x884] sm:$0xf] %v5239_v27 }
 0x462   :  { %v4688_v47 = vrot.slane %v4686_v58, 5  ;;  %v4692_v15 = vshll.u32 %v3936_v18, 16  ;;  %4830 = vst [vmem:[#allocation4 + $0x880] sm:$0xf] %v4671_v5  ;;  %v5242_v14 = vsel %vm13597_vm10, %v5240_v32, %v5241_v13  ;;  %v4696_v23 = vshrl.u32 %v3936_v18, 16  ;;  %10260 = vmatprep.mubr.bf16.mxu1 %v13223_v26  ;;  %v10123_v58 = vpop.f32.mrf.mxu1  ;;  %v15935_v32 = vpop.f32.mrf.mxu0 }
 0x463   :  { %v4702_v48 = vshll.u32 %v3937_v10, 16  ;;  %v4929_v52 = vld [vmem:[#allocation2 + $0x1a0] sm:$0x1]  ;;  %v11987_v34 = vrot.slane %v4927_v21, 9  ;;  %v4681_v30 = vsel %vm13579_vm9, %v4676_v38, %v4680_v42  ;;  %5375 = vst [vmem:[#allocation4 + $0x8a8] sm:$0xf] %v5242_v14  ;;  %10261 = vmatmul.mubr.bf16.gmra.mxu1 %v13221_v4 }
 0x464   :  { %v4689_v0 = vor.u32 %v4688_v47, %v4685_v20  ;;  %v4694_v54 = vrot.slane %v4692_v15, 5  ;;  %v5245_v25 = vrot.slane %v4928_v1, 5  ;;  %v5441_v22 = vld [vmem:[#allocation2 + $0x1a4] sm:$0xf]  ;;  %v5442_v29 = vld [vmem:[#allocation2 + $0x1a8] sm:$0xf] }
 0x465   :  { %4831 = vst [vmem:[#allocation4 + $0x8a4] sm:$0xf] %v4681_v30  ;;  %v4698_v43 = vrot.slane %v4696_v23, 4  ;;  %v4704_v27 = vrot.slane %v4702_v48, 5  ;;  %v5248_v13 = vrot.slane %v4929_v52, 5  ;;  %v17142_v10 = vld [vmem:[#allocation84_spill] sm:$0xff]  ;;  %v10417_v48 = vpop.f32.mrf.mxu0 }
 0x466   :  { %5505 = vst [vmem:[#allocation4 + $0x8d0] sm:$0xf] %v5441_v22  ;;  %5506 = vst [vmem:[#allocation4 + $0x8f4] sm:$0xf] %v5442_v29  ;;  %v5600_v18 = vld [vmem:[#allocation2 + $0x1a4] sm:$0xf]  ;;  %v9833_v21 = vadd.f32 %v17142_v10, %v15854_v63  ;;  %v5246_v4 = vsel %vm13597_vm10, %v11987_v34, %v5245_v25 }
 0x467   :  { %17143 = vst [vmem:[#allocation82_spill] sm:$0xff] %v15935_v32  ;;  %v11191_v42 = vld [vmem:[%s16845_s5 + $0x1c0] sm:$0xff]  ;;  %v4690_v1 = vrot.slane %v4689_v0, 4  ;;  %v5247_v20 = vrot.slane %v5245_v25, 4  ;;  %v5601_v26 = vld [vmem:[#allocation2 + $0x1a8] sm:$0xf]  ;;  %v4699_v47 = vor.u32 %v4698_v43, %v4694_v54 }
 0x468   :  { %v6348_v5 = vshrl.u32 %v5600_v18, 16  ;;  %v15942_v38 = vld [vmem:[#allocation2 + $0x40] sm:$0xf]  ;;  %5376 = vst [vmem:[#allocation4 + $0x8cc] sm:$0xf] %v5246_v4  ;;  %v6351_v14 = vshll.u32 %v5600_v18, 16  ;;  %v15951_v29 = vadd.f32 %v10121_v59, %v9833_v21 }
 0x469   :  { %v5602_v15 = vld [vmem:[#allocation2 + $0x1ac] sm:$0x1]  ;;  %v6357_v63 = vshll.u32 %v5601_v26, 16  ;;  %v6361_v23 = vshrl.u32 %v5601_v26, 16  ;;  %v11195_v52 = vld [vmem:[%s16845_s5 + $0x1e0] sm:$0xff]  ;;  %v4695_v34 = vsel %vm13579_vm9, %v4690_v1, %v4694_v54  ;;  %v5249_v25 = vsel %vm13597_vm10, %v5247_v20, %v5248_v13  ;;  %v15953_v26 = vpop.f32.mrf.mxu0  ;;  %v10126_v13 = vpop.f32.mrf.mxu1 }
 0x46a   :  { %v13224_v30 = vld [vmem:[#allocation4 + $0x888] ss:$36 sps:$4 sm:$0xff]   ;;  %v6350_v22 = vrot.slane %v6348_v5, 4  ;;  %17144 = vst [vmem:[#allocation84_spill] sm:$0xff] %v15951_v29  ;;  %v4700_v58 = vrot.slane %v4699_v47, 4  ;;  %v6353_v43 = vrot.slane %v6351_v14, 5  ;;  %v12437_v20 = vcombine.low %v11191_v42, %v11195_v52 }
 0x46b   :  { %v13226_v0 = vld [vmem:[#allocation4 + $0x88c] ss:$36 sps:$4 sm:$0xff]   ;;  %4832 = vst [vmem:[#allocation4 + $0x8c8] sm:$0xf] %v4695_v34  ;;  %5377 = vst [vmem:[#allocation4 + $0x8f0] sm:$0xf] %v5249_v25  ;;  %v12438_v59 = vcombine.high %v11191_v42, %v11195_v52  ;;  %v10420_v14 = vpop.f32.mrf.mxu0  ;;  %v10128_v25 = vpop.f32.mrf.mxu1 }
 0x46c   :  { %v6359_v18 = vrot.slane %v6357_v63, 5  ;;  %v6363_v10 = vrot.slane %v6361_v23, 4  ;;  %v6499_v4 = vld [vmem:[#allocation2 + $0x18] sm:$0xe]  ;;  %17145 = vst [vmem:[#allocation175_spill] sm:$0xff] %v15953_v26  ;;  %10557 = vmatprep.mubr.bf16.mxu0 %v13226_v0  ;;  %v6367_v48 = vshll.u32 %v5602_v15, 16  ;;  %v4705_v21 = vsel %vm13579_vm9, %v4700_v58, %v4704_v27 }
 0x46d   :  { %v6500_v32 = vld [vmem:[#allocation2 + $0x1c] sm:$0xf]  ;;  %v6501_v11 = vld [vmem:[#allocation2 + $0x20] sm:$0x1]  ;;  %10558 = vmatmul.mubr.bf16.gmra.mxu0 %v13224_v30  ;;  %v6354_v5 = vor.u32 %v6353_v43, %v6350_v22  ;;  %v13229_v63 = vld [vmem:[#allocation4 + $0x884] ss:$36 sps:$4 sm:$0xff]   ;;  %11569 = vmatprep.subr.bf16.mxu0 %v12438_v59  ;;  %v15972_v25 = vpop.f32.mrf.mxu0 }
 0x46e   :  { %v17146_v54 = vld [vmem:[#allocation87_spill] sm:$0xff]  ;;  %v6364_v47 = vor.u32 %v6363_v10, %v6359_v18  ;;  %4833 = vst [vmem:[#allocation4 + $0x8ec] sm:$0xf] %v4705_v21  ;;  %v6369_v23 = vrot.slane %v6367_v48, 5  ;;  %v11988_v0 = vrot.slane %v6499_v4, 9  ;;  %v6714_v15 = vrot.slane %v15942_v38, 5  ;;  %11570 = vmatpush1.bf16.msra.mxu0 %v12437_v20  ;;  %10268 = vmatprep.mubr.bf16.mxu1 %v13229_v63  ;;  %v10129_v48 = vpop.f32.mrf.mxu1 }
 0x46f   :  { %v9838_v1 = vadd.f32 %v17146_v54, %v15868_v41  ;;  %v13227_v41 = vld [vmem:[#allocation4 + $0x880] ss:$36 sps:$4 sm:$0xff]   ;;  %v6355_v54 = vrot.slane %v6354_v5, 4  ;;  %v6693_v52 = vrot.slane %v6500_v32, 5  ;;  %v6696_v30 = vrot.slane %v6501_v11, 5  ;;  %v17149_v4 = vld [vmem:[#allocation88_spill] sm:$0xff] }
 0x470   :  { %v6365_v42 = vrot.slane %v6364_v47, 4  ;;  %v17148_v27 = vld [vmem:[#allocation93_spill] sm:$0xff]  ;;  %v6507_v10 = vld [vmem:[#allocation2 + $0x38] sm:$0x1]  ;;  %v9841_v38 = vadd.f32 %v17149_v4, %v15910_v37  ;;  %10269 = vmatmul.mubr.bf16.gmra.mxu1 %v13227_v41  ;;  %v6508_v59 = vld [vmem:[#allocation2 + $0x3c] sm:$0xe]  ;;  %v10131_v63 = vpop.f32.mrf.mxu1 }
 0x471   :  { %v15960_v34 = vadd.f32 %v10126_v13, %v9838_v1  ;;  %v9557_v22 = vadd.f32 %v15775_v35, %v17148_v27  ;;  %v6505_v58 = vld [vmem:[#allocation2 + $0x30] sm:$0xe]  ;;  %v6506_v43 = vld [vmem:[#allocation2 + $0x34] sm:$0xf]  ;;  %v6515_v1 = vld [vmem:[#allocation2 + $0x58] sm:$0xf]  ;;  %v6360_v13 = vsel %vm13579_vm9, %v6355_v54, %v6359_v18  ;;  %v6694_v32 = vsel %vm13597_vm10, %v11988_v0, %v6693_v52 }
 0x472   :  { %v6370_v11 = vsel %vm13579_vm9, %v6365_v42, %v6369_v23  ;;  %v6695_v20 = vrot.slane %v6693_v52, 4  ;;  %v6510_v21 = vld [vmem:[#allocation2 + $0x44] sm:$0x1]  ;;  %6497 = vst [vmem:[#allocation4 + $0x8d4] sm:$0xf] %v6360_v13  ;;  %v11990_v5 = vrot.slane %v6505_v58, 9  ;;  %v15976_v54 = vadd.f32 %v10129_v48, %v9841_v38 }
 0x473   :  { %17147 = vst [vmem:[#allocation87_spill] sm:$0xff] %v15960_v34  ;;  %6498 = vst [vmem:[#allocation4 + $0x8f8] sm:$0xf] %v6370_v11  ;;  %v6707_v37 = vrot.slane %v6506_v43, 5  ;;  %v6710_v47 = vrot.slane %v6507_v10, 5  ;;  %v11991_v14 = vrot.slane %v6508_v59, 9 }
 0x474   :  { %6979 = vst [vmem:[#allocation4 + $0x20] sm:$0xf] %v6694_v32  ;;  %17150 = vst [vmem:[#allocation93_spill] sm:$0xff] %v15972_v25  ;;  %v6697_v36 = vsel %vm13597_vm10, %v6695_v20, %v6696_v30  ;;  %v6716_v18 = vrot.slane %v6714_v15, 4  ;;  %v6717_v23 = vrot.slane %v6510_v21, 5  ;;  %v10425_v30 = vpop.f32.mrf.mxu0  ;;  %v17152_v13 = vld [vmem:[#allocation94_spill] sm:$0xff] }
 0x475   :  { %v6511_v41 = vld [vmem:[#allocation2 + $0x48] sm:$0xe]  ;;  %v6512_v0 = vld [vmem:[#allocation2 + $0x4c] sm:$0xf]  ;;  %17151 = vst [vmem:[#allocation88_spill] sm:$0xff] %v15976_v54  ;;  %v6708_v52 = vsel %vm13597_vm10, %v11990_v5, %v6707_v37  ;;  %v6709_v27 = vrot.slane %v6707_v37, 4  ;;  %v6715_v58 = vsel %vm13597_vm10, %v11991_v14, %v6714_v15  ;;  %v9560_v11 = vadd.f32 %v15775_v35, %v17152_v13 }
 0x476   :  { %v15978_v42 = vld [vmem:[#allocation2 + $0x70] sm:$0xf]  ;;  %6980 = vst [vmem:[#allocation4 + $0x44] sm:$0xf] %v6697_v36  ;;  %v11992_v10 = vrot.slane %v6511_v41, 9  ;;  %v6718_v48 = vsel %vm13597_vm10, %v6716_v18, %v6717_v23  ;;  %v6721_v20 = vrot.slane %v6512_v0, 5  ;;  %v15990_v14 = vpop.f32.mrf.mxu0 }
 0x477   :  { %v6513_v43 = vld [vmem:[#allocation2 + $0x50] sm:$0x1]  ;;  %v6514_v4 = vld [vmem:[#allocation2 + $0x54] sm:$0xe]  ;;  %v13230_v32 = vld [vmem:[#allocation4 + $0x8c8] ss:$36 sps:$4 sm:$0xff]   ;;  %v6711_v59 = vsel %vm13597_vm10, %v6709_v27, %v6710_v47 }
 0x478   :  { %v13232_v38 = vld [vmem:[#allocation4 + $0x8cc] ss:$36 sps:$4 sm:$0xff]   ;;  %6983 = vst [vmem:[#allocation4 + $0xb0] sm:$0xf] %v6708_v52  ;;  %6985 = vst [vmem:[#allocation4 + $0xf8] sm:$0xf] %v6715_v58  ;;  %v6722_v35 = vsel %vm13597_vm10, %v11992_v10, %v6721_v20  ;;  %v10134_v52 = vpop.f32.mrf.mxu1 }
 0x479   :  { %6986 = vst [vmem:[#allocation4 + $0x11c] sm:$0xf] %v6718_v48  ;;  %v6724_v15 = vrot.slane %v6513_v43, 5  ;;  %v6516_v21 = vld [vmem:[#allocation2 + $0x5c] sm:$0x1]  ;;  %v11993_v5 = vrot.slane %v6514_v4, 9  ;;  %10276 = vmatprep.mubr.bf16.mxu1 %v13232_v38  ;;  %v10428_v4 = vpop.f32.mrf.mxu0 }
 0x47a   :  { %v6728_v37 = vrot.slane %v6515_v1, 5  ;;  %17153 = vst [vmem:[#allocation94_spill] sm:$0xff] %v15990_v14  ;;  %6984 = vst [vmem:[#allocation4 + $0xd4] sm:$0xf] %v6711_v59  ;;  %v6723_v63 = vrot.slane %v6721_v20, 4  ;;  %v6731_v36 = vrot.slane %v6516_v21, 5  ;;  %10277 = vmatmul.mubr.bf16.gmra.mxu1 %v13230_v32  ;;  %v10136_v20 = vpop.f32.mrf.mxu1 }
 0x47b   :  { %v6517_v18 = vld [vmem:[#allocation2 + $0x60] sm:$0xe]  ;;  %v6518_v23 = vld [vmem:[#allocation2 + $0x64] sm:$0xf]  ;;  %v17154_v41 = vld [vmem:[#allocation89_spill] sm:$0xff] }
 0x47c   :  { %v9846_v0 = vadd.f32 %v17154_v41, %v9557_v22  ;;  %6987 = vst [vmem:[#allocation4 + $0x140] sm:$0xf] %v6722_v35  ;;  %v6729_v47 = vsel %vm13597_vm10, %v11993_v5, %v6728_v37  ;;  %v6730_v27 = vrot.slane %v6728_v37, 4  ;;  %v6519_v1 = vld [vmem:[#allocation2 + $0x68] sm:$0x1]  ;;  %v11994_v58 = vrot.slane %v6517_v18, 9 }
 0x47d   :  { %v6735_v43 = vrot.slane %v6518_v23, 5  ;;  %v15997_v30 = vld [vmem:[#allocation2 + $0x88] sm:$0xf]  ;;  %v13233_v10 = vld [vmem:[#allocation4 + $0x8d0] ss:$36 sps:$4 sm:$0xff]   ;;  %v6725_v13 = vsel %vm13597_vm10, %v6723_v63, %v6724_v15  ;;  %v6738_v38 = vrot.slane %v6519_v1, 5  ;;  %v10137_v63 = vpop.f32.mrf.mxu1 }
 0x47e   :  { %6989 = vst [vmem:[#allocation4 + $0x188] sm:$0xf] %v6729_v47  ;;  %v6742_v22 = vrot.slane %v15978_v42, 5  ;;  %v16002_v48 = vadd.f32 %v10134_v52, %v9846_v0  ;;  %v13235_v59 = vld [vmem:[#allocation4 + $0x8d4] ss:$36 sps:$4 sm:$0xff]   ;;  %v6732_v21 = vsel %vm13597_vm10, %v6730_v27, %v6731_v36  ;;  %v17252_v29 = vld [vmem:[#allocation149_spill] sm:$0xff] }
 0x47f   :  { %6988 = vst [vmem:[#allocation4 + $0x164] sm:$0xf] %v6725_v13  ;;  %v6736_v5 = vsel %vm13597_vm10, %v11994_v58, %v6735_v43  ;;  %v6737_v32 = vrot.slane %v6735_v43, 4  ;;  %v17156_v37 = vld [vmem:[#allocation91_spill] sm:$0xff]  ;;  %v13236_v18 = vld [vmem:[#allocation4 + $0x20] ss:$36 sps:$4 sm:$0xff]   ;;  %10565 = vmatprep.mubr.bf16.mxu0 %v13235_v59  ;;  %v10139_v1 = vpop.f32.mrf.mxu1  ;;  %v16022_v58 = vpop.f32.mrf.mxu0 }
 0x480   :  { %17155 = vst [vmem:[#allocation89_spill] sm:$0xff] %v16002_v48  ;;  %v9849_v35 = vadd.f32 %v17156_v37, %v9560_v11  ;;  %6990 = vst [vmem:[#allocation4 + $0x1ac] sm:$0xf] %v6732_v21  ;;  %v6520_v15 = vld [vmem:[#allocation2 + $0x6c] sm:$0xe]  ;;  %12685 = vmatprep.mubr.bf16.mxu1 %v13236_v18  ;;  %10566 = vmatmul.mubr.bf16.gmra.mxu0 %v13233_v10  ;;  %v6744_v27 = vrot.slane %v6742_v22, 4 }
 0x481   :  { %6991 = vst [vmem:[#allocation4 + $0x1d0] sm:$0xf] %v6736_v5  ;;  %v16009_v42 = vld [vmem:[#allocation2 + $0xa0] sm:$0xf]  ;;  %v6739_v41 = vsel %vm13597_vm10, %v6737_v32, %v6738_v38  ;;  %v6522_v11 = vld [vmem:[#allocation2 + $0x74] sm:$0x1]  ;;  %v10433_v21 = vpop.f32.mrf.mxu0 }
 0x482   :  { %v16014_v23 = vld [vmem:[%s16844_s4] ss:$0 sm:$0xff]  ;;  %v16020_v0 = vadd.f32 %v10137_v63, %v9849_v35  ;;  %v13237_v52 = vld [vmem:[#allocation4 + $0x68] ss:$36 sps:$4 sm:$0xff]   ;;  %6992 = vst [vmem:[#allocation4 + $0x1f4] sm:$0xf] %v6739_v41  ;;  %v10142_v41 = vpop.f32.mrf.mxu1 }
 0x483   :  { %v9565_v36 = vadd.f32 %v16014_v23, %v15178_v7  ;;  %v11995_v47 = vrot.slane %v6520_v15, 9  ;;  %17158 = vst [vmem:[#allocation176_spill] sm:$0xff] %v16022_v58  ;;  %v13238_v43 = vld [vmem:[#allocation4 + $0xb0] ss:$36 sps:$4 sm:$0xff]   ;;  %v6745_v4 = vrot.slane %v6522_v11, 5  ;;  %v6756_v7 = vrot.slane %v15997_v30, 5  ;;  %12686 = vmatmul.mubr.bf16.vlgmr.msra.gmra.mxu1 %v13237_v52  ;;  %v16034_v11 = vpop.f32.mrf.mxu0 }
 0x484   :  { %17157 = vst [vmem:[#allocation91_spill] sm:$0xff] %v16020_v0  ;;  %v17159_v13 = vmov 0   ;;  %v6523_v20 = vld [vmem:[#allocation2 + $0x78] sm:$0xe]  ;;  %v6524_v59 = vld [vmem:[#allocation2 + $0x7c] sm:$0xf]  ;;  %12689 = vmatprep.mubr.bf16.mxu1 %v13238_v43 }
 0x485   :  { %11601 = vmatprep.mubr.bf16.mxu0 %v17159_v13  ;;  %v6743_v38 = vsel %vm13597_vm10, %v11995_v47, %v6742_v22  ;;  %v6746_v10 = vsel %vm13597_vm10, %v6744_v27, %v6745_v4  ;;  %v6525_v5 = vld [vmem:[#allocation2 + $0x80] sm:$0x1]  ;;  %v11996_v32 = vrot.slane %v6523_v20, 9  ;;  %v6749_v37 = vrot.slane %v6524_v59, 5  ;;  %v17161_v15 = vld [vmem:[#allocation98_spill] sm:$0xff]  ;;  %v10144_v20 = vpop.f32.mrf.mxu1  ;;  %v10436_v59 = vpop.f32.mrf.mxu0  ;;  %v17248_v0 = vld [vmem:[#allocation144_spill] sm:$0xff] }
 0x486   :  { %6993 = vst [vmem:[#allocation4 + $0x218] sm:$0xf] %v6743_v38  ;;  %v17160_v35 = vld [vmem:[#allocation95_spill] sm:$0xff]  ;;  %v9568_v30 = vadd.f32 %v16014_v23, %v17161_v15  ;;  %6994 = vst [vmem:[#allocation4 + $0x23c] sm:$0xf] %v6746_v10  ;;  %v6752_v63 = vrot.slane %v6525_v5, 5 }
 0x487   :  { %v9854_v18 = vadd.f32 %v17160_v35, %v9565_v36  ;;  %v6770_v22 = vrot.slane %v16009_v42, 5  ;;  %17162 = vst [vmem:[#allocation95_spill] sm:$0xff] %v16034_v11  ;;  %v16036_v47 = vld [vmem:[#allocation2 + $0xb8] sm:$0xf]  ;;  %v6750_v27 = vsel %vm13597_vm10, %v11996_v32, %v6749_v37  ;;  %v6758_v1 = vrot.slane %v6756_v7, 4  ;;  %v17164_v5 = vld [vmem:[#allocation100_spill] sm:$0xff]  ;;  %v10145_v20 = vpop.f32.mrf.mxu1 }
 0x488   :  { %v6751_v36 = vrot.slane %v6749_v37, 4  ;;  %6995 = vst [vmem:[#allocation4 + $0x260] sm:$0xf] %v6750_v27  ;;  %v6526_v38 = vld [vmem:[#allocation2 + $0x84] sm:$0xe]  ;;  %v9573_v35 = vadd.f32 %v16014_v23, %v17164_v5  ;;  %v17165_v15 = vld [vmem:[#allocation101_spill] sm:$0xff] }
 0x489   :  { %v16040_v4 = vadd.f32 %v10142_v41, %v9854_v18  ;;  %v6528_v52 = vld [vmem:[#allocation2 + $0x8c] sm:$0x1]  ;;  %v11997_v21 = vrot.slane %v6526_v38, 9  ;;  %v6772_v10 = vrot.slane %v6770_v22, 4  ;;  %v9576_v43 = vadd.f32 %v16014_v23, %v17165_v15  ;;  %v6529_v18 = vld [vmem:[#allocation2 + $0x90] sm:$0xe] }
 0x48a   :  { %v6759_v42 = vrot.slane %v6528_v52, 5  ;;  %v13239_v11 = vld [vmem:[#allocation4 + $0xf8] ss:$36 sps:$4 sm:$0xff]   ;;  %v6753_v32 = vsel %vm13597_vm10, %v6751_v36, %v6752_v63  ;;  %v6530_v37 = vld [vmem:[#allocation2 + $0x94] sm:$0xf]  ;;  %v11998_v59 = vrot.slane %v6529_v18, 9 }
 0x48b   :  { %17163 = vst [vmem:[#allocation98_spill] sm:$0xff] %v16040_v4  ;;  %v6531_v41 = vld [vmem:[#allocation2 + $0x98] sm:$0x1]  ;;  %v17166_v27 = vld [vmem:[#allocation96_spill] sm:$0xff]  ;;  %6996 = vst [vmem:[#allocation4 + $0x284] sm:$0xf] %v6753_v32  ;;  %v6757_v38 = vsel %vm13597_vm10, %v11997_v21, %v6756_v7  ;;  %12690 = vmatmul.mubr.bf16.gmra.mxu1 %v13239_v11 }
 0x48c   :  { %v9857_v58 = vadd.f32 %v17166_v27, %v9568_v30  ;;  %v6760_v52 = vsel %vm13597_vm10, %v6758_v1, %v6759_v42  ;;  %v6763_v5 = vrot.slane %v6530_v37, 5  ;;  %v6532_v15 = vld [vmem:[#allocation2 + $0x9c] sm:$0xe]  ;;  %v6534_v4 = vld [vmem:[#allocation2 + $0xa4] sm:$0x1]  ;;  %v6766_v63 = vrot.slane %v6531_v41, 5  ;;  %v10147_v30 = vpop.f32.mrf.mxu1 }
 0x48d   :  { %6997 = vst [vmem:[#allocation4 + $0x2a8] sm:$0xf] %v6757_v38  ;;  %6998 = vst [vmem:[#allocation4 + $0x2cc] sm:$0xf] %v6760_v52  ;;  %v11999_v36 = vrot.slane %v6532_v15, 9  ;;  %v6773_v26 = vrot.slane %v6534_v4, 5 }
 0x48e   :  { %v6784_v54 = vrot.slane %v16036_v47, 5  ;;  %v13240_v27 = vld [vmem:[#allocation4 + $0x140] ss:$36 sps:$4 sm:$0xff]   ;;  %v6764_v32 = vsel %vm13597_vm10, %v11998_v59, %v6763_v5  ;;  %v6765_v7 = vrot.slane %v6763_v5, 4  ;;  %v16056_v21 = vadd.f32 %v10145_v20, %v9857_v58  ;;  %v6535_v18 = vld [vmem:[#allocation2 + $0xa8] sm:$0xe]  ;;  %v10150_v38 = vpop.f32.mrf.mxu1 }
 0x48f   :  { %6999 = vst [vmem:[#allocation4 + $0x2f0] sm:$0xf] %v6764_v32  ;;  %v6771_v1 = vsel %vm13597_vm10, %v11999_v36, %v6770_v22  ;;  %v6774_v42 = vsel %vm13597_vm10, %v6772_v10, %v6773_v26  ;;  %v6536_v4 = vld [vmem:[#allocation2 + $0xac] sm:$0xf]  ;;  %v6537_v37 = vld [vmem:[#allocation2 + $0xb0] sm:$0x1]  ;;  %12693 = vmatprep.mubr.bf16.mxu1 %v13240_v27 }
 0x490   :  { %17167 = vst [vmem:[#allocation100_spill] sm:$0xff] %v16056_v21  ;;  %v17168_v47 = vld [vmem:[#allocation97_spill] sm:$0xff]  ;;  %v6767_v52 = vsel %vm13597_vm10, %v6765_v7, %v6766_v63  ;;  %7001 = vst [vmem:[#allocation4 + $0x338] sm:$0xf] %v6771_v1  ;;  %v12000_v58 = vrot.slane %v6535_v18, 9  ;;  %v6777_v11 = vrot.slane %v6536_v4, 5 }
 0x491   :  { %v9862_v41 = vadd.f32 %v17168_v47, %v9573_v35  ;;  %7002 = vst [vmem:[#allocation4 + $0x35c] sm:$0xf] %v6774_v42  ;;  %v6780_v20 = vrot.slane %v6537_v37, 5  ;;  %v11183_v22 = vld [vmem:[%s16845_s5 + $0x180] sm:$0xff]  ;;  %7000 = vst [vmem:[#allocation4 + $0x314] sm:$0xf] %v6767_v52  ;;  %v10152_v35 = vpop.f32.mrf.mxu1  ;;  %v16078_v37 = vpop.f32.mrf.mxu0 }
 0x492   :  { %v6538_v26 = vld [vmem:[#allocation2 + $0xb4] sm:$0xe]  ;;  %v6540_v10 = vld [vmem:[#allocation2 + $0xbc] sm:$0x1]  ;;  %v6786_v59 = vrot.slane %v6784_v54, 4  ;;  %v17170_v15 = vld [vmem:[#allocation99_spill] sm:$0xff]  ;;  %v6778_v63 = vsel %vm13597_vm10, %v12000_v58, %v6777_v11 }
 0x493   :  { %v16068_v5 = vadd.f32 %v10150_v38, %v9862_v41  ;;  %v9865_v36 = vadd.f32 %v17170_v15, %v9576_v43  ;;  %v16071_v30 = vld [vmem:[#allocation2 + $0x100] sm:$0xf]  ;;  %v6779_v27 = vrot.slane %v6777_v11, 4  ;;  %v12001_v32 = vrot.slane %v6538_v26, 9  ;;  %v13241_v18 = vld [vmem:[#allocation4 + $0x188] ss:$36 sps:$4 sm:$0xff]   ;;  %v10153_v47 = vpop.f32.mrf.mxu1 }
 0x494   :  { %v6787_v7 = vrot.slane %v6540_v10, 5  ;;  %v6541_v1 = vld [vmem:[#allocation2 + $0xc0] sm:$0xe]  ;;  %7003 = vst [vmem:[#allocation4 + $0x380] sm:$0xf] %v6778_v63  ;;  %17171 = vst [vmem:[#allocation96_spill] sm:$0xff] %v16078_v37  ;;  %12694 = vmatmul.mubr.bf16.gmra.mxu1 %v13241_v18 }
 0x495   :  { %17169 = vst [vmem:[#allocation101_spill] sm:$0xff] %v16068_v5  ;;  %v11187_v42 = vld [vmem:[%s16845_s5 + $0x1a0] sm:$0xff]  ;;  %v6781_v52 = vsel %vm13597_vm10, %v6779_v27, %v6780_v20  ;;  %v6785_v58 = vsel %vm13597_vm10, %v12001_v32, %v6784_v54  ;;  %v16086_v26 = vadd.f32 %v10153_v47, %v9865_v36  ;;  %v6543_v10 = vld [vmem:[#allocation2 + $0xc8] sm:$0x1]  ;;  %v12002_v35 = vrot.slane %v6541_v1, 9 }
 0x496   :  { %v6542_v4 = vld [vmem:[#allocation2 + $0xc4] sm:$0xf]  ;;  %v12429_v43 = vcombine.low %v11183_v22, %v11187_v42  ;;  %v12430_v41 = vcombine.high %v11183_v22, %v11187_v42  ;;  %v6788_v11 = vsel %vm13597_vm10, %v6786_v59, %v6787_v7  ;;  %7004 = vst [vmem:[#allocation4 + $0x3a4] sm:$0xf] %v6781_v52  ;;  %7005 = vst [vmem:[#allocation4 + $0x3c8] sm:$0xf] %v6785_v58  ;;  %v10441_v22 = vpop.f32.mrf.mxu0  ;;  %v10155_v42 = vpop.f32.mrf.mxu1 }
 0x497   :  { %v13242_v38 = vld [vmem:[#allocation4 + $0x1d0] ss:$36 sps:$4 sm:$0xff]   ;;  %17172 = vst [vmem:[#allocation97_spill] sm:$0xff] %v16086_v26  ;;  %7006 = vst [vmem:[#allocation4 + $0x3ec] sm:$0xf] %v6788_v11  ;;  %v6791_v15 = vrot.slane %v6542_v4, 5 }
 0x498   :  { %v6544_v63 = vld [vmem:[#allocation2 + $0xcc] sm:$0xe]  ;;  %11571 = vmatprep.subr.bf16.mxu0 %v12430_v41  ;;  %v6794_v21 = vrot.slane %v6543_v10, 5  ;;  %v6545_v20 = vld [vmem:[#allocation2 + $0xd0] sm:$0xf]  ;;  %v16090_v59 = vpop.f32.mrf.mxu0  ;;  %v6812_v36 = vrot.slane %v16071_v30, 5  ;;  %12697 = vmatprep.mubr.bf16.mxu1 %v13242_v38 }
 0x499   :  { %v12003_v27 = vrot.slane %v6544_v63, 9  ;;  %11572 = vmatpush1.bf16.msra.mxu0 %v12429_v43  ;;  %v6792_v54 = vsel %vm13597_vm10, %v12002_v35, %v6791_v15  ;;  %17173 = vst [vmem:[#allocation99_spill] sm:$0xff] %v16090_v59  ;;  %v16093_v32 = vld [vmem:[#allocation2 + $0x118] sm:$0xf]  ;;  %v17174_v7 = vld [vmem:[#allocation104_spill] sm:$0xff]  ;;  %v6793_v4 = vrot.slane %v6791_v15, 4 }
 0x49a   :  { %v9581_v1 = vadd.f32 %v16014_v23, %v17174_v7  ;;  %7007 = vst [vmem:[#allocation4 + $0x410] sm:$0xf] %v6792_v54  ;;  %v6798_v47 = vrot.slane %v6545_v20, 5  ;;  %v6546_v41 = vld [vmem:[#allocation2 + $0xd4] sm:$0x1]  ;;  %v10444_v18 = vpop.f32.mrf.mxu0  ;;  %v6814_v54 = vrot.slane %v6812_v36, 4 }
 0x49b   :  { %v6547_v52 = vld [vmem:[#allocation2 + $0xf0] sm:$0xe]  ;;  %v6548_v43 = vld [vmem:[#allocation2 + $0xf4] sm:$0xf]  ;;  %v6795_v58 = vsel %vm13597_vm10, %v6793_v4, %v6794_v21  ;;  %v6801_v10 = vrot.slane %v6546_v41, 5  ;;  %v17176_v7 = vld [vmem:[#allocation106_spill] sm:$0xff] }
 0x49c   :  { %v6799_v11 = vsel %vm13597_vm10, %v12003_v27, %v6798_v47  ;;  %v6800_v30 = vrot.slane %v6798_v47, 4  ;;  %v6549_v35 = vld [vmem:[#allocation2 + $0xf8] sm:$0x1]  ;;  %v13243_v63 = vld [vmem:[#allocation4 + $0x218] ss:$36 sps:$4 sm:$0xff]   ;;  %v12004_v38 = vrot.slane %v6547_v52, 9  ;;  %v16101_v42 = vpop.f32.mrf.mxu0  ;;  %v9584_v18 = vadd.f32 %v16014_v23, %v17176_v7 }
 0x49d   :  { %7008 = vst [vmem:[#allocation4 + $0x434] sm:$0xf] %v6795_v58  ;;  %7009 = vst [vmem:[#allocation4 + $0x458] sm:$0xf] %v6799_v11  ;;  %v6805_v15 = vrot.slane %v6548_v43, 5  ;;  %v6808_v22 = vrot.slane %v6549_v35, 5  ;;  %v10158_v43 = vpop.f32.mrf.mxu1  ;;  %12698 = vmatmul.mubr.bf16.gmra.mxu1 %v13243_v63 }
 0x49e   :  { %17175 = vst [vmem:[#allocation104_spill] sm:$0xff] %v16101_v42  ;;  %v6550_v20 = vld [vmem:[#allocation2 + $0xfc] sm:$0xe]  ;;  %v13244_v21 = vld [vmem:[#allocation4 + $0x260] ss:$36 sps:$4 sm:$0xff]   ;;  %v6802_v27 = vsel %vm13597_vm10, %v6800_v30, %v6801_v10  ;;  %v10449_v11 = vpop.f32.mrf.mxu0  ;;  %v6826_v35 = vrot.slane %v16093_v32, 5 }
 0x49f   :  { %v17177_v4 = vld [vmem:[#allocation102_spill] sm:$0xff]  ;;  %7010 = vst [vmem:[#allocation4 + $0x47c] sm:$0xf] %v6802_v27  ;;  %v6806_v41 = vsel %vm13597_vm10, %v12004_v38, %v6805_v15  ;;  %v6807_v52 = vrot.slane %v6805_v15, 4  ;;  %v12005_v58 = vrot.slane %v6550_v20, 9  ;;  %v10160_v20 = vpop.f32.mrf.mxu1  ;;  %12701 = vmatprep.mubr.bf16.mxu1 %v13244_v21  ;;  %v17250_v48 = vld [vmem:[#allocation152_spill] sm:$0xff] }
 0x4a0   :  { %v9870_v47 = vadd.f32 %v17177_v4, %v9581_v1  ;;  %7011 = vst [vmem:[#allocation4 + $0x4a0] sm:$0xf] %v6806_v41  ;;  %v6552_v7 = vld [vmem:[#allocation2 + $0x104] sm:$0x1]  ;;  %v6553_v59 = vld [vmem:[#allocation2 + $0x108] sm:$0xe]  ;;  %v16117_v27 = vpop.f32.mrf.mxu0 }
 0x4a1   :  { %v6554_v26 = vld [vmem:[#allocation2 + $0x10c] sm:$0xf]  ;;  %v6809_v1 = vsel %vm13597_vm10, %v6807_v52, %v6808_v22  ;;  %v6813_v30 = vsel %vm13597_vm10, %v12005_v58, %v6812_v36  ;;  %v6815_v10 = vrot.slane %v6552_v7, 5  ;;  %v6555_v38 = vld [vmem:[#allocation2 + $0x110] sm:$0x1]  ;;  %v12006_v15 = vrot.slane %v6553_v59, 9  ;;  %v10161_v52 = vpop.f32.mrf.mxu1 }
 0x4a2   :  { %v16111_v42 = vadd.f32 %v10158_v43, %v9870_v47  ;;  %17179 = vst [vmem:[#allocation102_spill] sm:$0xff] %v16117_v27  ;;  %7012 = vst [vmem:[#allocation4 + $0x4c4] sm:$0xf] %v6809_v1  ;;  %v6819_v32 = vrot.slane %v6554_v26, 5  ;;  %v6822_v4 = vrot.slane %v6555_v38, 5  ;;  %v17180_v47 = vld [vmem:[#allocation103_spill] sm:$0xff]  ;;  %v10452_v36 = vpop.f32.mrf.mxu0 }
 0x4a3   :  { %7013 = vst [vmem:[#allocation4 + $0x4e8] sm:$0xf] %v6813_v30  ;;  %v9873_v41 = vadd.f32 %v17180_v47, %v9584_v18  ;;  %v6556_v63 = vld [vmem:[#allocation2 + $0x114] sm:$0xe]  ;;  %v6558_v43 = vld [vmem:[#allocation2 + $0x11c] sm:$0x1]  ;;  %v6816_v22 = vsel %vm13597_vm10, %v6814_v54, %v6815_v10  ;;  %v10163_v54 = vpop.f32.mrf.mxu1 }
 0x4a4   :  { %17178 = vst [vmem:[#allocation106_spill] sm:$0xff] %v16111_v42  ;;  %v12007_v58 = vrot.slane %v6556_v63, 9  ;;  %v6828_v11 = vrot.slane %v6826_v35, 4  ;;  %v6829_v59 = vrot.slane %v6558_v43, 5  ;;  %v6559_v7 = vld [vmem:[#allocation2 + $0x120] sm:$0xe]  ;;  %v6820_v26 = vsel %vm13597_vm10, %v12006_v15, %v6819_v32  ;;  %v16128_v10 = vpop.f32.mrf.mxu0 }
 0x4a5   :  { %v6563_v20 = vld [vmem:[#allocation2 + $0x130] sm:$0xf]  ;;  %v17181_v27 = vld [vmem:[#allocation108_spill] sm:$0xff]  ;;  %7014 = vst [vmem:[#allocation4 + $0x50c] sm:$0xf] %v6816_v22  ;;  %v16126_v18 = vadd.f32 %v10161_v52, %v9873_v41  ;;  %v6821_v30 = vrot.slane %v6819_v32, 4 }
 0x4a6   :  { %v9589_v21 = vadd.f32 %v16014_v23, %v17181_v27  ;;  %v13245_v1 = vld [vmem:[#allocation4 + $0x2a8] ss:$36 sps:$4 sm:$0xff]   ;;  %7015 = vst [vmem:[#allocation4 + $0x530] sm:$0xf] %v6820_v26  ;;  %17183 = vst [vmem:[#allocation108_spill] sm:$0xff] %v16128_v10  ;;  %v6827_v38 = vsel %vm13597_vm10, %v12007_v58, %v6826_v35  ;;  %v6830_v47 = vsel %vm13597_vm10, %v6828_v11, %v6829_v59  ;;  %v12008_v43 = vrot.slane %v6559_v7, 9  ;;  %v10457_v36 = vpop.f32.mrf.mxu0 }
 0x4a7   :  { %17182 = vst [vmem:[#allocation103_spill] sm:$0xff] %v16126_v18  ;;  %v6560_v63 = vld [vmem:[#allocation2 + $0x124] sm:$0xf]  ;;  %v6561_v27 = vld [vmem:[#allocation2 + $0x128] sm:$0x1]  ;;  %v6823_v52 = vsel %vm13597_vm10, %v6821_v30, %v6822_v4  ;;  %v6840_v26 = vrot.slane %v6563_v20, 5  ;;  %12702 = vmatmul.mubr.bf16.gmra.mxu1 %v13245_v1 }
 0x4a8   :  { %v13246_v22 = vld [vmem:[#allocation4 + $0x2f0] ss:$36 sps:$4 sm:$0xff]   ;;  %7017 = vst [vmem:[#allocation4 + $0x578] sm:$0xf] %v6827_v38  ;;  %7018 = vst [vmem:[#allocation4 + $0x59c] sm:$0xf] %v6830_v47 }
 0x4a9   :  { %v6833_v15 = vrot.slane %v6560_v63, 5  ;;  %v6836_v41 = vrot.slane %v6561_v27, 5  ;;  %v11175_v32 = vld [vmem:[%s16845_s5 + $0x140] sm:$0xff]  ;;  %v6562_v35 = vld [vmem:[#allocation2 + $0x12c] sm:$0xe]  ;;  %v17184_v63 = vld [vmem:[#allocation109_spill] sm:$0xff]  ;;  %12705 = vmatprep.mubr.bf16.mxu1 %v13246_v22 }
 0x4aa   :  { %v6564_v58 = vld [vmem:[#allocation2 + $0x134] sm:$0x1]  ;;  %7016 = vst [vmem:[#allocation4 + $0x554] sm:$0xf] %v6823_v52  ;;  %v12009_v7 = vrot.slane %v6562_v35, 9  ;;  %v11179_v38 = vld [vmem:[%s16845_s5 + $0x160] sm:$0xff]  ;;  %v9592_v27 = vadd.f32 %v16014_v23, %v17184_v63  ;;  %v16147_v52 = vpop.f32.mrf.mxu0 }
 0x4ab   :  { %v6834_v11 = vsel %vm13597_vm10, %v12008_v43, %v6833_v15  ;;  %v6835_v59 = vrot.slane %v6833_v15, 4  ;;  %v6565_v54 = vld [vmem:[#allocation2 + $0x138] sm:$0xe]  ;;  %v6569_v47 = vld [vmem:[#allocation2 + $0x148] sm:$0xf]  ;;  %v17185_v4 = vld [vmem:[#allocation105_spill] sm:$0xff]  ;;  %v12421_v36 = vcombine.low %v11175_v32, %v11179_v38  ;;  %v12422_v43 = vcombine.high %v11175_v32, %v11179_v38  ;;  %v10166_v15 = vpop.f32.mrf.mxu1 }
 0x4ac   :  { %v9878_v30 = vadd.f32 %v17185_v4, %v9589_v21  ;;  %7019 = vst [vmem:[#allocation4 + $0x5c0] sm:$0xf] %v6834_v11  ;;  %17186 = vst [vmem:[#allocation109_spill] sm:$0xff] %v16147_v52  ;;  %v6841_v35 = vsel %vm13597_vm10, %v12009_v7, %v6840_v26  ;;  %v6842_v18 = vrot.slane %v6840_v26, 4  ;;  %v6843_v10 = vrot.slane %v6564_v58, 5  ;;  %v10460_v11 = vpop.f32.mrf.mxu0  ;;  %v17188_v52 = vld [vmem:[#allocation107_spill] sm:$0xff] }
 0x4ad   :  { %v6837_v20 = vsel %vm13597_vm10, %v6835_v59, %v6836_v41  ;;  %v6566_v42 = vld [vmem:[#allocation2 + $0x13c] sm:$0xf]  ;;  %v6567_v63 = vld [vmem:[#allocation2 + $0x140] sm:$0x1]  ;;  %7021 = vst [vmem:[#allocation4 + $0x608] sm:$0xf] %v6841_v35  ;;  %11573 = vmatprep.subr.bf16.mxu0 %v12422_v43  ;;  %v10168_v38 = vpop.f32.mrf.mxu1 }
 0x4ae   :  { %v16153_v1 = vld [vmem:[#allocation2 + $0x160] sm:$0xf]  ;;  %v16155_v21 = vadd.f32 %v10166_v15, %v9878_v30  ;;  %7020 = vst [vmem:[#allocation4 + $0x5e4] sm:$0xf] %v6837_v20  ;;  %v12010_v32 = vrot.slane %v6565_v54, 9  ;;  %v6847_v22 = vrot.slane %v6566_v42, 5  ;;  %v6844_v41 = vsel %vm13597_vm10, %v6842_v18, %v6843_v10  ;;  %11574 = vmatpush1.bf16.msra.mxu0 %v12421_v36 }
 0x4af   :  { %v6850_v59 = vrot.slane %v6567_v63, 5  ;;  %v6568_v7 = vld [vmem:[#allocation2 + $0x144] sm:$0xe]  ;;  %v6854_v26 = vrot.slane %v6569_v47, 5  ;;  %v16159_v58 = vld [vmem:[#allocation2 + $0x178] sm:$0xf]  ;;  %v9881_v30 = vadd.f32 %v17188_v52, %v9592_v27  ;;  %v10169_v54 = vpop.f32.mrf.mxu1 }
 0x4b0   :  { %17187 = vst [vmem:[#allocation105_spill] sm:$0xff] %v16155_v21  ;;  %v13247_v4 = vld [vmem:[#allocation4 + $0x338] ss:$36 sps:$4 sm:$0xff]   ;;  %7022 = vst [vmem:[#allocation4 + $0x62c] sm:$0xf] %v6844_v41  ;;  %v6848_v15 = vsel %vm13597_vm10, %v12010_v32, %v6847_v22  ;;  %v6849_v42 = vrot.slane %v6847_v22, 4  ;;  %v16173_v41 = vpop.f32.mrf.mxu0 }
 0x4b1   :  { %7023 = vst [vmem:[#allocation4 + $0x650] sm:$0xf] %v6848_v15  ;;  %v6570_v43 = vld [vmem:[#allocation2 + $0x14c] sm:$0x1]  ;;  %v12011_v20 = vrot.slane %v6568_v7, 9  ;;  %v6856_v35 = vrot.slane %v6854_v26, 4  ;;  %v16164_v10 = vadd.f32 %v10169_v54, %v9881_v30  ;;  %v10171_v27 = vpop.f32.mrf.mxu1  ;;  %12706 = vmatmul.mubr.bf16.gmra.mxu1 %v13247_v4 }
 0x4b2   :  { %v13248_v18 = vld [vmem:[#allocation4 + $0x380] ss:$36 sps:$4 sm:$0xff]   ;;  %v6857_v47 = vrot.slane %v6570_v43, 5  ;;  %v6868_v36 = vrot.slane %v16153_v1, 5  ;;  %v17190_v63 = vld [vmem:[#allocation112_spill] sm:$0xff]  ;;  %v6851_v52 = vsel %vm13597_vm10, %v6849_v42, %v6850_v59  ;;  %v6882_v59 = vrot.slane %v16159_v58, 5  ;;  %v10465_v42 = vpop.f32.mrf.mxu0 }
 0x4b3   :  { %17189 = vst [vmem:[#allocation107_spill] sm:$0xff] %v16164_v10  ;;  %v9597_v11 = vadd.f32 %v16014_v23, %v17190_v63  ;;  %v6855_v32 = vsel %vm13597_vm10, %v12011_v20, %v6854_v26  ;;  %v6571_v22 = vld [vmem:[#allocation2 + $0x150] sm:$0xe]  ;;  %v6572_v38 = vld [vmem:[#allocation2 + $0x154] sm:$0xf]  ;;  %17191 = vst [vmem:[#allocation112_spill] sm:$0xff] %v16173_v41  ;;  %12709 = vmatprep.mubr.bf16.mxu1 %v13248_v18  ;;  %v10174_v58 = vpop.f32.mrf.mxu1 }
 0x4b4   :  { %7024 = vst [vmem:[#allocation4 + $0x674] sm:$0xf] %v6851_v52  ;;  %v6858_v7 = vsel %vm13597_vm10, %v6856_v35, %v6857_v47  ;;  %7025 = vst [vmem:[#allocation4 + $0x698] sm:$0xf] %v6855_v32  ;;  %v6573_v1 = vld [vmem:[#allocation2 + $0x158] sm:$0x1] }
 0x4b5   :  { %v12012_v30 = vrot.slane %v6571_v22, 9  ;;  %v6861_v15 = vrot.slane %v6572_v38, 5  ;;  %v6574_v54 = vld [vmem:[#allocation2 + $0x15c] sm:$0xe]  ;;  %7026 = vst [vmem:[#allocation4 + $0x6bc] sm:$0xf] %v6858_v7  ;;  %v16185_v7 = vpop.f32.mrf.mxu0 }
 0x4b6   :  { %v6864_v43 = vrot.slane %v6573_v1, 5  ;;  %v6576_v20 = vld [vmem:[#allocation2 + $0x164] sm:$0x1]  ;;  %v12013_v63 = vrot.slane %v6574_v54, 9  ;;  %v16180_v27 = vld [vmem:[#allocation2 + $0x190] sm:$0xf] }
 0x4b7   :  { %v6862_v26 = vsel %vm13597_vm10, %v12012_v30, %v6861_v15  ;;  %v6863_v4 = vrot.slane %v6861_v15, 4  ;;  %v17192_v35 = vld [vmem:[#allocation114_spill] sm:$0xff]  ;;  %v6870_v18 = vrot.slane %v6868_v36, 4  ;;  %v6871_v22 = vrot.slane %v6576_v20, 5  ;;  %v6577_v15 = vld [vmem:[#allocation2 + $0x168] sm:$0xe]  ;;  %v10468_v10 = vpop.f32.mrf.mxu0 }
 0x4b8   :  { %v9600_v47 = vadd.f32 %v16014_v23, %v17192_v35  ;;  %v17193_v52 = vld [vmem:[#allocation110_spill] sm:$0xff]  ;;  %7027 = vst [vmem:[#allocation4 + $0x6e0] sm:$0xf] %v6862_v26  ;;  %17194 = vst [vmem:[#allocation114_spill] sm:$0xff] %v16185_v7  ;;  %v6869_v1 = vsel %vm13597_vm10, %v12013_v63, %v6868_v36  ;;  %v6578_v54 = vld [vmem:[#allocation2 + $0x16c] sm:$0xf]  ;;  %v10176_v7 = vpop.f32.mrf.mxu1 }
 0x4b9   :  { %v9886_v32 = vadd.f32 %v17193_v52, %v9597_v11  ;;  %v13249_v38 = vld [vmem:[#allocation4 + $0x3c8] ss:$36 sps:$4 sm:$0xff]   ;;  %v6865_v30 = vsel %vm13597_vm10, %v6863_v4, %v6864_v43  ;;  %v13250_v42 = vld [vmem:[#allocation4 + $0x410] ss:$36 sps:$4 sm:$0xff]   ;;  %v6872_v11 = vsel %vm13597_vm10, %v6870_v18, %v6871_v22  ;;  %7029 = vst [vmem:[#allocation4 + $0x728] sm:$0xf] %v6869_v1 }
 0x4ba   :  { %7028 = vst [vmem:[#allocation4 + $0x704] sm:$0xf] %v6865_v30  ;;  %v6579_v26 = vld [vmem:[#allocation2 + $0x170] sm:$0x1]  ;;  %v12014_v20 = vrot.slane %v6577_v15, 9  ;;  %v6875_v35 = vrot.slane %v6578_v54, 5  ;;  %12710 = vmatmul.mubr.bf16.gmra.mxu1 %v13249_v38  ;;  %v10177_v18 = vpop.f32.mrf.mxu1 }
 0x4bb   :  { %v16191_v41 = vadd.f32 %v10174_v58, %v9886_v32  ;;  %v6580_v52 = vld [vmem:[#allocation2 + $0x174] sm:$0xe]  ;;  %7030 = vst [vmem:[#allocation4 + $0x74c] sm:$0xf] %v6872_v11  ;;  %v6878_v4 = vrot.slane %v6579_v26, 5  ;;  %v6884_v63 = vrot.slane %v6882_v59, 4  ;;  %12713 = vmatprep.mubr.bf16.mxu1 %v13250_v42 }
 0x4bc   :  { %v6582_v43 = vld [vmem:[#allocation2 + $0x17c] sm:$0x1]  ;;  %v12015_v36 = vrot.slane %v6580_v52, 9  ;;  %v17196_v21 = vld [vmem:[#allocation111_spill] sm:$0xff]  ;;  %v6876_v32 = vsel %vm13597_vm10, %v12014_v20, %v6875_v35  ;;  %v6896_v58 = vrot.slane %v16180_v27, 5  ;;  %v6877_v22 = vrot.slane %v6875_v35, 4  ;;  %v10179_v11 = vpop.f32.mrf.mxu1  ;;  %v16209_v35 = vpop.f32.mrf.mxu0 }
 0x4bd   :  { %17195 = vst [vmem:[#allocation110_spill] sm:$0xff] %v16191_v41  ;;  %v9889_v37 = vadd.f32 %v17196_v21, %v9600_v47  ;;  %7031 = vst [vmem:[#allocation4 + $0x770] sm:$0xf] %v6876_v32  ;;  %v6885_v10 = vrot.slane %v6582_v43, 5  ;;  %v17197_v30 = vld [vmem:[#allocation116_spill] sm:$0xff]  ;;  %v17245_v41 = vld [vmem:[#allocation142_spill] sm:$0xff] }
 0x4be   :  { %v6883_v7 = vsel %vm13597_vm10, %v12015_v36, %v6882_v59  ;;  %v9605_v1 = vadd.f32 %v16014_v23, %v17197_v30  ;;  %v6583_v21 = vld [vmem:[#allocation2 + $0x180] sm:$0xe]  ;;  %v6584_v47 = vld [vmem:[#allocation2 + $0x184] sm:$0xf]  ;;  %v6585_v54 = vld [vmem:[#allocation2 + $0x188] sm:$0x1]  ;;  %v6879_v27 = vsel %vm13597_vm10, %v6877_v22, %v6878_v4  ;;  %v10473_v4 = vpop.f32.mrf.mxu0 }
 0x4bf   :  { %v16203_v15 = vadd.f32 %v10177_v18, %v9889_v37  ;;  %7033 = vst [vmem:[#allocation4 + $0x7b8] sm:$0xf] %v6883_v7  ;;  %v6886_v38 = vsel %vm13597_vm10, %v6884_v63, %v6885_v10  ;;  %v12016_v26 = vrot.slane %v6583_v21, 9  ;;  %v6889_v59 = vrot.slane %v6584_v47, 5  ;;  %v6586_v20 = vld [vmem:[#allocation2 + $0x18c] sm:$0xe] }
 0x4c0   :  { %17199 = vst [vmem:[#allocation116_spill] sm:$0xff] %v16209_v35  ;;  %7032 = vst [vmem:[#allocation4 + $0x794] sm:$0xf] %v6879_v27  ;;  %v6892_v37 = vrot.slane %v6585_v54, 5  ;;  %v6588_v42 = vld [vmem:[#allocation2 + $0x194] sm:$0x1] }
 0x4c1   :  { %17198 = vst [vmem:[#allocation111_spill] sm:$0xff] %v16203_v15  ;;  %7034 = vst [vmem:[#allocation4 + $0x7dc] sm:$0xf] %v6886_v38  ;;  %v12017_v52 = vrot.slane %v6586_v20, 9  ;;  %v6898_v43 = vrot.slane %v6896_v58, 4  ;;  %v6890_v32 = vsel %vm13597_vm10, %v12016_v26, %v6889_v59  ;;  %v6891_v22 = vrot.slane %v6889_v59, 4  ;;  %v10182_v38 = vpop.f32.mrf.mxu1  ;;  %v16218_v20 = vpop.f32.mrf.mxu0 }
 0x4c2   :  { %v13251_v36 = vld [vmem:[#allocation4 + $0x458] ss:$36 sps:$4 sm:$0xff]   ;;  %v13252_v18 = vld [vmem:[#allocation4 + $0x4a0] ss:$36 sps:$4 sm:$0xff]   ;;  %7035 = vst [vmem:[#allocation4 + $0x800] sm:$0xf] %v6890_v32 }
 0x4c3   :  { %v6897_v63 = vsel %vm13597_vm10, %v12017_v52, %v6896_v58  ;;  %v6899_v7 = vrot.slane %v6588_v42, 5  ;;  %v17200_v10 = vld [vmem:[#allocation117_spill] sm:$0xff]  ;;  %v6589_v54 = vld [vmem:[#allocation2 + $0x198] sm:$0xe]  ;;  %v6590_v11 = vld [vmem:[#allocation2 + $0x19c] sm:$0xf]  ;;  %v6893_v26 = vsel %vm13597_vm10, %v6891_v22, %v6892_v37  ;;  %12714 = vmatmul.mubr.bf16.gmra.mxu1 %v13251_v36 }
 0x4c4   :  { %v9608_v30 = vadd.f32 %v16014_v23, %v17200_v10  ;;  %v17201_v21 = vld [vmem:[#allocation113_spill] sm:$0xff]  ;;  %7037 = vst [vmem:[#allocation4 + $0x848] sm:$0xf] %v6897_v63  ;;  %v6591_v27 = vld [vmem:[#allocation2 + $0x1a0] sm:$0x1]  ;;  %17202 = vst [vmem:[#allocation117_spill] sm:$0xff] %v16218_v20  ;;  %12717 = vmatprep.mubr.bf16.mxu1 %v13252_v18  ;;  %v10184_v10 = vpop.f32.mrf.mxu1 }
 0x4c5   :  { %v9894_v47 = vadd.f32 %v17201_v21, %v9605_v1  ;;  %v6900_v59 = vsel %vm13597_vm10, %v6898_v43, %v6899_v7  ;;  %v12018_v58 = vrot.slane %v6589_v54, 9  ;;  %v6903_v42 = vrot.slane %v6590_v11, 5  ;;  %v6592_v52 = vld [vmem:[#allocation2 + $0x1a4] sm:$0xe]  ;;  %7036 = vst [vmem:[#allocation4 + $0x824] sm:$0xf] %v6893_v26  ;;  %v10476_v21 = vpop.f32.mrf.mxu0 }
 0x4c6   :  { %7038 = vst [vmem:[#allocation4 + $0x86c] sm:$0xf] %v6900_v59  ;;  %v6906_v1 = vrot.slane %v6591_v27, 5  ;;  %v6593_v4 = vld [vmem:[#allocation2 + $0x1a8] sm:$0xf]  ;;  %v12019_v63 = vrot.slane %v6592_v52, 9  ;;  %v10185_v36 = vpop.f32.mrf.mxu1 }
 0x4c7   :  { %v16224_v32 = vadd.f32 %v10182_v38, %v9894_v47  ;;  %v6904_v37 = vsel %vm13597_vm10, %v12018_v58, %v6903_v42  ;;  %v6905_v22 = vrot.slane %v6903_v42, 4  ;;  %v6594_v15 = vld [vmem:[#allocation2 + $0x1ac] sm:$0x1]  ;;  %v6910_v43 = vrot.slane %v6593_v4, 5  ;;  %v17204_v7 = vld [vmem:[#allocation115_spill] sm:$0xff]  ;;  %v16239_v52 = vpop.f32.mrf.mxu0  ;;  %v17209_v21 = vld [vmem:[#allocation118_spill] sm:$0xff] }
 0x4c8   :  { %v9897_v54 = vadd.f32 %v17204_v7, %v9608_v30  ;;  %7039 = vst [vmem:[#allocation4 + $0x890] sm:$0xf] %v6904_v37  ;;  %v6913_v18 = vrot.slane %v6594_v15, 5  ;;  %v10187_v26 = vpop.f32.mrf.mxu1  ;;  %v17206_v58 = vld [vmem:[#allocation120_spill] sm:$0xff]  ;;  %v13253_v42 = vld [vmem:[#allocation4 + $0x4e8] ss:$36 sps:$4 sm:$0xff]  }
 0x4c9   :  { %17203 = vst [vmem:[#allocation113_spill] sm:$0xff] %v16224_v32  ;;  %v6907_v47 = vsel %vm13597_vm10, %v6905_v22, %v6906_v1  ;;  %v6911_v11 = vsel %vm13597_vm10, %v12019_v63, %v6910_v43  ;;  %v6912_v27 = vrot.slane %v6910_v43, 4  ;;  %v9613_v30 = vadd.f32 %v16014_v23, %v17206_v58  ;;  %17207 = vst [vmem:[#allocation120_spill] sm:$0xff] %v16239_v52  ;;  %v13254_v1 = vld [vmem:[#allocation4 + $0x530] ss:$36 sps:$4 sm:$0xff]   ;;  %v10481_v4 = vpop.f32.mrf.mxu0  ;;  %v17208_v63 = vld [vmem:[#allocation122_spill] sm:$0xff] }
 0x4ca   :  { %v16233_v38 = vadd.f32 %v10185_v36, %v9897_v54  ;;  %7040 = vst [vmem:[#allocation4 + $0x8b4] sm:$0xf] %v6907_v47  ;;  %7041 = vst [vmem:[#allocation4 + $0x8d8] sm:$0xf] %v6911_v11  ;;  %v11167_v15 = vld [vmem:[%s16845_s5 + $0x100] sm:$0xff]  ;;  %v9616_v10 = vadd.f32 %v16014_v23, %v17208_v63  ;;  %v10190_v54 = vpop.f32.mrf.mxu1  ;;  %v17216_v63 = vld [vmem:[#allocation125_spill] sm:$0xff] }
 0x4cb   :  { %v6914_v59 = vsel %vm13597_vm10, %v6912_v27, %v6913_v18  ;;  %12718 = vmatmul.mubr.bf16.gmra.mxu1 %v13253_v42  ;;  %v9902_v37 = vadd.f32 %v17209_v21, %v9613_v30  ;;  %v16250_v22 = vpop.f32.mrf.mxu0  ;;  %v12413_v43 = vcombine.low %v11167_v15, %v11171_v50  ;;  %v12414_v7 = vcombine.high %v11167_v15, %v11171_v50  ;;  %v13255_v27 = vld [vmem:[#allocation4 + $0x578] ss:$36 sps:$4 sm:$0xff]   ;;  %v17212_v18 = vld [vmem:[#allocation119_spill] sm:$0xff] }
 0x4cc   :  { %17205 = vst [vmem:[#allocation115_spill] sm:$0xff] %v16233_v38  ;;  %7042 = vst [vmem:[#allocation4 + $0x8fc] sm:$0xf] %v6914_v59  ;;  %12721 = vmatprep.mubr.bf16.mxu1 %v13254_v1  ;;  %v10192_v11 = vpop.f32.mrf.mxu1  ;;  %v9905_v26 = vadd.f32 %v17212_v18, %v9616_v10  ;;  %v13256_v59 = vld [vmem:[#allocation4 + $0x5c0] ss:$36 sps:$4 sm:$0xff]   ;;  %v17214_v30 = vld [vmem:[#allocation124_spill] sm:$0xff]  ;;  %v9624_v21 = vadd.f32 %v16014_v23, %v17216_v63 }
 0x4cd   :  { %17210 = vst [vmem:[#allocation122_spill] sm:$0xff] %v16250_v22  ;;  %v16252_v36 = vadd.f32 %v10190_v54, %v9902_v37  ;;  %v10484_v47 = vpop.f32.mrf.mxu0  ;;  %11575 = vmatprep.subr.bf16.mxu0 %v12414_v7  ;;  %v9621_v1 = vadd.f32 %v16014_v23, %v17214_v30  ;;  %v17217_v37 = vld [vmem:[#allocation121_spill] sm:$0xff]  ;;  %v13257_v10 = vld [vmem:[#allocation4 + $0x608] ss:$36 sps:$4 sm:$0xff]   ;;  %v17244_v32 = vld [vmem:[#allocation140_spill] sm:$0xff] }
 0x4ce   :  { %11576 = vmatpush1.bf16.msra.mxu0 %v12413_v43  ;;  %v10193_v58 = vpop.f32.mrf.mxu1  ;;  %v13258_v47 = vld [vmem:[#allocation4 + $0x650] ss:$36 sps:$4 sm:$0xff]   ;;  %v17221_v30 = vld [vmem:[#allocation129_spill] sm:$0xff] }
 0x4cf   :  { %17211 = vst [vmem:[#allocation118_spill] sm:$0xff] %v16252_v36  ;;  %v16255_v42 = vadd.f32 %v10193_v58, %v9905_v26  ;;  %v16259_v15 = vpop.f32.mrf.mxu0  ;;  %v9910_v43 = vadd.f32 %v17217_v37, %v9621_v1  ;;  %v17220_v26 = vld [vmem:[#allocation123_spill] sm:$0xff]  ;;  %v13259_v37 = vld [vmem:[#allocation4 + $0x698] ss:$36 sps:$4 sm:$0xff]   ;;  %v17242_v38 = vld [vmem:[#allocation145_spill] sm:$0xff] }
 0x4d0   :  { %v10195_v4 = vpop.f32.mrf.mxu1  ;;  %17215 = vst [vmem:[#allocation124_spill] sm:$0xff] %v16259_v15  ;;  %v13265_v15 = vld [vmem:[#allocation4 + $0x848] ss:$36 sps:$4 sm:$0xff]  }
 0x4d1   :  { %17213 = vst [vmem:[#allocation119_spill] sm:$0xff] %v16255_v42  ;;  %v10489_v50 = vpop.f32.mrf.mxu0  ;;  %v9629_v4 = vadd.f32 %v16014_v23, %v17221_v30  ;;  %v17230_v42 = vld [vmem:[#allocation132_spill] sm:$0xff] }
 0x4d2   :  { %v10198_v54 = vpop.f32.mrf.mxu1 }
 0x4d3   :  { %12722 = vmatmul.mubr.bf16.gmra.mxu1 %v13255_v27  ;;  %v16264_v7 = vpop.f32.mrf.mxu0  ;;  %v16266_v11 = vadd.f32 %v10198_v54, %v9910_v43  ;;  %v16278_v43 = vld [vmem:[%s16844_s4] ss:$0 sm:$0xff] }
 0x4d4   :  { %12725 = vmatprep.mubr.bf16.mxu1 %v13256_v59  ;;  %17218 = vst [vmem:[#allocation125_spill] sm:$0xff] %v16264_v7  ;;  %v10200_v18 = vpop.f32.mrf.mxu1  ;;  %v9913_v59 = vadd.f32 %v17220_v26, %v9624_v21  ;;  %v13260_v21 = vld [vmem:[#allocation4 + $0x6e0] ss:$36 sps:$4 sm:$0xff]   ;;  %v13261_v7 = vld [vmem:[#allocation4 + $0x728] ss:$36 sps:$4 sm:$0xff]   ;;  %v9685_v49 = vadd.f32 %v16278_v43, %v17255_v60 }
 0x4d5   :  { %17219 = vst [vmem:[#allocation121_spill] sm:$0xff] %v16266_v11  ;;  %v10492_v27 = vpop.f32.mrf.mxu0  ;;  %v17236_v11 = vld [vmem:[#allocation133_spill] sm:$0xff] }
 0x4d6   :  { %v10201_v58 = vpop.f32.mrf.mxu1  ;;  %v11193_v60 = vld [vmem:[%s16845_s5 + $0x1d0] sm:$0xff] }
 0x4d7   :  { %v16271_v50 = vadd.f32 %v10201_v58, %v9913_v59  ;;  %v16273_v63 = vpop.f32.mrf.mxu0  ;;  %v17228_v58 = vld [vmem:[#allocation127_spill] sm:$0xff] }
 0x4d8   :  { %v10203_v1 = vpop.f32.mrf.mxu1  ;;  %17223 = vst [vmem:[#allocation129_spill] sm:$0xff] %v16273_v63 }
 0x4d9   :  { %17222 = vst [vmem:[#allocation123_spill] sm:$0xff] %v16271_v50  ;;  %v10497_v22 = vpop.f32.mrf.mxu0 }
 0x4da   :  { %v10206_v23 = vpop.f32.mrf.mxu1 }
 0x4db   :  { %12726 = vmatmul.mubr.bf16.gmra.mxu1 %v13257_v10  ;;  %v17224_v10 = vld [vmem:[#allocation131_spill] sm:$0xff]  ;;  %v16283_v18 = vpop.f32.mrf.mxu0 }
 0x4dc   :  { %12729 = vmatprep.mubr.bf16.mxu1 %v13258_v47  ;;  %v9632_v54 = vadd.f32 %v16278_v43, %v17224_v10  ;;  %v17225_v47 = vld [vmem:[#allocation126_spill] sm:$0xff]  ;;  %17226 = vst [vmem:[#allocation131_spill] sm:$0xff] %v16283_v18  ;;  %v10208_v59 = vpop.f32.mrf.mxu1  ;;  %v9637_v10 = vadd.f32 %v16278_v43, %v17230_v42 }
 0x4dd   :  { %v9918_v27 = vadd.f32 %v17225_v47, %v9629_v4  ;;  %v10500_v22 = vpop.f32.mrf.mxu0  ;;  %v13262_v4 = vld [vmem:[#allocation4 + $0x770] ss:$36 sps:$4 sm:$0xff]   ;;  %v17231_v47 = vld [vmem:[#allocation134_spill] sm:$0xff] }
 0x4de   :  { %v9921_v30 = vadd.f32 %v17228_v58, %v9632_v54  ;;  %v10209_v1 = vpop.f32.mrf.mxu1 }
 0x4df   :  { %v16285_v26 = vadd.f32 %v10206_v23, %v9918_v27  ;;  %v9640_v27 = vadd.f32 %v16278_v43, %v17231_v47  ;;  %v17232_v23 = vld [vmem:[#allocation128_spill] sm:$0xff] }
 0x4e0   :  { %v16288_v63 = vadd.f32 %v10209_v1, %v9921_v30  ;;  %v10211_v50 = vpop.f32.mrf.mxu1  ;;  %v9926_v59 = vadd.f32 %v17232_v23, %v9637_v10  ;;  %v13263_v1 = vld [vmem:[#allocation4 + $0x7b8] ss:$36 sps:$4 sm:$0xff]   ;;  %v11163_v10 = vld [vmem:[%s16845_s5 + $0xe0] sm:$0xff] }
 0x4e1   :  { %17227 = vst [vmem:[#allocation126_spill] sm:$0xff] %v16285_v26  ;;  %v17233_v50 = vld [vmem:[#allocation130_spill] sm:$0xff] }
 0x4e2   :  { %17229 = vst [vmem:[#allocation127_spill] sm:$0xff] %v16288_v63  ;;  %v10214_v54 = vpop.f32.mrf.mxu1  ;;  %v9929_v18 = vadd.f32 %v17233_v50, %v9640_v27  ;;  %v13264_v63 = vld [vmem:[#allocation4 + $0x800] ss:$36 sps:$4 sm:$0xff]  }
 0x4e3   :  { %12730 = vmatmul.mubr.bf16.gmra.mxu1 %v13259_v37  ;;  %v16292_v37 = vpop.f32.mrf.mxu0  ;;  %v16299_v58 = vadd.f32 %v10214_v54, %v9926_v59  ;;  %v17234_v59 = vld [vmem:[#allocation137_spill] sm:$0xff] }
 0x4e4   :  { %12733 = vmatprep.mubr.bf16.mxu1 %v13260_v21  ;;  %v10216_v30 = vpop.f32.mrf.mxu1  ;;  %v9645_v27 = vadd.f32 %v16278_v43, %v17234_v59  ;;  %v17237_v59 = vld [vmem:[#allocation135_spill] sm:$0xff] }
 0x4e5   :  { %v10505_v21 = vpop.f32.mrf.mxu0 }
 0x4e6   :  { %v10217_v26 = vpop.f32.mrf.mxu1 }
 0x4e7   :  { %v16297_v22 = vpop.f32.mrf.mxu0 }
 0x4e8   :  { %v10219_v23 = vpop.f32.mrf.mxu1 }
 0x4e9   :  { %v10508_v42 = vpop.f32.mrf.mxu0 }
 0x4ea   :  { %v17235_v42 = vld [vmem:[#allocation139_spill] sm:$0xff] }
 0x4eb   :  { %12734 = vmatmul.mubr.bf16.gmra.mxu1 %v13261_v7  ;;  %v11159_v7 = vld [vmem:[%s16845_s5 + $0xc0] sm:$0xff]  ;;  %v16312_v54 = vpop.f32.mrf.mxu0  ;;  %v9648_v50 = vadd.f32 %v16278_v43, %v17235_v42  ;;  %v17238_v42 = vld [vmem:[#allocation141_spill] sm:$0xff] }
 0x4ec   :  { %12737 = vmatprep.mubr.bf16.mxu1 %v13262_v4  ;;  %v16308_v4 = vadd.f32 %v10217_v26, %v9929_v18  ;;  %v12405_v21 = vcombine.low %v11159_v7, %v11163_v10  ;;  %v12406_v47 = vcombine.high %v11159_v7, %v11163_v10  ;;  %v13266_v26 = vld [vmem:[#allocation4 + $0x890] ss:$36 sps:$4 sm:$0xff]   ;;  %v10222_v7 = vpop.f32.mrf.mxu1  ;;  %v9653_v36 = vadd.f32 %v16278_v43, %v17238_v42 }
 0x4ed   :  { %v10513_v30 = vpop.f32.mrf.mxu0 }
 0x4ee   :  { %11577 = vmatprep.subr.bf16.mxu0 %v12406_v47  ;;  %v10224_v23 = vpop.f32.mrf.mxu1  ;;  %v9937_v47 = vadd.f32 %v17237_v59, %v9648_v50  ;;  %v13267_v30 = vld [vmem:[#allocation4 + $0x8d8] ss:$36 sps:$4 sm:$0xff]  }
 0x4ef   :  { %11578 = vmatpush1.bf16.msra.mxu0 %v12405_v21  ;;  %v16317_v18 = vpop.f32.mrf.mxu0 }
 0x4f0   :  { %v10225_v21 = vpop.f32.mrf.mxu1 }
 0x4f1   :  { %v10516_v10 = vpop.f32.mrf.mxu0  ;;  %v16322_v52 = vadd.f32 %v10225_v21, %v9937_v47  ;;  %v17241_v21 = vld [vmem:[#allocation138_spill] sm:$0xff] }
 0x4f3   :  { %12738 = vmatmul.mubr.bf16.gmra.mxu1 %v13263_v1  ;;  %v9934_v1 = vadd.f32 %v17236_v11, %v9645_v27  ;;  %v10227_v11 = vpop.f32.mrf.mxu1  ;;  %v16326_v27 = vpop.f32.mrf.mxu0 }
 0x4f4   :  { %12741 = vmatprep.mubr.bf16.mxu1 %v13264_v63 }
 0x4f5   :  { %v16319_v63 = vadd.f32 %v10222_v7, %v9934_v1  ;;  %v10521_v20 = vpop.f32.mrf.mxu0  ;;  %v17240_v7 = vld [vmem:[#allocation136_spill] sm:$0xff]  ;;  %v10230_v50 = vpop.f32.mrf.mxu1 }
 0x4f6   :  { %v9661_v20 = vadd.f32 %v16278_v43, %v17242_v38 }
 0x4f7   :  { %v16331_v10 = vpop.f32.mrf.mxu0  ;;  %v10232_v47 = vpop.f32.mrf.mxu1 }
 0x4f9   :  { %v10524_v59 = vpop.f32.mrf.mxu0  ;;  %v10233_v11 = vpop.f32.mrf.mxu1 }
 0x4fb   :  { %12742 = vmatmul.mubr.bf16.gmra.mxu1 %v13265_v15  ;;  %v17239_v15 = vld [vmem:[#allocation143_spill] sm:$0xff]  ;;  %v16341_v35 = vpop.f32.mrf.mxu0 }
 0x4fc   :  { %12745 = vmatprep.mubr.bf16.mxu1 %v13266_v26  ;;  %v9656_v1 = vadd.f32 %v16278_v43, %v17239_v15  ;;  %v9942_v26 = vadd.f32 %v17240_v7, %v9653_v36  ;;  %v10235_v15 = vpop.f32.mrf.mxu1  ;;  %v17243_v7 = vld [vmem:[#allocation147_spill] sm:$0xff] }
 0x4fd   :  { %v10529_v36 = vpop.f32.mrf.mxu0  ;;  %v17246_v15 = vld [vmem:[#allocation148_spill] sm:$0xff] }
 0x4fe   :  { %v16334_v23 = vadd.f32 %v10230_v50, %v9942_v26  ;;  %v9945_v42 = vadd.f32 %v17241_v21, %v9656_v1  ;;  %v9950_v26 = vadd.f32 %v17244_v32, %v9661_v20  ;;  %v10238_v50 = vpop.f32.mrf.mxu1  ;;  %v9669_v36 = vadd.f32 %v16278_v43, %v17246_v15  ;;  %v17247_v32 = vld [vmem:[#allocation150_spill] sm:$0xff] }
 0x4ff   :  { %v16346_v59 = vpop.f32.mrf.mxu0  ;;  %v9672_v20 = vadd.f32 %v16278_v43, %v17247_v32 }
 0x500   :  { %v16348_v47 = vadd.f32 %v10238_v50, %v9950_v26  ;;  %v10240_v1 = vpop.f32.mrf.mxu1  ;;  %v9958_v26 = vadd.f32 %v17248_v0, %v9669_v36  ;;  %v17251_v0 = vld [vmem:[#allocation154_spill] sm:$0xff] }
 0x501   :  { %v10532_v21 = vpop.f32.mrf.mxu0  ;;  %v9680_v36 = vadd.f32 %v16278_v43, %v17251_v0 }
 0x503   :  { %12746 = vmatmul.mubr.bf16.gmra.mxu1 %v13267_v30  ;;  %v16339_v30 = vadd.f32 %v10233_v11, %v9945_v42  ;;  %v10241_v42 = vpop.f32.mrf.mxu1  ;;  %v16355_v14 = vpop.f32.mrf.mxu0 }
 0x504   :  { %11683 = vmatprep.mubr.bf16.mxu1 %v17159_v13  ;;  %v9664_v13 = vadd.f32 %v16278_v43, %v17243_v7 }
 0x505   :  { %v10243_v5 = vpop.f32.mrf.mxu1  ;;  %v10537_v7 = vpop.f32.mrf.mxu0 }
 0x506   :  { %v9953_v38 = vadd.f32 %v17245_v41, %v9664_v13  ;;  %v9677_v7 = vadd.f32 %v16278_v43, %v17250_v48 }
 0x507   :  { %v16360_v1 = vpop.f32.mrf.mxu0 }
 0x508   :  { %v16351_v11 = vadd.f32 %v10241_v42, %v9953_v38  ;;  %v17249_v38 = vld [vmem:[#allocation146_spill] sm:$0xff] }
 0x509   :  { %v10246_v50 = vpop.f32.mrf.mxu1  ;;  %v10540_v41 = vpop.f32.mrf.mxu0  ;;  %v9961_v42 = vadd.f32 %v17249_v38, %v9672_v20  ;;  %v11155_v20 = vld [vmem:[%s16845_s5 + $0xa0] sm:$0xff] }
 0x50a   :  { %v16362_v21 = vadd.f32 %v10246_v50, %v9958_v26  ;;  %v9966_v26 = vadd.f32 %v17252_v29, %v9677_v7  ;;  %v16387_v7 = vadd.f32 %v16292_v37, %v16299_v58 }
 0x50b   :  { %v10248_v13 = vpop.f32.mrf.mxu1 }
 0x50c   :  { %17254 = vst [vmem:[#allocation132_spill] sm:$0xff] %v16387_v7 }
 0x50d   :  { %v10249_v25 = vpop.f32.mrf.mxu1 }
 0x50e   :  { %v16365_v15 = vadd.f32 %v10249_v25, %v9961_v42  ;;  %v11151_v25 = vld [vmem:[%s16845_s5 + $0x80] sm:$0xff] }
 0x50f   :  { %v10251_v5 = vpop.f32.mrf.mxu1  ;;  %v12397_v38 = vcombine.low %v11151_v25, %v11155_v20  ;;  %v12398_v42 = vcombine.high %v11151_v25, %v11155_v20  ;;  %v16395_v25 = vadd.f32 %v16297_v22, %v16308_v4  ;;  %v11143_v22 = vld [vmem:[%s16845_s5 + $0x40] sm:$0xff]  ;;  %v16411_v4 = vadd.f32 %v16326_v27, %v16334_v23 }
 0x510   :  { %v16369_v34 = vpop.f32.mrf.mxu0 }
 0x511   :  { %11579 = vmatprep.subr.bf16.mxu0 %v12398_v42  ;;  %17256 = vst [vmem:[#allocation134_spill] sm:$0xff] %v16395_v25  ;;  %v17260_v25 = vld [vmem:[#allocation161_spill] sm:$0xff] }
 0x512   :  { %v10545_v32 = vpop.f32.mrf.mxu0  ;;  %11580 = vmatpush1.bf16.msra.mxu0 %v12397_v38  ;;  %v17258_v38 = vld [vmem:[#allocation153_spill] sm:$0xff]  ;;  %v9693_v7 = vadd.f32 %v16278_v43, %v17260_v25 }
 0x513   :  { %v17253_v32 = vld [vmem:[#allocation151_spill] sm:$0xff]  ;;  %v9974_v42 = vadd.f32 %v17258_v38, %v9685_v49  ;;  %v16415_v49 = vadd.f32 %v16312_v54, %v16319_v63  ;;  %v16425_v54 = vadd.f32 %v16331_v10, %v16339_v30  ;;  %v16429_v63 = vadd.f32 %v16317_v18, %v16322_v52 }
 0x514   :  { %v16374_v50 = vpop.f32.mrf.mxu0  ;;  %v9969_v0 = vadd.f32 %v17253_v32, %v9680_v36  ;;  %v17257_v36 = vld [vmem:[#allocation158_spill] sm:$0xff]  ;;  %v17259_v38 = vld [vmem:[#allocation155_spill] sm:$0xff]  ;;  %v16440_v10 = vadd.f32 %v16341_v35, %v16348_v47 }
 0x515   :  { %v9688_v20 = vadd.f32 %v16278_v43, %v17257_v36  ;;  %v11147_v36 = vld [vmem:[%s16845_s5 + $0x60] sm:$0xff] }
 0x516   :  { %v10254_v13 = vpop.f32.mrf.mxu1  ;;  %v10548_v41 = vpop.f32.mrf.mxu0 }
 0x517   :  { %v16382_v48 = vadd.f32 %v10254_v13, %v9966_v26 }
 0x518   :  { %v10256_v5 = vpop.f32.mrf.mxu1 }
 0x51a   :  { %v10257_v29 = vpop.f32.mrf.mxu1 }
 0x51b   :  { %v16389_v51 = vadd.f32 %v10257_v29, %v9969_v0  ;;  %v11197_v0 = vld [vmem:[%s16845_s5 + $0x1f0] sm:$0xff] }
 0x51c   :  { %v10259_v26 = vpop.f32.mrf.mxu1 }
 0x51d   :  { %v12441_v26 = vcombine.low %v11193_v60, %v11197_v0 }
 0x51e   :  { %v10551_v13 = vpop.f32.mrf.mxu0 }
 0x520   :  { %v10553_v41 = vpop.f32.mrf.mxu0 }
 0x521   :  { %v12442_v41 = vcombine.high %v11193_v60, %v11197_v0 }
 0x522   :  { %v10554_v5 = vpop.f32.mrf.mxu0 }
 0x523   :  { %v10262_v37 = vpop.f32.mrf.mxu1  ;;  %11651 = vmatprep.subr.bf16.mxu1 %v12442_v41 }
 0x524   :  { %v10263_v58 = vadd.f32 %v10262_v37, %v9974_v42  ;;  %v10556_v32 = vpop.f32.mrf.mxu0  ;;  %v9977_v42 = vadd.f32 %v17259_v38, %v9688_v20  ;;  %v12389_v37 = vcombine.low %v11143_v22, %v11147_v36  ;;  %11652 = vmatpush1.bf16.msra.mxu1 %v12441_v26  ;;  %v16436_v26 = vadd.f32 %v16355_v14, %v16362_v21  ;;  %v17265_v21 = vld [vmem:[#allocation49_spill] sm:$0xff] }
 0x525   :  { %v10264_v29 = vpop.f32.mrf.mxu1  ;;  %v12390_v32 = vcombine.high %v11143_v22, %v11147_v36  ;;  %v17261_v22 = vld [vmem:[#allocation163_spill] sm:$0xff]  ;;  %v16451_v14 = vadd.f32 %v16346_v59, %v16351_v11  ;;  %v11189_v59 = vld [vmem:[%s16845_s5 + $0x1b0] sm:$0xff] }
 0x526   :  { %v9696_v25 = vadd.f32 %v16278_v43, %v17261_v22  ;;  %v17262_v29 = vld [vmem:[#allocation157_spill] sm:$0xff]  ;;  %v17266_v22 = vld [vmem:[#allocation166_spill] sm:$0xff]  ;;  %v16464_v11 = vadd.f32 %v10551_v13, %v10263_v58 }
 0x527   :  { %v10265_v27 = vpop.f32.mrf.mxu1  ;;  %11581 = vmatprep.subr.bf16.mxu0 %v12390_v32  ;;  %v9982_v41 = vadd.f32 %v17262_v29, %v9693_v7  ;;  %v17264_v32 = vld [vmem:[#allocation159_spill] sm:$0xff]  ;;  %v16447_v7 = vadd.f32 %v16360_v1, %v16365_v15  ;;  %v9704_v29 = vadd.f32 %v16278_v43, %v17266_v22  ;;  %v11185_v1 = vld [vmem:[%s16845_s5 + $0x190] sm:$0xff]  ;;  %v16468_v15 = vadd.f32 %v16369_v34, %v16382_v48 }
 0x528   :  { %v10266_v23 = vadd.f32 %v10265_v27, %v9977_v42  ;;  %11582 = vmatpush1.bf16.msra.mxu0 %v12389_v37  ;;  %v17263_v42 = vld [vmem:[#allocation164_spill] sm:$0xff]  ;;  %v9985_v27 = vadd.f32 %v17264_v32, %v9696_v25  ;;  %v17268_v32 = vld [vmem:[#allocation51_spill] sm:$0xff]  ;;  %v16478_v34 = vadd.f32 %v16374_v50, %v16389_v51  ;;  %v17274_v51 = vld [vmem:[#allocation165_spill] sm:$0xff] }
 0x529   :  { %v10267_v60 = vpop.f32.mrf.mxu1  ;;  %v9701_v37 = vadd.f32 %v16278_v43, %v17263_v42 }
 0x52a   :  { %v9453_v60 = vadd.f32 %v16278_v43, %v17265_v21  ;;  %v16474_v13 = vadd.f32 %v10554_v5, %v10266_v23  ;;  %v17273_v23 = vld [vmem:[#allocation169_spill] sm:$0xff] }
 0x52d   :  { %v10559_v20 = vpop.f32.mrf.mxu0 }
 0x52f   :  { %v10561_v0 = vpop.f32.mrf.mxu0 }
 0x530   :  { %v10270_v30 = vpop.f32.mrf.mxu1 }
 0x531   :  { %v10562_v52 = vpop.f32.mrf.mxu0  ;;  %v10271_v18 = vadd.f32 %v10270_v30, %v9982_v41  ;;  %v17267_v41 = vld [vmem:[#allocation160_spill] sm:$0xff] }
 0x532   :  { %v10272_v36 = vpop.f32.mrf.mxu1  ;;  %v9990_v30 = vadd.f32 %v17267_v41, %v9701_v37  ;;  %v9456_v37 = vadd.f32 %v16278_v43, %v17268_v32  ;;  %v17271_v41 = vld [vmem:[#allocation168_spill] sm:$0xff] }
 0x533   :  { %v10564_v38 = vpop.f32.mrf.mxu0  ;;  %v12433_v36 = vcombine.low %v11185_v1, %v11189_v59  ;;  %v16484_v32 = vadd.f32 %v10559_v20, %v10271_v18  ;;  %v10331_v20 = vadd.f32 %v15590_v2, %v15614_v9  ;;  %v17276_v18 = vld [vmem:[#allocation167_spill] sm:$0xff] }
 0x534   :  { %v10273_v35 = vpop.f32.mrf.mxu1  ;;  %v12434_v38 = vcombine.high %v11185_v1, %v11189_v59  ;;  %v17280_v9 = vld [vmem:[#allocation7_spill] sm:$0xff] }
 0x535   :  { %v10274_v47 = vadd.f32 %v10273_v35, %v9985_v27  ;;  %v17269_v35 = vld [vmem:[#allocation58_spill] sm:$0xff] }
 0x536   :  { %v10275_v0 = vpop.f32.mrf.mxu1  ;;  %11653 = vmatprep.subr.bf16.mxu1 %v12434_v38  ;;  %v9742_v21 = vadd.f32 %v17269_v35, %v9453_v60  ;;  %v17272_v38 = vld [vmem:[#allocation60_spill] sm:$0xff] }
 0x537   :  { %v17270_v0 = vld [vmem:[#allocation162_spill] sm:$0xff]  ;;  %11654 = vmatpush1.bf16.msra.mxu1 %v12433_v36  ;;  %v9745_v60 = vadd.f32 %v17272_v38, %v9456_v37 }
 0x538   :  { %v9993_v22 = vadd.f32 %v17270_v0, %v9704_v29 }
 0x539   :  { %v10034_v36 = vadd.f32 %v17273_v23, %v9745_v60 }
 0x53a   :  { %v10278_v25 = vpop.f32.mrf.mxu1 }
 0x53b   :  { %v10279_v42 = vadd.f32 %v10278_v25, %v9990_v30  ;;  %v10031_v30 = vadd.f32 %v17271_v41, %v9742_v21  ;;  %v10323_v41 = vadd.f32 %v17276_v18, %v10034_v36 }
 0x53c   :  { %v10280_v27 = vpop.f32.mrf.mxu1 }
 0x53d   :  { %v10320_v50 = vadd.f32 %v17274_v51, %v10031_v30  ;;  %v17279_v51 = vld [vmem:[#allocation8_spill] sm:$0xff] }
 0x53e   :  { %v10281_v58 = vpop.f32.mrf.mxu1 }
 0x53f   :  { %v10282_v43 = vadd.f32 %v10281_v58, %v9993_v22 }
 0x540   :  { %v10567_v48 = vpop.f32.mrf.mxu0  ;;  %v10283_v25 = vpop.f32.mrf.mxu1 }
 0x541   :  { %v16481_v1 = vadd.f32 %v10567_v48, %v10279_v42  ;;  %v17275_v42 = vld [vmem:[#allocation170_spill] sm:$0xff]  ;;  %v16492_v48 = vadd.f32 %v10562_v52, %v10274_v47  ;;  %v10336_v52 = vadd.f32 %v15612_v62, %v15630_v17  ;;  %v10344_v47 = vadd.f32 %v15638_v31, %v15649_v56 }
 0x542   :  { %v10569_v59 = vpop.f32.mrf.mxu0  ;;  %v10328_v21 = vadd.f32 %v17275_v42, %v15596_v12  ;;  %v17281_v62 = vld [vmem:[#allocation10_spill] sm:$0xff] }
 0x543   :  { %v12687_v5 = vpop.f32.mrf.mxu1 }
 0x544   :  { %v10570_v29 = vpop.f32.mrf.mxu0  ;;  %v10617_v37 = vadd.f32 %v12687_v5, %v10328_v21  ;;  %v10339_v21 = vadd.f32 %v15624_v16, %v15641_v46  ;;  %v10360_v46 = vadd.f32 %v15710_v24, %v15728_v57 }
 0x545   :  { %v16487_v27 = vadd.f32 %v10570_v29, %v10282_v43  ;;  %v10608_v35 = vpop.f32.mrf.mxu1  ;;  %v17277_v43 = vld [vmem:[#allocation6_spill] sm:$0xff]  ;;  %v17278_v29 = vld [vmem:[#allocation5_spill] sm:$0xff] }
 0x546   :  { %v10572_v0 = vpop.f32.mrf.mxu0  ;;  %v10609_v22 = vadd.f32 %v10608_v35, %v10320_v50  ;;  %v10929_v23 = vadd.f32 %v10617_v37, %v17278_v29 }
 0x547   :  { %v12688_v58 = vpop.f32.mrf.mxu1  ;;  %v10347_v0 = vadd.f32 %v15651_v28, %v15668_v44 }
 0x548   :  { %v10927_v25 = vadd.f32 %v10609_v22, %v17277_v43  ;;  %v10620_v38 = vadd.f32 %v12688_v58, %v10331_v20  ;;  %v10993_v22 = vmax.f32 %v10929_v23, 0.0  ;;  %v10352_v43 = vadd.f32 %v15670_v6, %v15692_v8  ;;  %v17284_v23 = vld [vmem:[#allocation11_spill] sm:$0xff] }
 0x549   :  { %v10611_v59 = vpop.f32.mrf.mxu1  ;;  %v10355_v6 = vadd.f32 %v15688_v53, %v15708_v40  ;;  %v10376_v40 = vadd.f32 %v15770_v61, %v15790_v19  ;;  %v17289_v61 = vld [vmem:[#allocation173_spill] sm:$0xff] }
 0x54a   :  { %v10612_v30 = vadd.f32 %v10611_v59, %v10323_v41  ;;  %v10991_v2 = vmax.f32 %v10927_v25, 0.0  ;;  %v10930_v36 = vadd.f32 %v10620_v38, %v17280_v9  ;;  %v17282_v25 = vld [vmem:[#allocation9_spill] sm:$0xff]  ;;  %v10379_v19 = vadd.f32 %v17289_v61, %v15804_v33  ;;  %v17300_v61 = vld [vmem:[#allocation86_spill] sm:$0xff] }
 0x54b   :  { %v12691_v60 = vpop.f32.mrf.mxu1 }
 0x54c   :  { %v10928_v12 = vadd.f32 %v10612_v30, %v17279_v51  ;;  %v10633_v37 = vadd.f32 %v12691_v60, %v10344_v47  ;;  %v10994_v31 = vmax.f32 %v10930_v36, 0.0  ;;  %v17283_v30 = vld [vmem:[#allocation12_spill] sm:$0xff]  ;;  %v10363_v47 = vadd.f32 %v15722_v39, %v15746_v55  ;;  %v17285_v36 = vld [vmem:[#allocation14_spill] sm:$0xff] }
 0x54d   :  { %v10624_v5 = vpop.f32.mrf.mxu1 }
 0x54e   :  { %v10992_v50 = vmax.f32 %v10928_v12, 0.0  ;;  %v10625_v35 = vadd.f32 %v10624_v5, %v10336_v52  ;;  %v10933_v28 = vadd.f32 %v10633_v37, %v17282_v25  ;;  %v17290_v25 = vld [vmem:[#allocation172_spill] sm:$0xff] }
 0x54f   :  { %v12692_v42 = vpop.f32.mrf.mxu1 }
 0x550   :  { %v11055_v58 = vadd.f32 %v10992_v50, %v10991_v2  ;;  %v10931_v17 = vadd.f32 %v10625_v35, %v17281_v62  ;;  %v10636_v18 = vadd.f32 %v12692_v42, %v10347_v0  ;;  %v10997_v8 = vmax.f32 %v10933_v28, 0.0  ;;  %v17287_v62 = vld [vmem:[#allocation16_spill] sm:$0xff]  ;;  %v17291_v28 = vld [vmem:[#allocation171_spill] sm:$0xff] }
 0x551   :  { %v10627_v20 = vpop.f32.mrf.mxu1 }
 0x552   :  { %v11056_v56 = vadd.f32 %v11055_v58, %v10993_v22  ;;  %v10628_v41 = vadd.f32 %v10627_v20, %v10339_v21  ;;  %v10995_v44 = vmax.f32 %v10931_v17, 0.0  ;;  %v10934_v51 = vadd.f32 %v10636_v18, %v17284_v23  ;;  %v17286_v58 = vld [vmem:[#allocation13_spill] sm:$0xff] }
 0x553   :  { %v10368_v22 = vadd.f32 %v15744_v3, %v15762_v45  ;;  %v11181_v3 = vld [vmem:[%s16845_s5 + $0x170] sm:$0xff]  ;;  %v11135_v45 = vld [vmem:[%s16845_s5] sm:$0xff] }
 0x554   :  { %v12695_v59 = vpop.f32.mrf.mxu1  ;;  %v11057_v38 = vadd.f32 %v11056_v56, %v10994_v31  ;;  %v10932_v16 = vadd.f32 %v10628_v41, %v17283_v30  ;;  %v10998_v24 = vmax.f32 %v10934_v51, 0.0  ;;  %v17288_v31 = vld [vmem:[#allocation15_spill] sm:$0xff]  ;;  %v17292_v51 = vld [vmem:[#allocation18_spill] sm:$0xff] }
 0x555   :  { %v10649_v9 = vadd.f32 %v12695_v59, %v10360_v46  ;;  %v11177_v59 = vld [vmem:[%s16845_s5 + $0x150] sm:$0xff] }
 0x556   :  { %v10640_v60 = vpop.f32.mrf.mxu1  ;;  %v11058_v29 = vadd.f32 %v11057_v38, %v10995_v44  ;;  %v10996_v12 = vmax.f32 %v10932_v16, 0.0  ;;  %v10371_v44 = vadd.f32 %v17291_v28, %v17290_v25  ;;  %v12425_v38 = vcombine.low %v11177_v59, %v11181_v3  ;;  %v11139_v16 = vld [vmem:[%s16845_s5 + $0x20] sm:$0xff]  ;;  %v11169_v46 = vld [vmem:[%s16845_s5 + $0x110] sm:$0xff] }
 0x557   :  { %v10641_v52 = vadd.f32 %v10640_v60, %v10352_v43  ;;  %v10937_v39 = vadd.f32 %v10649_v9, %v17286_v58  ;;  %v12426_v30 = vcombine.high %v11177_v59, %v11181_v3  ;;  %v11173_v60 = vld [vmem:[%s16845_s5 + $0x130] sm:$0xff] }
 0x558   :  { %v12696_v5 = vpop.f32.mrf.mxu1  ;;  %v11059_v2 = vadd.f32 %v11058_v29, %v10996_v12  ;;  %v12418_v9 = vcombine.high %v11169_v46, %v11173_v60  ;;  %v11153_v58 = vld [vmem:[%s16845_s5 + $0x90] sm:$0xff] }
 0x559   :  { %v10935_v50 = vadd.f32 %v10641_v52, %v17285_v36  ;;  %v10652_v0 = vadd.f32 %v12696_v5, %v10363_v47  ;;  %v11001_v29 = vmax.f32 %v10937_v39, 0.0  ;;  %v11161_v52 = vld [vmem:[%s16845_s5 + $0xd0] sm:$0xff]  ;;  %11655 = vmatprep.subr.bf16.mxu1 %v12426_v30 }
 0x55a   :  { %v10643_v35 = vpop.f32.mrf.mxu1  ;;  %v11060_v57 = vadd.f32 %v11059_v2, %v10997_v8  ;;  %v11165_v47 = vld [vmem:[%s16845_s5 + $0xf0] sm:$0xff]  ;;  %v12381_v8 = vcombine.low %v11135_v45, %v11139_v16  ;;  %v12382_v2 = vcombine.high %v11135_v45, %v11139_v16  ;;  %11656 = vmatpush1.bf16.msra.mxu1 %v12425_v38 }
 0x55b   :  { %v10644_v42 = vadd.f32 %v10643_v35, %v10355_v6  ;;  %v10999_v55 = vmax.f32 %v10935_v50, 0.0  ;;  %v10938_v56 = vadd.f32 %v10652_v0, %v17288_v31  ;;  %v17293_v0 = vld [vmem:[#allocation79_spill] sm:$0xff]  ;;  %11657 = vmatprep.subr.bf16.mxu1 %v12418_v9  ;;  %v17295_v39 = vld [vmem:[#allocation17_spill] sm:$0xff]  ;;  %v16576_v31 = vld [vmem:[%s16845_s5 + $0x1e8] sm:$0xff]  ;;  %v12409_v38 = vcombine.low %v11161_v52, %v11165_v47 }
 0x55c   :  { %v11061_v37 = vadd.f32 %v11060_v57, %v10998_v24  ;;  %v12417_v24 = vcombine.low %v11169_v46, %v11173_v60  ;;  %11583 = vmatprep.subr.bf16.mxu0 %v12382_v2  ;;  %v17299_v59 = vld [vmem:[#allocation73_spill] sm:$0xff] }
 0x55d   :  { %v12699_v21 = vpop.f32.mrf.mxu1  ;;  %v10936_v53 = vadd.f32 %v10644_v42, %v17287_v62  ;;  %v11002_v36 = vmax.f32 %v10938_v56, 0.0  ;;  %v17294_v42 = vld [vmem:[#allocation174_spill] sm:$0xff]  ;;  %11584 = vmatpush1.bf16.msra.mxu0 %v12381_v8  ;;  %v17297_v56 = vld [vmem:[#allocation19_spill] sm:$0xff]  ;;  %v17302_v16 = vld [vmem:[#allocation81_spill] sm:$0xff] }
 0x55e   :  { %v11062_v20 = vadd.f32 %v11061_v37, %v10999_v55  ;;  %v10665_v23 = vadd.f32 %v12699_v21, %v10376_v40  ;;  %v10384_v21 = vadd.f32 %v17294_v42, %v17293_v0  ;;  %11658 = vmatpush1.bf16.msra.mxu1 %v12417_v24  ;;  %v17303_v46 = vld [vmem:[#allocation77_spill] sm:$0xff] }
 0x55f   :  { %v10656_v17 = vpop.f32.mrf.mxu1  ;;  %v11000_v18 = vmax.f32 %v10936_v53, 0.0  ;;  %v17296_v53 = vld [vmem:[#allocation20_spill] sm:$0xff]  ;;  %v10387_v60 = vadd.f32 %v17303_v46, %v17302_v16  ;;  %v17306_v42 = vld [vmem:[#allocation85_spill] sm:$0xff]  ;;  %v17314_v16 = vld [vmem:[#allocation78_spill] sm:$0xff] }
 0x560   :  { %v10657_v41 = vadd.f32 %v10656_v17, %v10368_v22  ;;  %v12410_v22 = vcombine.high %v11161_v52, %v11165_v47  ;;  %v10941_v55 = vadd.f32 %v10665_v23, %v17295_v39  ;;  %v11157_v17 = vld [vmem:[%s16845_s5 + $0xb0] sm:$0xff]  ;;  %v17315_v46 = vld [vmem:[#allocation75_spill] sm:$0xff] }
 0x561   :  { %v12700_v43 = vpop.f32.mrf.mxu1  ;;  %v11063_v33 = vadd.f32 %v11062_v20, %v11000_v18  ;;  %v16571_v20 = vld [vmem:[%s16845_s5 + $0x1c8] sm:$0xff]  ;;  %v11145_v52 = vld [vmem:[%s16845_s5 + $0x50] sm:$0xff]  ;;  %v12401_v9 = vcombine.low %v11153_v58, %v11157_v17 }
 0x562   :  { %v10939_v12 = vadd.f32 %v10657_v41, %v17292_v51  ;;  %v10668_v5 = vadd.f32 %v12700_v43, %v10379_v19  ;;  %v17298_v41 = vld [vmem:[#allocation74_spill] sm:$0xff]  ;;  %v17301_v19 = vld [vmem:[#allocation83_spill] sm:$0xff]  ;;  %11659 = vmatprep.subr.bf16.mxu1 %v12410_v22  ;;  %v12440_v23 = vcombine.high %v16571_v20, %v16576_v31  ;;  %v11005_v51 = vmax.f32 %v10941_v55, 0.0  ;;  %v11149_v47 = vld [vmem:[%s16845_s5 + $0x70] sm:$0xff] }
 0x563   :  { %v10659_v6 = vpop.f32.mrf.mxu1  ;;  %v11064_v50 = vadd.f32 %v11063_v33, %v11001_v29  ;;  %v10392_v3 = vadd.f32 %v17299_v59, %v17298_v41  ;;  %v10395_v43 = vadd.f32 %v17301_v19, %v17300_v61  ;;  %v12402_v29 = vcombine.high %v11153_v58, %v11157_v17  ;;  %11660 = vmatpush1.bf16.msra.mxu1 %v12409_v38  ;;  %v17307_v39 = vld [vmem:[#allocation21_spill] sm:$0xff]  ;;  %v17311_v61 = vld [vmem:[#allocation23_spill] sm:$0xff] }
 0x564   :  { %v10660_v35 = vadd.f32 %v10659_v6, %v10371_v44  ;;  %v11003_v37 = vmax.f32 %v10939_v12, 0.0  ;;  %v10942_v18 = vadd.f32 %v10668_v5, %v17297_v56  ;;  %v12439_v33 = vcombine.low %v16571_v20, %v16576_v31  ;;  %v17304_v6 = vld [vmem:[#allocation22_spill] sm:$0xff]  ;;  %11610 = vmatprep.subr.bf16.mxu0 %v12440_v23  ;;  %v11137_v58 = vld [vmem:[%s16845_s5 + $0x10] sm:$0xff]  ;;  %v17309_v56 = vld [vmem:[#allocation92_spill] sm:$0xff] }
 0x565   :  { %v11065_v62 = vadd.f32 %v11064_v50, %v11002_v36  ;;  %11661 = vmatprep.subr.bf16.mxu1 %v12402_v29  ;;  %v12394_v22 = vcombine.high %v11145_v52, %v11149_v47  ;;  %v11141_v17 = vld [vmem:[%s16845_s5 + $0x30] sm:$0xff]  ;;  %v11160_v20 = vld [vmem:[%s16845_s5 + $0xc8] sm:$0xff] }
 0x566   :  { %v10940_v40 = vadd.f32 %v10660_v35, %v17296_v53  ;;  %v11006_v36 = vmax.f32 %v10942_v18, 0.0  ;;  %v17308_v53 = vld [vmem:[#allocation24_spill] sm:$0xff]  ;;  %v12386_v29 = vcombine.high %v11137_v58, %v11141_v17 }
 0x567   :  { %v12703_v57 = vpop.f32.mrf.mxu1  ;;  %v11066_v25 = vadd.f32 %v11065_v62, %v11003_v37  ;;  %v17310_v18 = vld [vmem:[#allocation76_spill] sm:$0xff]  ;;  %11662 = vmatpush1.bf16.msra.mxu1 %v12401_v9 }
 0x568   :  { %v11004_v28 = vmax.f32 %v10940_v40, 0.0  ;;  %v10681_v5 = vadd.f32 %v12703_v57, %v10392_v3  ;;  %v17305_v57 = vld [vmem:[#allocation90_spill] sm:$0xff]  ;;  %v10408_v41 = vadd.f32 %v17310_v18, %v17309_v56  ;;  %v12393_v3 = vcombine.low %v11145_v52, %v11149_v47  ;;  %11663 = vmatprep.subr.bf16.mxu1 %v12394_v22  ;;  %v11164_v31 = vld [vmem:[%s16845_s5 + $0xe8] sm:$0xff] }
 0x569   :  { %v10672_v45 = vpop.f32.mrf.mxu1  ;;  %v12385_v52 = vcombine.low %v11137_v58, %v11141_v17  ;;  %v17323_v17 = vld [vmem:[#allocation27_spill] sm:$0xff] }
 0x56a   :  { %v10673_v44 = vadd.f32 %v10672_v45, %v10384_v21  ;;  %v11067_v12 = vadd.f32 %v11066_v25, %v11004_v28  ;;  %v10400_v21 = vadd.f32 %v17306_v42, %v17305_v57  ;;  %v10945_v55 = vadd.f32 %v10681_v5, %v17307_v39  ;;  %v17312_v28 = vld [vmem:[#allocation84_spill] sm:$0xff]  ;;  %v17316_v5 = vld [vmem:[#allocation26_spill] sm:$0xff]  ;;  %v17319_v42 = vld [vmem:[#allocation25_spill] sm:$0xff] }
 0x56b   :  { %v12704_v30 = vpop.f32.mrf.mxu1  ;;  %11664 = vmatpush1.bf16.msra.mxu1 %v12393_v3  ;;  %v17325_v3 = vld [vmem:[#allocation94_spill] sm:$0xff] }
 0x56c   :  { %v10943_v8 = vadd.f32 %v10673_v44, %v17304_v6  ;;  %v11068_v50 = vadd.f32 %v11067_v12, %v11005_v51  ;;  %v10684_v35 = vadd.f32 %v12704_v30, %v10395_v43  ;;  %v17313_v44 = vld [vmem:[#allocation80_spill] sm:$0xff]  ;;  %v11009_v23 = vmax.f32 %v10945_v55, 0.0  ;;  %11665 = vmatprep.subr.bf16.mxu1 %v12386_v29 }
 0x56d   :  { %v10675_v2 = vpop.f32.mrf.mxu1  ;;  %v10411_v38 = vadd.f32 %v17313_v44, %v17312_v28  ;;  %v17320_v55 = vld [vmem:[#allocation28_spill] sm:$0xff] }
 0x56e   :  { %v10676_v24 = vadd.f32 %v10675_v2, %v10387_v60  ;;  %v11007_v37 = vmax.f32 %v10943_v8, 0.0  ;;  %v11069_v62 = vadd.f32 %v11068_v50, %v11006_v36  ;;  %v10946_v19 = vadd.f32 %v10684_v35, %v17311_v61  ;;  %v17317_v35 = vld [vmem:[#allocation87_spill] sm:$0xff] }
 0x56f   :  { %v10403_v60 = vadd.f32 %v17315_v46, %v17314_v16  ;;  %11666 = vmatpush1.bf16.msra.mxu1 %v12385_v52  ;;  %v17331_v52 = vld [vmem:[#allocation29_spill] sm:$0xff] }
 0x570   :  { %v10944_v40 = vadd.f32 %v10676_v24, %v17308_v53  ;;  %v11070_v45 = vadd.f32 %v11069_v62, %v11007_v37  ;;  %v11010_v47 = vmax.f32 %v10946_v19, 0.0  ;;  %v17318_v24 = vld [vmem:[#allocation82_spill] sm:$0xff]  ;;  %v17321_v37 = vld [vmem:[#allocation89_spill] sm:$0xff]  ;;  %v17326_v19 = vld [vmem:[#allocation88_spill] sm:$0xff] }
 0x571   :  { %v12707_v0 = vpop.f32.mrf.mxu1  ;;  %v10416_v57 = vadd.f32 %v17318_v24, %v17317_v35  ;;  %v17322_v62 = vld [vmem:[#allocation93_spill] sm:$0xff] }
 0x572   :  { %v11008_v43 = vmax.f32 %v10944_v40, 0.0  ;;  %v10697_v12 = vadd.f32 %v12707_v0, %v10408_v41  ;;  %v10424_v53 = vadd.f32 %v17322_v62, %v17321_v37  ;;  %v17333_v24 = vld [vmem:[#allocation101_spill] sm:$0xff]  ;;  %v17337_v62 = vld [vmem:[#allocation99_spill] sm:$0xff] }
 0x573   :  { %v10688_v59 = vpop.f32.mrf.mxu1  ;;  %v17336_v37 = vld [vmem:[#allocation97_spill] sm:$0xff] }
 0x574   :  { %v10689_v25 = vadd.f32 %v10688_v59, %v10400_v21  ;;  %v11071_v51 = vadd.f32 %v11070_v45, %v11008_v43  ;;  %v10949_v21 = vadd.f32 %v10697_v12, %v17319_v42  ;;  %v17324_v59 = vld [vmem:[#allocation91_spill] sm:$0xff] }
 0x575   :  { %v12708_v30 = vpop.f32.mrf.mxu1  ;;  %v10427_v45 = vadd.f32 %v17325_v3, %v17324_v59  ;;  %v17327_v43 = vld [vmem:[#allocation175_spill] sm:$0xff]  ;;  %v17340_v3 = vld [vmem:[#allocation34_spill] sm:$0xff] }
 0x576   :  { %v10947_v6 = vadd.f32 %v10689_v25, %v17316_v5  ;;  %v11072_v2 = vadd.f32 %v11071_v51, %v11009_v23  ;;  %v10700_v36 = vadd.f32 %v12708_v30, %v10411_v38  ;;  %v10419_v25 = vadd.f32 %v17327_v43, %v17326_v19  ;;  %v17328_v30 = vld [vmem:[#allocation30_spill] sm:$0xff] }
 0x577   :  { %v10691_v8 = vpop.f32.mrf.mxu1  ;;  %v11013_v28 = vmax.f32 %v10949_v21, 0.0  ;;  %v17329_v5 = vld [vmem:[#allocation98_spill] sm:$0xff] }
 0x578   :  { %v10692_v9 = vadd.f32 %v10691_v8, %v10403_v60  ;;  %v11011_v22 = vmax.f32 %v10947_v6, 0.0  ;;  %v11073_v39 = vadd.f32 %v11072_v2, %v11010_v47  ;;  %v10950_v56 = vadd.f32 %v10700_v36, %v17323_v17  ;;  %v17330_v6 = vld [vmem:[#allocation176_spill] sm:$0xff]  ;;  %v17339_v17 = vld [vmem:[#allocation95_spill] sm:$0xff] }
 0x579   :  { %v10432_v8 = vadd.f32 %v17330_v6, %v17329_v5  ;;  %v17345_v6 = vld [vmem:[#allocation105_spill] sm:$0xff] }
 0x57a   :  { %v12711_v50 = vpop.f32.mrf.mxu1  ;;  %v10948_v0 = vadd.f32 %v10692_v9, %v17320_v55  ;;  %v11074_v58 = vadd.f32 %v11073_v39, %v11011_v22  ;;  %v11014_v60 = vmax.f32 %v10950_v56, 0.0  ;;  %v17332_v9 = vld [vmem:[#allocation32_spill] sm:$0xff]  ;;  %v17335_v22 = vld [vmem:[#allocation31_spill] sm:$0xff] }
 0x57b   :  { %v10713_v38 = vadd.f32 %v12711_v50, %v10424_v53  ;;  %v10443_v53 = vadd.f32 %v17337_v62, %v17336_v37  ;;  %v17352_v62 = vld [vmem:[#allocation38_spill] sm:$0xff] }
 0x57c   :  { %v10704_v40 = vpop.f32.mrf.mxu1  ;;  %v11012_v18 = vmax.f32 %v10948_v0, 0.0 }
 0x57d   :  { %v10705_v41 = vadd.f32 %v10704_v40, %v10416_v57  ;;  %v10953_v47 = vadd.f32 %v10713_v38, %v17331_v52  ;;  %v17334_v57 = vld [vmem:[#allocation96_spill] sm:$0xff]  ;;  %v17341_v38 = vld [vmem:[#allocation106_spill] sm:$0xff] }
 0x57e   :  { %v12712_v61 = vpop.f32.mrf.mxu1  ;;  %v11075_v44 = vadd.f32 %v11074_v58, %v11012_v18  ;;  %v10440_v50 = vadd.f32 %v17334_v57, %v17333_v24  ;;  %v17338_v58 = vld [vmem:[#allocation100_spill] sm:$0xff]  ;;  %v17348_v24 = vld [vmem:[#allocation107_spill] sm:$0xff]  ;;  %v17349_v57 = vld [vmem:[#allocation109_spill] sm:$0xff] }
 0x57f   :  { %v10951_v16 = vadd.f32 %v10705_v41, %v17328_v30  ;;  %v10716_v23 = vadd.f32 %v12712_v61, %v10427_v45  ;;  %v10435_v56 = vadd.f32 %v17339_v17, %v17338_v58  ;;  %v11017_v18 = vmax.f32 %v10953_v47, 0.0  ;;  %v17342_v30 = vld [vmem:[#allocation104_spill] sm:$0xff] }
 0x580   :  { %v10707_v46 = vpop.f32.mrf.mxu1  ;;  %v11076_v29 = vadd.f32 %v11075_v44, %v11013_v28 }
 0x581   :  { %v10708_v51 = vadd.f32 %v10707_v46, %v10419_v25  ;;  %v11015_v2 = vmax.f32 %v10951_v16, 0.0  ;;  %v10954_v39 = vadd.f32 %v10716_v23, %v17335_v22  ;;  %v10448_v16 = vadd.f32 %v17342_v30, %v17341_v38  ;;  %v17343_v46 = vld [vmem:[#allocation33_spill] sm:$0xff]  ;;  %v17358_v30 = vld [vmem:[#allocation116_spill] sm:$0xff] }
 0x582   :  { %v11077_v36 = vadd.f32 %v11076_v29, %v11014_v60  ;;  %v17357_v38 = vld [vmem:[#allocation113_spill] sm:$0xff] }
 0x583   :  { %v12715_v12 = vpop.f32.mrf.mxu1  ;;  %v10952_v35 = vadd.f32 %v10708_v51, %v17332_v9  ;;  %v11018_v19 = vmax.f32 %v10954_v39, 0.0  ;;  %v17344_v51 = vld [vmem:[#allocation36_spill] sm:$0xff] }
 0x584   :  { %v11078_v21 = vadd.f32 %v11077_v36, %v11015_v2  ;;  %v10729_v59 = vadd.f32 %v12715_v12, %v10440_v50  ;;  %v17347_v2 = vld [vmem:[#allocation35_spill] sm:$0xff]  ;;  %v10459_v50 = vadd.f32 %v17349_v57, %v17348_v24 }
 0x585   :  { %v10720_v42 = vpop.f32.mrf.mxu1  ;;  %v11016_v55 = vmax.f32 %v10952_v35, 0.0 }
 0x586   :  { %v10721_v0 = vadd.f32 %v10720_v42, %v10432_v8  ;;  %v10957_v60 = vadd.f32 %v10729_v59, %v17343_v46  ;;  %v17346_v8 = vld [vmem:[#allocation108_spill] sm:$0xff] }
 0x587   :  { %v12716_v40 = vpop.f32.mrf.mxu1  ;;  %v11079_v41 = vadd.f32 %v11078_v21, %v11016_v55  ;;  %v10456_v12 = vadd.f32 %v17346_v8, %v17345_v6  ;;  %v17350_v55 = vld [vmem:[#allocation103_spill] sm:$0xff] }
 0x588   :  { %v10955_v45 = vadd.f32 %v10721_v0, %v17340_v3  ;;  %v10732_v25 = vadd.f32 %v12716_v40, %v10443_v53  ;;  %v11021_v21 = vmax.f32 %v10957_v60, 0.0  ;;  %v17351_v0 = vld [vmem:[#allocation102_spill] sm:$0xff]  ;;  %v17353_v3 = vld [vmem:[#allocation37_spill] sm:$0xff]  ;;  %v17360_v8 = vld [vmem:[#allocation115_spill] sm:$0xff] }
 0x589   :  { %v10723_v61 = vpop.f32.mrf.mxu1  ;;  %v11080_v43 = vadd.f32 %v11079_v41, %v11017_v18  ;;  %v10451_v37 = vadd.f32 %v17351_v0, %v17350_v55 }
 0x58a   :  { %v10724_v28 = vadd.f32 %v10723_v61, %v10435_v56  ;;  %v11019_v29 = vmax.f32 %v10955_v45, 0.0  ;;  %v10958_v36 = vadd.f32 %v10732_v25, %v17347_v2  ;;  %v17354_v61 = vld [vmem:[#allocation40_spill] sm:$0xff]  ;;  %v17362_v2 = vld [vmem:[#allocation111_spill] sm:$0xff] }
 0x58b   :  { %v12719_v44 = vpop.f32.mrf.mxu1  ;;  %v11081_v23 = vadd.f32 %v11080_v43, %v11018_v19  ;;  %v17355_v43 = vld [vmem:[#allocation110_spill] sm:$0xff]  ;;  %v17356_v25 = vld [vmem:[#allocation112_spill] sm:$0xff] }
 0x58c   :  { %v10956_v5 = vadd.f32 %v10724_v28, %v17344_v51  ;;  %v10745_v39 = vadd.f32 %v12719_v44, %v10456_v12  ;;  %v11022_v58 = vmax.f32 %v10958_v36, 0.0  ;;  %v10464_v28 = vadd.f32 %v17356_v25, %v17355_v43  ;;  %v17361_v12 = vld [vmem:[#allocation117_spill] sm:$0xff]  ;;  %v17363_v36 = vld [vmem:[#allocation114_spill] sm:$0xff] }
 0x58d   :  { %v10736_v52 = vpop.f32.mrf.mxu1  ;;  %v11082_v47 = vadd.f32 %v11081_v23, %v11019_v29  ;;  %v17359_v29 = vld [vmem:[#allocation39_spill] sm:$0xff] }
 0x58e   :  { %v11020_v9 = vmax.f32 %v10956_v5, 0.0  ;;  %v10737_v35 = vadd.f32 %v10736_v52, %v10448_v16  ;;  %v10961_v45 = vadd.f32 %v10745_v39, %v17353_v3  ;;  %v10472_v16 = vadd.f32 %v17358_v30, %v17357_v38  ;;  %v17367_v3 = vld [vmem:[#allocation43_spill] sm:$0xff]  ;;  %v17370_v38 = vld [vmem:[#allocation121_spill] sm:$0xff]  ;;  %v17371_v30 = vld [vmem:[#allocation124_spill] sm:$0xff] }
 0x58f   :  { %v12720_v42 = vpop.f32.mrf.mxu1  ;;  %v10475_v52 = vadd.f32 %v17361_v12, %v17360_v8 }
 0x590   :  { %v11083_v22 = vadd.f32 %v11082_v47, %v11020_v9  ;;  %v10959_v53 = vadd.f32 %v10737_v35, %v17352_v62  ;;  %v10748_v56 = vadd.f32 %v12720_v42, %v10459_v50  ;;  %v10467_v9 = vadd.f32 %v17363_v36, %v17362_v2  ;;  %v17364_v50 = vld [vmem:[#allocation42_spill] sm:$0xff]  ;;  %v17365_v62 = vld [vmem:[#allocation41_spill] sm:$0xff] }
 0x591   :  { %v10739_v40 = vpop.f32.mrf.mxu1  ;;  %v11025_v24 = vmax.f32 %v10961_v45, 0.0  ;;  %v17368_v45 = vld [vmem:[#allocation118_spill] sm:$0xff] }
 0x592   :  { %v11084_v17 = vadd.f32 %v11083_v22, %v11021_v21  ;;  %v10740_v18 = vadd.f32 %v10739_v40, %v10451_v37  ;;  %v11023_v44 = vmax.f32 %v10959_v53, 0.0  ;;  %v10962_v23 = vadd.f32 %v10748_v56, %v17359_v29  ;;  %v17373_v29 = vld [vmem:[#allocation125_spill] sm:$0xff] }
 0x593   :  { %v12723_v41 = vpop.f32.mrf.mxu1 }
 0x594   :  { %v11085_v59 = vadd.f32 %v11084_v17, %v11022_v58  ;;  %v10960_v19 = vadd.f32 %v10740_v18, %v17354_v61  ;;  %v10761_v6 = vadd.f32 %v12723_v41, %v10472_v16  ;;  %v11026_v55 = vmax.f32 %v10962_v23, 0.0  ;;  %v17366_v18 = vld [vmem:[#allocation44_spill] sm:$0xff] }
 0x595   :  { %v10752_v46 = vpop.f32.mrf.mxu1  ;;  %v17369_v61 = vld [vmem:[#allocation120_spill] sm:$0xff]  ;;  %v10488_v16 = vadd.f32 %v17371_v30, %v17370_v38 }
 0x596   :  { %v11086_v60 = vrot.slane %v11085_v59, 4  ;;  %v11024_v51 = vmax.f32 %v10960_v19, 0.0  ;;  %v10753_v5 = vadd.f32 %v10752_v46, %v10464_v28  ;;  %v10965_v53 = vadd.f32 %v10761_v6, %v17365_v62  ;;  %v17375_v6 = vld [vmem:[#allocation122_spill] sm:$0xff]  ;;  %v17384_v38 = vld [vmem:[#allocation132_spill] sm:$0xff] }
 0x597   :  { %v12724_v47 = vpop.f32.mrf.mxu1  ;;  %v10480_v19 = vadd.f32 %v17369_v61, %v17368_v45 }
 0x598   :  { %v11087_v35 = vadd.f32 %v11086_v60, %v11085_v59  ;;  %v11092_v57 = vadd.f32 %v11024_v51, %v11023_v44  ;;  %v10963_v42 = vadd.f32 %v10753_v5, %v17364_v50  ;;  %v10764_v21 = vadd.f32 %v12724_v47, %v10475_v52  ;;  %v17372_v60 = vld [vmem:[#allocation123_spill] sm:$0xff] }
 0x599   :  { %v10755_v22 = vpop.f32.mrf.mxu1  ;;  %v10491_v23 = vadd.f32 %v17373_v29, %v17372_v60  ;;  %v17374_v5 = vld [vmem:[#allocation119_spill] sm:$0xff]  ;;  %v11029_v52 = vmax.f32 %v10965_v53, 0.0 }
 0x59a   :  { %v11088_v39 = vrot.slane %v11087_v35, 2  ;;  %v11093_v0 = vadd.f32 %v11092_v57, %v11025_v24  ;;  %v10756_v37 = vadd.f32 %v10755_v22, %v10467_v9  ;;  %v11027_v17 = vmax.f32 %v10963_v42, 0.0  ;;  %v17376_v9 = vld [vmem:[#allocation46_spill] sm:$0xff] }
 0x59b   :  { %v12727_v40 = vpop.f32.mrf.mxu1  ;;  %v10966_v59 = vadd.f32 %v10764_v21, %v17367_v3  ;;  %v10483_v8 = vadd.f32 %v17375_v6, %v17374_v5 }
 0x59c   :  { %v11089_v58 = vadd.f32 %v11088_v39, %v11087_v35  ;;  %v11094_v56 = vadd.f32 %v11093_v0, %v11026_v55  ;;  %v10964_v41 = vadd.f32 %v10756_v37, %v17366_v18  ;;  %v10777_v2 = vadd.f32 %v12727_v40, %v10488_v16  ;;  %v17377_v39 = vld [vmem:[#allocation126_spill] sm:$0xff]  ;;  %v17378_v55 = vld [vmem:[#allocation129_spill] sm:$0xff]  ;;  %v17385_v16 = vld [vmem:[#allocation52_spill] sm:$0xff] }
 0x59d   :  { %v10768_v43 = vpop.f32.mrf.mxu1  ;;  %v11030_v36 = vmax.f32 %v10966_v59, 0.0  ;;  %v10496_v0 = vadd.f32 %v17378_v55, %v17377_v39  ;;  %v17379_v37 = vld [vmem:[#allocation45_spill] sm:$0xff] }
 0x59e   :  { %v11090_v25 = vrot.slane %v11089_v58, 1  ;;  %v11095_v28 = vadd.f32 %v11094_v56, %v11027_v17  ;;  %v11028_v44 = vmax.f32 %v10964_v41, 0.0  ;;  %v10769_v46 = vadd.f32 %v10768_v43, %v10480_v19  ;;  %v17381_v41 = vld [vmem:[#allocation47_spill] sm:$0xff] }
 0x59f   :  { %v12728_v51 = vpop.f32.mrf.mxu1  ;;  %v10969_v62 = vadd.f32 %v10777_v2, %v17379_v37  ;;  %v17382_v19 = vld [vmem:[#allocation127_spill] sm:$0xff] }
 0x5a0   :  { %v11091_v12 = vadd.f32 %v11090_v25, %v11089_v58  ;;  %v11096_v47 = vadd.f32 %v11095_v28, %v11028_v44  ;;  %v10967_v35 = vadd.f32 %v10769_v46, %v17376_v9  ;;  %v10780_v42 = vadd.f32 %v12728_v51, %v10491_v23  ;;  %v17380_v58 = vld [vmem:[#allocation48_spill] sm:$0xff]  ;;  %v17383_v43 = vld [vmem:[#allocation131_spill] sm:$0xff]  ;;  %v17386_v51 = vld [vmem:[#allocation134_spill] sm:$0xff] }
 0x5a1   :  { %v10771_v24 = vpop.f32.mrf.mxu1  ;;  %v10499_v25 = vadd.f32 %v17383_v43, %v17382_v19  ;;  %v11033_v28 = vmax.f32 %v10969_v62, 0.0  ;;  %v17390_v62 = vld [vmem:[#allocation56_spill] sm:$0xff] }
 0x5a2   :  { %v16674_v57 = vmul.f32 0.00390625, %v11091_v12  ;;  %v11097_v50 = vadd.f32 %v11096_v47, %v11029_v52  ;;  %v10772_v21 = vadd.f32 %v10771_v24, %v10483_v8  ;;  %v11031_v53 = vmax.f32 %v10967_v35, 0.0  ;;  %v17387_v12 = vld [vmem:[#allocation50_spill] sm:$0xff] }
 0x5a3   :  { %v12731_v22 = vpop.f32.mrf.mxu1  ;;  %v10970_v3 = vadd.f32 %v10780_v42, %v17381_v41 }
 0x5a4   :  { %11131 = vst [vmem:[%s16846_s7] sm:$0x1] %v16674_v57  ;;  %v11098_v40 = vadd.f32 %v11097_v50, %v11030_v36  ;;  %v10968_v17 = vadd.f32 %v10772_v21, %v17380_v58  ;;  %v10793_v30 = vadd.f32 %v12731_v22, %v17384_v38  ;;  %v17388_v36 = vld [vmem:[#allocation54_spill] sm:$0xff]  ;;  %v17389_v50 = vld [vmem:[#allocation53_spill] sm:$0xff] }
 0x5a5   :  { %v10784_v56 = vpop.f32.mrf.mxu1  ;;  %v11034_v29 = vmax.f32 %v10970_v3, 0.0  ;;  %v17391_v3 = vld [vmem:[#allocation55_spill] sm:$0xff] }
 0x5a6   :  { %v11099_v18 = vadd.f32 %v11098_v40, %v11031_v53  ;;  %v11032_v59 = vmax.f32 %v10968_v17, 0.0  ;;  %v10785_v45 = vadd.f32 %v10784_v56, %v10496_v0  ;;  %v10973_v52 = vadd.f32 %v10793_v30, %v17387_v12  ;;  %v17395_v12 = vld [vmem:[#allocation61_spill] sm:$0xff] }
 0x5a7   :  { %v12732_v61 = vpop.f32.mrf.mxu1 }
 0x5a8   :  { %v11100_v44 = vadd.f32 %v11099_v18, %v11032_v59  ;;  %v10971_v46 = vadd.f32 %v10785_v45, %v17385_v16  ;;  %v10796_v5 = vadd.f32 %v12732_v61, %v17386_v51  ;;  %v11037_v55 = vmax.f32 %v10973_v52, 0.0 }
 0x5a9   :  { %v10787_v60 = vpop.f32.mrf.mxu1 }
 0x5aa   :  { %v11101_v23 = vadd.f32 %v11100_v44, %v11033_v28  ;;  %v10788_v6 = vadd.f32 %v10787_v60, %v10499_v25  ;;  %v11035_v47 = vmax.f32 %v10971_v46, 0.0  ;;  %v10974_v42 = vadd.f32 %v10796_v5, %v17389_v50  ;;  %v17393_v28 = vld [vmem:[#allocation57_spill] sm:$0xff] }
 0x5ab   :  { %v12735_v8 = vpop.f32.mrf.mxu1 }
 0x5ac   :  { %v11102_v2 = vadd.f32 %v11101_v23, %v11034_v29  ;;  %v10972_v9 = vadd.f32 %v10788_v6, %v17388_v36  ;;  %v10809_v37 = vadd.f32 %v12735_v8, %v16411_v4  ;;  %v11038_v58 = vmax.f32 %v10974_v42, 0.0 }
 0x5ad   :  { %v10800_v35 = vpop.f32.mrf.mxu1 }
 0x5ae   :  { %v11103_v24 = vadd.f32 %v11102_v2, %v11035_v47  ;;  %v11036_v21 = vmax.f32 %v10972_v9, 0.0  ;;  %v10801_v22 = vadd.f32 %v10800_v35, %v16415_v49  ;;  %v10977_v59 = vadd.f32 %v10809_v37, %v17391_v3  ;;  %v17392_v49 = vld [vmem:[#allocation59_spill] sm:$0xff] }
 0x5af   :  { %v12736_v39 = vpop.f32.mrf.mxu1 }
 0x5b0   :  { %v11104_v0 = vadd.f32 %v11103_v24, %v11036_v21  ;;  %v10975_v53 = vadd.f32 %v10801_v22, %v17390_v62  ;;  %v10812_v56 = vadd.f32 %v12736_v39, %v16425_v54  ;;  %v11041_v16 = vmax.f32 %v10977_v59, 0.0  ;;  %v17397_v24 = vld [vmem:[#allocation63_spill] sm:$0xff] }
 0x5b1   :  { %v10803_v40 = vpop.f32.mrf.mxu1 }
 0x5b2   :  { %v11105_v17 = vadd.f32 %v11104_v0, %v11037_v55  ;;  %v10804_v18 = vadd.f32 %v10803_v40, %v16429_v63  ;;  %v11039_v45 = vmax.f32 %v10975_v53, 0.0  ;;  %v10978_v4 = vadd.f32 %v10812_v56, %v17393_v28  ;;  %v17394_v63 = vld [vmem:[#allocation62_spill] sm:$0xff] }
 0x5b3   :  { %v12739_v41 = vpop.f32.mrf.mxu1 }
 0x5b4   :  { %v11106_v61 = vadd.f32 %v11105_v17, %v11038_v58  ;;  %v10976_v19 = vadd.f32 %v10804_v18, %v17392_v49  ;;  %v10825_v54 = vadd.f32 %v12739_v41, %v16436_v26  ;;  %v11042_v23 = vmax.f32 %v10978_v4, 0.0  ;;  %v17399_v17 = vld [vmem:[#allocation65_spill] sm:$0xff] }
 0x5b5   :  { %v10816_v43 = vpop.f32.mrf.mxu1 }
 0x5b6   :  { %v11107_v25 = vadd.f32 %v11106_v61, %v11039_v45  ;;  %v11040_v44 = vmax.f32 %v10976_v19, 0.0  ;;  %v10817_v38 = vadd.f32 %v10816_v43, %v16440_v10  ;;  %v10981_v52 = vadd.f32 %v10825_v54, %v17395_v12  ;;  %v17396_v10 = vld [vmem:[#allocation64_spill] sm:$0xff]  ;;  %v17401_v61 = vld [vmem:[#allocation67_spill] sm:$0xff]  ;;  %v17403_v54 = vld [vmem:[#allocation69_spill] sm:$0xff] }
 0x5b7   :  { %v12740_v30 = vpop.f32.mrf.mxu1 }
 0x5b8   :  { %v11108_v46 = vadd.f32 %v11107_v25, %v11040_v44  ;;  %v10979_v60 = vadd.f32 %v10817_v38, %v17394_v63  ;;  %v10828_v5 = vadd.f32 %v12740_v30, %v16447_v7  ;;  %v11045_v22 = vmax.f32 %v10981_v52, 0.0 }
 0x5b9   :  { %v10819_v29 = vpop.f32.mrf.mxu1 }
 0x5ba   :  { %v11109_v51 = vadd.f32 %v11108_v46, %v11041_v16  ;;  %v10820_v6 = vadd.f32 %v10819_v29, %v16451_v14  ;;  %v11043_v47 = vmax.f32 %v10979_v60, 0.0  ;;  %v10982_v26 = vadd.f32 %v10828_v5, %v17397_v24  ;;  %v17398_v14 = vld [vmem:[#allocation66_spill] sm:$0xff]  ;;  %v17405_v5 = vld [vmem:[#allocation71_spill] sm:$0xff] }
 0x5bb   :  { %v12743_v8 = vpop.f32.mrf.mxu1  ;;  %v11133_v24 = vpack.c.bf16 %v16674_v57, %v16674_v57 }
 0x5bc   :  { %v11110_v2 = vadd.f32 %v11109_v51, %v11042_v23  ;;  %v10980_v36 = vadd.f32 %v10820_v6, %v17396_v10  ;;  %v10841_v7 = vadd.f32 %v12743_v8, %v16464_v11  ;;  %v11046_v37 = vmax.f32 %v10982_v26, 0.0  ;;  %v17404_v23 = vld [vmem:[#allocation72_spill] sm:$0xff] }
 0x5bd   :  { %v10832_v9 = vpop.f32.mrf.mxu1 }
 0x5be   :  { %v11111_v35 = vadd.f32 %v11110_v2, %v11043_v47  ;;  %v11044_v50 = vmax.f32 %v10980_v36, 0.0  ;;  %v10833_v42 = vadd.f32 %v10832_v9, %v16468_v15  ;;  %v10985_v56 = vadd.f32 %v10841_v7, %v17399_v17  ;;  %v17400_v15 = vld [vmem:[#allocation68_spill] sm:$0xff] }
 0x5bf   :  { %v12744_v21 = vpop.f32.mrf.mxu1 }
 0x5c0   :  { %v11112_v39 = vadd.f32 %v11111_v35, %v11044_v50  ;;  %v10983_v55 = vadd.f32 %v10833_v42, %v17398_v14  ;;  %v10844_v53 = vadd.f32 %v12744_v21, %v16474_v13  ;;  %v11049_v25 = vmax.f32 %v10985_v56, 0.0 }
 0x5c1   :  { %v10835_v0 = vpop.f32.mrf.mxu1  ;;  %v11243_v42 = vunpack.c.l.b16 %v11133_v24  ;;  %v11142_v24 = vld [vmem:[%s16845_s5 + $0x38] sm:$0xff] }
 0x5c2   :  { %v11113_v62 = vadd.f32 %v11112_v39, %v11045_v22  ;;  %v10836_v40 = vadd.f32 %v10835_v0, %v16478_v34  ;;  %v11047_v18 = vmax.f32 %v10983_v55, 0.0  ;;  %v10986_v11 = vadd.f32 %v10844_v53, %v17401_v61  ;;  %v17402_v34 = vld [vmem:[#allocation70_spill] sm:$0xff]  ;;  %v11184_v22 = vld [vmem:[%s16845_s5 + $0x188] sm:$0xff] }
 0x5c3   :  { %v12747_v58 = vpop.f32.mrf.mxu1  ;;  %v11188_v39 = vld [vmem:[%s16845_s5 + $0x1a8] sm:$0xff] }
 0x5c4   :  { %v11114_v41 = vadd.f32 %v11113_v62, %v11046_v37  ;;  %v10984_v3 = vadd.f32 %v10836_v40, %v17400_v15  ;;  %v10857_v13 = vadd.f32 %v12747_v58, %v16481_v1  ;;  %v11050_v38 = vmax.f32 %v10986_v11, 0.0  ;;  %v11176_v55 = vld [vmem:[%s16845_s5 + $0x148] sm:$0xff] }
 0x5c5   :  { %v10848_v59 = vpop.f32.mrf.mxu1  ;;  %v12432_v57 = vcombine.high %v11184_v22, %v11188_v39  ;;  %v11180_v0 = vld [vmem:[%s16845_s5 + $0x168] sm:$0xff]  ;;  %v12431_v37 = vcombine.low %v11184_v22, %v11188_v39  ;;  %v17406_v62 = vmov 0  }
 0x5c6   :  { %v11115_v45 = vadd.f32 %v11114_v41, %v11047_v18  ;;  %v11048_v49 = vmax.f32 %v10984_v3, 0.0  ;;  %v10849_v19 = vadd.f32 %v10848_v59, %v16484_v32  ;;  %v10989_v63 = vadd.f32 %v10857_v13, %v17403_v54  ;;  %v11168_v40 = vld [vmem:[%s16845_s5 + $0x108] sm:$0xff]  ;;  %v11194_v13 = vld [vmem:[%s16845_s5 + $0x1d8] sm:$0xff] }
 0x5c7   :  { %v12748_v43 = vpop.f32.mrf.mxu1  ;;  %v12424_v53 = vcombine.high %v11176_v55, %v11180_v0  ;;  %v11172_v58 = vld [vmem:[%s16845_s5 + $0x128] sm:$0xff]  ;;  %v12423_v17 = vcombine.low %v11176_v55, %v11180_v0  ;;  %v12408_v18 = vcombine.high %v11160_v20, %v11164_v31  ;;  %v12407_v3 = vcombine.low %v11160_v20, %v11164_v31  ;;  %v11178_v54 = vld [vmem:[%s16845_s5 + $0x158] sm:$0xff]  ;;  %v11199_v0 = vld [vmem:[%s16847_s6] sm:$0xff] }
 0x5c8   :  { %v11116_v28 = vadd.f32 %v11115_v45, %v11048_v49  ;;  %v10987_v4 = vadd.f32 %v10849_v19, %v17402_v34  ;;  %v10860_v16 = vadd.f32 %v12748_v43, %v16487_v27  ;;  %v11053_v1 = vmax.f32 %v10989_v63, 0.0  ;;  %v11152_v41 = vld [vmem:[%s16845_s5 + $0x88] sm:$0xff]  ;;  %v11198_v34 = vld [vmem:[%s16845_s5 + $0x1f8] sm:$0xff] }
 0x5c9   :  { %v10851_v44 = vpop.f32.mrf.mxu1  ;;  %v12416_v56 = vcombine.high %v11168_v40, %v11172_v58  ;;  %v11156_v15 = vld [vmem:[%s16845_s5 + $0xa8] sm:$0xff]  ;;  %v11182_v63 = vld [vmem:[%s16845_s5 + $0x178] sm:$0xff] }
 0x5ca   :  { %v11117_v30 = vadd.f32 %v11116_v28, %v11049_v25  ;;  %v10852_v46 = vadd.f32 %v10851_v44, %v16492_v48  ;;  %v11051_v60 = vmax.f32 %v10987_v4, 0.0  ;;  %v10990_v6 = vadd.f32 %v10860_v16, %v17405_v5  ;;  %v11144_v45 = vld [vmem:[%s16845_s5 + $0x48] sm:$0xff] }
 0x5cb   :  { %v12400_v59 = vcombine.high %v11152_v41, %v11156_v15  ;;  %v11148_v61 = vld [vmem:[%s16845_s5 + $0x68] sm:$0xff]  ;;  %v12399_v11 = vcombine.low %v11152_v41, %v11156_v15  ;;  %v12444_v44 = vcombine.high %v11194_v13, %v11198_v34  ;;  %v12443_v16 = vcombine.low %v11194_v13, %v11198_v34 }
 0x5cc   :  { %v11118_v29 = vadd.f32 %v11117_v30, %v11050_v38  ;;  %v10988_v32 = vadd.f32 %v10852_v46, %v17404_v23  ;;  %v11054_v52 = vmax.f32 %v10990_v6, 0.0  ;;  %v12392_v49 = vcombine.high %v11144_v45, %v11148_v61  ;;  %v11136_v19 = vld [vmem:[%s16845_s5 + $0x8] sm:$0xff]  ;;  %v11186_v38 = vld [vmem:[%s16845_s5 + $0x198] sm:$0xff] }
 0x5cd   :  { %v11140_v43 = vld [vmem:[%s16845_s5 + $0x28] sm:$0xff]  ;;  %v12391_v25 = vcombine.low %v11144_v45, %v11148_v61  ;;  %v11190_v30 = vld [vmem:[%s16845_s5 + $0x1b8] sm:$0xff]  ;;  %v13276_v34 = vmov 1966171168  }
 0x5ce   :  { %v11119_v51 = vadd.f32 %v11118_v29, %v11051_v60  ;;  %v11052_v8 = vmax.f32 %v10988_v32, 0.0  ;;  %v12384_v28 = vcombine.high %v11136_v19, %v11140_v43  ;;  %v12383_v4 = vcombine.low %v11136_v19, %v11140_v43  ;;  %v11170_v23 = vld [vmem:[%s16845_s5 + $0x118] sm:$0xff] }
 0x5cf   :  { %v12436_v46 = vcombine.high %v11186_v38, %v11190_v30  ;;  %v12435_v60 = vcombine.low %v11186_v38, %v11190_v30  ;;  %v12428_v29 = vcombine.high %v11178_v54, %v11182_v63  ;;  %v11174_v32 = vld [vmem:[%s16845_s5 + $0x138] sm:$0xff] }
 0x5d0   :  { %v11120_v12 = vadd.f32 %v11119_v51, %v11052_v8  ;;  %v12427_v51 = vcombine.low %v11178_v54, %v11182_v63  ;;  %v12420_v5 = vcombine.high %v11170_v23, %v11174_v32  ;;  %v11162_v6 = vld [vmem:[%s16845_s5 + $0xd8] sm:$0xff] }
 0x5d1   :  { %v11166_v8 = vld [vmem:[%s16845_s5 + $0xf8] sm:$0xff] }
 0x5d2   :  { %v11121_v47 = vadd.f32 %v11120_v12, %v11053_v1  ;;  %v12419_v1 = vcombine.low %v11170_v23, %v11174_v32  ;;  %v12412_v12 = vcombine.high %v11162_v6, %v11166_v8 }
 0x5d4   :  { %v11122_v2 = vadd.f32 %v11121_v47, %v11054_v52  ;;  %v11154_v52 = vld [vmem:[%s16845_s5 + $0x98] sm:$0xff] }
 0x5d5   :  { %v11158_v47 = vld [vmem:[%s16845_s5 + $0xb8] sm:$0xff] }
 0x5d6   :  { %v11123_v10 = vrot.slane %v11122_v2, 4 }
 0x5d8   :  { %v11124_v36 = vadd.f32 %v11123_v10, %v11122_v2  ;;  %v12411_v2 = vcombine.low %v11162_v6, %v11166_v8  ;;  %v12404_v10 = vcombine.high %v11154_v52, %v11158_v47 }
 0x5da   :  { %v11125_v27 = vrot.slane %v11124_v36, 2 }
 0x5dc   :  { %v11126_v9 = vadd.f32 %v11125_v27, %v11124_v36  ;;  %v11146_v36 = vld [vmem:[%s16845_s5 + $0x58] sm:$0xff] }
 0x5dd   :  { %v11150_v27 = vld [vmem:[%s16845_s5 + $0x78] sm:$0xff] }
 0x5de   :  { %v11127_v48 = vrot.slane %v11126_v9, 1 }
 0x5e0   :  { %v11128_v35 = vadd.f32 %v11127_v48, %v11126_v9  ;;  %v12403_v9 = vcombine.low %v11154_v52, %v11158_v47  ;;  %v12396_v48 = vcombine.high %v11146_v36, %v11150_v27 }
 0x5e2   :  { %v11130_v26 = vmul.f32 0.00390625, %v11128_v35  ;;  %v11138_v35 = vld [vmem:[%s16845_s5 + $0x18] sm:$0xff] }
 0x5e4   :  { %11132 = vst [vmem:[%s16846_s7 + $0x1] sm:$0x1] %v11130_v26  ;;  %v11134_v50 = vpack.c.bf16 %v11130_v26, %v11130_v26  ;;  %v12395_v26 = vcombine.low %v11146_v36, %v11150_v27 }
 0x5e6   :  { %v11244_v21 = vunpack.c.l.b16 %v11134_v50  ;;  %v12388_v50 = vcombine.high %v11138_v35, %v11142_v24 }
 0x5e8   :  { %v11246_v7 = vsel %vm11245_vm15, %v11244_v21, %v11243_v42  ;;  %v12387_v42 = vcombine.low %v11138_v35, %v11142_v24  ;;  %v11201_v21 = vlaneseq }
 0x5e9   :  { %v16736_v14 = vpack.c.b16 %v11246_v7, %v11246_v7 }
 0x5ea   :  { %v11202_v22 = vshrl.u32 %v11201_v21, 7 }
 0x5eb   :  { %11602 = vmatmul.mubr.bf16.vlgmr.msra.gmra.mxu0 %v16736_v14  ;;  %11684 = vmatmul.mubr.bf16.vlgmr.msra.gmra.mxu1 %v16736_v14 }
 0x5ec   :  { %11611 = vmatpush1.bf16.msra.mxu0 %v12439_v33  ;;  %11642 = vmatprep.mubr.bf16.mxu0 %v17406_v62  ;;  %v12415_v33 = vcombine.low %v11168_v40, %v11172_v58  ;;  %v11203_v39 = vsub.s32 0, %v11202_v22  ;;  %v11219_v7 = vsub.s32 4, %v11202_v22  ;;  %v11223_v55 = vsub.s32 5, %v11202_v22 }
 0x5ed   :  { %11612 = vmatprep.subr.bf16.mxu0 %v12432_v57  ;;  %v11207_v57 = vsub.s32 1, %v11202_v22  ;;  %v11227_v30 = vsub.s32 6, %v11202_v22 }
 0x5ee   :  { %v11224_v40 = vrot.slane %v11199_v0, %v11223_v55 }
 0x5f0   :  { %11613 = vmatpush1.bf16.msra.mxu0 %v12431_v37  ;;  %v11204_v37 = vrot.slane %v11199_v0, %v11203_v39 }
 0x5f1   :  { %11614 = vmatprep.subr.bf16.mxu0 %v12424_v53  ;;  %v11208_v53 = vrot.slane %v11199_v0, %v11207_v57 }
 0x5f4   :  { %11615 = vmatpush1.bf16.msra.mxu0 %v12423_v17 }
 0x5f5   :  { %11616 = vmatprep.subr.bf16.mxu0 %v12416_v56 }
 0x5f8   :  { %11617 = vmatpush1.bf16.msra.mxu0 %v12415_v33 }
 0x5f9   :  { %11618 = vmatprep.subr.bf16.mxu0 %v12408_v18 }
 0x5fc   :  { %11619 = vmatpush1.bf16.msra.mxu0 %v12407_v3 }
 0x5fd   :  { %11620 = vmatprep.subr.bf16.mxu0 %v12400_v59 }
 0x600   :  { %11621 = vmatpush1.bf16.msra.mxu0 %v12399_v11 }
 0x601   :  { %11622 = vmatprep.subr.bf16.mxu0 %v12392_v49 }
 0x604   :  { %11623 = vmatpush1.bf16.msra.mxu0 %v12391_v25  ;;  %v11215_v25 = vsub.s32 3, %v11202_v22 }
 0x605   :  { %11624 = vmatprep.subr.bf16.mxu0 %v12384_v28  ;;  %v11211_v28 = vsub.s32 2, %v11202_v22 }
 0x606   :  { %v11216_v13 = vrot.slane %v11199_v0, %v11215_v25 }
 0x608   :  { %11625 = vmatpush1.bf16.msra.mxu0 %v12383_v4  ;;  %v11746_v4 = vunpack.c.l.s4 %v13276_v34 }
 0x609   :  { %11692 = vmatprep.subr.bf16.mxu0 %v12444_v44  ;;  %v11212_v44 = vrot.slane %v11199_v0, %v11211_v28 }
 0x60b   :  { %11643 = vmatmul.mubr.bf16.vlgmr.msra.gmra.mxu0 %v16736_v14 }
 0x60c   :  { %11693 = vmatpush1.bf16.msra.mxu0 %v12443_v16  ;;  %11724 = vmatprep.mubr.bf16.mxu0 %v17406_v62  ;;  %v11220_v62 = vrot.slane %v11199_v0, %v11219_v7  ;;  %v11231_v16 = vsub.s32 7, %v11202_v22 }
 0x60d   :  { %11694 = vmatprep.subr.bf16.mxu0 %v12436_v46  ;;  %v11747_v46 = vunpack.c.0.s8 %v11746_v4 }
 0x60f   :  { %v11750_v32 = vsub.s32 %v11747_v46, %v11202_v22 }
 0x610   :  { %11695 = vmatpush1.bf16.msra.mxu0 %v12435_v60  ;;  %v11228_v60 = vrot.slane %v11199_v0, %v11227_v30 }
 0x611   :  { %11696 = vmatprep.subr.bf16.mxu0 %v12428_v29  ;;  %v11232_v29 = vrot.slane %v11199_v0, %v11231_v16 }
 0x614   :  { %11697 = vmatpush1.bf16.msra.mxu0 %v12427_v51 }
 0x615   :  { %11698 = vmatprep.subr.bf16.mxu0 %v12420_v5 }
 0x618   :  { %11699 = vmatpush1.bf16.msra.mxu0 %v12419_v1 }
 0x619   :  { %11700 = vmatprep.subr.bf16.mxu0 %v12412_v12 }
 0x61c   :  { %11701 = vmatpush1.bf16.msra.mxu0 %v12411_v2 }
 0x61d   :  { %11702 = vmatprep.subr.bf16.mxu0 %v12404_v10 }
 0x620   :  { %11703 = vmatpush1.bf16.msra.mxu0 %v12403_v9 }
 0x621   :  { %11704 = vmatprep.subr.bf16.mxu0 %v12396_v48 }
 0x624   :  { %11705 = vmatpush1.bf16.msra.mxu0 %v12395_v26 }
 0x625   :  { %11706 = vmatprep.subr.bf16.mxu0 %v12388_v50 }
 0x628   :  { %11707 = vmatpush1.bf16.msra.mxu0 %v12387_v42 }
 0x62b   :  { %11725 = vmatmul.mubr.bf16.vlgmr.msra.gmra.mxu0 %v16736_v14 }
 0x6ab   :  { %v11603_v58 = vpop.f32.mrf.mxu0  ;;  %v11685_v17 = vpop.f32.mrf.mxu1 }
 0x6ac   :  { %v11604_v31 = vadd.f32 %v11603_v58, %v11204_v37  ;;  %v11686_v14 = vadd.f32 %v11685_v17, %v11220_v62 }
 0x6ad   :  { %v11605_v56 = vpop.f32.mrf.mxu0  ;;  %v11687_v20 = vpop.f32.mrf.mxu1 }
 0x6ae   :  { %v11606_v33 = vadd.f32 %v11605_v56, %v11208_v53  ;;  %v11688_v18 = vadd.f32 %v11687_v20, %v11224_v40 }
 0x6af   :  { %v11607_v41 = vpop.f32.mrf.mxu0  ;;  %v11689_v15 = vpop.f32.mrf.mxu1 }
 0x6b0   :  { %v11741_v3 = vcombine.low %v11604_v31, %v11606_v33  ;;  %v11743_v59 = vcombine.low %v11686_v14, %v11688_v18 }
 0x6b1   :  { %v11608_v45 = vpop.f32.mrf.mxu0  ;;  %v11690_v61 = vpop.f32.mrf.mxu1 }
 0x6b2   :  { %v11751_v12 = vrot.slane %v11741_v3, %v11750_v32  ;;  %v11765_v2 = vrot.slane %v11743_v59, %v11750_v32 }
 0x6cb   :  { %v11644_v11 = vpop.f32.mrf.mxu0 }
 0x6cc   :  { %v11645_v54 = vadd.f32 %v11644_v11, %v11212_v44 }
 0x6cd   :  { %v11646_v49 = vpop.f32.mrf.mxu0 }
 0x6ce   :  { %v11647_v38 = vadd.f32 %v11646_v49, %v11216_v13 }
 0x6cf   :  { %v11648_v19 = vpop.f32.mrf.mxu0 }
 0x6d0   :  { %v11742_v63 = vcombine.low %v11645_v54, %v11647_v38 }
 0x6d1   :  { %v11649_v43 = vpop.f32.mrf.mxu0 }
 0x6d2   :  { %v11758_v5 = vrot.slane %v11742_v63, %v11750_v32 }
 0x6d4   :  { %v11773_v10 = vcombine.low %v11751_v12, %v11758_v5  ;;  %v11774_v36 = vcombine.high %v11751_v12, %v11758_v5 }
 0x6d6   :  { %v11783_v35 = vrot.slane %v11773_v10, %v11750_v32  ;;  %v11790_v24 = vrot.slane %v11774_v36, %v11750_v32 }
 0x6eb   :  { %v11726_v23 = vpop.f32.mrf.mxu0 }
 0x6ec   :  { %v11727_v6 = vadd.f32 %v11726_v23, %v11228_v60 }
 0x6ed   :  { %v11728_v51 = vpop.f32.mrf.mxu0 }
 0x6ee   :  { %v11729_v8 = vadd.f32 %v11728_v51, %v11232_v29 }
 0x6ef   :  { %v11730_v1 = vpop.f32.mrf.mxu0 }
 0x6f0   :  { %v11744_v52 = vcombine.low %v11727_v6, %v11729_v8 }
 0x6f1   :  { %v11731_v47 = vpop.f32.mrf.mxu0 }
 0x6f2   :  { %v11772_v27 = vrot.slane %v11744_v52, %v11750_v32 }
 0x6f4   :  { %v11775_v9 = vcombine.low %v11765_v2, %v11772_v27  ;;  %v11776_v48 = vcombine.high %v11765_v2, %v11772_v27 }
 0x6f6   :  { %v11797_v26 = vrot.slane %v11775_v9, %v11750_v32  ;;  %v11804_v50 = vrot.slane %v11776_v48, %v11750_v32 }
 0x6f8   :  { %v11805_v42 = vcombine.low %v11783_v35, %v11797_v26  ;;  %v11806_v21 = vcombine.low %v11790_v24, %v11804_v50 }
 0x6fa   :  { %11809 = vst [vmem:[%s16848_s8] sm:$0xff] %v11805_v42  ;;  %11810 = vst [vmem:[%s16848_s8 + $0x8] sm:$0xff] %v11806_v21 }

</bundles_post_ra>
